<compile_context>
chip_gen: v5e
topology: v5e:2x2
jax: 0.10.0
libtpu: 0.0.40
codegen_flags: <defaults>
</compile_context>

<pallas_src>
import functools

import jax
import jax.numpy as jnp
from jax.experimental import pallas as pl
from jax.experimental.pallas import tpu as pltpu


@functools.lru_cache(maxsize=None)
def _vmem_limit_bytes():
    """Generation-aware VMEM budget (v5e/v6e: ~100 MiB, v7x: ~51 MiB)."""
    try:
        cap = int(pltpu.get_tpu_info().vmem_capacity_bytes)
    except Exception:  # off-TPU / API drift -> conservative fallback
        cap = 64 * 1024 * 1024
    return max(32 * 1024 * 1024, min(int(cap * 0.8), 100 * 1024 * 1024))


def _group_matrix(C, groups, hw):
    """gmat[j, c] = 1/(HW*Cg) if channels j, c share a group, else 0."""
    cg = C // groups
    gid = jnp.arange(C) // cg
    same = (gid[:, None] == gid[None, :]).astype(jnp.float32)
    return same / float(hw * cg)


def _pick_row_tile_h(H, W):
    # >= 2 row tiles per image (=> >= 4 grid steps with N >= 2: both v7x TCs get
    # pipelined work) while capping rows-per-tile so the f32 accumulator and the
    # output/residual tiles stay small.
    for th in range(H, 0, -1):
        if H % th:
            continue
        if H // th < 2:
            continue
        if th * W > 1024:
            continue
        return th
    return H


# ---------------------------------------------------------------------------
# Fused GroupNorm + SiLU + 3x3 conv (+ bias (+ time-emb) (+ residual)) kernel
# ---------------------------------------------------------------------------

def _gn_silu_conv_kernel(*refs, eps, has_residual):
    if has_residual:
        x_ref, gmat_ref, gamma_ref, beta_ref, w_ref, b_ref, r_ref, o_ref, ypad_ref = refs
    else:
        x_ref, gmat_ref, gamma_ref, beta_ref, w_ref, b_ref, o_ref, ypad_ref = refs
        r_ref = None
    _, H, W, Cin = x_ref.shape
    _, th, _, Cout = o_ref.shape
    i = pl.program_id(1)

    # Row-tile 0 of each batch: GroupNorm stats (two-pass, via the (C,C) group
    # mask matmul), affine + SiLU, written once into the H-padded bf16 scratch.
    @pl.when(i == 0)
    def _():
        xf = x_ref[0].reshape(H * W, Cin).astype(jnp.float32)      # (HW, C)
        gm = gmat_ref[...]
        mean = jnp.dot(jnp.sum(xf, axis=0, keepdims=True), gm,
                       preferred_element_type=jnp.float32)         # (1, C)
        xc = xf - mean
        var = jnp.dot(jnp.sum(xc * xc, axis=0, keepdims=True), gm,
                      preferred_element_type=jnp.float32)          # (1, C)
        a = jax.lax.rsqrt(var + eps) * gamma_ref[...]
        b = beta_ref[...] - mean * a
        y = xf * a + b
        y = y * jax.nn.sigmoid(y)                                  # SiLU
        zrow = jnp.zeros((1, W, Cin), ypad_ref.dtype)
        ypad_ref[pl.ds(0, 1)] = zrow                               # top H-pad
        ypad_ref[pl.ds(H + 1, 1)] = zrow                           # bottom H-pad
        ypad_ref[pl.ds(1, H)] = y.reshape(H, W, Cin).astype(ypad_ref.dtype)

    # 3x3 taps formed in VMEM: row window (+ halo) from the padded scratch,
    # W shifts via zero-column concats; nine accumulating K=Cin MXU dots.
    rows = ypad_ref[pl.ds(i * th, th + 2)]                         # (th+2, W, C)
    zcol = jnp.zeros((th + 2, 1, Cin), rows.dtype)
    shifted = (
        jnp.concatenate([zcol, rows[:, :W - 1, :]], axis=1),       # input col w-1
        rows,                                                      # input col w
        jnp.concatenate([rows[:, 1:, :], zcol], axis=1),           # input col w+1
    )
    acc = jnp.zeros((th * W, Cout), jnp.float32)
    for kh in range(3):
        for kw in range(3):
            tap = shifted[kw][kh:kh + th].reshape(th * W, Cin)
            acc = acc + jnp.dot(tap, w_ref[kh, kw],
                                preferred_element_type=jnp.float32)
    acc = acc + b_ref[...]
    if r_ref is not None:
        acc = acc + r_ref[0].reshape(th * W, Cout).astype(jnp.float32)
    o_ref[0] = acc.reshape(th, W, Cout).astype(o_ref.dtype)


def gn_silu_conv3x3(x_nhwc, gn_gamma, gn_beta, w_oihw, bias_vec, *,
                    residual_nhwc=None, groups=32, eps=1e-5,
                    out_dtype=jnp.bfloat16):
    """GroupNorm(32) -> SiLU -> 3x3/s1/p1 conv (+ bias) (+ residual), fused."""
    N, H, W, Cin = x_nhwc.shape
    Cout = w_oihw.shape[0]
    assert w_oihw.shape == (Cout, Cin, 3, 3)
    th = _pick_row_tile_h(H, W)

    gmat = _group_matrix(Cin, groups, H * W)
    wmat = jnp.transpose(w_oihw, (2, 3, 1, 0)).astype(jnp.bfloat16)   # (3,3,Cin,Cout)
    bias = bias_vec.reshape(1, Cout).astype(jnp.float32)
    gamma = gn_gamma.reshape(1, Cin).astype(jnp.float32)
    beta = gn_beta.reshape(1, Cin).astype(jnp.float32)

    whole = lambda b, i: (b, 0, 0, 0)       # per-batch resident image
    tiled = lambda b, i: (b, i, 0, 0)       # row-tiled streams
    bc2 = lambda b, i: (0, 0)
    bc4 = lambda b, i: (0, 0, 0, 0)

    in_specs = [
        pl.BlockSpec((1, H, W, Cin), whole),       # x (GN input, resident / batch)
        pl.BlockSpec((Cin, Cin), bc2),             # group mask matrix
        pl.BlockSpec((1, Cin), bc2),               # gamma
        pl.BlockSpec((1, Cin), bc2),               # beta
        pl.BlockSpec((3, 3, Cin, Cout), bc4),      # conv weights (resident)
        pl.BlockSpec((1, Cout), bc2),              # bias (+ folded time emb)
    ]
    args = [x_nhwc, gmat, gamma, beta, wmat, bias]
    has_res = residual_nhwc is not None
    if has_res:
        assert residual_nhwc.shape == (N, H, W, Cout)
        in_specs.append(pl.BlockSpec((1, th, W, Cout), tiled))
        args.append(residual_nhwc)

    out = pl.pallas_call(
        functools.partial(_gn_silu_conv_kernel, eps=eps, has_residual=has_res),
        out_shape=jax.ShapeDtypeStruct((N, H, W, Cout), out_dtype),
        grid=(N, H // th),
        in_specs=in_specs,
        out_specs=pl.BlockSpec((1, th, W, Cout), tiled),
        scratch_shapes=[pltpu.VMEM((H + 2, W, Cin), jnp.bfloat16)],   # H-padded GN+SiLU output
        compiler_params=pltpu.CompilerParams(
            dimension_semantics=("parallel", "arbitrary"),
            vmem_limit_bytes=_vmem_limit_bytes()),
    )(*args)
    return out


# ---------------------------------------------------------------------------
# Fused AttentionBlock kernel (GroupNorm + fused QKV + softmax + proj + residual)
# ---------------------------------------------------------------------------

def _attn_kernel(x_ref, gmat_ref, gamma_ref, beta_ref, wqkv_ref, bqkv_ref,
                 wp_ref, bp_ref, o_ref, *, eps):
    x = x_ref[0].astype(jnp.float32)                               # (HW, C) f32 trunk
    C = x.shape[-1]
    gm = gmat_ref[...]
    mean = jnp.dot(jnp.sum(x, axis=0, keepdims=True), gm,
                   preferred_element_type=jnp.float32)
    xc = x - mean
    var = jnp.dot(jnp.sum(xc * xc, axis=0, keepdims=True), gm,
                  preferred_element_type=jnp.float32)
    a = jax.lax.rsqrt(var + eps) * gamma_ref[...]
    b = beta_ref[...] - mean * a
    xn = (x * a + b).astype(jnp.bfloat16)                          # GroupNorm (no SiLU)

    # Fused Q/K/V projection; softmax scale already folded into Wq/bq.
    qkv = jnp.dot(xn, wqkv_ref[...], preferred_element_type=jnp.float32) + bqkv_ref[...]
    q = qkv[:, :C].astype(jnp.bfloat16)
    k = qkv[:, C:2 * C].astype(jnp.bfloat16)
    v = qkv[:, 2 * C:].astype(jnp.bfloat16)

    s = jax.lax.dot_general(q, k, (((1,), (1,)), ((), ())),        # q @ k^T
                            preferred_element_type=jnp.float32)    # (HW, HW)
    s = s - jnp.max(s, axis=-1, keepdims=True)
    p = jnp.exp(s)
    p = p * pl.reciprocal(jnp.sum(p, axis=-1, keepdims=True), approx=True)
    o = jnp.dot(p.astype(jnp.bfloat16), v, preferred_element_type=jnp.float32)
    y = jnp.dot(o.astype(jnp.bfloat16), wp_ref[...],
                preferred_element_type=jnp.float32) + bp_ref[...]
    o_ref[0] = (x + y).astype(o_ref.dtype)
    # TODO(synk): flash-style KV/query tiling for large HW (keeps scores tile-sized).


def attention_block(x_nhwc, p, *, groups=32, eps=1e-5):
    N, H, W, C = x_nhwc.shape
    HW = H * W
    x_flat = x_nhwc.reshape(N, HW, C)
    gmat = _group_matrix(C, groups, HW)
    gamma = p["gn_w"].reshape(1, C).astype(jnp.float32)
    beta = p["gn_b"].reshape(1, C).astype(jnp.float32)
    scale = float(C) ** -0.5
    # PyTorch Linear: y = x @ W^T + b.  Fold softmax scale into Q; fuse Q/K/V.
    wqkv = jnp.concatenate(
        [p["q_w"].T * scale, p["k_w"].T, p["v_w"].T], axis=1).astype(jnp.bfloat16)
    bqkv = jnp.concatenate(
        [p["q_b"] * scale, p["k_b"], p["v_b"]]).reshape(1, 3 * C).astype(jnp.float32)
    wp = p["proj_w"].T.astype(jnp.bfloat16)
    bp = p["proj_b"].reshape(1, C).astype(jnp.float32)

    per_batch = lambda b: (b, 0, 0)
    shared = lambda b: (0, 0)
    out = pl.pallas_call(
        functools.partial(_attn_kernel, eps=eps),
        out_shape=jax.ShapeDtypeStruct((N, HW, C), jnp.float32),
        grid=(N,),
        in_specs=[
            pl.BlockSpec((1, HW, C), per_batch),   # x (trunk; GN input + residual)
            pl.BlockSpec((C, C), shared),          # group mask matrix
            pl.BlockSpec((1, C), shared),          # gamma
            pl.BlockSpec((1, C), shared),          # beta
            pl.BlockSpec((C, 3 * C), shared),      # W_qkv (scale folded into Q)
            pl.BlockSpec((1, 3 * C), shared),      # b_qkv
            pl.BlockSpec((C, C), shared),          # W_proj
            pl.BlockSpec((1, C), shared),          # b_proj
        ],
        out_specs=pl.BlockSpec((1, HW, C), per_batch),
        compiler_params=pltpu.CompilerParams(
            dimension_semantics=("parallel",),
            vmem_limit_bytes=_vmem_limit_bytes()),
    )(x_flat, gmat, gamma, beta, wqkv, bqkv, wp, bp)
    return out.reshape(N, H, W, C)


# ---------------------------------------------------------------------------
# UNetMidBlock2D forward (Pallas path)
# ---------------------------------------------------------------------------

def resnet_block(x_nhwc, t, p):
    # norm1 -> SiLU -> conv1 (+ folded time-emb bias), norm2 -> SiLU -> conv2
    # (+ residual).  Dropout p=0.0 is identity; in_ch == out_ch (no shortcut).
    t_bias = p["conv1_b"] + p["time_w"] @ t + p["time_b"]          # tiny matvec (glue)
    h = gn_silu_conv3x3(x_nhwc, p["norm1_w"], p["norm1_b"],
                        p["conv1_w"], t_bias, out_dtype=jnp.bfloat16)
    return gn_silu_conv3x3(h, p["norm2_w"], p["norm2_b"],
                           p["conv2_w"], p["conv2_b"],
                           residual_nhwc=x_nhwc, out_dtype=jnp.float32)


def unet_mid_block2d(x_nchw, t, params):
    x = jnp.transpose(x_nchw, (0, 2, 3, 1))                        # NCHW -> NHWC
    for p in params["resnets"]:
        x = resnet_block(x, t, p)
    x = attention_block(x, params["attn"])
    return jnp.transpose(x, (0, 3, 1, 2))                          # NHWC -> NCHW


# ---------------------------------------------------------------------------
# Pure-JAX reference (matches PyTorch semantics, NCHW)
# ---------------------------------------------------------------------------

def _gn_ref(x, gamma, beta, groups=32, eps=1e-5):
    N, C, H, W = x.shape
    xg = x.reshape(N, groups, C // groups, H, W)
    mean = xg.mean(axis=(2, 3, 4), keepdims=True)
    var = xg.var(axis=(2, 3, 4), keepdims=True)
    xn = ((xg - mean) / jnp.sqrt(var + eps)).reshape(N, C, H, W)
    return xn * gamma[None, :, None, None] + beta[None, :, None, None]


def _silu(x):
    return x * jax.nn.sigmoid(x)


def _conv_ref(x, w, b):
    y = jax.lax.conv_general_dilated(
        x, w, (1, 1), ((1, 1), (1, 1)),
        dimension_numbers=("NCHW", "OIHW", "NCHW"))
    return y + b[None, :, None, None]


def unet_mid_block2d_ref(x, t, params):
    for p in params["resnets"]:
        h = _silu(_gn_ref(x, p["norm1_w"], p["norm1_b"]))
        h = _conv_ref(h, p["conv1_w"], p["conv1_b"])
        h = h + (p["time_w"] @ t + p["time_b"])[None, :, None, None]
        h = _silu(_gn_ref(h, p["norm2_w"], p["norm2_b"]))
        h = _conv_ref(h, p["conv2_w"], p["conv2_b"])
        x = x + h
    ap = params["attn"]
    N, C, H, W = x.shape
    xn = _gn_ref(x, ap["gn_w"], ap["gn_b"])
    xn = xn.reshape(N, C, H * W).transpose(0, 2, 1)                # (N, HW, C)
    q = xn @ ap["q_w"].T + ap["q_b"]
    k = xn @ ap["k_w"].T + ap["k_b"]
    v = xn @ ap["v_w"].T + ap["v_b"]
    s = jnp.einsum("bqc,bkc->bqk", q, k) * (C ** -0.5)
    a = jax.nn.softmax(s, axis=-1)
    o = jnp.einsum("bqk,bkc->bqc", a, v)
    y = o @ ap["proj_w"].T + ap["proj_b"]
    y = y.transpose(0, 2, 1).reshape(N, C, H, W)
    return x + y


# ---------------------------------------------------------------------------
# Parameter init + driver
# ---------------------------------------------------------------------------

def init_params(key, ch, time_dim):
    ks = iter(jax.random.split(key, 64))
    n = lambda shape, s=0.05: s * jax.random.normal(next(ks), shape, jnp.float32)
    g = lambda: 1.0 + 0.1 * jax.random.normal(next(ks), (ch,), jnp.float32)
    resnets = []
    for _ in range(2):
        resnets.append(dict(
            norm1_w=g(), norm1_b=n((ch,), 0.1),
            conv1_w=n((ch, ch, 3, 3)), conv1_b=n((ch,), 0.1),
            time_w=n((ch, time_dim)), time_b=n((ch,), 0.1),
            norm2_w=g(), norm2_b=n((ch,), 0.1),
            conv2_w=n((ch, ch, 3, 3)), conv2_b=n((ch,), 0.1),
        ))
    attn = dict(
        gn_w=g(), gn_b=n((ch,), 0.1),
        q_w=n((ch, ch)), q_b=n((ch,), 0.1),
        k_w=n((ch, ch)), k_b=n((ch,), 0.1),
        v_w=n((ch, ch)), v_b=n((ch,), 0.1),
        proj_w=n((ch, ch)), proj_b=n((ch,), 0.1),
    )
    return dict(resnets=resnets, attn=attn)


if __name__ == "__main__":
    # GroupNorm(32) needs C % 32 == 0; C = 128 keeps every streamed last dim
    # lane-dense (full 128-lane vregs, unmasked stores).
    N, C, H, W, T_DIM = 2, 128, 16, 16, 32

    key = jax.random.PRNGKey(0)
    kx, kt, kp = jax.random.split(key, 3)
    x = jax.random.normal(kx, (N, C, H, W), jnp.float32)           # NCHW, like PyTorch
    t = jax.random.normal(kt, (T_DIM,), jnp.float32)               # 1-D time embedding
    params = init_params(kp, C, T_DIM)

    out = jax.block_until_ready(jax.jit(unet_mid_block2d)(x, t, params))
    assert out.shape == (N, C, H, W), out.shape

    with jax.default_matmul_precision("highest"):
        ref = jax.block_until_ready(unet_mid_block2d_ref(x, t, params))
    err = float(jnp.max(jnp.abs(out - ref)))
    ref_scale = float(jnp.max(jnp.abs(ref)))
    assert err <= 3e-2 * max(1.0, ref_scale), f"max abs err {err} (ref max {ref_scale})"

    print("KERNEL_OK")
</pallas_src>

<mosaic_0001>
module attributes {stable_mosaic.version = 11 : i64} {
  func.func @_gn_silu_conv_kernel(%arg0: i32, %arg1: i32, %arg2: memref<1x16x16x128xf32, #tpu.memory_space<vmem>>, %arg3: memref<128x128xf32, #tpu.memory_space<vmem>>, %arg4: memref<1x128xf32, #tpu.memory_space<vmem>>, %arg5: memref<1x128xf32, #tpu.memory_space<vmem>>, %arg6: memref<3x3x128x128xbf16, #tpu.memory_space<vmem>>, %arg7: memref<1x128xf32, #tpu.memory_space<vmem>>, %arg8: memref<1x8x16x128xbf16, #tpu.memory_space<vmem>>, %arg9: memref<18x16x128xbf16, #tpu.memory_space<vmem>>) attributes {dimension_semantics = [#tpu.dimension_semantics<parallel>, #tpu.dimension_semantics<arbitrary>], iteration_bounds = array<i64: 2, 2>, scalar_prefetch = 0 : i64, scratch_operands = 1 : i64, tpu.core_type = #tpu.core_type<tc>, window_params = [{transform_indices = @transform_0, window_bounds = array<i64: 1, 16, 16, 128>}, {pipeline_mode = #tpu.pipeline_mode<synchronous>, transform_indices = @transform_1, window_bounds = array<i64: 128, 128>}, {pipeline_mode = #tpu.pipeline_mode<synchronous>, transform_indices = @transform_2, window_bounds = array<i64: 1, 128>}, {pipeline_mode = #tpu.pipeline_mode<synchronous>, transform_indices = @transform_3, window_bounds = array<i64: 1, 128>}, {pipeline_mode = #tpu.pipeline_mode<synchronous>, transform_indices = @transform_4, window_bounds = array<i64: 3, 3, 128, 128>}, {pipeline_mode = #tpu.pipeline_mode<synchronous>, transform_indices = @transform_5, window_bounds = array<i64: 1, 128>}, {transform_indices = @transform_6, window_bounds = array<i64: 1, 8, 16, 128>}]} {
    %c0_i32 = arith.constant 0 : i32
    %0 = arith.cmpi eq, %arg1, %c0_i32 : i32
    %1 = arith.extui %0 : i1 to i32
    %c0_i32_0 = arith.constant 0 : i32
    %2 = arith.cmpi ne, %1, %c0_i32_0 : i32
    scf.if %2 {
      %c0_52 = arith.constant 0 : index
      %c0_53 = arith.constant 0 : index
      %c0_54 = arith.constant 0 : index
      %c0_55 = arith.constant 0 : index
      %74 = vector.load %arg2[%c0_52, %c0_53, %c0_54, %c0_55] : memref<1x16x16x128xf32, #tpu.memory_space<vmem>>, vector<1x16x16x128xf32>
      %75 = vector.shape_cast %74 : vector<1x16x16x128xf32> to vector<16x16x128xf32>
      %76 = vector.shape_cast %75 : vector<16x16x128xf32> to vector<256x128xf32>
      %c0_56 = arith.constant 0 : index
      %c0_57 = arith.constant 0 : index
      %77 = vector.load %arg3[%c0_56, %c0_57] : memref<128x128xf32, #tpu.memory_space<vmem>>, vector<128x128xf32>
      %cst_58 = arith.constant dense<0.000000e+00> : vector<128xf32>
      %78 = vector.multi_reduction <add>, %76, %cst_58 [0] : vector<256x128xf32> to vector<128xf32>
      %79 = vector.shape_cast %78 : vector<128xf32> to vector<1x128xf32>
      %cst_59 = arith.constant dense<0.000000e+00> : vector<1x128xf32>
      %80 = tpu.matmul %79, %77, %cst_59 {dimension_numbers = #tpu.dot_dimension_numbers<[1], [0], [0], [1], [0, 0, 1, 1], [], []>} : vector<1x128xf32>, vector<128x128xf32>, vector<1x128xf32> -> vector<1x128xf32>
      %81 = vector.broadcast %80 : vector<1x128xf32> to vector<256x128xf32>
      %82 = arith.subf %76, %81 : vector<256x128xf32>
      %83 = arith.mulf %82, %82 : vector<256x128xf32>
      %cst_60 = arith.constant dense<0.000000e+00> : vector<128xf32>
      %84 = vector.multi_reduction <add>, %83, %cst_60 [0] : vector<256x128xf32> to vector<128xf32>
      %85 = vector.shape_cast %84 : vector<128xf32> to vector<1x128xf32>
      %cst_61 = arith.constant dense<0.000000e+00> : vector<1x128xf32>
      %86 = tpu.matmul %85, %77, %cst_61 {dimension_numbers = #tpu.dot_dimension_numbers<[1], [0], [0], [1], [0, 0, 1, 1], [], []>} : vector<1x128xf32>, vector<128x128xf32>, vector<1x128xf32> -> vector<1x128xf32>
      %cst_62 = arith.constant 9.99999974E-6 : f32
      %87 = vector.broadcast %cst_62 : f32 to vector<1x128xf32>
      %88 = arith.addf %86, %87 : vector<1x128xf32>
      %89 = math.rsqrt %88 : vector<1x128xf32>
      %c0_63 = arith.constant 0 : index
      %c0_64 = arith.constant 0 : index
      %90 = vector.load %arg4[%c0_63, %c0_64] : memref<1x128xf32, #tpu.memory_space<vmem>>, vector<1x128xf32>
      %91 = arith.mulf %89, %90 : vector<1x128xf32>
      %c0_65 = arith.constant 0 : index
      %c0_66 = arith.constant 0 : index
      %92 = vector.load %arg5[%c0_65, %c0_66] : memref<1x128xf32, #tpu.memory_space<vmem>>, vector<1x128xf32>
      %93 = arith.mulf %80, %91 : vector<1x128xf32>
      %94 = arith.subf %92, %93 : vector<1x128xf32>
      %95 = vector.broadcast %91 : vector<1x128xf32> to vector<256x128xf32>
      %96 = arith.mulf %76, %95 : vector<256x128xf32>
      %97 = vector.broadcast %94 : vector<1x128xf32> to vector<256x128xf32>
      %98 = arith.addf %96, %97 : vector<256x128xf32>
      %99 = arith.negf %98 : vector<256x128xf32>
      %100 = math.exp %99 : vector<256x128xf32>
      %cst_67 = arith.constant 1.000000e+00 : f32
      %101 = vector.broadcast %cst_67 : f32 to vector<256x128xf32>
      %102 = arith.addf %101, %100 : vector<256x128xf32>
      %103 = arith.divf %101, %102 : vector<256x128xf32>
      %104 = arith.mulf %98, %103 : vector<256x128xf32>
      %cst_68 = arith.constant 0.000000e+00 : bf16
      %105 = vector.broadcast %cst_68 : bf16 to vector<1x16x128xbf16>
      %c0_69 = arith.constant 0 : index
      %c0_70 = arith.constant 0 : index
      %c0_71 = arith.constant 0 : index
      %106 = vector.load %arg9[%c0_69, %c0_70, %c0_71] : memref<18x16x128xbf16, #tpu.memory_space<vmem>>, vector<1x16x128xbf16>
      tpu.vector_store %arg9[%c0_69, %c0_70, %c0_71], %105 {strides = array<i32>} : memref<18x16x128xbf16, #tpu.memory_space<vmem>>, vector<1x16x128xbf16>,
      %c17 = arith.constant 17 : index
      %c0_72 = arith.constant 0 : index
      %c0_73 = arith.constant 0 : index
      %107 = vector.load %arg9[%c17, %c0_72, %c0_73] : memref<18x16x128xbf16, #tpu.memory_space<vmem>>, vector<1x16x128xbf16>
      tpu.vector_store %arg9[%c17, %c0_72, %c0_73], %105 {strides = array<i32>} : memref<18x16x128xbf16, #tpu.memory_space<vmem>>, vector<1x16x128xbf16>,
      %108 = vector.shape_cast %104 : vector<256x128xf32> to vector<16x16x128xf32>
      %109 = arith.truncf %108 : vector<16x16x128xf32> to vector<16x16x128xbf16>
      %c1_74 = arith.constant 1 : index
      %c0_75 = arith.constant 0 : index
      %c0_76 = arith.constant 0 : index
      %110 = vector.load %arg9[%c1_74, %c0_75, %c0_76] : memref<18x16x128xbf16, #tpu.memory_space<vmem>>, vector<16x16x128xbf16>
      tpu.vector_store %arg9[%c1_74, %c0_75, %c0_76], %109 {strides = array<i32>} : memref<18x16x128xbf16, #tpu.memory_space<vmem>>, vector<16x16x128xbf16>,
    } else {
    }
    %c8_i32 = arith.constant 8 : i32
    %3 = arith.muli %arg1, %c8_i32 : i32
    %4 = arith.index_cast %3 : i32 to index
    %c0 = arith.constant 0 : index
    %c0_1 = arith.constant 0 : index
    %5 = vector.load %arg9[%4, %c0, %c0_1] : memref<18x16x128xbf16, #tpu.memory_space<vmem>>, vector<10x16x128xbf16>
    %cst = arith.constant 0.000000e+00 : bf16
    %6 = vector.broadcast %cst : bf16 to vector<10x1x128xbf16>
    %7 = vector.extract_strided_slice %5 {offsets = [0, 0, 0], sizes = [10, 15, 128], strides = [1, 1, 1]} : vector<10x16x128xbf16> to vector<10x15x128xbf16>
    %8 = tpu.concatenate %6, %7 in 1 : vector<10x1x128xbf16>, vector<10x15x128xbf16> -> vector<10x16x128xbf16>
    %9 = vector.extract_strided_slice %5 {offsets = [0, 1, 0], sizes = [10, 15, 128], strides = [1, 1, 1]} : vector<10x16x128xbf16> to vector<10x15x128xbf16>
    %10 = tpu.concatenate %9, %6 in 1 : vector<10x15x128xbf16>, vector<10x1x128xbf16> -> vector<10x16x128xbf16>
    %cst_2 = arith.constant 0.000000e+00 : f32
    %11 = vector.broadcast %cst_2 : f32 to vector<128x128xf32>
    %12 = vector.extract_strided_slice %8 {offsets = [0, 0, 0], sizes = [8, 16, 128], strides = [1, 1, 1]} : vector<10x16x128xbf16> to vector<8x16x128xbf16>
    %13 = vector.shape_cast %12 : vector<8x16x128xbf16> to vector<128x128xbf16>
    %c0_3 = arith.constant 0 : index
    %c0_4 = arith.constant 0 : index
    %c0_5 = arith.constant 0 : index
    %c0_6 = arith.constant 0 : index
    %14 = vector.load %arg6[%c0_3, %c0_4, %c0_5, %c0_6] : memref<3x3x128x128xbf16, #tpu.memory_space<vmem>>, vector<1x1x128x128xbf16>
    %15 = vector.shape_cast %14 : vector<1x1x128x128xbf16> to vector<128x128xbf16>
    %cst_7 = arith.constant dense<0.000000e+00> : vector<128x128xf32>
    %16 = tpu.matmul %13, %15, %cst_7 {dimension_numbers = #tpu.dot_dimension_numbers<[1], [0], [0], [1], [0, 0, 1, 1], [], []>} : vector<128x128xbf16>, vector<128x128xbf16>, vector<128x128xf32> -> vector<128x128xf32>
    %17 = arith.addf %11, %16 : vector<128x128xf32>
    %18 = vector.extract_strided_slice %5 {offsets = [0, 0, 0], sizes = [8, 16, 128], strides = [1, 1, 1]} : vector<10x16x128xbf16> to vector<8x16x128xbf16>
    %19 = vector.shape_cast %18 : vector<8x16x128xbf16> to vector<128x128xbf16>
    %c0_8 = arith.constant 0 : index
    %c1 = arith.constant 1 : index
    %c0_9 = arith.constant 0 : index
    %c0_10 = arith.constant 0 : index
    %20 = vector.load %arg6[%c0_8, %c1, %c0_9, %c0_10] : memref<3x3x128x128xbf16, #tpu.memory_space<vmem>>, vector<1x1x128x128xbf16>
    %21 = vector.shape_cast %20 : vector<1x1x128x128xbf16> to vector<128x128xbf16>
    %cst_11 = arith.constant dense<0.000000e+00> : vector<128x128xf32>
    %22 = tpu.matmul %19, %21, %cst_11 {dimension_numbers = #tpu.dot_dimension_numbers<[1], [0], [0], [1], [0, 0, 1, 1], [], []>} : vector<128x128xbf16>, vector<128x128xbf16>, vector<128x128xf32> -> vector<128x128xf32>
    %23 = arith.addf %17, %22 : vector<128x128xf32>
    %24 = vector.extract_strided_slice %10 {offsets = [0, 0, 0], sizes = [8, 16, 128], strides = [1, 1, 1]} : vector<10x16x128xbf16> to vector<8x16x128xbf16>
    %25 = vector.shape_cast %24 : vector<8x16x128xbf16> to vector<128x128xbf16>
    %c0_12 = arith.constant 0 : index
    %c2 = arith.constant 2 : index
    %c0_13 = arith.constant 0 : index
    %c0_14 = arith.constant 0 : index
    %26 = vector.load %arg6[%c0_12, %c2, %c0_13, %c0_14] : memref<3x3x128x128xbf16, #tpu.memory_space<vmem>>, vector<1x1x128x128xbf16>
    %27 = vector.shape_cast %26 : vector<1x1x128x128xbf16> to vector<128x128xbf16>
    %cst_15 = arith.constant dense<0.000000e+00> : vector<128x128xf32>
    %28 = tpu.matmul %25, %27, %cst_15 {dimension_numbers = #tpu.dot_dimension_numbers<[1], [0], [0], [1], [0, 0, 1, 1], [], []>} : vector<128x128xbf16>, vector<128x128xbf16>, vector<128x128xf32> -> vector<128x128xf32>
    %29 = arith.addf %23, %28 : vector<128x128xf32>
    %30 = vector.extract_strided_slice %8 {offsets = [1, 0, 0], sizes = [8, 16, 128], strides = [1, 1, 1]} : vector<10x16x128xbf16> to vector<8x16x128xbf16>
    %31 = vector.shape_cast %30 : vector<8x16x128xbf16> to vector<128x128xbf16>
    %c1_16 = arith.constant 1 : index
    %c0_17 = arith.constant 0 : index
    %c0_18 = arith.constant 0 : index
    %c0_19 = arith.constant 0 : index
    %32 = vector.load %arg6[%c1_16, %c0_17, %c0_18, %c0_19] : memref<3x3x128x128xbf16, #tpu.memory_space<vmem>>, vector<1x1x128x128xbf16>
    %33 = vector.shape_cast %32 : vector<1x1x128x128xbf16> to vector<128x128xbf16>
    %cst_20 = arith.constant dense<0.000000e+00> : vector<128x128xf32>
    %34 = tpu.matmul %31, %33, %cst_20 {dimension_numbers = #tpu.dot_dimension_numbers<[1], [0], [0], [1], [0, 0, 1, 1], [], []>} : vector<128x128xbf16>, vector<128x128xbf16>, vector<128x128xf32> -> vector<128x128xf32>
    %35 = arith.addf %29, %34 : vector<128x128xf32>
    %36 = vector.extract_strided_slice %5 {offsets = [1, 0, 0], sizes = [8, 16, 128], strides = [1, 1, 1]} : vector<10x16x128xbf16> to vector<8x16x128xbf16>
    %37 = vector.shape_cast %36 : vector<8x16x128xbf16> to vector<128x128xbf16>
    %c1_21 = arith.constant 1 : index
    %c1_22 = arith.constant 1 : index
    %c0_23 = arith.constant 0 : index
    %c0_24 = arith.constant 0 : index
    %38 = vector.load %arg6[%c1_21, %c1_22, %c0_23, %c0_24] : memref<3x3x128x128xbf16, #tpu.memory_space<vmem>>, vector<1x1x128x128xbf16>
    %39 = vector.shape_cast %38 : vector<1x1x128x128xbf16> to vector<128x128xbf16>
    %cst_25 = arith.constant dense<0.000000e+00> : vector<128x128xf32>
    %40 = tpu.matmul %37, %39, %cst_25 {dimension_numbers = #tpu.dot_dimension_numbers<[1], [0], [0], [1], [0, 0, 1, 1], [], []>} : vector<128x128xbf16>, vector<128x128xbf16>, vector<128x128xf32> -> vector<128x128xf32>
    %41 = arith.addf %35, %40 : vector<128x128xf32>
    %42 = vector.extract_strided_slice %10 {offsets = [1, 0, 0], sizes = [8, 16, 128], strides = [1, 1, 1]} : vector<10x16x128xbf16> to vector<8x16x128xbf16>
    %43 = vector.shape_cast %42 : vector<8x16x128xbf16> to vector<128x128xbf16>
    %c1_26 = arith.constant 1 : index
    %c2_27 = arith.constant 2 : index
    %c0_28 = arith.constant 0 : index
    %c0_29 = arith.constant 0 : index
    %44 = vector.load %arg6[%c1_26, %c2_27, %c0_28, %c0_29] : memref<3x3x128x128xbf16, #tpu.memory_space<vmem>>, vector<1x1x128x128xbf16>
    %45 = vector.shape_cast %44 : vector<1x1x128x128xbf16> to vector<128x128xbf16>
    %cst_30 = arith.constant dense<0.000000e+00> : vector<128x128xf32>
    %46 = tpu.matmul %43, %45, %cst_30 {dimension_numbers = #tpu.dot_dimension_numbers<[1], [0], [0], [1], [0, 0, 1, 1], [], []>} : vector<128x128xbf16>, vector<128x128xbf16>, vector<128x128xf32> -> vector<128x128xf32>
    %47 = arith.addf %41, %46 : vector<128x128xf32>
    %48 = vector.extract_strided_slice %8 {offsets = [2, 0, 0], sizes = [8, 16, 128], strides = [1, 1, 1]} : vector<10x16x128xbf16> to vector<8x16x128xbf16>
    %49 = vector.shape_cast %48 : vector<8x16x128xbf16> to vector<128x128xbf16>
    %c2_31 = arith.constant 2 : index
    %c0_32 = arith.constant 0 : index
    %c0_33 = arith.constant 0 : index
    %c0_34 = arith.constant 0 : index
    %50 = vector.load %arg6[%c2_31, %c0_32, %c0_33, %c0_34] : memref<3x3x128x128xbf16, #tpu.memory_space<vmem>>, vector<1x1x128x128xbf16>
    %51 = vector.shape_cast %50 : vector<1x1x128x128xbf16> to vector<128x128xbf16>
    %cst_35 = arith.constant dense<0.000000e+00> : vector<128x128xf32>
    %52 = tpu.matmul %49, %51, %cst_35 {dimension_numbers = #tpu.dot_dimension_numbers<[1], [0], [0], [1], [0, 0, 1, 1], [], []>} : vector<128x128xbf16>, vector<128x128xbf16>, vector<128x128xf32> -> vector<128x128xf32>
    %53 = arith.addf %47, %52 : vector<128x128xf32>
    %54 = vector.extract_strided_slice %5 {offsets = [2, 0, 0], sizes = [8, 16, 128], strides = [1, 1, 1]} : vector<10x16x128xbf16> to vector<8x16x128xbf16>
    %55 = vector.shape_cast %54 : vector<8x16x128xbf16> to vector<128x128xbf16>
    %c2_36 = arith.constant 2 : index
    %c1_37 = arith.constant 1 : index
    %c0_38 = arith.constant 0 : index
    %c0_39 = arith.constant 0 : index
    %56 = vector.load %arg6[%c2_36, %c1_37, %c0_38, %c0_39] : memref<3x3x128x128xbf16, #tpu.memory_space<vmem>>, vector<1x1x128x128xbf16>
    %57 = vector.shape_cast %56 : vector<1x1x128x128xbf16> to vector<128x128xbf16>
    %cst_40 = arith.constant dense<0.000000e+00> : vector<128x128xf32>
    %58 = tpu.matmul %55, %57, %cst_40 {dimension_numbers = #tpu.dot_dimension_numbers<[1], [0], [0], [1], [0, 0, 1, 1], [], []>} : vector<128x128xbf16>, vector<128x128xbf16>, vector<128x128xf32> -> vector<128x128xf32>
    %59 = arith.addf %53, %58 : vector<128x128xf32>
    %60 = vector.extract_strided_slice %10 {offsets = [2, 0, 0], sizes = [8, 16, 128], strides = [1, 1, 1]} : vector<10x16x128xbf16> to vector<8x16x128xbf16>
    %61 = vector.shape_cast %60 : vector<8x16x128xbf16> to vector<128x128xbf16>
    %c2_41 = arith.constant 2 : index
    %c2_42 = arith.constant 2 : index
    %c0_43 = arith.constant 0 : index
    %c0_44 = arith.constant 0 : index
    %62 = vector.load %arg6[%c2_41, %c2_42, %c0_43, %c0_44] : memref<3x3x128x128xbf16, #tpu.memory_space<vmem>>, vector<1x1x128x128xbf16>
    %63 = vector.shape_cast %62 : vector<1x1x128x128xbf16> to vector<128x128xbf16>
    %cst_45 = arith.constant dense<0.000000e+00> : vector<128x128xf32>
    %64 = tpu.matmul %61, %63, %cst_45 {dimension_numbers = #tpu.dot_dimension_numbers<[1], [0], [0], [1], [0, 0, 1, 1], [], []>} : vector<128x128xbf16>, vector<128x128xbf16>, vector<128x128xf32> -> vector<128x128xf32>
    %65 = arith.addf %59, %64 : vector<128x128xf32>
    %c0_46 = arith.constant 0 : index
    %c0_47 = arith.constant 0 : index
    %66 = vector.load %arg7[%c0_46, %c0_47] : memref<1x128xf32, #tpu.memory_space<vmem>>, vector<1x128xf32>
    %67 = vector.broadcast %66 : vector<1x128xf32> to vector<128x128xf32>
    %68 = arith.addf %65, %67 : vector<128x128xf32>
    %69 = vector.shape_cast %68 : vector<128x128xf32> to vector<8x16x128xf32>
    %70 = arith.truncf %69 : vector<8x16x128xf32> to vector<8x16x128xbf16>
    %c0_48 = arith.constant 0 : index
    %c0_49 = arith.constant 0 : index
    %c0_50 = arith.constant 0 : index
    %c0_51 = arith.constant 0 : index
    %71 = vector.load %arg8[%c0_48, %c0_49, %c0_50, %c0_51] : memref<1x8x16x128xbf16, #tpu.memory_space<vmem>>, vector<1x8x16x128xbf16>
    %72 = vector.shape_cast %71 : vector<1x8x16x128xbf16> to vector<8x16x128xbf16>
    %73 = vector.shape_cast %70 : vector<8x16x128xbf16> to vector<1x8x16x128xbf16>
    tpu.vector_store %arg8[%c0_48, %c0_49, %c0_50, %c0_51], %73 {strides = array<i32>} : memref<1x8x16x128xbf16, #tpu.memory_space<vmem>>, vector<1x8x16x128xbf16>,
    return
  }
  func.func @transform_0(%arg0: i32, %arg1: i32) -> (i32, i32, i32, i32) {
    %c0_i32 = arith.constant 0 : i32
    %c0_i32_0 = arith.constant 0 : i32
    %c0_i32_1 = arith.constant 0 : i32
    %c0_i32_2 = arith.constant 0 : i32
    return %arg0, %c0_i32, %c0_i32_0, %c0_i32_1 : i32, i32, i32, i32
  }
  func.func @transform_1(%arg0: i32, %arg1: i32) -> (i32, i32) {
    %c0_i32 = arith.constant 0 : i32
    %c0_i32_0 = arith.constant 0 : i32
    %c0_i32_1 = arith.constant 0 : i32
    return %c0_i32, %c0_i32_0 : i32, i32
  }
  func.func @transform_2(%arg0: i32, %arg1: i32) -> (i32, i32) {
    %c0_i32 = arith.constant 0 : i32
    %c0_i32_0 = arith.constant 0 : i32
    %c0_i32_1 = arith.constant 0 : i32
    return %c0_i32, %c0_i32_0 : i32, i32
  }
  func.func @transform_3(%arg0: i32, %arg1: i32) -> (i32, i32) {
    %c0_i32 = arith.constant 0 : i32
    %c0_i32_0 = arith.constant 0 : i32
    %c0_i32_1 = arith.constant 0 : i32
    return %c0_i32, %c0_i32_0 : i32, i32
  }
  func.func @transform_4(%arg0: i32, %arg1: i32) -> (i32, i32, i32, i32) {
    %c0_i32 = arith.constant 0 : i32
    %c0_i32_0 = arith.constant 0 : i32
    %c0_i32_1 = arith.constant 0 : i32
    %c0_i32_2 = arith.constant 0 : i32
    %c0_i32_3 = arith.constant 0 : i32
    return %c0_i32, %c0_i32_0, %c0_i32_1, %c0_i32_2 : i32, i32, i32, i32
  }
  func.func @transform_5(%arg0: i32, %arg1: i32) -> (i32, i32) {
    %c0_i32 = arith.constant 0 : i32
    %c0_i32_0 = arith.constant 0 : i32
    %c0_i32_1 = arith.constant 0 : i32
    return %c0_i32, %c0_i32_0 : i32, i32
  }
  func.func @transform_6(%arg0: i32, %arg1: i32) -> (i32, i32, i32, i32) {
    %c0_i32 = arith.constant 0 : i32
    %c0_i32_0 = arith.constant 0 : i32
    %c0_i32_1 = arith.constant 0 : i32
    return %arg0, %arg1, %c0_i32, %c0_i32_0 : i32, i32, i32, i32
  }
}

module attributes {stable_mosaic.version = 11 : i64} {
  func.func @_gn_silu_conv_kernel(%arg0: i32, %arg1: i32, %arg2: memref<1x16x16x128xbf16, #tpu.memory_space<vmem>>, %arg3: memref<128x128xf32, #tpu.memory_space<vmem>>, %arg4: memref<1x128xf32, #tpu.memory_space<vmem>>, %arg5: memref<1x128xf32, #tpu.memory_space<vmem>>, %arg6: memref<3x3x128x128xbf16, #tpu.memory_space<vmem>>, %arg7: memref<1x128xf32, #tpu.memory_space<vmem>>, %arg8: memref<1x8x16x128xf32, #tpu.memory_space<vmem>>, %arg9: memref<1x8x16x128xf32, #tpu.memory_space<vmem>>, %arg10: memref<18x16x128xbf16, #tpu.memory_space<vmem>>) attributes {dimension_semantics = [#tpu.dimension_semantics<parallel>, #tpu.dimension_semantics<arbitrary>], iteration_bounds = array<i64: 2, 2>, scalar_prefetch = 0 : i64, scratch_operands = 1 : i64, tpu.core_type = #tpu.core_type<tc>, window_params = [{transform_indices = @transform_0, window_bounds = array<i64: 1, 16, 16, 128>}, {pipeline_mode = #tpu.pipeline_mode<synchronous>, transform_indices = @transform_1, window_bounds = array<i64: 128, 128>}, {pipeline_mode = #tpu.pipeline_mode<synchronous>, transform_indices = @transform_2, window_bounds = array<i64: 1, 128>}, {pipeline_mode = #tpu.pipeline_mode<synchronous>, transform_indices = @transform_3, window_bounds = array<i64: 1, 128>}, {pipeline_mode = #tpu.pipeline_mode<synchronous>, transform_indices = @transform_4, window_bounds = array<i64: 3, 3, 128, 128>}, {pipeline_mode = #tpu.pipeline_mode<synchronous>, transform_indices = @transform_5, window_bounds = array<i64: 1, 128>}, {transform_indices = @transform_6, window_bounds = array<i64: 1, 8, 16, 128>}, {transform_indices = @transform_7, window_bounds = array<i64: 1, 8, 16, 128>}]} {
    %c0_i32 = arith.constant 0 : i32
    %0 = arith.cmpi eq, %arg1, %c0_i32 : i32
    %1 = arith.extui %0 : i1 to i32
    %c0_i32_0 = arith.constant 0 : i32
    %2 = arith.cmpi ne, %1, %c0_i32_0 : i32
    scf.if %2 {
      %c0_56 = arith.constant 0 : index
      %c0_57 = arith.constant 0 : index
      %c0_58 = arith.constant 0 : index
      %c0_59 = arith.constant 0 : index
      %77 = vector.load %arg2[%c0_56, %c0_57, %c0_58, %c0_59] : memref<1x16x16x128xbf16, #tpu.memory_space<vmem>>, vector<1x16x16x128xbf16>
      %78 = vector.shape_cast %77 : vector<1x16x16x128xbf16> to vector<16x16x128xbf16>
      %79 = vector.shape_cast %78 : vector<16x16x128xbf16> to vector<256x128xbf16>
      %80 = arith.extf %79 : vector<256x128xbf16> to vector<256x128xf32>
      %c0_60 = arith.constant 0 : index
      %c0_61 = arith.constant 0 : index
      %81 = vector.load %arg3[%c0_60, %c0_61] : memref<128x128xf32, #tpu.memory_space<vmem>>, vector<128x128xf32>
      %cst_62 = arith.constant dense<0.000000e+00> : vector<128xf32>
      %82 = vector.multi_reduction <add>, %80, %cst_62 [0] : vector<256x128xf32> to vector<128xf32>
      %83 = vector.shape_cast %82 : vector<128xf32> to vector<1x128xf32>
      %cst_63 = arith.constant dense<0.000000e+00> : vector<1x128xf32>
      %84 = tpu.matmul %83, %81, %cst_63 {dimension_numbers = #tpu.dot_dimension_numbers<[1], [0], [0], [1], [0, 0, 1, 1], [], []>} : vector<1x128xf32>, vector<128x128xf32>, vector<1x128xf32> -> vector<1x128xf32>
      %85 = vector.broadcast %84 : vector<1x128xf32> to vector<256x128xf32>
      %86 = arith.subf %80, %85 : vector<256x128xf32>
      %87 = arith.mulf %86, %86 : vector<256x128xf32>
      %cst_64 = arith.constant dense<0.000000e+00> : vector<128xf32>
      %88 = vector.multi_reduction <add>, %87, %cst_64 [0] : vector<256x128xf32> to vector<128xf32>
      %89 = vector.shape_cast %88 : vector<128xf32> to vector<1x128xf32>
      %cst_65 = arith.constant dense<0.000000e+00> : vector<1x128xf32>
      %90 = tpu.matmul %89, %81, %cst_65 {dimension_numbers = #tpu.dot_dimension_numbers<[1], [0], [0], [1], [0, 0, 1, 1], [], []>} : vector<1x128xf32>, vector<128x128xf32>, vector<1x128xf32> -> vector<1x128xf32>
      %cst_66 = arith.constant 9.99999974E-6 : f32
      %91 = vector.broadcast %cst_66 : f32 to vector<1x128xf32>
      %92 = arith.addf %90, %91 : vector<1x128xf32>
      %93 = math.rsqrt %92 : vector<1x128xf32>
      %c0_67 = arith.constant 0 : index
      %c0_68 = arith.constant 0 : index
      %94 = vector.load %arg4[%c0_67, %c0_68] : memref<1x128xf32, #tpu.memory_space<vmem>>, vector<1x128xf32>
      %95 = arith.mulf %93, %94 : vector<1x128xf32>
      %c0_69 = arith.constant 0 : index
      %c0_70 = arith.constant 0 : index
      %96 = vector.load %arg5[%c0_69, %c0_70] : memref<1x128xf32, #tpu.memory_space<vmem>>, vector<1x128xf32>
      %97 = arith.mulf %84, %95 : vector<1x128xf32>
      %98 = arith.subf %96, %97 : vector<1x128xf32>
      %99 = vector.broadcast %95 : vector<1x128xf32> to vector<256x128xf32>
      %100 = arith.mulf %80, %99 : vector<256x128xf32>
      %101 = vector.broadcast %98 : vector<1x128xf32> to vector<256x128xf32>
      %102 = arith.addf %100, %101 : vector<256x128xf32>
      %103 = arith.negf %102 : vector<256x128xf32>
      %104 = math.exp %103 : vector<256x128xf32>
      %cst_71 = arith.constant 1.000000e+00 : f32
      %105 = vector.broadcast %cst_71 : f32 to vector<256x128xf32>
      %106 = arith.addf %105, %104 : vector<256x128xf32>
      %107 = arith.divf %105, %106 : vector<256x128xf32>
      %108 = arith.mulf %102, %107 : vector<256x128xf32>
      %cst_72 = arith.constant 0.000000e+00 : bf16
      %109 = vector.broadcast %cst_72 : bf16 to vector<1x16x128xbf16>
      %c0_73 = arith.constant 0 : index
      %c0_74 = arith.constant 0 : index
      %c0_75 = arith.constant 0 : index
      %110 = vector.load %arg10[%c0_73, %c0_74, %c0_75] : memref<18x16x128xbf16, #tpu.memory_space<vmem>>, vector<1x16x128xbf16>
      tpu.vector_store %arg10[%c0_73, %c0_74, %c0_75], %109 {strides = array<i32>} : memref<18x16x128xbf16, #tpu.memory_space<vmem>>, vector<1x16x128xbf16>,
      %c17 = arith.constant 17 : index
      %c0_76 = arith.constant 0 : index
      %c0_77 = arith.constant 0 : index
      %111 = vector.load %arg10[%c17, %c0_76, %c0_77] : memref<18x16x128xbf16, #tpu.memory_space<vmem>>, vector<1x16x128xbf16>
      tpu.vector_store %arg10[%c17, %c0_76, %c0_77], %109 {strides = array<i32>} : memref<18x16x128xbf16, #tpu.memory_space<vmem>>, vector<1x16x128xbf16>,
      %112 = vector.shape_cast %108 : vector<256x128xf32> to vector<16x16x128xf32>
      %113 = arith.truncf %112 : vector<16x16x128xf32> to vector<16x16x128xbf16>
      %c1_78 = arith.constant 1 : index
      %c0_79 = arith.constant 0 : index
      %c0_80 = arith.constant 0 : index
      %114 = vector.load %arg10[%c1_78, %c0_79, %c0_80] : memref<18x16x128xbf16, #tpu.memory_space<vmem>>, vector<16x16x128xbf16>
      tpu.vector_store %arg10[%c1_78, %c0_79, %c0_80], %113 {strides = array<i32>} : memref<18x16x128xbf16, #tpu.memory_space<vmem>>, vector<16x16x128xbf16>,
    } else {
    }
    %c8_i32 = arith.constant 8 : i32
    %3 = arith.muli %arg1, %c8_i32 : i32
    %4 = arith.index_cast %3 : i32 to index
    %c0 = arith.constant 0 : index
    %c0_1 = arith.constant 0 : index
    %5 = vector.load %arg10[%4, %c0, %c0_1] : memref<18x16x128xbf16, #tpu.memory_space<vmem>>, vector<10x16x128xbf16>
    %cst = arith.constant 0.000000e+00 : bf16
    %6 = vector.broadcast %cst : bf16 to vector<10x1x128xbf16>
    %7 = vector.extract_strided_slice %5 {offsets = [0, 0, 0], sizes = [10, 15, 128], strides = [1, 1, 1]} : vector<10x16x128xbf16> to vector<10x15x128xbf16>
    %8 = tpu.concatenate %6, %7 in 1 : vector<10x1x128xbf16>, vector<10x15x128xbf16> -> vector<10x16x128xbf16>
    %9 = vector.extract_strided_slice %5 {offsets = [0, 1, 0], sizes = [10, 15, 128], strides = [1, 1, 1]} : vector<10x16x128xbf16> to vector<10x15x128xbf16>
    %10 = tpu.concatenate %9, %6 in 1 : vector<10x15x128xbf16>, vector<10x1x128xbf16> -> vector<10x16x128xbf16>
    %cst_2 = arith.constant 0.000000e+00 : f32
    %11 = vector.broadcast %cst_2 : f32 to vector<128x128xf32>
    %12 = vector.extract_strided_slice %8 {offsets = [0, 0, 0], sizes = [8, 16, 128], strides = [1, 1, 1]} : vector<10x16x128xbf16> to vector<8x16x128xbf16>
    %13 = vector.shape_cast %12 : vector<8x16x128xbf16> to vector<128x128xbf16>
    %c0_3 = arith.constant 0 : index
    %c0_4 = arith.constant 0 : index
    %c0_5 = arith.constant 0 : index
    %c0_6 = arith.constant 0 : index
    %14 = vector.load %arg6[%c0_3, %c0_4, %c0_5, %c0_6] : memref<3x3x128x128xbf16, #tpu.memory_space<vmem>>, vector<1x1x128x128xbf16>
    %15 = vector.shape_cast %14 : vector<1x1x128x128xbf16> to vector<128x128xbf16>
    %cst_7 = arith.constant dense<0.000000e+00> : vector<128x128xf32>
    %16 = tpu.matmul %13, %15, %cst_7 {dimension_numbers = #tpu.dot_dimension_numbers<[1], [0], [0], [1], [0, 0, 1, 1], [], []>} : vector<128x128xbf16>, vector<128x128xbf16>, vector<128x128xf32> -> vector<128x128xf32>
    %17 = arith.addf %11, %16 : vector<128x128xf32>
    %18 = vector.extract_strided_slice %5 {offsets = [0, 0, 0], sizes = [8, 16, 128], strides = [1, 1, 1]} : vector<10x16x128xbf16> to vector<8x16x128xbf16>
    %19 = vector.shape_cast %18 : vector<8x16x128xbf16> to vector<128x128xbf16>
    %c0_8 = arith.constant 0 : index
    %c1 = arith.constant 1 : index
    %c0_9 = arith.constant 0 : index
    %c0_10 = arith.constant 0 : index
    %20 = vector.load %arg6[%c0_8, %c1, %c0_9, %c0_10] : memref<3x3x128x128xbf16, #tpu.memory_space<vmem>>, vector<1x1x128x128xbf16>
    %21 = vector.shape_cast %20 : vector<1x1x128x128xbf16> to vector<128x128xbf16>
    %cst_11 = arith.constant dense<0.000000e+00> : vector<128x128xf32>
    %22 = tpu.matmul %19, %21, %cst_11 {dimension_numbers = #tpu.dot_dimension_numbers<[1], [0], [0], [1], [0, 0, 1, 1], [], []>} : vector<128x128xbf16>, vector<128x128xbf16>, vector<128x128xf32> -> vector<128x128xf32>
    %23 = arith.addf %17, %22 : vector<128x128xf32>
    %24 = vector.extract_strided_slice %10 {offsets = [0, 0, 0], sizes = [8, 16, 128], strides = [1, 1, 1]} : vector<10x16x128xbf16> to vector<8x16x128xbf16>
    %25 = vector.shape_cast %24 : vector<8x16x128xbf16> to vector<128x128xbf16>
    %c0_12 = arith.constant 0 : index
    %c2 = arith.constant 2 : index
    %c0_13 = arith.constant 0 : index
    %c0_14 = arith.constant 0 : index
    %26 = vector.load %arg6[%c0_12, %c2, %c0_13, %c0_14] : memref<3x3x128x128xbf16, #tpu.memory_space<vmem>>, vector<1x1x128x128xbf16>
    %27 = vector.shape_cast %26 : vector<1x1x128x128xbf16> to vector<128x128xbf16>
    %cst_15 = arith.constant dense<0.000000e+00> : vector<128x128xf32>
    %28 = tpu.matmul %25, %27, %cst_15 {dimension_numbers = #tpu.dot_dimension_numbers<[1], [0], [0], [1], [0, 0, 1, 1], [], []>} : vector<128x128xbf16>, vector<128x128xbf16>, vector<128x128xf32> -> vector<128x128xf32>
    %29 = arith.addf %23, %28 : vector<128x128xf32>
    %30 = vector.extract_strided_slice %8 {offsets = [1, 0, 0], sizes = [8, 16, 128], strides = [1, 1, 1]} : vector<10x16x128xbf16> to vector<8x16x128xbf16>
    %31 = vector.shape_cast %30 : vector<8x16x128xbf16> to vector<128x128xbf16>
    %c1_16 = arith.constant 1 : index
    %c0_17 = arith.constant 0 : index
    %c0_18 = arith.constant 0 : index
    %c0_19 = arith.constant 0 : index
    %32 = vector.load %arg6[%c1_16, %c0_17, %c0_18, %c0_19] : memref<3x3x128x128xbf16, #tpu.memory_space<vmem>>, vector<1x1x128x128xbf16>
    %33 = vector.shape_cast %32 : vector<1x1x128x128xbf16> to vector<128x128xbf16>
    %cst_20 = arith.constant dense<0.000000e+00> : vector<128x128xf32>
    %34 = tpu.matmul %31, %33, %cst_20 {dimension_numbers = #tpu.dot_dimension_numbers<[1], [0], [0], [1], [0, 0, 1, 1], [], []>} : vector<128x128xbf16>, vector<128x128xbf16>, vector<128x128xf32> -> vector<128x128xf32>
    %35 = arith.addf %29, %34 : vector<128x128xf32>
    %36 = vector.extract_strided_slice %5 {offsets = [1, 0, 0], sizes = [8, 16, 128], strides = [1, 1, 1]} : vector<10x16x128xbf16> to vector<8x16x128xbf16>
    %37 = vector.shape_cast %36 : vector<8x16x128xbf16> to vector<128x128xbf16>
    %c1_21 = arith.constant 1 : index
    %c1_22 = arith.constant 1 : index
    %c0_23 = arith.constant 0 : index
    %c0_24 = arith.constant 0 : index
    %38 = vector.load %arg6[%c1_21, %c1_22, %c0_23, %c0_24] : memref<3x3x128x128xbf16, #tpu.memory_space<vmem>>, vector<1x1x128x128xbf16>
    %39 = vector.shape_cast %38 : vector<1x1x128x128xbf16> to vector<128x128xbf16>
    %cst_25 = arith.constant dense<0.000000e+00> : vector<128x128xf32>
    %40 = tpu.matmul %37, %39, %cst_25 {dimension_numbers = #tpu.dot_dimension_numbers<[1], [0], [0], [1], [0, 0, 1, 1], [], []>} : vector<128x128xbf16>, vector<128x128xbf16>, vector<128x128xf32> -> vector<128x128xf32>
    %41 = arith.addf %35, %40 : vector<128x128xf32>
    %42 = vector.extract_strided_slice %10 {offsets = [1, 0, 0], sizes = [8, 16, 128], strides = [1, 1, 1]} : vector<10x16x128xbf16> to vector<8x16x128xbf16>
    %43 = vector.shape_cast %42 : vector<8x16x128xbf16> to vector<128x128xbf16>
    %c1_26 = arith.constant 1 : index
    %c2_27 = arith.constant 2 : index
    %c0_28 = arith.constant 0 : index
    %c0_29 = arith.constant 0 : index
    %44 = vector.load %arg6[%c1_26, %c2_27, %c0_28, %c0_29] : memref<3x3x128x128xbf16, #tpu.memory_space<vmem>>, vector<1x1x128x128xbf16>
    %45 = vector.shape_cast %44 : vector<1x1x128x128xbf16> to vector<128x128xbf16>
    %cst_30 = arith.constant dense<0.000000e+00> : vector<128x128xf32>
    %46 = tpu.matmul %43, %45, %cst_30 {dimension_numbers = #tpu.dot_dimension_numbers<[1], [0], [0], [1], [0, 0, 1, 1], [], []>} : vector<128x128xbf16>, vector<128x128xbf16>, vector<128x128xf32> -> vector<128x128xf32>
    %47 = arith.addf %41, %46 : vector<128x128xf32>
    %48 = vector.extract_strided_slice %8 {offsets = [2, 0, 0], sizes = [8, 16, 128], strides = [1, 1, 1]} : vector<10x16x128xbf16> to vector<8x16x128xbf16>
    %49 = vector.shape_cast %48 : vector<8x16x128xbf16> to vector<128x128xbf16>
    %c2_31 = arith.constant 2 : index
    %c0_32 = arith.constant 0 : index
    %c0_33 = arith.constant 0 : index
    %c0_34 = arith.constant 0 : index
    %50 = vector.load %arg6[%c2_31, %c0_32, %c0_33, %c0_34] : memref<3x3x128x128xbf16, #tpu.memory_space<vmem>>, vector<1x1x128x128xbf16>
    %51 = vector.shape_cast %50 : vector<1x1x128x128xbf16> to vector<128x128xbf16>
    %cst_35 = arith.constant dense<0.000000e+00> : vector<128x128xf32>
    %52 = tpu.matmul %49, %51, %cst_35 {dimension_numbers = #tpu.dot_dimension_numbers<[1], [0], [0], [1], [0, 0, 1, 1], [], []>} : vector<128x128xbf16>, vector<128x128xbf16>, vector<128x128xf32> -> vector<128x128xf32>
    %53 = arith.addf %47, %52 : vector<128x128xf32>
    %54 = vector.extract_strided_slice %5 {offsets = [2, 0, 0], sizes = [8, 16, 128], strides = [1, 1, 1]} : vector<10x16x128xbf16> to vector<8x16x128xbf16>
    %55 = vector.shape_cast %54 : vector<8x16x128xbf16> to vector<128x128xbf16>
    %c2_36 = arith.constant 2 : index
    %c1_37 = arith.constant 1 : index
    %c0_38 = arith.constant 0 : index
    %c0_39 = arith.constant 0 : index
    %56 = vector.load %arg6[%c2_36, %c1_37, %c0_38, %c0_39] : memref<3x3x128x128xbf16, #tpu.memory_space<vmem>>, vector<1x1x128x128xbf16>
    %57 = vector.shape_cast %56 : vector<1x1x128x128xbf16> to vector<128x128xbf16>
    %cst_40 = arith.constant dense<0.000000e+00> : vector<128x128xf32>
    %58 = tpu.matmul %55, %57, %cst_40 {dimension_numbers = #tpu.dot_dimension_numbers<[1], [0], [0], [1], [0, 0, 1, 1], [], []>} : vector<128x128xbf16>, vector<128x128xbf16>, vector<128x128xf32> -> vector<128x128xf32>
    %59 = arith.addf %53, %58 : vector<128x128xf32>
    %60 = vector.extract_strided_slice %10 {offsets = [2, 0, 0], sizes = [8, 16, 128], strides = [1, 1, 1]} : vector<10x16x128xbf16> to vector<8x16x128xbf16>
    %61 = vector.shape_cast %60 : vector<8x16x128xbf16> to vector<128x128xbf16>
    %c2_41 = arith.constant 2 : index
    %c2_42 = arith.constant 2 : index
    %c0_43 = arith.constant 0 : index
    %c0_44 = arith.constant 0 : index
    %62 = vector.load %arg6[%c2_41, %c2_42, %c0_43, %c0_44] : memref<3x3x128x128xbf16, #tpu.memory_space<vmem>>, vector<1x1x128x128xbf16>
    %63 = vector.shape_cast %62 : vector<1x1x128x128xbf16> to vector<128x128xbf16>
    %cst_45 = arith.constant dense<0.000000e+00> : vector<128x128xf32>
    %64 = tpu.matmul %61, %63, %cst_45 {dimension_numbers = #tpu.dot_dimension_numbers<[1], [0], [0], [1], [0, 0, 1, 1], [], []>} : vector<128x128xbf16>, vector<128x128xbf16>, vector<128x128xf32> -> vector<128x128xf32>
    %65 = arith.addf %59, %64 : vector<128x128xf32>
    %c0_46 = arith.constant 0 : index
    %c0_47 = arith.constant 0 : index
    %66 = vector.load %arg7[%c0_46, %c0_47] : memref<1x128xf32, #tpu.memory_space<vmem>>, vector<1x128xf32>
    %67 = vector.broadcast %66 : vector<1x128xf32> to vector<128x128xf32>
    %68 = arith.addf %65, %67 : vector<128x128xf32>
    %c0_48 = arith.constant 0 : index
    %c0_49 = arith.constant 0 : index
    %c0_50 = arith.constant 0 : index
    %c0_51 = arith.constant 0 : index
    %69 = vector.load %arg8[%c0_48, %c0_49, %c0_50, %c0_51] : memref<1x8x16x128xf32, #tpu.memory_space<vmem>>, vector<1x8x16x128xf32>
    %70 = vector.shape_cast %69 : vector<1x8x16x128xf32> to vector<8x16x128xf32>
    %71 = vector.shape_cast %70 : vector<8x16x128xf32> to vector<128x128xf32>
    %72 = arith.addf %68, %71 : vector<128x128xf32>
    %73 = vector.shape_cast %72 : vector<128x128xf32> to vector<8x16x128xf32>
    %c0_52 = arith.constant 0 : index
    %c0_53 = arith.constant 0 : index
    %c0_54 = arith.constant 0 : index
    %c0_55 = arith.constant 0 : index
    %74 = vector.load %arg9[%c0_52, %c0_53, %c0_54, %c0_55] : memref<1x8x16x128xf32, #tpu.memory_space<vmem>>, vector<1x8x16x128xf32>
    %75 = vector.shape_cast %74 : vector<1x8x16x128xf32> to vector<8x16x128xf32>
    %76 = vector.shape_cast %73 : vector<8x16x128xf32> to vector<1x8x16x128xf32>
    tpu.vector_store %arg9[%c0_52, %c0_53, %c0_54, %c0_55], %76 {strides = array<i32>} : memref<1x8x16x128xf32, #tpu.memory_space<vmem>>, vector<1x8x16x128xf32>,
    return
  }
  func.func @transform_0(%arg0: i32, %arg1: i32) -> (i32, i32, i32, i32) {
    %c0_i32 = arith.constant 0 : i32
    %c0_i32_0 = arith.constant 0 : i32
    %c0_i32_1 = arith.constant 0 : i32
    %c0_i32_2 = arith.constant 0 : i32
    return %arg0, %c0_i32, %c0_i32_0, %c0_i32_1 : i32, i32, i32, i32
  }
  func.func @transform_1(%arg0: i32, %arg1: i32) -> (i32, i32) {
    %c0_i32 = arith.constant 0 : i32
    %c0_i32_0 = arith.constant 0 : i32
    %c0_i32_1 = arith.constant 0 : i32
    return %c0_i32, %c0_i32_0 : i32, i32
  }
  func.func @transform_2(%arg0: i32, %arg1: i32) -> (i32, i32) {
    %c0_i32 = arith.constant 0 : i32
    %c0_i32_0 = arith.constant 0 : i32
    %c0_i32_1 = arith.constant 0 : i32
    return %c0_i32, %c0_i32_0 : i32, i32
  }
  func.func @transform_3(%arg0: i32, %arg1: i32) -> (i32, i32) {
    %c0_i32 = arith.constant 0 : i32
    %c0_i32_0 = arith.constant 0 : i32
    %c0_i32_1 = arith.constant 0 : i32
    return %c0_i32, %c0_i32_0 : i32, i32
  }
  func.func @transform_4(%arg0: i32, %arg1: i32) -> (i32, i32, i32, i32) {
    %c0_i32 = arith.constant 0 : i32
    %c0_i32_0 = arith.constant 0 : i32
    %c0_i32_1 = arith.constant 0 : i32
    %c0_i32_2 = arith.constant 0 : i32
    %c0_i32_3 = arith.constant 0 : i32
    return %c0_i32, %c0_i32_0, %c0_i32_1, %c0_i32_2 : i32, i32, i32, i32
  }
  func.func @transform_5(%arg0: i32, %arg1: i32) -> (i32, i32) {
    %c0_i32 = arith.constant 0 : i32
    %c0_i32_0 = arith.constant 0 : i32
    %c0_i32_1 = arith.constant 0 : i32
    return %c0_i32, %c0_i32_0 : i32, i32
  }
  func.func @transform_6(%arg0: i32, %arg1: i32) -> (i32, i32, i32, i32) {
    %c0_i32 = arith.constant 0 : i32
    %c0_i32_0 = arith.constant 0 : i32
    %c0_i32_1 = arith.constant 0 : i32
    return %arg0, %arg1, %c0_i32, %c0_i32_0 : i32, i32, i32, i32
  }
  func.func @transform_7(%arg0: i32, %arg1: i32) -> (i32, i32, i32, i32) {
    %c0_i32 = arith.constant 0 : i32
    %c0_i32_0 = arith.constant 0 : i32
    %c0_i32_1 = arith.constant 0 : i32
    return %arg0, %arg1, %c0_i32, %c0_i32_0 : i32, i32, i32, i32
  }
}

module attributes {stable_mosaic.version = 11 : i64} {
  func.func @_attn_kernel(%arg0: i32, %arg1: memref<1x256x128xf32, #tpu.memory_space<vmem>>, %arg2: memref<128x128xf32, #tpu.memory_space<vmem>>, %arg3: memref<1x128xf32, #tpu.memory_space<vmem>>, %arg4: memref<1x128xf32, #tpu.memory_space<vmem>>, %arg5: memref<128x384xbf16, #tpu.memory_space<vmem>>, %arg6: memref<1x384xf32, #tpu.memory_space<vmem>>, %arg7: memref<128x128xbf16, #tpu.memory_space<vmem>>, %arg8: memref<1x128xf32, #tpu.memory_space<vmem>>, %arg9: memref<1x256x128xf32, #tpu.memory_space<vmem>>) attributes {dimension_semantics = [#tpu.dimension_semantics<parallel>], iteration_bounds = array<i64: 2>, scalar_prefetch = 0 : i64, scratch_operands = 0 : i64, tpu.core_type = #tpu.core_type<tc>, window_params = [{transform_indices = @transform_0, window_bounds = array<i64: 1, 256, 128>}, {pipeline_mode = #tpu.pipeline_mode<synchronous>, transform_indices = @transform_1, window_bounds = array<i64: 128, 128>}, {pipeline_mode = #tpu.pipeline_mode<synchronous>, transform_indices = @transform_2, window_bounds = array<i64: 1, 128>}, {pipeline_mode = #tpu.pipeline_mode<synchronous>, transform_indices = @transform_3, window_bounds = array<i64: 1, 128>}, {pipeline_mode = #tpu.pipeline_mode<synchronous>, transform_indices = @transform_4, window_bounds = array<i64: 128, 384>}, {pipeline_mode = #tpu.pipeline_mode<synchronous>, transform_indices = @transform_5, window_bounds = array<i64: 1, 384>}, {pipeline_mode = #tpu.pipeline_mode<synchronous>, transform_indices = @transform_6, window_bounds = array<i64: 128, 128>}, {pipeline_mode = #tpu.pipeline_mode<synchronous>, transform_indices = @transform_7, window_bounds = array<i64: 1, 128>}, {transform_indices = @transform_8, window_bounds = array<i64: 1, 256, 128>}]} {
    %c0 = arith.constant 0 : index
    %c0_0 = arith.constant 0 : index
    %c0_1 = arith.constant 0 : index
    %0 = vector.load %arg1[%c0, %c0_0, %c0_1] : memref<1x256x128xf32, #tpu.memory_space<vmem>>, vector<1x256x128xf32>
    %1 = vector.shape_cast %0 : vector<1x256x128xf32> to vector<256x128xf32>
    %c0_2 = arith.constant 0 : index
    %c0_3 = arith.constant 0 : index
    %2 = vector.load %arg2[%c0_2, %c0_3] : memref<128x128xf32, #tpu.memory_space<vmem>>, vector<128x128xf32>
    %cst = arith.constant dense<0.000000e+00> : vector<128xf32>
    %3 = vector.multi_reduction <add>, %1, %cst [0] : vector<256x128xf32> to vector<128xf32>
    %4 = vector.shape_cast %3 : vector<128xf32> to vector<1x128xf32>
    %cst_4 = arith.constant dense<0.000000e+00> : vector<1x128xf32>
    %5 = tpu.matmul %4, %2, %cst_4 {dimension_numbers = #tpu.dot_dimension_numbers<[1], [0], [0], [1], [0, 0, 1, 1], [], []>} : vector<1x128xf32>, vector<128x128xf32>, vector<1x128xf32> -> vector<1x128xf32>
    %6 = vector.broadcast %5 : vector<1x128xf32> to vector<256x128xf32>
    %7 = arith.subf %1, %6 : vector<256x128xf32>
    %8 = arith.mulf %7, %7 : vector<256x128xf32>
    %cst_5 = arith.constant dense<0.000000e+00> : vector<128xf32>
    %9 = vector.multi_reduction <add>, %8, %cst_5 [0] : vector<256x128xf32> to vector<128xf32>
    %10 = vector.shape_cast %9 : vector<128xf32> to vector<1x128xf32>
    %cst_6 = arith.constant dense<0.000000e+00> : vector<1x128xf32>
    %11 = tpu.matmul %10, %2, %cst_6 {dimension_numbers = #tpu.dot_dimension_numbers<[1], [0], [0], [1], [0, 0, 1, 1], [], []>} : vector<1x128xf32>, vector<128x128xf32>, vector<1x128xf32> -> vector<1x128xf32>
    %cst_7 = arith.constant 9.99999974E-6 : f32
    %12 = vector.broadcast %cst_7 : f32 to vector<1x128xf32>
    %13 = arith.addf %11, %12 : vector<1x128xf32>
    %14 = math.rsqrt %13 : vector<1x128xf32>
    %c0_8 = arith.constant 0 : index
    %c0_9 = arith.constant 0 : index
    %15 = vector.load %arg3[%c0_8, %c0_9] : memref<1x128xf32, #tpu.memory_space<vmem>>, vector<1x128xf32>
    %16 = arith.mulf %14, %15 : vector<1x128xf32>
    %c0_10 = arith.constant 0 : index
    %c0_11 = arith.constant 0 : index
    %17 = vector.load %arg4[%c0_10, %c0_11] : memref<1x128xf32, #tpu.memory_space<vmem>>, vector<1x128xf32>
    %18 = arith.mulf %5, %16 : vector<1x128xf32>
    %19 = arith.subf %17, %18 : vector<1x128xf32>
    %20 = vector.broadcast %16 : vector<1x128xf32> to vector<256x128xf32>
    %21 = arith.mulf %1, %20 : vector<256x128xf32>
    %22 = vector.broadcast %19 : vector<1x128xf32> to vector<256x128xf32>
    %23 = arith.addf %21, %22 : vector<256x128xf32>
    %24 = arith.truncf %23 : vector<256x128xf32> to vector<256x128xbf16>
    %c0_12 = arith.constant 0 : index
    %c0_13 = arith.constant 0 : index
    %25 = vector.load %arg5[%c0_12, %c0_13] : memref<128x384xbf16, #tpu.memory_space<vmem>>, vector<128x384xbf16>
    %cst_14 = arith.constant dense<0.000000e+00> : vector<256x384xf32>
    %26 = tpu.matmul %24, %25, %cst_14 {dimension_numbers = #tpu.dot_dimension_numbers<[1], [0], [0], [1], [0, 0, 1, 1], [], []>} : vector<256x128xbf16>, vector<128x384xbf16>, vector<256x384xf32> -> vector<256x384xf32>
    %c0_15 = arith.constant 0 : index
    %c0_16 = arith.constant 0 : index
    %27 = vector.load %arg6[%c0_15, %c0_16] : memref<1x384xf32, #tpu.memory_space<vmem>>, vector<1x384xf32>
    %28 = vector.broadcast %27 : vector<1x384xf32> to vector<256x384xf32>
    %29 = arith.addf %26, %28 : vector<256x384xf32>
    %30 = vector.extract_strided_slice %29 {offsets = [0, 0], sizes = [256, 128], strides = [1, 1]} : vector<256x384xf32> to vector<256x128xf32>
    %31 = arith.truncf %30 : vector<256x128xf32> to vector<256x128xbf16>
    %32 = vector.extract_strided_slice %29 {offsets = [0, 128], sizes = [256, 128], strides = [1, 1]} : vector<256x384xf32> to vector<256x128xf32>
    %33 = arith.truncf %32 : vector<256x128xf32> to vector<256x128xbf16>
    %34 = vector.extract_strided_slice %29 {offsets = [0, 256], sizes = [256, 128], strides = [1, 1]} : vector<256x384xf32> to vector<256x128xf32>
    %35 = arith.truncf %34 : vector<256x128xf32> to vector<256x128xbf16>
    %cst_17 = arith.constant dense<0.000000e+00> : vector<256x256xf32>
    %36 = tpu.matmul %31, %33, %cst_17 {dimension_numbers = #tpu.dot_dimension_numbers<[1], [1], [0], [0], [0, 0, 1, 0], [], []>} : vector<256x128xbf16>, vector<256x128xbf16>, vector<256x256xf32> -> vector<256x256xf32>
    %cst_18 = arith.constant dense<0xFF800000> : vector<256xf32>
    %37 = vector.multi_reduction <maximumf>, %36, %cst_18 [1] : vector<256x256xf32> to vector<256xf32>
    %38 = vector.shape_cast %37 : vector<256xf32> to vector<256x1xf32>
    %39 = vector.broadcast %38 : vector<256x1xf32> to vector<256x256xf32>
    %40 = arith.subf %36, %39 : vector<256x256xf32>
    %41 = math.exp %40 : vector<256x256xf32>
    %cst_19 = arith.constant dense<0.000000e+00> : vector<256xf32>
    %42 = vector.multi_reduction <add>, %41, %cst_19 [1] : vector<256x256xf32> to vector<256xf32>
    %43 = vector.shape_cast %42 : vector<256xf32> to vector<256x1xf32>
    %44 = tpu.reciprocal %43 {approx = true} : vector<256x1xf32> -> vector<256x1xf32>
    %45 = vector.broadcast %44 : vector<256x1xf32> to vector<256x256xf32>
    %46 = arith.mulf %41, %45 : vector<256x256xf32>
    %47 = arith.truncf %46 : vector<256x256xf32> to vector<256x256xbf16>
    %cst_20 = arith.constant dense<0.000000e+00> : vector<256x128xf32>
    %48 = tpu.matmul %47, %35, %cst_20 {dimension_numbers = #tpu.dot_dimension_numbers<[1], [0], [0], [1], [0, 0, 1, 1], [], []>} : vector<256x256xbf16>, vector<256x128xbf16>, vector<256x128xf32> -> vector<256x128xf32>
    %49 = arith.truncf %48 : vector<256x128xf32> to vector<256x128xbf16>
    %c0_21 = arith.constant 0 : index
    %c0_22 = arith.constant 0 : index
    %50 = vector.load %arg7[%c0_21, %c0_22] : memref<128x128xbf16, #tpu.memory_space<vmem>>, vector<128x128xbf16>
    %cst_23 = arith.constant dense<0.000000e+00> : vector<256x128xf32>
    %51 = tpu.matmul %49, %50, %cst_23 {dimension_numbers = #tpu.dot_dimension_numbers<[1], [0], [0], [1], [0, 0, 1, 1], [], []>} : vector<256x128xbf16>, vector<128x128xbf16>, vector<256x128xf32> -> vector<256x128xf32>
    %c0_24 = arith.constant 0 : index
    %c0_25 = arith.constant 0 : index
    %52 = vector.load %arg8[%c0_24, %c0_25] : memref<1x128xf32, #tpu.memory_space<vmem>>, vector<1x128xf32>
    %53 = vector.broadcast %52 : vector<1x128xf32> to vector<256x128xf32>
    %54 = arith.addf %51, %53 : vector<256x128xf32>
    %55 = arith.addf %1, %54 : vector<256x128xf32>
    %c0_26 = arith.constant 0 : index
    %c0_27 = arith.constant 0 : index
    %c0_28 = arith.constant 0 : index
    %56 = vector.load %arg9[%c0_26, %c0_27, %c0_28] : memref<1x256x128xf32, #tpu.memory_space<vmem>>, vector<1x256x128xf32>
    %57 = vector.shape_cast %56 : vector<1x256x128xf32> to vector<256x128xf32>
    %58 = vector.shape_cast %55 : vector<256x128xf32> to vector<1x256x128xf32>
    tpu.vector_store %arg9[%c0_26, %c0_27, %c0_28], %58 {strides = array<i32>} : memref<1x256x128xf32, #tpu.memory_space<vmem>>, vector<1x256x128xf32>,
    return
  }
  func.func @transform_0(%arg0: i32) -> (i32, i32, i32) {
    %c0_i32 = arith.constant 0 : i32
    %c0_i32_0 = arith.constant 0 : i32
    %c0_i32_1 = arith.constant 0 : i32
    return %arg0, %c0_i32, %c0_i32_0 : i32, i32, i32
  }
  func.func @transform_1(%arg0: i32) -> (i32, i32) {
    %c0_i32 = arith.constant 0 : i32
    %c0_i32_0 = arith.constant 0 : i32
    %c0_i32_1 = arith.constant 0 : i32
    return %c0_i32, %c0_i32_0 : i32, i32
  }
  func.func @transform_2(%arg0: i32) -> (i32, i32) {
    %c0_i32 = arith.constant 0 : i32
    %c0_i32_0 = arith.constant 0 : i32
    %c0_i32_1 = arith.constant 0 : i32
    return %c0_i32, %c0_i32_0 : i32, i32
  }
  func.func @transform_3(%arg0: i32) -> (i32, i32) {
    %c0_i32 = arith.constant 0 : i32
    %c0_i32_0 = arith.constant 0 : i32
    %c0_i32_1 = arith.constant 0 : i32
    return %c0_i32, %c0_i32_0 : i32, i32
  }
  func.func @transform_4(%arg0: i32) -> (i32, i32) {
    %c0_i32 = arith.constant 0 : i32
    %c0_i32_0 = arith.constant 0 : i32
    %c0_i32_1 = arith.constant 0 : i32
    return %c0_i32, %c0_i32_0 : i32, i32
  }
  func.func @transform_5(%arg0: i32) -> (i32, i32) {
    %c0_i32 = arith.constant 0 : i32
    %c0_i32_0 = arith.constant 0 : i32
    %c0_i32_1 = arith.constant 0 : i32
    return %c0_i32, %c0_i32_0 : i32, i32
  }
  func.func @transform_6(%arg0: i32) -> (i32, i32) {
    %c0_i32 = arith.constant 0 : i32
    %c0_i32_0 = arith.constant 0 : i32
    %c0_i32_1 = arith.constant 0 : i32
    return %c0_i32, %c0_i32_0 : i32, i32
  }
  func.func @transform_7(%arg0: i32) -> (i32, i32) {
    %c0_i32 = arith.constant 0 : i32
    %c0_i32_0 = arith.constant 0 : i32
    %c0_i32_1 = arith.constant 0 : i32
    return %c0_i32, %c0_i32_0 : i32, i32
  }
  func.func @transform_8(%arg0: i32) -> (i32, i32, i32) {
    %c0_i32 = arith.constant 0 : i32
    %c0_i32_0 = arith.constant 0 : i32
    %c0_i32_1 = arith.constant 0 : i32
    return %arg0, %c0_i32, %c0_i32_0 : i32, i32, i32
  }
}

</mosaic_0001>

<bundles_post_ra>
// kernel: unet_mid_block2d.5
= control target key start
LH: loop header
LB: loop body
LE: loop exit
PB: predicated region body
PF: predicated region fallthrough
CT: control target
= control target key end

     0   :  { %s3807_s21 = smov 0   ;;  %s3809_s22 = smov 0   ;;  %s6022_s0 = inlined_call_operand.vmem [shape: f32[2,16,16,128], index: 0, kind: input, shape index: {}]   ;;  %s6023_s1 = inlined_call_operand.vmem [shape: f32[128,128], index: 1, kind: input, shape index: {}]   ;;  %s6024_s2 = inlined_call_operand.vmem [shape: f32[1,128], index: 2, kind: input, shape index: {}]   ;;  %s6025_s3 = inlined_call_operand.vmem [shape: f32[1,128], index: 3, kind: input, shape index: {}]   ;;  %s6026_s4 = inlined_call_operand.vmem [shape: bf16[3,3,128,128], index: 4, kind: input, shape index: {}]   ;;  %s6027_s5 = inlined_call_operand.vmem [shape: f32[1,128], index: 5, kind: input, shape index: {}]   ;;  %s6028_s6 = inlined_call_operand.vmem [shape: bf16[2,16,16,128], index: 6, kind: output, shape index: {}]  }
   0x1   :  { %s3811_s23 = smov 0   ;;  %s3813_s24 = smov 0  }
   0x2   :  { %s3815_s25 = smov 0  }
   0x3 LB: > { %s25_s26 = sadd.s32 1, %s3761_s23  ;;  %s28_s27 = sadd.s32 1, %s3765_s24  ;;  %s3769_s25 = sphi %s3815_s25, %s16_s25   ;;  %s3765_s24 = sphi %s3813_s24, %s6309_s24   ;;  %s3761_s23 = sphi %s3811_s23, %s6308_s23   ;;  %s3757_s22 = sphi %s3809_s22, %s6307_s22   ;;  %s3753_s21 = sphi %s3807_s21, %s6306_s21  }
   0x4   : > { %p26_p0 = scmp.ge.s32.totalorder %s25_s26, 2  ;;  %p2807_p1 = scmp.ge.s32.totalorder %s3769_s25, 1 }
   0x5   : > { %p226_p2 = scmp.lt.s32.totalorder %s3769_s25, 5 }
   0x6   : > { %s6311_s26 = smov (%p26_p0, %s25_s26), 0  ;;  %s6313_s27 = smov (!%p26_p0, %s28_s27), %s3765_s24 }
   0x7   : > { %p227_p3 = pnand %p2807_p1, %p226_p2  ;;  %p30_p4 = scmp.ge.s32.totalorder %s6313_s27, 2 }
   0x8   : > { %p261_p5 = scmp.lt.s32.totalorder (!%p227_p3), %s3757_s22, 1  ;;  %s2810_s28 = sshll.u32 (!%p227_p3), %s3753_s21, 3 }
   0x9   : > { %s6315_s27 = smov (%p30_p4, %s6313_s27), 0  ;;  %230 = sbr.rel (%p227_p3) target bundleno = 1078 (0x436), region = 44 }
   0xa   : > { %p269_p6 = scmp.lt.s32.totalorder (!%p227_p3), %s2810_s28, 15  ;;  %p2814_p7 = scmp.ne.s32.totalorder (!%p227_p3), %s3753_s21, 0 }
   0xe   : > { %s6317_s22 = smov (!%p261_p5, %s3757_s22), 1  ;;  %s6319_s28 = smov (!%p269_p6, %s2810_s28), 15 }
   0xf   : > { %s3308_s29 = sshll.u32 %s6317_s22, 8  ;;  %s2812_s30 = sshll.u32 %s6317_s22, 5 }
  0x10   : > { %s3843_s9 = scalar_lea.vmem %s6022_s0, %s3308_s29  ;;  %s2811_s10 = sshll.u32 %s6319_s28, 1 }
  0x11   : > { %s273_s11 = sadd.s32 %s2812_s30, %s2811_s10  ;;  %281 = sbr.rel (%p2814_p7) target bundleno = 623 (0x26f), region = 48 }
  0x12   : > { %s2813_s12 = sshll.u32 %s273_s11, 2 }
  0x13   : > { %s3848_s15 = scalar_lea.vmem %s6028_s6, %s2813_s12 }
  0x16   : > { %v329_v0 = vld [vmem:[%s6023_s1 + $0x78] sm:$0xff]  ;;  %v328_v1 = vld [vmem:[%s6023_s1 + $0x70] sm:$0xff]  ;;  %v327_v2 = vld [vmem:[%s6023_s1 + $0x68] sm:$0xff] }
  0x17   : > { %367 = vmatpush.msra.mxu0 %v329_v0  ;;  %489 = vmatpush.msra.mxu1 %v329_v0  ;;  %v326_v3 = vld [vmem:[%s6023_s1 + $0x60] sm:$0xff]  ;;  %v3867_v5 = vld [vmem:[%s3843_s9 + $0x8] sm:$0xff]  ;;  %v325_v6 = vld [vmem:[%s6023_s1 + $0x58] sm:$0xff] }
  0x18   : > { %v3864_v4 = vld [vmem:[%s3843_s9] sm:$0xff]  ;;  %v3873_v7 = vld [vmem:[%s3843_s9 + $0x10] sm:$0xff]  ;;  %v3878_v9 = vld [vmem:[%s3843_s9 + $0x18] sm:$0xff] }
  0x19   : > { %368 = vmatpush.msra.mxu0 %v328_v1  ;;  %490 = vmatpush.msra.mxu1 %v328_v1  ;;  %v330_v8 = vadd.f32 %v3867_v5, %v3864_v4  ;;  %v324_v10 = vld [vmem:[%s6023_s1 + $0x50] sm:$0xff]  ;;  %v3885_v12 = vld [vmem:[%s3843_s9 + $0x20] sm:$0xff]  ;;  %v323_v13 = vld [vmem:[%s6023_s1 + $0x48] sm:$0xff] }
  0x1a   : > { %v3892_v15 = vld [vmem:[%s3843_s9 + $0x28] sm:$0xff]  ;;  %v322_v16 = vld [vmem:[%s6023_s1 + $0x40] sm:$0xff]  ;;  %v3899_v18 = vld [vmem:[%s3843_s9 + $0x30] sm:$0xff] }
  0x1b   : > { %369 = vmatpush.msra.mxu0 %v327_v2  ;;  %491 = vmatpush.msra.mxu1 %v327_v2  ;;  %v331_v11 = vadd.f32 %v330_v8, %v3873_v7  ;;  %v321_v19 = vld [vmem:[%s6023_s1 + $0x38] sm:$0xff]  ;;  %v320_v22 = vld [vmem:[%s6023_s1 + $0x30] sm:$0xff]  ;;  %v3913_v24 = vld [vmem:[%s3843_s9 + $0x40] sm:$0xff] }
  0x1c   : > { %v3906_v21 = vld [vmem:[%s3843_s9 + $0x38] sm:$0xff]  ;;  %v319_v25 = vld [vmem:[%s6023_s1 + $0x28] sm:$0xff]  ;;  %v318_v28 = vld [vmem:[%s6023_s1 + $0x20] sm:$0xff] }
  0x1d   : > { %370 = vmatpush.msra.mxu0 %v326_v3  ;;  %492 = vmatpush.msra.mxu1 %v326_v3  ;;  %v332_v14 = vadd.f32 %v331_v11, %v3878_v9  ;;  %v3920_v27 = vld [vmem:[%s3843_s9 + $0x48] sm:$0xff]  ;;  %v3927_v30 = vld [vmem:[%s3843_s9 + $0x50] sm:$0xff]  ;;  %v317_v31 = vld [vmem:[%s6023_s1 + $0x18] sm:$0xff] }
  0x1e   : > { %v3934_v33 = vld [vmem:[%s3843_s9 + $0x58] sm:$0xff]  ;;  %v316_v34 = vld [vmem:[%s6023_s1 + $0x10] sm:$0xff]  ;;  %v3941_v36 = vld [vmem:[%s3843_s9 + $0x60] sm:$0xff] }
  0x1f   : > { %371 = vmatpush.msra.mxu0 %v325_v6  ;;  %493 = vmatpush.msra.mxu1 %v325_v6  ;;  %v333_v17 = vadd.f32 %v332_v14, %v3885_v12  ;;  %v315_v37 = vld [vmem:[%s6023_s1 + $0x8] sm:$0xff]  ;;  %v314_v40 = vld [vmem:[%s6023_s1] sm:$0xff]  ;;  %v3955_v42 = vld [vmem:[%s3843_s9 + $0x70] sm:$0xff] }
  0x20   : > { %v3948_v39 = vld [vmem:[%s3843_s9 + $0x68] sm:$0xff]  ;;  %v3959_v44 = vld [vmem:[%s3843_s9 + $0x78] sm:$0xff]  ;;  %v3963_v46 = vld [vmem:[%s3843_s9 + $0x80] sm:$0xff] }
  0x21   : > { %372 = vmatpush.msra.mxu0 %v324_v10  ;;  %494 = vmatpush.msra.mxu1 %v324_v10  ;;  %v334_v20 = vadd.f32 %v333_v17, %v3892_v15  ;;  %v3967_v48 = vld [vmem:[%s3843_s9 + $0x88] sm:$0xff]  ;;  %v3971_v50 = vld [vmem:[%s3843_s9 + $0x90] sm:$0xff]  ;;  %v3975_v52 = vld [vmem:[%s3843_s9 + $0x98] sm:$0xff] }
  0x22   : > { %v3979_v54 = vld [vmem:[%s3843_s9 + $0xa0] sm:$0xff]  ;;  %v3983_v56 = vld [vmem:[%s3843_s9 + $0xa8] sm:$0xff]  ;;  %v3987_v58 = vld [vmem:[%s3843_s9 + $0xb0] sm:$0xff] }
  0x23   : > { %373 = vmatpush.msra.mxu0 %v323_v13  ;;  %495 = vmatpush.msra.mxu1 %v323_v13  ;;  %v335_v23 = vadd.f32 %v334_v20, %v3899_v18  ;;  %v3991_v60 = vld [vmem:[%s3843_s9 + $0xb8] sm:$0xff]  ;;  %v3995_v62 = vld [vmem:[%s3843_s9 + $0xc0] sm:$0xff]  ;;  %v3999_v0 = vld [vmem:[%s3843_s9 + $0xc8] sm:$0xff] }
  0x24   : > { %v4003_v2 = vld [vmem:[%s3843_s9 + $0xd0] sm:$0xff]  ;;  %v4007_v6 = vld [vmem:[%s3843_s9 + $0xd8] sm:$0xff]  ;;  %v4011_v10 = vld [vmem:[%s3843_s9 + $0xe0] sm:$0xff] }
  0x25   : > { %374 = vmatpush.msra.mxu0 %v322_v16  ;;  %496 = vmatpush.msra.mxu1 %v322_v16  ;;  %v336_v26 = vadd.f32 %v335_v23, %v3906_v21  ;;  %v4015_v13 = vld [vmem:[%s3843_s9 + $0xe8] sm:$0xff]  ;;  %v4019_v16 = vld [vmem:[%s3843_s9 + $0xf0] sm:$0xff] }
  0x27   : > { %375 = vmatpush.msra.mxu0 %v321_v19  ;;  %497 = vmatpush.msra.mxu1 %v321_v19  ;;  %v337_v29 = vadd.f32 %v336_v26, %v3913_v24  ;;  %v4023_v19 = vld [vmem:[%s3843_s9 + $0xf8] sm:$0xff] }
  0x29   : > { %376 = vmatpush.msra.mxu0 %v320_v22  ;;  %498 = vmatpush.msra.mxu1 %v320_v22  ;;  %v338_v32 = vadd.f32 %v337_v29, %v3920_v27 }
  0x2b   : > { %377 = vmatpush.msra.mxu0 %v319_v25  ;;  %499 = vmatpush.msra.mxu1 %v319_v25  ;;  %v339_v35 = vadd.f32 %v338_v32, %v3927_v30 }
  0x2d   : > { %378 = vmatpush.msra.mxu0 %v318_v28  ;;  %500 = vmatpush.msra.mxu1 %v318_v28  ;;  %v340_v38 = vadd.f32 %v339_v35, %v3934_v33 }
  0x2f   : > { %379 = vmatpush.msra.mxu0 %v317_v31  ;;  %501 = vmatpush.msra.mxu1 %v317_v31  ;;  %v341_v41 = vadd.f32 %v340_v38, %v3941_v36 }
  0x31   : > { %380 = vmatpush.msra.mxu0 %v316_v34  ;;  %502 = vmatpush.msra.mxu1 %v316_v34  ;;  %v342_v43 = vadd.f32 %v341_v41, %v3948_v39 }
  0x33   : > { %381 = vmatpush.msra.mxu0 %v315_v37  ;;  %503 = vmatpush.msra.mxu1 %v315_v37  ;;  %v343_v45 = vadd.f32 %v342_v43, %v3955_v42 }
  0x35   : > { %382 = vmatpush.msra.mxu0 %v314_v40  ;;  %504 = vmatpush.msra.mxu1 %v314_v40  ;;  %v344_v47 = vadd.f32 %v343_v45, %v3959_v44 }
  0x37   : > { %v345_v49 = vadd.f32 %v344_v47, %v3963_v46 }
  0x39   : > { %v346_v51 = vadd.f32 %v345_v49, %v3967_v48 }
  0x3b   : > { %v347_v53 = vadd.f32 %v346_v51, %v3971_v50 }
  0x3d   : > { %v348_v55 = vadd.f32 %v347_v53, %v3975_v52 }
  0x3f   : > { %v349_v57 = vadd.f32 %v348_v55, %v3979_v54 }
  0x41   : > { %v350_v59 = vadd.f32 %v349_v57, %v3983_v56 }
  0x43   : > { %v351_v61 = vadd.f32 %v350_v59, %v3987_v58 }
  0x45   : > { %v352_v63 = vadd.f32 %v351_v61, %v3991_v60 }
  0x47   : > { %v353_v1 = vadd.f32 %v352_v63, %v3995_v62 }
  0x49   : > { %v354_v3 = vadd.f32 %v353_v1, %v3999_v0 }
  0x4b   : > { %v355_v8 = vadd.f32 %v354_v3, %v4003_v2 }
  0x4d   : > { %v356_v11 = vadd.f32 %v355_v8, %v4007_v6 }
  0x4f   : > { %v357_v14 = vadd.f32 %v356_v11, %v4011_v10 }
  0x51   : > { %v358_v17 = vadd.f32 %v357_v14, %v4015_v13 }
  0x53   : > { %v359_v20 = vadd.f32 %v358_v17, %v4019_v16 }
  0x55   : > { %v360_v22 = vadd.f32 %v359_v20, %v4023_v19 }
  0x57   : > { %v361_v23 = vrot.slane %v360_v22, 4 }
  0x59   : > { %v362_v25 = vadd.f32 %v361_v23, %v360_v22 }
  0x5b   : > { %v363_v26 = vrot.slane %v362_v25, 2 }
  0x5d   : > { %v364_v28 = vadd.f32 %v363_v26, %v362_v25 }
  0x5f   : > { %v365_v29 = vrot.slane %v364_v28, 1 }
  0x61   : > { %v366_v31 = vadd.f32 %v365_v29, %v364_v28 }
  0x63   : > { %383 = vmatmul.f32.vlgmr.msra.gmra.mxu0 %v366_v31 }
  0xe0   : > { %v4027_v32 = vpop.f32.mrf.mxu0 }
  0xe1   : > { %v4030_v34 = vperm.slane %v4027_v32, 0 }
  0xe3   : > { %v388_v35 = vsub.f32 %v3864_v4, %v4030_v34  ;;  %v389_v37 = vsub.f32 %v3867_v5, %v4030_v34  ;;  %v390_v38 = vsub.f32 %v3873_v7, %v4030_v34  ;;  %v391_v43 = vsub.f32 %v3878_v9, %v4030_v34 }
  0xe4   : > { %v392_v45 = vsub.f32 %v3885_v12, %v4030_v34  ;;  %v393_v51 = vsub.f32 %v3892_v15, %v4030_v34  ;;  %v394_v57 = vsub.f32 %v3899_v18, %v4030_v34  ;;  %v395_v63 = vsub.f32 %v3906_v21, %v4030_v34 }
  0xe5   : > { %v420_v40 = vmul.f32 %v388_v35, %v388_v35  ;;  %v421_v41 = vmul.f32 %v389_v37, %v389_v37  ;;  %v422_v47 = vmul.f32 %v390_v38, %v390_v38  ;;  %v423_v53 = vmul.f32 %v391_v43, %v391_v43 }
  0xe6   : > { %v424_v59 = vmul.f32 %v392_v45, %v392_v45  ;;  %v425_v1 = vmul.f32 %v393_v51, %v393_v51  ;;  %v396_v8 = vsub.f32 %v3913_v24, %v4030_v34  ;;  %v426_v11 = vmul.f32 %v394_v57, %v394_v57 }
  0xe7   : > { %v452_v49 = vadd.f32 %v421_v41, %v420_v40  ;;  %v397_v17 = vsub.f32 %v3920_v27, %v4030_v34  ;;  %v427_v20 = vmul.f32 %v395_v63, %v395_v63  ;;  %v398_v23 = vsub.f32 %v3927_v30, %v4030_v34 }
  0xe8   : > { %v428_v25 = vmul.f32 %v396_v8, %v396_v8  ;;  %v399_v28 = vsub.f32 %v3934_v33, %v4030_v34  ;;  %v400_v35 = vsub.f32 %v3941_v36, %v4030_v34  ;;  %v401_v40 = vsub.f32 %v3948_v39, %v4030_v34 }
  0xe9   : > { %v453_v55 = vadd.f32 %v452_v49, %v422_v47  ;;  %v429_v29 = vmul.f32 %v397_v17, %v397_v17  ;;  %v430_v37 = vmul.f32 %v398_v23, %v398_v23  ;;  %v402_v45 = vsub.f32 %v3955_v42, %v4030_v34 }
  0xea   : > { %v431_v41 = vmul.f32 %v399_v28, %v399_v28  ;;  %v432_v47 = vmul.f32 %v400_v35, %v400_v35  ;;  %v403_v51 = vsub.f32 %v3959_v44, %v4030_v34  ;;  %v404_v57 = vsub.f32 %v3963_v46, %v4030_v34 }
  0xeb   : > { %v454_v61 = vadd.f32 %v453_v55, %v423_v53  ;;  %v433_v53 = vmul.f32 %v401_v40, %v401_v40  ;;  %v405_v63 = vsub.f32 %v3967_v48, %v4030_v34  ;;  %v406_v8 = vsub.f32 %v3971_v50, %v4030_v34 }
  0xec   : > { %v407_v17 = vsub.f32 %v3975_v52, %v4030_v34  ;;  %v408_v23 = vsub.f32 %v3979_v54, %v4030_v34  ;;  %v409_v28 = vsub.f32 %v3983_v56, %v4030_v34  ;;  %v410_v35 = vsub.f32 %v3987_v58, %v4030_v34 }
  0xed   : > { %v455_v3 = vadd.f32 %v454_v61, %v424_v59  ;;  %v434_v59 = vmul.f32 %v402_v45, %v402_v45  ;;  %v411_v40 = vsub.f32 %v3991_v60, %v4030_v34  ;;  %v412_v45 = vsub.f32 %v3995_v62, %v4030_v34 }
  0xef   : > { %v456_v14 = vadd.f32 %v455_v3, %v425_v1  ;;  %v435_v1 = vmul.f32 %v403_v51, %v403_v51  ;;  %v413_v51 = vsub.f32 %v3999_v0, %v4030_v34 }
  0xf1   : > { %v457_v22 = vadd.f32 %v456_v14, %v426_v11  ;;  %v436_v11 = vmul.f32 %v404_v57, %v404_v57  ;;  %v414_v57 = vsub.f32 %v4003_v2, %v4030_v34 }
  0xf3   : > { %v458_v26 = vadd.f32 %v457_v22, %v427_v20  ;;  %v437_v20 = vmul.f32 %v405_v63, %v405_v63  ;;  %v415_v63 = vsub.f32 %v4007_v6, %v4030_v34 }
  0xf5   : > { %v459_v31 = vadd.f32 %v458_v26, %v428_v25  ;;  %v438_v25 = vmul.f32 %v406_v8, %v406_v8  ;;  %v416_v8 = vsub.f32 %v4011_v10, %v4030_v34 }
  0xf7   : > { %v460_v38 = vadd.f32 %v459_v31, %v429_v29  ;;  %v439_v29 = vmul.f32 %v407_v17, %v407_v17  ;;  %v417_v17 = vsub.f32 %v4015_v13, %v4030_v34 }
  0xf9   : > { %v461_v43 = vadd.f32 %v460_v38, %v430_v37  ;;  %v440_v37 = vmul.f32 %v408_v23, %v408_v23  ;;  %v418_v23 = vsub.f32 %v4019_v16, %v4030_v34 }
  0xfb   : > { %v462_v49 = vadd.f32 %v461_v43, %v431_v41  ;;  %v441_v41 = vmul.f32 %v409_v28, %v409_v28  ;;  %v419_v28 = vsub.f32 %v4023_v19, %v4030_v34 }
  0xfd   : > { %v463_v55 = vadd.f32 %v462_v49, %v432_v47  ;;  %v442_v47 = vmul.f32 %v410_v35, %v410_v35  ;;  %v450_v35 = vmul.f32 %v418_v23, %v418_v23 }
  0xff   : > { %v464_v61 = vadd.f32 %v463_v55, %v433_v53  ;;  %v443_v53 = vmul.f32 %v411_v40, %v411_v40 }
 0x101   : > { %v465_v3 = vadd.f32 %v464_v61, %v434_v59  ;;  %v444_v59 = vmul.f32 %v412_v45, %v412_v45 }
 0x103   : > { %v466_v14 = vadd.f32 %v465_v3, %v435_v1  ;;  %v445_v1 = vmul.f32 %v413_v51, %v413_v51 }
 0x105   : > { %v467_v22 = vadd.f32 %v466_v14, %v436_v11  ;;  %v446_v11 = vmul.f32 %v414_v57, %v414_v57 }
 0x107   : > { %v468_v26 = vadd.f32 %v467_v22, %v437_v20  ;;  %v447_v20 = vmul.f32 %v415_v63, %v415_v63 }
 0x109   : > { %v469_v31 = vadd.f32 %v468_v26, %v438_v25  ;;  %v448_v25 = vmul.f32 %v416_v8, %v416_v8 }
 0x10b   : > { %v470_v38 = vadd.f32 %v469_v31, %v439_v29  ;;  %v449_v29 = vmul.f32 %v417_v17, %v417_v17 }
 0x10d   : > { %v471_v43 = vadd.f32 %v470_v38, %v440_v37  ;;  %v451_v38 = vmul.f32 %v419_v28, %v419_v28 }
 0x10f   : > { %v472_v49 = vadd.f32 %v471_v43, %v441_v41 }
 0x111   : > { %v473_v55 = vadd.f32 %v472_v49, %v442_v47 }
 0x113   : > { %v474_v61 = vadd.f32 %v473_v55, %v443_v53 }
 0x115   : > { %v475_v3 = vadd.f32 %v474_v61, %v444_v59 }
 0x117   : > { %v476_v14 = vadd.f32 %v475_v3, %v445_v1 }
 0x119   : > { %v477_v22 = vadd.f32 %v476_v14, %v446_v11  ;;  %v519_v11 = vld [vmem:[%s6024_s2] sm:$0x1] }
 0x11b   : > { %v478_v26 = vadd.f32 %v477_v22, %v447_v20  ;;  %v521_v20 = vld [vmem:[%s6025_s3] sm:$0x1] }
 0x11d   : > { %v479_v31 = vadd.f32 %v478_v26, %v448_v25 }
 0x11f   : > { %v480_v37 = vadd.f32 %v479_v31, %v449_v29 }
 0x121   : > { %v481_v40 = vadd.f32 %v480_v37, %v450_v35 }
 0x123   : > { %v482_v41 = vadd.f32 %v481_v40, %v451_v38 }
 0x125   : > { %v483_v43 = vrot.slane %v482_v41, 4 }
 0x127   : > { %v484_v45 = vadd.f32 %v483_v43, %v482_v41 }
 0x129   : > { %v485_v47 = vrot.slane %v484_v45, 2 }
 0x12b   : > { %v486_v49 = vadd.f32 %v485_v47, %v484_v45 }
 0x12d   : > { %v487_v51 = vrot.slane %v486_v49, 1 }
 0x12f   : > { %v488_v53 = vadd.f32 %v487_v51, %v486_v49 }
 0x131   : > { %505 = vmatmul.f32.vlgmr.msra.gmra.mxu1 %v488_v53 }
 0x1ae   : > { %v506_v55 = vpop.f32.mrf.mxu1 }
 0x1af   : > { %v507_v57 = vadd.f32 1e-05, %v506_v55 }
 0x1b1   : > { %3600 = vrsqrt.f32 %v507_v57  ;;  %vm515_vm1 = vweird.f32 %v507_v57 }
 0x1b7   : > { %v3601_v59 = vpop.eup %3600 }
 0x1b8   : > { %v510_v61 = vmul.f32 %v3601_v59, %v507_v57  ;;  %vm516_vm0 = vweird.f32 %v3601_v59 }
 0x1b9   : > { %vm517_vm2 = vmor %vm515_vm1, %vm516_vm0 }
 0x1ba   : > { %v511_v34 = vmul.f32 %v3601_v59, %v510_v61 }
 0x1bc   : > { %v512_v63 = vmul.f32 0.5, %v511_v34 }
 0x1be   : > { %v513_v1 = vsub.f32 1.5, %v512_v63 }
 0x1c0   : > { %v514_v3 = vmul.f32 %v3601_v59, %v513_v1 }
 0x1c2   : > { %v518_v8 = vsel %vm517_vm2, %v3601_v59, %v514_v3 }
 0x1c3   : > { %v520_v14 = vmul.f32 %v519_v11, %v518_v8 }
 0x1c5   : > { %v522_v17 = vmul.f32 %v520_v14, %v4027_v32  ;;  %v4103_v23 = vperm.slane %v520_v14, 0 }
 0x1c7   : > { %v523_v22 = vsub.f32 %v521_v20, %v522_v17  ;;  %v525_v26 = vmul.f32 %v4103_v23, %v3864_v4  ;;  %v526_v28 = vmul.f32 %v4103_v23, %v3867_v5  ;;  %v527_v29 = vmul.f32 %v4103_v23, %v3873_v7 }
 0x1c8   : > { %v528_v31 = vmul.f32 %v4103_v23, %v3878_v9  ;;  %v529_v37 = vmul.f32 %v4103_v23, %v3885_v12  ;;  %v530_v5 = vmul.f32 %v4103_v23, %v3892_v15  ;;  %v531_v38 = vmul.f32 %v4103_v23, %v3899_v18 }
 0x1c9   : > { %v4105_v25 = vperm.slane %v523_v22, 0  ;;  %v532_v9 = vmul.f32 %v4103_v23, %v3906_v21  ;;  %v533_v41 = vmul.f32 %v4103_v23, %v3913_v24  ;;  %v534_v15 = vmul.f32 %v4103_v23, %v3920_v27 }
 0x1ca   : > { %v535_v18 = vmul.f32 %v4103_v23, %v3927_v30  ;;  %v536_v21 = vmul.f32 %v4103_v23, %v3934_v33  ;;  %v537_v24 = vmul.f32 %v4103_v23, %v3941_v36  ;;  %v538_v27 = vmul.f32 %v4103_v23, %v3948_v39 }
 0x1cb   : > { %v4114_v32 = vadd.f32 %v4105_v25, %v525_v26  ;;  %v4119_v35 = vadd.f32 %v4105_v25, %v526_v28  ;;  %v4124_v4 = vadd.f32 %v4105_v25, %v527_v29  ;;  %v4129_v7 = vadd.f32 %v4105_v25, %v528_v31 }
 0x1cc   : > { %v4136_v40 = vadd.f32 %v4105_v25, %v529_v37  ;;  %v4144_v43 = vadd.f32 %v4105_v25, %v530_v5  ;;  %v4152_v47 = vadd.f32 %v4105_v25, %v531_v38  ;;  %v4160_v51 = vadd.f32 %v4105_v25, %v532_v9 }
 0x1cd   : > { %6072 = vst [vmem:[#allocation3_spill] sm:$0xff] %v4114_v32  ;;  %v2815_v12 = vmul.f32 -1.442695, %v4114_v32  ;;  %v2816_v45 = vmul.f32 -1.442695, %v4119_v35  ;;  %v539_v30 = vmul.f32 %v4103_v23, %v3955_v42  ;;  %v4166_v33 = vadd.f32 %v4105_v25, %v533_v41 }
 0x1ce   : > { %6073 = vst [vmem:[#allocation4_spill] sm:$0xff] %v4119_v35  ;;  %v2817_v49 = vmul.f32 -1.442695, %v4124_v4  ;;  %v2818_v53 = vmul.f32 -1.442695, %v4129_v7  ;;  %v540_v36 = vmul.f32 %v4103_v23, %v3959_v44  ;;  %v4172_v57 = vadd.f32 %v4105_v25, %v534_v15 }
 0x1cf   : > { %6074 = vst [vmem:[#allocation5_spill] sm:$0xff] %v4124_v4  ;;  %3602 = vpow2.f32 %v2815_v12  ;;  %v2819_v55 = vmul.f32 -1.442695, %v4136_v40  ;;  %v2820_v39 = vmul.f32 -1.442695, %v4144_v43  ;;  %v541_v59 = vmul.f32 %v4103_v23, %v3963_v46 }
 0x1d0   : > { %6075 = vst [vmem:[#allocation6_spill] sm:$0xff] %v4129_v7  ;;  %3604 = vpow2.f32 %v2816_v45  ;;  %v4178_v42 = vadd.f32 %v4105_v25, %v535_v18  ;;  %v2821_v61 = vmul.f32 -1.442695, %v4152_v47  ;;  %v542_v34 = vmul.f32 %v4103_v23, %v3967_v48 }
 0x1d1   : > { %6076 = vst [vmem:[#allocation7_spill] sm:$0xff] %v4136_v40  ;;  %3606 = vpow2.f32 %v2817_v49  ;;  %v4184_v44 = vadd.f32 %v4105_v25, %v536_v21  ;;  %v2822_v63 = vmul.f32 -1.442695, %v4160_v51  ;;  %v543_v1 = vmul.f32 %v4103_v23, %v3971_v50 }
 0x1d2   : > { %6077 = vst [vmem:[#allocation8_spill] sm:$0xff] %v4144_v43  ;;  %3608 = vpow2.f32 %v2818_v53  ;;  %v4190_v46 = vadd.f32 %v4105_v25, %v537_v24  ;;  %v2823_v3 = vmul.f32 -1.442695, %v4166_v33  ;;  %v544_v8 = vmul.f32 %v4103_v23, %v3975_v52 }
 0x1d3   : > { %6078 = vst [vmem:[#allocation9_spill] sm:$0xff] %v4152_v47  ;;  %3610 = vpow2.f32 %v2819_v55  ;;  %v4196_v48 = vadd.f32 %v4105_v25, %v538_v27  ;;  %v2824_v11 = vmul.f32 -1.442695, %v4172_v57  ;;  %v545_v50 = vmul.f32 %v4103_v23, %v3979_v54 }
 0x1d4   : > { %6079 = vst [vmem:[#allocation10_spill] sm:$0xff] %v4160_v51  ;;  %3612 = vpow2.f32 %v2820_v39  ;;  %v4204_v17 = vadd.f32 %v4105_v25, %v539_v30  ;;  %v2825_v20 = vmul.f32 -1.442695, %v4178_v42  ;;  %v546_v52 = vmul.f32 %v4103_v23, %v3983_v56 }
 0x1d5   : > { %6080 = vst [vmem:[#allocation11_spill] sm:$0xff] %v4166_v33  ;;  %v4199_v14 = vpop.eup %3602  ;;  %3614 = vpow2.f32 %v2821_v61  ;;  %v4212_v26 = vadd.f32 %v4105_v25, %v540_v36  ;;  %v2826_v28 = vmul.f32 -1.442695, %v4184_v44  ;;  %v547_v54 = vmul.f32 %v4103_v23, %v3987_v58 }
 0x1d6   : > { %6081 = vst [vmem:[#allocation12_spill] sm:$0xff] %v4172_v57  ;;  %v4207_v22 = vpop.eup %3604  ;;  %3616 = vpow2.f32 %v2822_v63  ;;  %v4220_v31 = vadd.f32 %v4105_v25, %v541_v59  ;;  %v2827_v37 = vmul.f32 -1.442695, %v4190_v46  ;;  %v548_v56 = vmul.f32 %v4103_v23, %v3991_v60 }
 0x1d7   : > { %6082 = vst [vmem:[#allocation13_spill] sm:$0xff] %v4178_v42  ;;  %v4215_v29 = vpop.eup %3606  ;;  %3618 = vpow2.f32 %v2823_v3  ;;  %v4228_v38 = vadd.f32 %v4105_v25, %v542_v34  ;;  %v2828_v9 = vmul.f32 -1.442695, %v4196_v48  ;;  %v549_v58 = vmul.f32 %v4103_v23, %v3995_v62 }
 0x1d8   : > { %6083 = vst [vmem:[#allocation14_spill] sm:$0xff] %v4184_v44  ;;  %v4223_v5 = vpop.eup %3608  ;;  %3620 = vpow2.f32 %v2824_v11  ;;  %v4236_v41 = vadd.f32 %v4105_v25, %v543_v1  ;;  %v2829_v15 = vmul.f32 -1.442695, %v4204_v17  ;;  %v550_v60 = vmul.f32 %v4103_v23, %v3999_v0 }
 0x1d9   : > { %6084 = vst [vmem:[#allocation15_spill] sm:$0xff] %v4190_v46  ;;  %v4231_v12 = vpop.eup %3610  ;;  %3622 = vpow2.f32 %v2825_v20  ;;  %v4244_v18 = vadd.f32 %v4105_v25, %v544_v8  ;;  %v2830_v21 = vmul.f32 -1.442695, %v4212_v26  ;;  %v551_v62 = vmul.f32 %v4103_v23, %v4003_v2 }
 0x1da   : > { %6085 = vst [vmem:[#allocation16_spill] sm:$0xff] %v4196_v48  ;;  %v4239_v45 = vpop.eup %3612  ;;  %3624 = vpow2.f32 %v2826_v28  ;;  %v4252_v24 = vadd.f32 %v4105_v25, %v545_v50  ;;  %v2831_v27 = vmul.f32 -1.442695, %v4220_v31  ;;  %v552_v0 = vmul.f32 %v4103_v23, %v4007_v6 }
 0x1db   : > { %6086 = vst [vmem:[#allocation17_spill] sm:$0xff] %v4204_v17  ;;  %v4247_v49 = vpop.eup %3614  ;;  %3626 = vpow2.f32 %v2827_v37  ;;  %v4260_v30 = vadd.f32 %v4105_v25, %v546_v52  ;;  %v2832_v55 = vmul.f32 -1.442695, %v4228_v38  ;;  %v553_v2 = vmul.f32 %v4103_v23, %v4011_v10 }
 0x1dc   : > { %6087 = vst [vmem:[#allocation18_spill] sm:$0xff] %v4212_v26  ;;  %v4255_v53 = vpop.eup %3616  ;;  %3628 = vpow2.f32 %v2828_v9  ;;  %v4268_v39 = vadd.f32 %v4105_v25, %v547_v54  ;;  %v2833_v59 = vmul.f32 -1.442695, %v4236_v41  ;;  %v554_v6 = vmul.f32 %v4103_v23, %v4015_v13 }
 0x1dd   : > { %6088 = vst [vmem:[#allocation19_spill] sm:$0xff] %v4220_v31  ;;  %v4263_v36 = vpop.eup %3618  ;;  %3630 = vpow2.f32 %v2829_v15  ;;  %v4276_v34 = vadd.f32 %v4105_v25, %v548_v56  ;;  %v2834_v63 = vmul.f32 -1.442695, %v4244_v18  ;;  %v555_v10 = vmul.f32 %v4103_v23, %v4019_v16 }
 0x1de   : > { %6089 = vst [vmem:[#allocation20_spill] sm:$0xff] %v4228_v38  ;;  %v4271_v61 = vpop.eup %3620  ;;  %3632 = vpow2.f32 %v2830_v21  ;;  %v4284_v3 = vadd.f32 %v4105_v25, %v549_v58  ;;  %v2835_v8 = vmul.f32 -1.442695, %v4252_v24  ;;  %v556_v13 = vmul.f32 %v4103_v23, %v4023_v19 }
 0x1df   : > { %6090 = vst [vmem:[#allocation21_spill] sm:$0xff] %v4236_v41  ;;  %v4279_v1 = vpop.eup %3622  ;;  %3634 = vpow2.f32 %v2831_v27  ;;  %v4292_v50 = vadd.f32 %v4105_v25, %v550_v60  ;;  %v2836_v20 = vmul.f32 -1.442695, %v4260_v30  ;;  %v4298_v16 = vadd.f32 %v4105_v25, %v551_v62 }
 0x1e0   : > { %6091 = vst [vmem:[#allocation22_spill] sm:$0xff] %v4244_v18  ;;  %v4287_v11 = vpop.eup %3624  ;;  %3636 = vpow2.f32 %v2832_v55  ;;  %v4301_v28 = vadd.f32 %v4105_v25, %v552_v0  ;;  %v2837_v54 = vmul.f32 -1.442695, %v4268_v39  ;;  %v4307_v19 = vadd.f32 %v4105_v25, %v553_v2 }
 0x1e1   : > { %6092 = vst [vmem:[#allocation23_spill] sm:$0xff] %v4252_v24  ;;  %v4295_v52 = vpop.eup %3626  ;;  %3638 = vpow2.f32 %v2833_v59  ;;  %v4310_v23 = vadd.f32 %v4105_v25, %v554_v6  ;;  %v2838_v56 = vmul.f32 -1.442695, %v4276_v34  ;;  %v4316_v58 = vadd.f32 %v4105_v25, %v555_v10 }
 0x1e2   : > { %6093 = vst [vmem:[#allocation24_spill] sm:$0xff] %v4260_v30  ;;  %v4304_v37 = vpop.eup %3628  ;;  %3640 = vpow2.f32 %v2834_v63  ;;  %v2839_v15 = vmul.f32 -1.442695, %v4284_v3  ;;  %v4320_v60 = vadd.f32 1.0, %v4199_v14  ;;  %v4325_v62 = vadd.f32 %v4105_v25, %v556_v13 }
 0x1e3   : > { %6094 = vst [vmem:[#allocation25_spill] sm:$0xff] %v4268_v39  ;;  %v4313_v9 = vpop.eup %3630  ;;  %3642 = vpow2.f32 %v2835_v8  ;;  %v2840_v27 = vmul.f32 -1.442695, %v4292_v50  ;;  %v4329_v0 = vadd.f32 1.0, %v4207_v22  ;;  %v2841_v2 = vmul.f32 -1.442695, %v4298_v16 }
 0x1e4   : > { %6095 = vst [vmem:[#allocation26_spill] sm:$0xff] %v4276_v34  ;;  %v4322_v21 = vpop.eup %3632  ;;  %3644 = vpow2.f32 %v2836_v20  ;;  %v2842_v14 = vmul.f32 -1.442695, %v4301_v28  ;;  %v2843_v6 = vmul.f32 -1.442695, %v4307_v19  ;;  %v4337_v25 = vadd.f32 1.0, %v4215_v29 }
 0x1e5   : > { %6096 = vst [vmem:[#allocation27_spill] sm:$0xff] %v4284_v3  ;;  %v4331_v55 = vpop.eup %3634  ;;  %3646 = vpow2.f32 %v2837_v54  ;;  %v2844_v10 = vmul.f32 -1.442695, %v4310_v23  ;;  %v2845_v22 = vmul.f32 -1.442695, %v4316_v58  ;;  %v731_v8 = vand.u32 2147483648, %v4320_v60 }
 0x1e6   : > { %6097 = vst [vmem:[#allocation28_spill] sm:$0xff] %v4292_v50  ;;  %v3637_v59 = vpop.eup %3636  ;;  %3648 = vpow2.f32 %v2838_v56  ;;  %v2846_v20 = vmul.f32 -1.442695, %v4325_v62  ;;  %v4344_v54 = vadd.f32 1.0, %v4223_v5  ;;  %v746_v56 = vand.u32 2147483648, %v4329_v0 }
 0x1e7   : > { %6098 = vst [vmem:[#allocation29_spill] sm:$0xff] %v4298_v16  ;;  %v3639_v63 = vpop.eup %3638  ;;  %3650 = vpow2.f32 %v2839_v15  ;;  %v4348_v29 = vadd.f32 1.0, %v4231_v12  ;;  %v4351_v15 = vadd.f32 1.0, %v4239_v45  ;;  %v4363_v12 = vadd.f32 1.0, %v4263_v36 }
 0x1e8   : > { %6099 = vst [vmem:[#allocation30_spill] sm:$0xff] %v4301_v28  ;;  %v3641_v13 = vpop.eup %3640  ;;  %3652 = vpow2.f32 %v2840_v27  ;;  %v4355_v27 = vadd.f32 1.0, %v4247_v49  ;;  %v4365_v45 = vor.u32 1.1754944e-38, %v731_v8  ;;  %v776_v5 = vand.u32 2147483648, %v4344_v54 }
 0x1e9   : > { %6100 = vst [vmem:[#allocation31_spill] sm:$0xff] %v4307_v19  ;;  %v3643_v19 = vpop.eup %3642  ;;  %3654 = vpow2.f32 %v2841_v2  ;;  %v4360_v2 = vadd.f32 1.0, %v4255_v53  ;;  %v4376_v53 = vadd.f32 1.0, %v4279_v1  ;;  %v4381_v50 = vadd.f32 1.0, %v4287_v11 }
 0x1ea   : > { %6101 = vst [vmem:[#allocation32_spill] sm:$0xff] %v4310_v23  ;;  %v3645_v23 = vpop.eup %3644  ;;  %3656 = vpow2.f32 %v2842_v14  ;;  %v4368_v14 = vor.u32 1.1754944e-38, %v746_v56  ;;  %v791_v49 = vand.u32 2147483648, %v4348_v29  ;;  %v4391_v1 = vadd.f32 1.0, %v4304_v37 }
 0x1eb   : > { %6102 = vst [vmem:[#allocation33_spill] sm:$0xff] %v4316_v58  ;;  %v3647_v28 = vpop.eup %3646  ;;  %3658 = vpow2.f32 %v2843_v6  ;;  %v4373_v6 = vadd.f32 1.0, %v4271_v61  ;;  %v4388_v61 = vadd.f32 1.0, %v4295_v52  ;;  %v806_v36 = vand.u32 2147483648, %v4351_v15 }
 0x1ec   : > { %6103 = vst [vmem:[#allocation34_spill] sm:$0xff] %v4325_v62  ;;  %v761_v62 = vand.u32 2147483648, %v4337_v25  ;;  %v3649_v58 = vpop.eup %3648  ;;  %3660 = vrcp.f32 %v4320_v60  ;;  %v4395_v11 = vadd.f32 1.0, %v4313_v9  ;;  %v4402_v52 = vadd.f32 1.0, %v4322_v21 }
 0x1ed   : > { %v3651_v16 = vpop.eup %3650  ;;  %3662 = vrcp.f32 %v4329_v0  ;;  %v4409_v9 = vadd.f32 1.0, %v4331_v55  ;;  %v4411_v18 = vadd.f32 1.0, %v3637_v59  ;;  %v4421_v21 = vor.u32 1.1754944e-38, %v806_v36 }
 0x1ee   : > { %v3653_v8 = vpop.eup %3652  ;;  %3664 = vrcp.f32 %v4337_v25  ;;  %v4384_v56 = vor.u32 1.1754944e-38, %v761_v62  ;;  %v4398_v62 = vor.u32 1.1754944e-38, %v776_v5  ;;  %v4414_v5 = vor.u32 1.1754944e-38, %v791_v49 }
 0x1ef   : > { %v3655_v3 = vpop.eup %3654  ;;  %3666 = vpow2.f32 %v2844_v10  ;;  %v821_v10 = vand.u32 2147483648, %v4355_v27  ;;  %v836_v37 = vand.u32 2147483648, %v4360_v2  ;;  %v4426_v55 = vadd.f32 1.0, %v3641_v13 }
 0x1f0   : > { %v3657_v34 = vpop.eup %3656  ;;  %3668 = vrcp.f32 %v4344_v54  ;;  %v4428_v59 = vadd.f32 1.0, %v3643_v19  ;;  %v4431_v31 = vadd.f32 1.0, %v3645_v23  ;;  %v4439_v17 = vadd.f32 1.0, %v3647_v28 }
 0x1f1   : > { %v3659_v30 = vpop.eup %3658  ;;  %3670 = vpow2.f32 %v2845_v22  ;;  %v4418_v22 = vadd.f32 1.0, %v3639_v63  ;;  %v4434_v63 = vor.u32 1.1754944e-38, %v821_v10  ;;  %v851_v19 = vand.u32 2147483648, %v4363_v12 }
 0x1f2   : > { %v4406_v24 = vpop.eup %3660  ;;  %3672 = vrcp.f32 %v4348_v29  ;;  %6104 = vst [vmem:[#allocation35_spill] sm:$0xff] %v4431_v31  ;;  %v4445_v23 = vadd.f32 1.0, %v3649_v58  ;;  %v4451_v49 = vor.u32 1.1754944e-38, %v836_v37  ;;  %v4455_v48 = vadd.f32 1.0, %v3651_v16 }
 0x1f3   : > { %v4416_v39 = vpop.eup %3662  ;;  %3674 = vrcp.f32 %v4351_v15  ;;  %6105 = vst [vmem:[#allocation36_spill] sm:$0xff] %v4439_v17  ;;  %v721_v13 = vmul.f32 %v4406_v24, %v4320_v60  ;;  %v866_v44 = vand.u32 2147483648, %v4373_v6  ;;  %v4462_v42 = vadd.f32 1.0, %v3653_v8 }
 0x1f4   : > { %v4424_v41 = vpop.eup %3664  ;;  %3676 = vpow2.f32 %v2846_v20  ;;  %6106 = vst [vmem:[#allocation37_spill] sm:$0xff] %v4445_v23  ;;  %v736_v10 = vmul.f32 %v4416_v39, %v4329_v0  ;;  %v4464_v57 = vadd.f32 1.0, %v3655_v3  ;;  %v4469_v16 = vadd.f32 1.0, %v3657_v34 }
 0x1f5   : > { %v3667_v38 = vpop.eup %3666  ;;  %3678 = vrcp.f32 %v4355_v27  ;;  %v751_v36 = vmul.f32 %v4424_v41, %v4337_v25  ;;  %6107 = vst [vmem:[#allocation38_spill] sm:$0xff] %v4455_v48  ;;  %v722_v47 = vsub.f32 1.0, %v721_v13  ;;  %v4471_v43 = vor.u32 1.1754944e-38, %v851_v19 }
 0x1f6   : > { %v4437_v26 = vpop.eup %3668  ;;  %3680 = vrcp.f32 %v4360_v2  ;;  %6108 = vst [vmem:[#allocation39_spill] sm:$0xff] %v4462_v42  ;;  %v4476_v40 = vadd.f32 1.0, %v3659_v30  ;;  %vm725_vm3 = vweird.f32 %v4320_v60  ;;  %v737_v3 = vsub.f32 1.0, %v736_v10 }
 0x1f7   : > { %v3671_v20 = vpop.eup %3670  ;;  %3682 = vrcp.f32 %v4363_v12  ;;  %6109 = vst [vmem:[#allocation40_spill] sm:$0xff] %v4464_v57  ;;  %v766_v37 = vmul.f32 %v4437_v26, %v4344_v54  ;;  %v752_v8 = vsub.f32 1.0, %v751_v36  ;;  %v881_v7 = vand.u32 2147483648, %v4376_v53 }
 0x1f8   : > { %v4453_v28 = vpop.eup %3672  ;;  %6110 = vst [vmem:[#allocation41_spill] sm:$0xff] %v4469_v16  ;;  %3684 = vrcp.f32 %v4373_v6  ;;  %vm740_vm4 = vweird.f32 %v4329_v0  ;;  %v4487_v19 = vor.u32 1.1754944e-38, %v866_v44  ;;  %v4490_v30 = vadd.f32 1.0, %v3667_v38 }
 0x1f9   : > { %v4460_v58 = vpop.eup %3674  ;;  %6111 = vst [vmem:[#allocation42_spill] sm:$0xff] %v4476_v40  ;;  %v781_v34 = vmul.f32 %v4453_v28, %v4348_v29  ;;  %3686 = vrcp.f32 %v4376_v53  ;;  %v4492_v10 = vadd.f32 1.0, %v3671_v20  ;;  %vm755_vm5 = vweird.f32 %v4337_v25 }
 0x1fa   : > { %v3677_v51 = vpop.eup %3676  ;;  %v796_v13 = vmul.f32 %v4460_v58, %v4351_v15  ;;  %6112 = vst [vmem:[#allocation43_spill] sm:$0xff] %v4490_v30  ;;  %v767_v36 = vsub.f32 1.0, %v766_v37  ;;  %v723_v40 = vmul.f32 %v4406_v24, %v722_v47  ;;  %v738_v38 = vmul.f32 %v4416_v39, %v737_v3 }
 0x1fb   : > { %v4474_v46 = vpop.eup %3678  ;;  %6113 = vst [vmem:[#allocation44_spill] sm:$0xff] %v4492_v10  ;;  %v4498_v32 = vadd.f32 1.0, %v3677_v51  ;;  %v753_v20 = vmul.f32 %v4424_v41, %v752_v8  ;;  %vm770_vm6 = vweird.f32 %v4344_v54  ;;  %v4509_v33 = vor.u32 1.1754944e-38, %v881_v7 }
 0x1fc   : > { %v4480_v4 = vpop.eup %3680  ;;  %v811_v44 = vmul.f32 %v4474_v46, %v4355_v27  ;;  %vm726_vm7 = vweird.f32 %v4406_v24  ;;  %v6115_v47 = vand.u32 2147483647, %v4320_v60  ;;  %v782_v3 = vsub.f32 1.0, %v781_v34 }
 0x1fd   : > { %v4496_v35 = vpop.eup %3682  ;;  %6114 = vst [vmem:[#allocation45_spill] sm:$0xff] %v4498_v32  ;;  %v826_v37 = vmul.f32 %v4480_v4, %v4360_v2  ;;  %v797_v16 = vsub.f32 1.0, %v796_v13  ;;  %v896_v8 = vand.u32 2147483648, %v4381_v50  ;;  %vm741_vm9 = vweird.f32 %v4416_v39  ;;  %vm4559_vm0 = vmor %vm725_vm3, %vm726_vm7 }
 0x1fe   : > { %v4511_v51 = vpop.eup %3684  ;;  %vm4516_vm8 = vcmp.eq.f32.partialorder %v6115_v47, 8.507059e+37  ;;  %v6118_v10 = vand.u32 2147483647, %v4329_v0  ;;  %v6121_v30 = vand.u32 2147483647, %v4337_v25  ;;  %v768_v47 = vmul.f32 %v4437_v26, %v767_v36  ;;  %vm4573_vm2 = vmor %vm740_vm4, %vm741_vm9 }
 0x1ff   : > { %vm785_vm12 = vweird.f32 %v4348_v29  ;;  %v841_v34 = vmul.f32 %v4496_v35, %v4363_v12  ;;  %3688 = vrcp.f32 %v4381_v50  ;;  %v4539_v13 = vpop.eup %3686  ;;  %vm756_vm13 = vweird.f32 %v4424_v41 }
 0x200   : > { %vm4524_vm10 = vcmp.eq.f32.partialorder %v6118_v10, 8.507059e+37  ;;  %vm4530_vm11 = vcmp.eq.f32.partialorder %v6121_v30, 8.507059e+37  ;;  %v724_v10 = vadd.f32 %v4406_v24, %v723_v40  ;;  %vm800_vm14 = vweird.f32 %v4351_v15  ;;  %vm4589_vm4 = vmor %vm755_vm5, %vm756_vm13 }
 0x201   : > { %v812_v30 = vsub.f32 1.0, %v811_v44  ;;  %3690 = vrcp.f32 %v4388_v61  ;;  %v739_v36 = vadd.f32 %v4416_v39, %v738_v38  ;;  %v754_v42 = vadd.f32 %v4424_v41, %v753_v20 }
 0x202   : > { %v6124_v48 = vand.u32 2147483647, %v4344_v54  ;;  %v827_v17 = vsub.f32 1.0, %v826_v37  ;;  %v856_v40 = vmul.f32 %v4511_v51, %v4373_v6  ;;  %v783_v38 = vmul.f32 %v4453_v28, %v782_v3 }
 0x203   : > { %v798_v20 = vmul.f32 %v4460_v58, %v797_v16  ;;  %vm815_vm1 = vweird.f32 %v4355_v27  ;;  %3692 = vrcp.f32 %v4391_v1  ;;  %v769_v37 = vadd.f32 %v4437_v26, %v768_v47 }
 0x204   : > { %vm4549_vm15 = vcmp.eq.f32.partialorder %v6124_v48, 8.507059e+37  ;;  %v4566_v48 = vor.u32 1.1754944e-38, %v896_v8  ;;  %vm771_vm3 = vweird.f32 %v4437_v26  ;;  %v842_v16 = vsub.f32 1.0, %v841_v34 }
 0x205   : > { %v871_v3 = vmul.f32 %v4539_v13, %v4376_v53  ;;  %v728_v8 = vsel %vm4559_vm0, %v4406_v24, %v724_v10  ;;  %vm786_vm9 = vweird.f32 %v4453_v28  ;;  %vm801_vm7 = vweird.f32 %v4460_v58  ;;  %v4596_v34 = vpop.eup %3688 }
 0x206   : > { %6129 = vst [vmem:[#allocation46_spill] sm:$0xff] %v4566_v48  ;;  %v813_v47 = vmul.f32 %v4474_v46, %v812_v30  ;;  %v743_v24 = vsel %vm4573_vm2, %v4416_v39, %v739_v36  ;;  %v758_v25 = vsel %vm4589_vm4, %v4424_v41, %v754_v42  ;;  %v6134_v10 = vand.u32 2147483647, %v4348_v29  ;;  %vm4624_vm2 = vmor %vm770_vm6, %vm771_vm3 }
 0x207   : > { %v6137_v31 = vand.u32 2147483647, %v4351_v15  ;;  %v828_v48 = vmul.f32 %v4480_v4, %v827_v17  ;;  %vm845_vm0 = vweird.f32 %v4363_v12  ;;  %v857_v39 = vsub.f32 1.0, %v856_v40  ;;  %v4618_v36 = vpop.eup %3690 }
 0x208   : > { %vm4606_vm5 = vcmp.eq.f32.partialorder %v6134_v10, 8.507059e+37  ;;  %v799_v41 = vadd.f32 %v4460_v58, %v798_v20  ;;  %vm816_vm4 = vweird.f32 %v4474_v46  ;;  %3694 = vrcp.f32 %v4395_v11 }
 0x209   : > { %vm4612_vm13 = vcmp.eq.f32.partialorder %v6137_v31, 8.507059e+37  ;;  %v784_v31 = vadd.f32 %v4453_v28, %v783_v38  ;;  %v4635_v17 = vsel %vm4516_vm8, %v4365_v45, %v728_v8  ;;  %v773_v54 = vsel %vm4624_vm2, %v4437_v26, %v769_v37  ;;  %v4654_v8 = vpop.eup %3692  ;;  %vm4670_vm2 = vmor %vm785_vm12, %vm786_vm9 }
 0x20a   : > { %v6142_v40 = vand.u32 2147483647, %v4355_v27  ;;  %v6145_v38 = vand.u32 2147483647, %v4360_v2  ;;  %v843_v32 = vmul.f32 %v4496_v35, %v842_v16  ;;  %v872_v45 = vsub.f32 1.0, %v871_v3 }
 0x20b   : > { %v4659_v26 = vsel %vm4524_vm10, %v4368_v14, %v743_v24  ;;  %v4664_v37 = vsel %vm4530_vm11, %v4384_v56, %v758_v25  ;;  %v814_v3 = vadd.f32 %v4474_v46, %v813_v47  ;;  %vm831_vm8 = vweird.f32 %v4480_v4  ;;  %vm4680_vm10 = vmor %vm800_vm14, %vm801_vm7 }
 0x20c   : > { %vm4642_vm6 = vcmp.eq.f32.partialorder %v6142_v40, 8.507059e+37  ;;  %vm4648_vm3 = vcmp.eq.f32.partialorder %v6145_v38, 8.507059e+37  ;;  %v829_v14 = vadd.f32 %v4480_v4, %v828_v48  ;;  %v6152_v29 = vand.u32 2147483647, %v4363_v12  ;;  %vm4713_vm14 = vmor %vm815_vm1, %vm816_vm4 }
 0x20d   : > { %v858_v7 = vmul.f32 %v4511_v51, %v857_v39  ;;  %vm875_vm12 = vweird.f32 %v4376_v53  ;;  %v886_v0 = vmul.f32 %v4596_v34, %v4381_v50  ;;  %v901_v15 = vmul.f32 %v4618_v36, %v4388_v61 }
 0x20e   : > { %vm4687_vm11 = vcmp.eq.f32.partialorder %v6152_v29, 8.507059e+37  ;;  %v4700_v48 = vsel %vm4549_vm15, %v4398_v62, %v773_v54  ;;  %v788_v47 = vsel %vm4670_vm2, %v4453_v28, %v784_v31  ;;  %v803_v24 = vsel %vm4680_vm10, %v4460_v58, %v799_v41  ;;  %v4728_v27 = vpop.eup %3694 }
 0x20f   : > { %3696 = vrcp.f32 %v4402_v52  ;;  %v844_v62 = vadd.f32 %v4496_v35, %v843_v32  ;;  %vm846_vm15 = vweird.f32 %v4496_v35  ;;  %v6157_v23 = vand.u32 2147483647, %v4373_v6 }
 0x210   : > { %v873_v58 = vmul.f32 %v4539_v13, %v872_v45  ;;  %v916_v10 = vmul.f32 %v4654_v8, %v4391_v1  ;;  %v818_v39 = vsel %vm4713_vm14, %v4474_v46, %v814_v3  ;;  %vm6160_vm1 = vweird.f32 %v4360_v2 }
 0x211   : > { %vm4721_vm7 = vcmp.eq.f32.partialorder %v6157_v23, 8.507059e+37  ;;  %vm4737_vm9 = vmor %vm6160_vm1, %vm831_vm8  ;;  %vm861_vm4 = vweird.f32 %v4511_v51  ;;  %v911_v31 = vand.u32 2147483648, %v4388_v61  ;;  %3698 = vrcp.f32 %v4409_v9 }
 0x212   : > { %v833_v41 = vsel %vm4737_vm9, %v4480_v4, %v829_v14  ;;  %v859_v46 = vadd.f32 %v4511_v51, %v858_v7  ;;  %v6163_v54 = vand.u32 2147483647, %v4376_v53  ;;  %v887_v40 = vsub.f32 1.0, %v886_v0  ;;  %vm4768_vm8 = vmor %vm845_vm0, %vm846_vm15 }
 0x213   : > { %v902_v38 = vsub.f32 1.0, %v901_v15  ;;  %v4757_v32 = vsel %vm4606_vm5, %v4414_v5, %v788_v47  ;;  %v4762_v45 = vsel %vm4612_vm13, %v4421_v21, %v803_v24  ;;  %vm876_vm10 = vweird.f32 %v4539_v13 }
 0x214   : > { %vm4750_vm2 = vcmp.eq.f32.partialorder %v6163_v54, 8.507059e+37  ;;  %vm890_vm14 = vweird.f32 %v4381_v50  ;;  %v909_v5 = vand.u32 2147483647, %v4388_v61  ;;  %v848_v44 = vsel %vm4768_vm8, %v4496_v35, %v844_v62 }
 0x215   : > { %v874_v21 = vadd.f32 %v4539_v13, %v873_v58  ;;  %v917_v30 = vsub.f32 1.0, %v916_v10  ;;  %v931_v12 = vmul.f32 %v4728_v27, %v4395_v11  ;;  %v4781_v16 = vpop.eup %3696  ;;  %v4786_v3 = vsel %vm4642_vm6, %v4434_v63, %v818_v39 }
 0x216   : > { %v4791_v57 = vsel %vm4648_vm3, %v4451_v49, %v833_v41  ;;  %vm6168_vm5 = vweird.f32 %v4373_v6  ;;  %vm905_vm0 = vweird.f32 %v4388_v61  ;;  %3700 = vrcp.f32 %v4411_v18  ;;  %vm4820_vm3 = vmor %vm875_vm12, %vm876_vm10 }
 0x217   : > { %vm4797_vm13 = vmor %vm6168_vm5, %vm861_vm4  ;;  %v888_v60 = vmul.f32 %v4596_v34, %v887_v40  ;;  %v903_v49 = vmul.f32 %v4618_v36, %v902_v38  ;;  %v912_v20 = vor.u32 1.1754944e-38, %v911_v31  ;;  %vm920_vm6 = vweird.f32 %v4391_v1  ;;  %v4809_v6 = vpop.eup %3698 }
 0x218   : > { %v863_v63 = vsel %vm4797_vm13, %v4511_v51, %v859_v46  ;;  %v4814_v14 = vsel %vm4687_vm11, %v4471_v43, %v848_v44  ;;  %v924_v29 = vand.u32 2147483647, %v4391_v1  ;;  %v926_v7 = vand.u32 2147483648, %v4391_v1 }
 0x219   : > { %3702 = vrcp.f32 %v4418_v22  ;;  %v878_v56 = vsel %vm4820_vm3, %v4539_v13, %v874_v21  ;;  %v6173_v43 = vand.u32 2147483647, %v4381_v50  ;;  %vm4836_vm12 = vcmp.eq.f32.partialorder %v909_v5, 8.507059e+37 }
 0x21a   : > { %v918_v15 = vmul.f32 %v4654_v8, %v917_v30  ;;  %v932_v47 = vsub.f32 1.0, %v931_v12  ;;  %v946_v24 = vmul.f32 %v4781_v16, %v4402_v52  ;;  %v4846_v13 = vsel %vm4721_vm7, %v4487_v19, %v863_v63 }
 0x21b   : > { %vm4832_vm11 = vcmp.eq.f32.partialorder %v6173_v43, 8.507059e+37  ;;  %vm891_vm15 = vweird.f32 %v4596_v34  ;;  %vm906_vm1 = vweird.f32 %v4618_v36  ;;  %v939_v25 = vand.u32 2147483647, %v4395_v11 }
 0x21c   : > { %v889_v62 = vadd.f32 %v4596_v34, %v888_v60  ;;  %v904_v23 = vadd.f32 %v4618_v36, %v903_v49  ;;  %v961_v58 = vmul.f32 %v4809_v6, %v4409_v9  ;;  %3704 = vrcp.f32 %v4426_v55  ;;  %v4856_v10 = vpop.eup %3700  ;;  %vm4870_vm9 = vmor %vm890_vm14, %vm891_vm15  ;;  %v6188_v49 = vld [vmem:[#allocation46_spill] sm:$0xff] }
 0x21d   : > { %v4861_v19 = vsel %vm4750_vm2, %v4509_v33, %v878_v56  ;;  %vm4863_vm7 = vcmp.eq.f32.partialorder %v924_v29, 8.507059e+37  ;;  %v927_v39 = vor.u32 1.1754944e-38, %v926_v7  ;;  %v941_v42 = vand.u32 2147483648, %v4395_v11  ;;  %vm4883_vm2 = vmor %vm905_vm0, %vm906_vm1 }
 0x21e   : > { %v919_v41 = vadd.f32 %v4654_v8, %v918_v15  ;;  %vm921_vm4 = vweird.f32 %v4654_v8  ;;  %v933_v33 = vmul.f32 %v4728_v27, %v932_v47  ;;  %v947_v46 = vsub.f32 1.0, %v946_v24  ;;  %v6191_v15 = vld [vmem:[#allocation35_spill] sm:$0xff] }
 0x21f   : > { %v4877_v54 = vpop.eup %3702  ;;  %vm935_vm8 = vweird.f32 %v4395_v11  ;;  %v954_v50 = vand.u32 2147483647, %v4402_v52  ;;  %v956_v40 = vand.u32 2147483648, %v4402_v52  ;;  %3706 = vrcp.f32 %v4428_v59  ;;  %vm4908_vm5 = vmor %vm920_vm6, %vm921_vm4 }
 0x220   : > { %v893_v38 = vsel %vm4870_vm9, %v4596_v34, %v889_v62  ;;  %v908_v61 = vsel %vm4883_vm2, %v4618_v36, %v904_v23  ;;  %vm4897_vm10 = vcmp.eq.f32.partialorder %v939_v25, 8.507059e+37  ;;  %vm950_vm14 = vweird.f32 %v4402_v52 }
 0x221   : > { %v962_v5 = vsub.f32 1.0, %v961_v58  ;;  %v976_v44 = vmul.f32 %v4856_v10, %v4411_v18  ;;  %vm936_vm13 = vweird.f32 %v4728_v27  ;;  %v942_v36 = vor.u32 1.1754944e-38, %v941_v42  ;;  %v6196_v42 = vld [vmem:[#allocation36_spill] sm:$0xff] }
 0x222   : > { %v969_v21 = vand.u32 2147483647, %v4409_v9  ;;  %v971_v30 = vand.u32 2147483648, %v4409_v9  ;;  %v4915_v12 = vpop.eup %3704  ;;  %v923_v35 = vsel %vm4908_vm5, %v4654_v8, %v919_v41  ;;  %v934_v63 = vadd.f32 %v4728_v27, %v933_v33 }
 0x223   : > { %v948_v1 = vmul.f32 %v4781_v16, %v947_v46  ;;  %v991_v60 = vmul.f32 %v4877_v54, %v4418_v22  ;;  %v4927_v51 = vsel %vm4832_vm11, %v6188_v49, %v893_v38  ;;  %v4931_v29 = vsel %vm4836_vm12, %v912_v20, %v908_v61  ;;  %vm4951_vm11 = vmor %vm935_vm8, %vm936_vm13 }
 0x224   : > { %v957_v7 = vor.u32 1.1754944e-38, %v956_v40  ;;  %vm965_vm0 = vweird.f32 %v4409_v9  ;;  %vm951_vm6 = vweird.f32 %v4781_v16  ;;  %vm4935_vm3 = vcmp.eq.f32.partialorder %v954_v50, 8.507059e+37 }
 0x225   : > { %v963_v56 = vmul.f32 %v4809_v6, %v962_v5  ;;  %v977_v43 = vsub.f32 1.0, %v976_v44  ;;  %3708 = vrcp.f32 %v6191_v15  ;;  %v4941_v0 = vpop.eup %3706  ;;  %v4945_v20 = vsel %vm4863_vm7, %v927_v39, %v923_v35  ;;  %vm4984_vm7 = vmor %vm950_vm14, %vm951_vm6  ;;  %v6201_v5 = vld [vmem:[#allocation37_spill] sm:$0xff]  ;;  %v6230_v44 = vld [vmem:[#allocation42_spill] sm:$0xff] }
 0x226   : > { %v972_v47 = vor.u32 1.1754944e-38, %v971_v30  ;;  %v986_v24 = vand.u32 2147483648, %v4411_v18  ;;  %v1006_v25 = vmul.f32 %v4915_v12, %v4426_v55  ;;  %v938_v62 = vsel %vm4951_vm11, %v4728_v27, %v934_v63  ;;  %v6221_v35 = vld [vmem:[#allocation41_spill] sm:$0xff] }
 0x227   : > { %v949_v23 = vadd.f32 %v4781_v16, %v948_v1  ;;  %vm4962_vm12 = vcmp.eq.f32.partialorder %v969_v21, 8.507059e+37  ;;  %v984_v11 = vand.u32 2147483647, %v4411_v18  ;;  %v992_v28 = vsub.f32 1.0, %v991_v60 }
 0x228   : > { %vm966_vm15 = vweird.f32 %v4809_v6  ;;  %vm980_vm1 = vweird.f32 %v4411_v18  ;;  %v1001_v39 = vand.u32 2147483648, %v4418_v22  ;;  %3710 = vrcp.f32 %v6196_v42 }
 0x229   : > { %v964_v31 = vadd.f32 %v4809_v6, %v963_v56  ;;  %v978_v27 = vmul.f32 %v4856_v10, %v977_v43  ;;  %v999_v41 = vand.u32 2147483647, %v4418_v22  ;;  %v1021_v33 = vmul.f32 %v4941_v0, %v4428_v59  ;;  %vm5005_vm8 = vmor %vm965_vm0, %vm966_vm15  ;;  %v6206_v56 = vld [vmem:[#allocation38_spill] sm:$0xff] }
 0x22a   : > { %v4978_v46 = vsel %vm4897_vm10, %v942_v36, %v938_v62  ;;  %v987_v50 = vor.u32 1.1754944e-38, %v986_v24  ;;  %vm995_vm9 = vweird.f32 %v4418_v22  ;;  %v1007_v40 = vsub.f32 1.0, %v1006_v25 }
 0x22b   : > { %v4989_v38 = vpop.eup %3708  ;;  %v953_v61 = vsel %vm4984_vm7, %v4781_v16, %v949_v23  ;;  %vm981_vm4 = vweird.f32 %v4856_v10  ;;  %vm4995_vm2 = vcmp.eq.f32.partialorder %v984_v11, 8.507059e+37  ;;  %v993_v52 = vmul.f32 %v4877_v54, %v992_v28  ;;  %v6211_v11 = vld [vmem:[#allocation39_spill] sm:$0xff] }
 0x22c   : > { %3712 = vrcp.f32 %v6201_v5  ;;  %v1002_v34 = vor.u32 1.1754944e-38, %v1001_v39  ;;  %vm1010_vm10 = vweird.f32 %v4426_v55  ;;  %v1014_v16 = vand.u32 2147483647, %v4426_v55  ;;  %vm5044_vm13 = vmor %vm980_vm1, %vm981_vm4 }
 0x22d   : > { %v1016_v36 = vand.u32 2147483648, %v4426_v55  ;;  %v968_v21 = vsel %vm5005_vm8, %v4809_v6, %v964_v31  ;;  %v979_v30 = vadd.f32 %v4856_v10, %v978_v27  ;;  %vm5016_vm14 = vcmp.eq.f32.partialorder %v999_v41, 8.507059e+37 }
 0x22e   : > { %v1022_v9 = vsub.f32 1.0, %v1021_v33  ;;  %v1036_v63 = vmul.f32 %v4989_v38, %v6191_v15  ;;  %v5022_v1 = vpop.eup %3710  ;;  %v5026_v60 = vsel %vm4935_vm3, %v957_v7, %v953_v61  ;;  %v1008_v49 = vmul.f32 %v4915_v12, %v1007_v40  ;;  %v6216_v40 = vld [vmem:[#allocation40_spill] sm:$0xff] }
 0x22f   : > { %v1031_v6 = vand.u32 2147483648, %v4428_v59  ;;  %3714 = vrcp.f32 %v6206_v56  ;;  %v994_v43 = vadd.f32 %v4877_v54, %v993_v52  ;;  %vm996_vm5 = vweird.f32 %v4877_v54 }
 0x230   : > { %v1029_v53 = vand.u32 2147483647, %v4428_v59  ;;  %v1051_v24 = vmul.f32 %v5022_v1, %v6196_v42  ;;  %v5038_v8 = vsel %vm4962_vm12, %v972_v47, %v968_v21  ;;  %vm1011_vm0 = vweird.f32 %v4915_v12  ;;  %vm5063_vm11 = vmor %vm995_vm9, %vm996_vm5 }
 0x231   : > { %vm5049_vm6 = vcmp.eq.f32.partialorder %v1014_v16, 8.507059e+37  ;;  %v1017_v62 = vor.u32 1.1754944e-38, %v1016_v36  ;;  %vm1025_vm3 = vweird.f32 %v4428_v59  ;;  %v983_v47 = vsel %vm5044_vm13, %v4856_v10, %v979_v30  ;;  %vm5093_vm7 = vmor %vm1010_vm10, %vm1011_vm0 }
 0x232   : > { %v5054_v23 = vpop.eup %3712  ;;  %v1023_v18 = vmul.f32 %v4941_v0, %v1022_v9  ;;  %v1037_v58 = vsub.f32 1.0, %v1036_v63  ;;  %3716 = vrcp.f32 %v6211_v11  ;;  %v1009_v39 = vadd.f32 %v4915_v12, %v1008_v49 }
 0x233   : > { %v1032_v31 = vor.u32 1.1754944e-38, %v1031_v6  ;;  %v1046_v27 = vand.u32 2147483648, %v6191_v15  ;;  %v1066_v41 = vmul.f32 %v5054_v23, %v6201_v5  ;;  %v998_v10 = vsel %vm5063_vm11, %v4877_v54, %v994_v43 }
 0x234   : > { %vm5074_vm12 = vcmp.eq.f32.partialorder %v1029_v53, 8.507059e+37  ;;  %v1044_v22 = vand.u32 2147483647, %v6191_v15  ;;  %v1052_v2 = vsub.f32 1.0, %v1051_v24  ;;  %3718 = vrcp.f32 %v6216_v40 }
 0x235   : > { %v5080_v61 = vpop.eup %3714  ;;  %v5084_v52 = vsel %vm4995_vm2, %v987_v50, %v983_v47  ;;  %vm1026_vm15 = vweird.f32 %v4941_v0  ;;  %vm1040_vm1 = vweird.f32 %v6191_v15  ;;  %v1061_v54 = vand.u32 2147483648, %v6196_v42 }
 0x236   : > { %v1024_v16 = vadd.f32 %v4941_v0, %v1023_v18  ;;  %v1038_v4 = vmul.f32 %v4989_v38, %v1037_v58  ;;  %vm1055_vm9 = vweird.f32 %v6196_v42  ;;  %v1059_v50 = vand.u32 2147483647, %v6196_v42  ;;  %vm5124_vm8 = vmor %vm1025_vm3, %vm1026_vm15  ;;  %v6233_v42 = vld [vmem:[#allocation43_spill] sm:$0xff] }
 0x237   : > { %v1067_v36 = vsub.f32 1.0, %v1066_v41  ;;  %v5103_v21 = vsel %vm5016_vm14, %v1002_v34, %v998_v10  ;;  %v1013_v55 = vsel %vm5093_vm7, %v4915_v12, %v1009_v39  ;;  %v1047_v30 = vor.u32 1.1754944e-38, %v1046_v27 }
 0x238   : > { %v1081_v9 = vmul.f32 %v5080_v61, %v6206_v56  ;;  %v5110_v63 = vpop.eup %3716  ;;  %vm5112_vm4 = vcmp.eq.f32.partialorder %v1044_v22, 8.507059e+37  ;;  %v1053_v6 = vmul.f32 %v5022_v1, %v1052_v2  ;;  %vm1070_vm2 = vweird.f32 %v6201_v5 }
 0x239   : > { %v1074_v34 = vand.u32 2147483647, %v6201_v5  ;;  %3720 = vrcp.f32 %v6221_v35  ;;  %vm1041_vm10 = vweird.f32 %v4989_v38  ;;  %v1062_v43 = vor.u32 1.1754944e-38, %v1061_v54 }
 0x23a   : > { %v1076_v53 = vand.u32 2147483648, %v6201_v5  ;;  %v1096_v24 = vmul.f32 %v5110_v63, %v6211_v11  ;;  %v5132_v7 = vpop.eup %3718  ;;  %v5136_v47 = vsel %vm5049_vm6, %v1017_v62, %v1013_v55  ;;  %v1028_v59 = vsel %vm5124_vm8, %v4941_v0, %v1024_v16  ;;  %vm5165_vm0 = vmor %vm1040_vm1, %vm1041_vm10 }
 0x23b   : > { %v1039_v18 = vadd.f32 %v4989_v38, %v1038_v4  ;;  %vm5142_vm14 = vcmp.eq.f32.partialorder %v1059_v50, 8.507059e+37  ;;  %v1068_v28 = vmul.f32 %v5054_v23, %v1067_v36  ;;  %vm1056_vm5 = vweird.f32 %v5022_v1 }
 0x23c   : > { %v1082_v39 = vsub.f32 1.0, %v1081_v9  ;;  %v1089_v27 = vand.u32 2147483647, %v6206_v56  ;;  %v1111_v25 = vmul.f32 %v5132_v7, %v6216_v40  ;;  %v1054_v62 = vadd.f32 %v5022_v1, %v1053_v6  ;;  %vm5184_vm11 = vmor %vm1055_vm9, %vm1056_vm5 }
 0x23d   : > { %vm5152_vm13 = vcmp.eq.f32.partialorder %v1074_v34, 8.507059e+37  ;;  %v1091_v41 = vand.u32 2147483648, %v6206_v56  ;;  %v1097_v10 = vsub.f32 1.0, %v1096_v24  ;;  %v5159_v22 = vsel %vm5074_vm12, %v1032_v31, %v1028_v59 }
 0x23e   : > { %vm1071_vm6 = vweird.f32 %v5054_v23  ;;  %v1077_v54 = vor.u32 1.1754944e-38, %v1076_v53  ;;  %vm1085_vm3 = vweird.f32 %v6206_v56  ;;  %3722 = vrcp.f32 %v6230_v44 }
 0x23f   : > { %v5172_v16 = vpop.eup %3720  ;;  %v1043_v31 = vsel %vm5165_vm0, %v4989_v38, %v1039_v18  ;;  %v1069_v33 = vadd.f32 %v5054_v23, %v1068_v28  ;;  %v1104_v15 = vand.u32 2147483647, %v6211_v11  ;;  %v1106_v4 = vand.u32 2147483648, %v6211_v11  ;;  %vm5205_vm15 = vmor %vm1070_vm2, %vm1071_vm6  ;;  %v6240_v28 = vld [vmem:[#allocation44_spill] sm:$0xff] }
 0x240   : > { %v1083_v36 = vmul.f32 %v5080_v61, %v1082_v39  ;;  %vm1100_vm12 = vweird.f32 %v6211_v11  ;;  %v1112_v55 = vsub.f32 1.0, %v1111_v25  ;;  %v1126_v38 = vmul.f32 %v5172_v16, %v6221_v35 }
 0x241   : > { %v1058_v9 = vsel %vm5184_vm11, %v5022_v1, %v1054_v62  ;;  %v1092_v6 = vor.u32 1.1754944e-38, %v1091_v41  ;;  %v1098_v34 = vmul.f32 %v5110_v63, %v1097_v10  ;;  %3724 = vrcp.f32 %v6233_v42 }
 0x242   : > { %v5199_v12 = vsel %vm5112_vm4, %v1047_v30, %v1043_v31  ;;  %vm5209_vm1 = vcmp.eq.f32.partialorder %v1089_v27, 8.507059e+37  ;;  %vm1115_vm7 = vweird.f32 %v6216_v40  ;;  %v1119_v1 = vand.u32 2147483647, %v6216_v40 }
 0x243   : > { %v1121_v49 = vand.u32 2147483648, %v6216_v40  ;;  %v1127_v30 = vsub.f32 1.0, %v1126_v38  ;;  %v1073_v59 = vsel %vm5205_vm15, %v5054_v23, %v1069_v33  ;;  %vm1086_vm9 = vweird.f32 %v5080_v61 }
 0x244   : > { %vm5220_vm4 = vcmp.eq.f32.partialorder %v1104_v15, 8.507059e+37  ;;  %v1107_v18 = vor.u32 1.1754944e-38, %v1106_v4  ;;  %3726 = vrcp.f32 %v6240_v28  ;;  %v5225_v39 = vpop.eup %3722  ;;  %v5229_v27 = vsel %vm5142_vm14, %v1062_v43, %v1058_v9  ;;  %vm5256_vm5 = vmor %vm1085_vm3, %vm1086_vm9  ;;  %v6260_v9 = vld [vmem:[#allocation3_spill] sm:$0xff] }
 0x245   : > { %v1084_v25 = vadd.f32 %v5080_v61, %v1083_v36  ;;  %v1113_v62 = vmul.f32 %v5132_v7, %v1112_v55  ;;  %vm1130_vm2 = vweird.f32 %v6221_v35  ;;  %v1134_v23 = vand.u32 2147483647, %v6221_v35  ;;  %v6245_v36 = vld [vmem:[#allocation45_spill] sm:$0xff] }
 0x246   : > { %v1099_v41 = vadd.f32 %v5110_v63, %v1098_v34  ;;  %vm1101_vm8 = vweird.f32 %v5110_v63  ;;  %v1136_v10 = vand.u32 2147483648, %v6221_v35  ;;  %v1141_v2 = vmul.f32 %v5225_v39, %v6230_v44 }
 0x247   : > { %v5242_v43 = vsel %vm5152_vm13, %v1077_v54, %v1073_v59  ;;  %vm1116_vm10 = vweird.f32 %v5132_v7  ;;  %vm5245_vm14 = vcmp.eq.f32.partialorder %v1119_v1, 8.507059e+37  ;;  %v1122_v31 = vor.u32 1.1754944e-38, %v1121_v49  ;;  %v5250_v15 = vpop.eup %3724  ;;  %vm5270_vm13 = vmor %vm1100_vm12, %vm1101_vm8 }
 0x248   : > { %v1128_v33 = vmul.f32 %v5172_v16, %v1127_v30  ;;  %v1142_v0 = vsub.f32 1.0, %v1141_v2  ;;  %v1149_v54 = vand.u32 2147483647, %v6230_v44  ;;  %v1151_v50 = vand.u32 2147483648, %v6230_v44  ;;  %vm5300_vm11 = vmor %vm1115_vm7, %vm1116_vm10 }
 0x249   : > { %3728 = vrcp.f32 %v6245_v36  ;;  %v1088_v55 = vsel %vm5256_vm5, %v5080_v61, %v1084_v25  ;;  %v1114_v38 = vadd.f32 %v5132_v7, %v1113_v62  ;;  %vm5275_vm0 = vcmp.eq.f32.partialorder %v1134_v23, 8.507059e+37  ;;  %v6274_v62 = vld [vmem:[#allocation11_spill] sm:$0xff] }
 0x24a   : > { %v1156_v34 = vmul.f32 %v5250_v15, %v6233_v42  ;;  %v5281_v53 = vpop.eup %3726  ;;  %v1103_v61 = vsel %vm5270_vm13, %v5110_v63, %v1099_v41  ;;  %v1137_v11 = vor.u32 1.1754944e-38, %v1136_v10  ;;  %v1143_v1 = vmul.f32 %v5225_v39, %v1142_v0 }
 0x24b   : > { %vm1145_vm6 = vweird.f32 %v6230_v44  ;;  %v1129_v49 = vadd.f32 %v5172_v16, %v1128_v33  ;;  %vm1131_vm3 = vweird.f32 %v5172_v16  ;;  %v1171_v59 = vmul.f32 %v5281_v53, %v6240_v28 }
 0x24c   : > { %v1157_v30 = vsub.f32 1.0, %v1156_v34  ;;  %v5294_v25 = vsel %vm5209_vm1, %v1092_v6, %v1088_v55  ;;  %vm5304_vm12 = vcmp.eq.f32.partialorder %v1149_v54, 8.507059e+37  ;;  %v1152_v23 = vor.u32 1.1754944e-38, %v1151_v50  ;;  %vm5322_vm1 = vmor %vm1130_vm2, %vm1131_vm3 }
 0x24d   : > { %v1166_v41 = vand.u32 2147483648, %v6233_v42  ;;  %v5311_v24 = vsel %vm5220_vm4, %v1107_v18, %v1103_v61  ;;  %v1118_v6 = vsel %vm5300_vm11, %v5132_v7, %v1114_v38  ;;  %vm1160_vm15 = vweird.f32 %v6233_v42 }
 0x24e   : > { %v1181_v40 = vand.u32 2147483648, %v6240_v28  ;;  %v1144_v5 = vadd.f32 %v5225_v39, %v1143_v1  ;;  %vm1146_vm7 = vweird.f32 %v5225_v39  ;;  %v1164_v18 = vand.u32 2147483647, %v6233_v42 }
 0x24f   : > { %v5318_v10 = vpop.eup %3728  ;;  %v1172_v33 = vsub.f32 1.0, %v1171_v59  ;;  %v1133_v7 = vsel %vm5322_vm1, %v5172_v16, %v1129_v49  ;;  %v1158_v4 = vmul.f32 %v5250_v15, %v1157_v30  ;;  %v1196_v0 = vand.u32 2147483648, %v6245_v36  ;;  %vm5344_vm4 = vmor %vm1145_vm6, %vm1146_vm7 }
 0x250   : > { %v1186_v35 = vmul.f32 %v5318_v10, %v6245_v36  ;;  %v5338_v54 = vsel %vm5245_vm14, %v1122_v31, %v1118_v6  ;;  %v1167_v50 = vor.u32 1.1754944e-38, %v1166_v41  ;;  %vm1175_vm9 = vweird.f32 %v6240_v28  ;;  %v6264_v41 = vld [vmem:[#allocation5_spill] sm:$0xff] }
 0x251   : > { %v1179_v55 = vand.u32 2147483647, %v6240_v28  ;;  %vm1161_vm2 = vweird.f32 %v5250_v15  ;;  %v1182_v56 = vor.u32 1.1754944e-38, %v1181_v40  ;;  %vm1190_vm8 = vweird.f32 %v6245_v36  ;;  %v6265_v40 = vld [vmem:[#allocation6_spill] sm:$0xff] }
 0x252   : > { %v1187_v38 = vsub.f32 1.0, %v1186_v35  ;;  %v1194_v58 = vand.u32 2147483647, %v6245_v36  ;;  %v5353_v31 = vsel %vm5275_vm0, %v1137_v11, %v1133_v7  ;;  %v1148_v44 = vsel %vm5344_vm4, %v5225_v39, %v1144_v5  ;;  %v6263_v39 = vld [vmem:[#allocation4_spill] sm:$0xff]  ;;  %v6266_v5 = vld [vmem:[#allocation7_spill] sm:$0xff]  ;;  %vm5396_vm0 = vmor %vm1160_vm15, %vm1161_vm2 }
 0x253   : > { %v1173_v34 = vmul.f32 %v5281_v53, %v1172_v33  ;;  %vm1176_vm10 = vweird.f32 %v5281_v53  ;;  %v1159_v61 = vadd.f32 %v5250_v15, %v1158_v4  ;;  %vm5361_vm14 = vcmp.eq.f32.partialorder %v1164_v18, 8.507059e+37  ;;  %v6269_v7 = vld [vmem:[#allocation8_spill] sm:$0xff]  ;;  %v6289_v36 = vld [vmem:[#allocation22_spill] sm:$0xff] }
 0x254   : > { %v1188_v49 = vmul.f32 %v5318_v10, %v1187_v38  ;;  %v1197_v30 = vor.u32 1.1754944e-38, %v1196_v0  ;;  %v1200_v11 = vmul.f32 %v4635_v17, %v6260_v9  ;;  %vm5368_vm5 = vcmp.eq.f32.partialorder %v1179_v55, 8.507059e+37  ;;  %v6276_v55 = vld [vmem:[#allocation13_spill] sm:$0xff]  ;;  %v6277_v38 = vld [vmem:[#allocation14_spill] sm:$0xff]  ;;  %v6279_v9 = vld [vmem:[#allocation16_spill] sm:$0xff] }
 0x255   : > { %v1201_v63 = vmul.f32 %v4659_v26, %v6263_v39  ;;  %v1202_v6 = vmul.f32 %v4664_v37, %v6264_v41  ;;  %v1203_v2 = vmul.f32 %v4700_v48, %v6265_v40  ;;  %v1204_v18 = vmul.f32 %v4757_v32, %v6266_v5  ;;  %v6270_v26 = vld [vmem:[#allocation9_spill] sm:$0xff]  ;;  %v6271_v37 = vld [vmem:[#allocation10_spill] sm:$0xff]  ;;  %vm5422_vm3 = vmor %vm1175_vm9, %vm1176_vm10 }
 0x256   : > { %v1153_v33 = vsel %vm5304_vm12, %v1152_v23, %v1148_v44  ;;  %vm5382_vm13 = vcmp.eq.f32.partialorder %v1194_v58, 8.507059e+37  ;;  %v1205_v4 = vmul.f32 %v4762_v45, %v6269_v7  ;;  %v1206_v35 = vmul.f32 %v4786_v3, %v6270_v26  ;;  %v6275_v23 = vld [vmem:[#allocation12_spill] sm:$0xff]  ;;  %v6278_v44 = vld [vmem:[#allocation15_spill] sm:$0xff]  ;;  %v6288_v40 = vld [vmem:[#allocation21_spill] sm:$0xff] }
 0x257   : > { %v1207_v0 = vmul.f32 %v4791_v57, %v6271_v37  ;;  %v1174_v32 = vadd.f32 %v5281_v53, %v1173_v34  ;;  %vm1191_vm6 = vweird.f32 %v5318_v10  ;;  %v1208_v45 = vmul.f32 %v4814_v14, %v6274_v62  ;;  %v6290_v7 = vld [vmem:[#allocation23_spill] sm:$0xff]  ;;  %v6299_v17 = vld [vmem:[#allocation32_spill] sm:$0xff] }
 0x258   : > { %v1209_v3 = vmul.f32 %v4846_v13, %v6275_v23  ;;  %v1163_v57 = vsel %vm5396_vm0, %v5250_v15, %v1159_v61  ;;  %v1189_v42 = vadd.f32 %v5318_v10, %v1188_v49  ;;  %v1210_v16 = vmul.f32 %v4861_v19, %v6276_v55  ;;  %v6282_v19 = vld [vmem:[#allocation17_spill] sm:$0xff]  ;;  %vm5437_vm11 = vmor %vm1190_vm8, %vm1191_vm6  ;;  %v6298_v23 = vld [vmem:[#allocation31_spill] sm:$0xff] }
 0x259   : > { %v1211_v58 = vmul.f32 %v4927_v51, %v6277_v38  ;;  %v1212_v34 = vmul.f32 %v4931_v29, %v6278_v44  ;;  %v1213_v14 = vmul.f32 %v4945_v20, %v6279_v9  ;;  %v3396_v39 = vpack.c.bf16 %v1201_v63, %v1200_v11  ;;  %v6283_v51 = vld [vmem:[#allocation18_spill] sm:$0xff]  ;;  %v6286_v11 = vld [vmem:[#allocation19_spill] sm:$0xff]  ;;  %v6287_v63 = vld [vmem:[#allocation20_spill] sm:$0xff] }
 0x25a   : > { %v3401_v13 = vpack.c.bf16 %v1203_v2, %v1202_v6  ;;  %v1214_v61 = vmul.f32 %v4978_v46, %v6282_v19  ;;  %v1215_v49 = vmul.f32 %v5026_v60, %v6283_v51  ;;  %v3406_v29 = vpack.c.bf16 %v1205_v4, %v1204_v18  ;;  %v6291_v4 = vld [vmem:[#allocation24_spill] sm:$0xff]  ;;  %v6301_v55 = vld [vmem:[#allocation34_spill] sm:$0xff] }
 0x25b   : > { %v3411_v41 = vpack.c.bf16 %v1207_v0, %v1206_v35  ;;  %v1178_v20 = vsel %vm5422_vm3, %v5281_v53, %v1174_v32  ;;  %v1216_v46 = vmul.f32 %v5038_v8, %v6286_v11  ;;  %v1217_v60 = vmul.f32 %v5084_v52, %v6287_v63  ;;  %3397 = vst [vmem:[#allocation2 + $0x8] sm:$0xff] %v3396_v39  }
 0x25c   : > { %v3416_v6 = vpack.c.bf16 %v1209_v3, %v1208_v45  ;;  %v1193_v53 = vsel %vm5437_vm11, %v5318_v10, %v1189_v42  ;;  %v1218_v2 = vmul.f32 %v5103_v21, %v6288_v40  ;;  %v1219_v5 = vmul.f32 %v5136_v47, %v6289_v36  ;;  %3513 = vst [vmem:[#allocation2 + $0x10] sm:$0xff] %v3401_v13   ;;  %v6292_v21 = vld [vmem:[#allocation25_spill] sm:$0xff]  ;;  %v6293_v47 = vld [vmem:[#allocation26_spill] sm:$0xff] }
 0x25d   : > { %v3421_v18 = vpack.c.bf16 %v1211_v58, %v1210_v16  ;;  %v1168_v8 = vsel %vm5361_vm14, %v1167_v50, %v1163_v57  ;;  %v1220_v52 = vmul.f32 %v5159_v22, %v6290_v7  ;;  %v1221_v26 = vmul.f32 %v5199_v12, %v6291_v4  ;;  %3514 = vst [vmem:[#allocation2 + $0x18] sm:$0xff] %v3406_v29   ;;  %v6294_v22 = vld [vmem:[#allocation27_spill] sm:$0xff]  ;;  %v6295_v12 = vld [vmem:[#allocation28_spill] sm:$0xff] }
 0x25e   : > { %v3426_v35 = vpack.c.bf16 %v1213_v14, %v1212_v34  ;;  %v1183_v10 = vsel %vm5368_vm5, %v1182_v56, %v1178_v20  ;;  %v1222_v37 = vmul.f32 %v5229_v27, %v6292_v21  ;;  %v1223_v0 = vmul.f32 %v5242_v43, %v6293_v47  ;;  %3515 = vst [vmem:[#allocation2 + $0x20] sm:$0xff] %v3411_v41   ;;  %v6296_v56 = vld [vmem:[#allocation29_spill] sm:$0xff]  ;;  %v6297_v27 = vld [vmem:[#allocation30_spill] sm:$0xff] }
 0x25f   : > { %v3431_v1 = vpack.c.bf16 %v1215_v49, %v1214_v61  ;;  %v1198_v50 = vsel %vm5382_vm13, %v1197_v30, %v1193_v53  ;;  %v1224_v48 = vmul.f32 %v5294_v25, %v6294_v22  ;;  %v1225_v32 = vmul.f32 %v5311_v24, %v6295_v12  ;;  %3516 = vst [vmem:[#allocation2 + $0x28] sm:$0xff] %v3416_v6   ;;  %v6300_v25 = vld [vmem:[#allocation33_spill] sm:$0xff] }
 0x260   : > { %v3436_v59 = vpack.c.bf16 %v1217_v60, %v1216_v46  ;;  %v1226_v62 = vmul.f32 %v5338_v54, %v6296_v56  ;;  %v1227_v45 = vmul.f32 %v5353_v31, %v6297_v27  ;;  %3517 = vst [vmem:[#allocation2 + $0x30] sm:$0xff] %v3421_v18   ;;  %v3441_v43 = vpack.c.bf16 %v1219_v5, %v1218_v2 }
 0x261   : > { %v1228_v3 = vmul.f32 %v1153_v33, %v6298_v23  ;;  %v1229_v30 = vmul.f32 %v1168_v8, %v6299_v17  ;;  %3518 = vst [vmem:[#allocation2 + $0x38] sm:$0xff] %v3426_v35   ;;  %v3446_v57 = vpack.c.bf16 %v1221_v26, %v1220_v52  ;;  %v1230_v42 = vmul.f32 %v1183_v10, %v6300_v25 }
 0x262   : > { %v1231_v24 = vmul.f32 %v1198_v50, %v6301_v55  ;;  %3519 = vst [vmem:[#allocation2 + $0x40] sm:$0xff] %v3431_v1   ;;  %v3451_v16 = vpack.c.bf16 %v1223_v0, %v1222_v37  ;;  %v3456_v38 = vpack.c.bf16 %v1225_v32, %v1224_v48  ;;  %v3461_v54 = vpack.c.bf16 %v1227_v45, %v1226_v62 }
 0x263   : > { %3520 = vst [vmem:[#allocation2 + $0x48] sm:$0xff] %v3436_v59   ;;  %v3466_v31 = vpack.c.bf16 %v1229_v30, %v1228_v3  ;;  %v3771_v33 = vmov 0  }
 0x264   : > { %3521 = vst [vmem:[#allocation2 + $0x50] sm:$0xff] %v3441_v43   ;;  %v3471_v58 = vpack.c.bf16 %v1231_v24, %v1230_v42 }
 0x265   : > { %3522 = vst [vmem:[#allocation2 + $0x58] sm:$0xff] %v3446_v57  }
 0x266   : > { %3523 = vst [vmem:[#allocation2 + $0x60] sm:$0xff] %v3451_v16  }
 0x267   : > { %3524 = vst [vmem:[#allocation2 + $0x68] sm:$0xff] %v3456_v38  }
 0x268   : > { %3525 = vst [vmem:[#allocation2 + $0x70] sm:$0xff] %v3461_v54  }
 0x269   : > { %3526 = vst [vmem:[#allocation2 + $0x78] sm:$0xff] %v3466_v31  }
 0x26a   : > { %3527 = vst [vmem:[#allocation2 + $0x80] sm:$0xff] %v3471_v58  }
 0x26b   : > { %1232 = vst [vmem:[#allocation2] sm:$0xf] %v3771_v33 }
 0x26c   : > { %1233 = vst [vmem:[#allocation2 + $0x4] sm:$0xf] %v3771_v33 }
 0x26d   : > { %1235 = vst [vmem:[#allocation2 + $0x88] sm:$0xf] %v3771_v33 }
 0x26e   : > { %1236 = vst [vmem:[#allocation2 + $0x8c] sm:$0xf] %v3771_v33 }
 0x26f PF: > { %v3336_v44 = vld [vmem:[%s6026_s4 + $0x78] sm:$0xff]  ;;  %v3335_v34 = vld [vmem:[%s6026_s4 + $0x70] sm:$0xff]  ;;  %v3334_v9 = vld [vmem:[%s6026_s4 + $0x68] sm:$0xff]  ;;  %s3310_s16 = sshll.u32 %s3753_s21, 6  ;;  %vm1456_vm12 = vcmask 1040384   ;;  %vm1499_vm1 = vcmask 1047552  }
 0x270   : > { %3535 = vmatpush.bf16.msra.mxu1 %v3336_v44  ;;  %3536 = vmatpush.bf16.msra.mxu2 %v3336_v44  ;;  %v3333_v14 = vld [vmem:[%s6026_s4 + $0x60] sm:$0xff]  ;;  %v3332_v39 = vld [vmem:[%s6026_s4 + $0x58] sm:$0xff]  ;;  %v3331_v13 = vld [vmem:[%s6026_s4 + $0x50] sm:$0xff]  ;;  %s5509_s29 = scalar_lea.vmem [#allocation2], %s3310_s16  ;;  %vm1457_vm15 = vsmask.f32 256 }
 0x271   : > { %3537 = vmatpush.bf16.msra.mxu3 %v3336_v44  ;;  %1601 = vmatpush.bf16.msra.mxu0 %v3336_v44  ;;  %v3330_v15 = vld [vmem:[%s6026_s4 + $0x48] sm:$0xff]  ;;  %v3329_v19 = vld [vmem:[%s6026_s4 + $0x40] sm:$0xff]  ;;  %v3344_v61 = vld [vmem:[%s6026_s4 + $0xb8] sm:$0xff]  ;;  %vm1500_vm7 = vsmask.f32 7424 }
 0x272   : > { %v3328_v51 = vld [vmem:[%s6026_s4 + $0x38] sm:$0xff]  ;;  %v3343_v46 = vld [vmem:[%s6026_s4 + $0xb0] sm:$0xff]  ;;  %v3342_v53 = vld [vmem:[%s6026_s4 + $0xa8] sm:$0xff] }
 0x273   : > { %v3352_v28 = vld [vmem:[%s6026_s4 + $0xf8] sm:$0xff]  ;;  %v3327_v63 = vld [vmem:[%s6026_s4 + $0x30] sm:$0xff]  ;;  %v3326_v40 = vld [vmem:[%s6026_s4 + $0x28] sm:$0xff] }
 0x274   : > { %3538 = vmatpush.bf16.msra.mxu1 %v3335_v34  ;;  %3539 = vmatpush.bf16.msra.mxu2 %v3335_v34  ;;  %v3360_v11 = vld [vmem:[%s6026_s4 + $0x138] sm:$0xff]  ;;  %v3351_v60 = vld [vmem:[%s6026_s4 + $0xf0] sm:$0xff]  ;;  %v3350_v2 = vld [vmem:[%s6026_s4 + $0xe8] sm:$0xff] }
 0x275   : > { %3540 = vmatpush.bf16.msra.mxu3 %v3335_v34  ;;  %1602 = vmatpush.bf16.msra.mxu0 %v3335_v34  ;;  %v5512_v49 = vld [vmem:[%s5509_s29 + $0x10] sm:$0xff]  ;;  %v5515_v29 = vld [vmem:[%s5509_s29 + $0x20] sm:$0xff]  ;;  %v3358_v36 = vld [vmem:[%s6026_s4 + $0x128] sm:$0xff] }
 0x276   : > { %v5518_v41 = vld [vmem:[%s5509_s29 + $0x30] sm:$0xff]  ;;  %v5521_v20 = vld [vmem:[%s5509_s29] sm:$0xff]  ;;  %v3340_v52 = vld [vmem:[%s6026_s4 + $0x98] sm:$0xff] }
 0x277   : > { %v3359_v6 = vld [vmem:[%s6026_s4 + $0x130] sm:$0xff]  ;;  %v3341_v5 = vld [vmem:[%s6026_s4 + $0xa0] sm:$0xff]  ;;  %v3324_v4 = vld [vmem:[%s6026_s4 + $0x18] sm:$0xff]  ;;  %v1377_v50 = vshrl.u32 %v5521_v20, 16  ;;  %v1380_v22 = vshll.u32 %v5521_v20, 16 }
 0x278   : > { %3541 = vmatpush.bf16.msra.mxu1 %v3334_v9  ;;  %3542 = vmatpush.bf16.msra.mxu2 %v3334_v9  ;;  %v3325_v18 = vld [vmem:[%s6026_s4 + $0x20] sm:$0xff]  ;;  %v5576_v26 = vld [vmem:[%s5509_s29 + $0x18] sm:$0xff]  ;;  %v5579_v35 = vld [vmem:[%s5509_s29 + $0x28] sm:$0xff] }
 0x279   : > { %3543 = vmatpush.bf16.msra.mxu3 %v3334_v9  ;;  %1603 = vmatpush.bf16.msra.mxu0 %v3334_v9  ;;  %v3349_v8 = vld [vmem:[%s6026_s4 + $0xe0] sm:$0xff]  ;;  %v5582_v10 = vld [vmem:[%s5509_s29 + $0x38] sm:$0xff]  ;;  %v5585_v21 = vld [vmem:[%s5509_s29 + $0x8] sm:$0xff]  ;;  %v1379_v27 = vrot.slane %v1377_v50, 7  ;;  %v1469_v45 = vrot.slane %v1380_v22, 1 }
 0x27a   : > { %v3357_v7 = vld [vmem:[%s6026_s4 + $0x120] sm:$0xff]  ;;  %v3348_v37 = vld [vmem:[%s6026_s4 + $0xd8] sm:$0xff]  ;;  %v3339_v0 = vld [vmem:[%s6026_s4 + $0x90] sm:$0xff]  ;;  %v1384_v32 = vshrl.u32 %v5585_v21, 16  ;;  %v1387_v3 = vshll.u32 %v5585_v21, 16 }
 0x27b   : > { %v3356_v47 = vld [vmem:[%s6026_s4 + $0x118] sm:$0xff]  ;;  %v3323_v1 = vld [vmem:[%s6026_s4 + $0x10] sm:$0xff]  ;;  %v3338_v59 = vld [vmem:[%s6026_s4 + $0x88] sm:$0xff]  ;;  %v1382_v42 = vor.u32 %v1380_v22, %v1379_v27  ;;  %v1470_v24 = vor.u32 %v1469_v45, %v1377_v50 }
 0x27c   : > { %3544 = vmatpush.bf16.msra.mxu1 %v3333_v14  ;;  %3545 = vmatpush.bf16.msra.mxu2 %v3333_v14  ;;  %v3347_v48 = vld [vmem:[%s6026_s4 + $0xd0] sm:$0xff]  ;;  %v3322_v56 = vld [vmem:[%s6026_s4 + $0x8] sm:$0xff]  ;;  %v1386_v23 = vrot.slane %v1384_v32, 7  ;;  %v3337_v17 = vld [vmem:[%s6026_s4 + $0x80] sm:$0xff] }
 0x27d   : > { %3546 = vmatpush.bf16.msra.mxu3 %v3333_v14  ;;  %1604 = vmatpush.bf16.msra.mxu0 %v3333_v14  ;;  %v3355_v12 = vld [vmem:[%s6026_s4 + $0x110] sm:$0xff]  ;;  %v3346_v62 = vld [vmem:[%s6026_s4 + $0xc8] sm:$0xff]  ;;  %v3321_v30 = vld [vmem:[%s6026_s4] sm:$0xff] }
 0x27e   : > { %v3354_v43 = vld [vmem:[%s6026_s4 + $0x108] sm:$0xff]  ;;  %v3376_v57 = vld [vmem:[%s6026_s4 + $0x1b8] sm:$0xff]  ;;  %vm5639_vm9 = vmand %vm1456_vm12, %vm1457_vm15  ;;  %v1389_v31 = vor.u32 %v1387_v3, %v1386_v23 }
 0x27f   : > { %v3368_v25 = vld [vmem:[%s6026_s4 + $0x178] sm:$0xff]  ;;  %v3345_v16 = vld [vmem:[%s6026_s4 + $0xc0] sm:$0xff]  ;;  %vm5649_vm4 = vmand %vm1499_vm1, %vm1500_vm7  ;;  %v1459_v44 = vsel %vm5639_vm9, 0, %v1382_v42 }
 0x280   : > { %3547 = vmatpush.bf16.msra.mxu1 %v3332_v39  ;;  %3548 = vmatpush.bf16.msra.mxu2 %v3332_v39  ;;  %v3353_v38 = vld [vmem:[%s6026_s4 + $0x100] sm:$0xff]  ;;  %v3384_v58 = vld [vmem:[%s6026_s4 + $0x1f8] sm:$0xff]  ;;  %v1502_v34 = vsel %vm5649_vm4, %v1470_v24, 0  ;;  %v1460_v9 = vsel %vm5639_vm9, 0, %v1389_v31  ;;  %v3375_v14 = vld [vmem:[%s6026_s4 + $0x1b0] sm:$0xff]  ;;  %v1415_v24 = vshll.u32 %v5579_v35, 16 }
 0x281   : > { %3549 = vmatpush.bf16.msra.mxu3 %v3332_v39  ;;  %1605 = vmatpush.bf16.msra.mxu0 %v3332_v39  ;;  %v3392_v33 = vld [vmem:[%s6026_s4 + $0x238] sm:$0xff]  ;;  %v3367_v39 = vld [vmem:[%s6026_s4 + $0x170] sm:$0xff] }
 0x282   : > { %v3380_v50 = vld [vmem:[%s6026_s4 + $0x1d8] sm:$0xff]  ;;  %v3371_v23 = vld [vmem:[%s6026_s4 + $0x190] sm:$0xff] }
 0x283   : > { %v3364_v22 = vld [vmem:[%s6026_s4 + $0x158] sm:$0xff] }
 0x284   : > { %3550 = vmatpush.bf16.msra.mxu1 %v3331_v13  ;;  %3551 = vmatpush.bf16.msra.mxu2 %v3331_v13 }
 0x285   : > { %3552 = vmatpush.bf16.msra.mxu3 %v3331_v13  ;;  %1606 = vmatpush.bf16.msra.mxu0 %v3331_v13  ;;  %v3383_v13 = vld [vmem:[%s6026_s4 + $0x1f0] sm:$0xff] }
 0x288   : > { %3553 = vmatpush.bf16.msra.mxu1 %v3330_v15  ;;  %3554 = vmatpush.bf16.msra.mxu2 %v3330_v15 }
 0x289   : > { %3555 = vmatpush.bf16.msra.mxu3 %v3330_v15  ;;  %1607 = vmatpush.bf16.msra.mxu0 %v3330_v15  ;;  %v3391_v15 = vld [vmem:[%s6026_s4 + $0x230] sm:$0xff] }
 0x28c   : > { %3556 = vmatpush.bf16.msra.mxu1 %v3329_v19  ;;  %3557 = vmatpush.bf16.msra.mxu2 %v3329_v19 }
 0x28d   : > { %3558 = vmatpush.bf16.msra.mxu3 %v3329_v19  ;;  %1608 = vmatpush.bf16.msra.mxu0 %v3329_v19  ;;  %v1391_v19 = vshrl.u32 %v5512_v49, 16 }
 0x28f   : > { %1619 = vmatmul.bf16.vlgmr.msra.gmra.mxu1 %v5512_v49  ;;  %1629 = vmatmul.bf16.vlgmr.msra.gmra.mxu2 %v5515_v29 }
 0x290   : > { %1812 = vmatpush.bf16.msrb.mxu2 %v3344_v61  ;;  %1698 = vmatpush.bf16.msrb.mxu1 %v3328_v51  ;;  %v3374_v61 = vld [vmem:[%s6026_s4 + $0x1a8] sm:$0xff] }
 0x291   : > { %1639 = vmatmul.bf16.vlgmr.msra.gmra.mxu3 %v5518_v41  ;;  %1609 = vmatmul.bf16.vlgmr.msra.gmra.mxu0 %v5521_v20  ;;  %v3366_v51 = vld [vmem:[%s6026_s4 + $0x168] sm:$0xff] }
 0x292   : > { %1942 = vmatpush.bf16.msrb.mxu3 %v3352_v28  ;;  %2073 = vmatpush.bf16.msrb.mxu0 %v3360_v11  ;;  %v3382_v20 = vld [vmem:[%s6026_s4 + $0x1e8] sm:$0xff]  ;;  %v1471_v11 = vrot.slane %v1387_v3, 1  ;;  %v3379_v3 = vld [vmem:[%s6026_s4 + $0x1d0] sm:$0xff] }
 0x293   : > { %v3390_v28 = vld [vmem:[%s6026_s4 + $0x228] sm:$0xff] }
 0x294   : > { %1813 = vmatpush.bf16.msrb.mxu2 %v3343_v46  ;;  %1699 = vmatpush.bf16.msrb.mxu1 %v3327_v63  ;;  %v1393_v46 = vrot.slane %v1391_v19, 7  ;;  %v1394_v63 = vshll.u32 %v5512_v49, 16 }
 0x296   : > { %1943 = vmatpush.bf16.msrb.mxu3 %v3351_v60  ;;  %2074 = vmatpush.bf16.msrb.mxu0 %v3359_v6  ;;  %v1472_v60 = vor.u32 %v1471_v11, %v1384_v32  ;;  %v1396_v6 = vor.u32 %v1394_v63, %v1393_v46  ;;  %v3377_v11 = vld [vmem:[%s6026_s4 + $0x1c0] sm:$0xff]  ;;  %v1426_v46 = vshrl.u32 %v5582_v10, 16 }
 0x298   : > { %1814 = vmatpush.bf16.msrb.mxu2 %v3342_v53  ;;  %1700 = vmatpush.bf16.msrb.mxu1 %v3326_v40  ;;  %v5696_v53 = vsel %vm5649_vm4, %v1472_v60, 0  ;;  %v5700_v40 = vsel %vm5639_vm9, 0, %v1396_v6  ;;  %v1428_v6 = vrot.slane %v1426_v46, 7 }
 0x29a   : > { %1944 = vmatpush.bf16.msrb.mxu3 %v3350_v2  ;;  %2075 = vmatpush.bf16.msrb.mxu0 %v3358_v36  ;;  %v3373_v2 = vld [vmem:[%s6026_s4 + $0x1a0] sm:$0xff] }
 0x29b   : > { %v3381_v36 = vld [vmem:[%s6026_s4 + $0x1e0] sm:$0xff] }
 0x29c   : > { %1815 = vmatpush.bf16.msrb.mxu2 %v3341_v5  ;;  %1701 = vmatpush.bf16.msrb.mxu1 %v3325_v18  ;;  %v3365_v5 = vld [vmem:[%s6026_s4 + $0x160] sm:$0xff]  ;;  %v1398_v18 = vshrl.u32 %v5576_v26, 16 }
 0x29e   : > { %1945 = vmatpush.bf16.msrb.mxu3 %v3349_v8  ;;  %2076 = vmatpush.bf16.msrb.mxu0 %v3357_v7  ;;  %v3389_v8 = vld [vmem:[%s6026_s4 + $0x220] sm:$0xff]  ;;  %v1473_v7 = vrot.slane %v1394_v63, 1 }
 0x29f   : > { %1624 = vmatmul.bf16.gmra.mxu1 %v5576_v26  ;;  %1634 = vmatmul.bf16.gmra.mxu2 %v5579_v35  ;;  %v3361_v63 = vld [vmem:[%s6026_s4 + $0x140] sm:$0xff] }
 0x2a0   : > { %1816 = vmatpush.bf16.msrb.mxu2 %v3340_v52  ;;  %1702 = vmatpush.bf16.msrb.mxu1 %v3324_v4  ;;  %v1400_v52 = vrot.slane %v1398_v18, 7  ;;  %v1401_v4 = vshll.u32 %v5576_v26, 16 }
 0x2a1   : > { %1644 = vmatmul.bf16.gmra.mxu3 %v5582_v10  ;;  %1614 = vmatmul.bf16.gmra.mxu0 %v5585_v21 }
 0x2a2   : > { %1946 = vmatpush.bf16.msrb.mxu3 %v3348_v37  ;;  %2077 = vmatpush.bf16.msrb.mxu0 %v3356_v47  ;;  %v1403_v37 = vor.u32 %v1401_v4, %v1400_v52  ;;  %v1475_v32 = vrot.slane %v1401_v4, 1 }
 0x2a4   : > { %1817 = vmatpush.bf16.msrb.mxu2 %v3339_v0  ;;  %1703 = vmatpush.bf16.msrb.mxu1 %v3323_v1  ;;  %v5725_v0 = vsel %vm5639_vm9, 0, %v1403_v37  ;;  %v3372_v1 = vld [vmem:[%s6026_s4 + $0x198] sm:$0xff] }
 0x2a6   : > { %1947 = vmatpush.bf16.msrb.mxu3 %v3347_v48  ;;  %2078 = vmatpush.bf16.msrb.mxu0 %v3355_v12  ;;  %v1405_v48 = vshrl.u32 %v5515_v29, 16  ;;  %v3388_v12 = vld [vmem:[%s6026_s4 + $0x218] sm:$0xff] }
 0x2a8   : > { %1818 = vmatpush.bf16.msrb.mxu2 %v3338_v59  ;;  %1704 = vmatpush.bf16.msrb.mxu1 %v3322_v56  ;;  %v1407_v59 = vrot.slane %v1405_v48, 7  ;;  %v1408_v56 = vshll.u32 %v5515_v29, 16 }
 0x2aa   : > { %1948 = vmatpush.bf16.msrb.mxu3 %v3346_v62  ;;  %2079 = vmatpush.bf16.msrb.mxu0 %v3354_v43  ;;  %v1476_v62 = vor.u32 %v1475_v32, %v1398_v18  ;;  %v1410_v27 = vor.u32 %v1408_v56, %v1407_v59 }
 0x2ac   : > { %1819 = vmatpush.bf16.msrb.mxu2 %v3337_v17  ;;  %1705 = vmatpush.bf16.msrb.mxu1 %v3321_v30  ;;  %v5747_v45 = vsel %vm5649_vm4, %v1476_v62, 0  ;;  %v5751_v43 = vsel %vm5639_vm9, 0, %v1410_v27  ;;  %v3363_v17 = vld [vmem:[%s6026_s4 + $0x150] sm:$0xff]  ;;  %v1412_v30 = vshrl.u32 %v5579_v35, 16 }
 0x2ae   : > { %1949 = vmatpush.bf16.msrb.mxu3 %v3345_v16  ;;  %2080 = vmatpush.bf16.msrb.mxu0 %v3353_v38  ;;  %v1414_v42 = vrot.slane %v1412_v30, 7 }
 0x2af   : > { %1706 = vmatmul.bf16.vlgmr.msrb.gmra.mxu1 %v1459_v44  ;;  %1820 = vmatmul.bf16.vlgmr.msrb.gmra.mxu2 %v1502_v34  ;;  %v3378_v44 = vld [vmem:[%s6026_s4 + $0x1c8] sm:$0xff]  ;;  %v1419_v34 = vshrl.u32 %v5518_v41, 16 }
 0x2b0   : > { %2333 = vmatpush.bf16.msra.mxu2 %v3376_v57  ;;  %2203 = vmatpush.bf16.msra.mxu1 %v3368_v25  ;;  %v3387_v57 = vld [vmem:[%s6026_s4 + $0x210] sm:$0xff]  ;;  %v1477_v25 = vrot.slane %v1408_v56, 1  ;;  %v1417_v38 = vor.u32 %v1415_v24, %v1414_v42 }
 0x2b1   : > { %1950 = vmatmul.bf16.vlgmr.msrb.gmra.mxu3 %v1460_v9  ;;  %2081 = vmatmul.bf16.vlgmr.msrb.gmra.mxu0 %v5585_v21  ;;  %v1474_v21 = vor.u32 %v1473_v7, %v1391_v19 }
 0x2b2   : > { %2464 = vmatpush.bf16.msra.mxu3 %v3384_v58  ;;  %2594 = vmatpush.bf16.msra.mxu0 %v3392_v33  ;;  %v1478_v16 = vor.u32 %v1477_v25, %v1405_v48  ;;  %v5777_v58 = vsel %vm5639_vm9, 0, %v1417_v38  ;;  %v3370_v33 = vld [vmem:[%s6026_s4 + $0x188] sm:$0xff] }
 0x2b3   : > { %v5721_v47 = vsel %vm5649_vm4, %v1474_v21, 0  ;;  %v5834_v21 = vld [vmem:[%s5509_s29 + $0x40] sm:$0xff] }
 0x2b4   : > { %2334 = vmatpush.bf16.msra.mxu2 %v3375_v14  ;;  %2204 = vmatpush.bf16.msra.mxu1 %v3367_v39  ;;  %v5773_v31 = vsel %vm5649_vm4, %v1478_v16, 0  ;;  %v1479_v14 = vrot.slane %v1415_v24, 1  ;;  %v1421_v39 = vrot.slane %v1419_v34, 7  ;;  %v1433_v37 = vshrl.u32 %v5834_v21, 16 }
 0x2b5   : > { %v1436_v59 = vshll.u32 %v5834_v21, 16 }
 0x2b6   : > { %2465 = vmatpush.bf16.msra.mxu3 %v3383_v13  ;;  %2595 = vmatpush.bf16.msra.mxu0 %v3391_v15  ;;  %v1422_v13 = vshll.u32 %v5518_v41, 16  ;;  %v3386_v15 = vld [vmem:[%s6026_s4 + $0x208] sm:$0xff]  ;;  %v1480_v19 = vor.u32 %v1479_v14, %v1412_v30  ;;  %v1435_v32 = vrot.slane %v1433_v37, 7 }
 0x2b8   : > { %2335 = vmatpush.bf16.msra.mxu2 %v3374_v61  ;;  %2205 = vmatpush.bf16.msra.mxu1 %v3366_v51  ;;  %v1424_v61 = vor.u32 %v1422_v13, %v1421_v39  ;;  %v5799_v51 = vsel %vm5649_vm4, %v1480_v19, 0  ;;  %v1481_v60 = vrot.slane %v1422_v13, 1  ;;  %v1438_v62 = vor.u32 %v1436_v59, %v1435_v32 }
 0x2ba   : > { %2466 = vmatpush.bf16.msra.mxu3 %v3382_v20  ;;  %2596 = vmatpush.bf16.msra.mxu0 %v3390_v28  ;;  %v5803_v20 = vsel %vm5639_vm9, 0, %v1424_v61  ;;  %v3369_v28 = vld [vmem:[%s6026_s4 + $0x180] sm:$0xff] }
 0x2bc   : > { %2336 = vmatpush.bf16.msra.mxu2 %v3373_v2  ;;  %2206 = vmatpush.bf16.msra.mxu1 %v3365_v5  ;;  %v1429_v2 = vshll.u32 %v5582_v10, 16  ;;  %v1482_v5 = vor.u32 %v1481_v60, %v1419_v34 }
 0x2be   : > { %2467 = vmatpush.bf16.msra.mxu3 %v3381_v36  ;;  %2597 = vmatpush.bf16.msra.mxu0 %v3389_v8  ;;  %v3385_v36 = vld [vmem:[%s6026_s4 + $0x200] sm:$0xff]  ;;  %v1431_v18 = vor.u32 %v1429_v2, %v1428_v6  ;;  %v5827_v7 = vsel %vm5649_vm4, %v1482_v5, 0  ;;  %v1483_v48 = vrot.slane %v1429_v2, 1 }
 0x2bf   : > { %1711 = vmatmul.bf16.gmra.mxu1 %v1460_v9  ;;  %1825 = vmatmul.bf16.gmra.mxu2 %v5696_v53  ;;  %v3362_v9 = vld [vmem:[%s6026_s4 + $0x148] sm:$0xff] }
 0x2c0   : > { %2337 = vmatpush.bf16.msra.mxu2 %v3372_v1  ;;  %2207 = vmatpush.bf16.msra.mxu1 %v3364_v22  ;;  %v5831_v4 = vsel %vm5639_vm9, 0, %v1431_v18  ;;  %v1484_v56 = vor.u32 %v1483_v48, %v1426_v46 }
 0x2c1   : > { %1955 = vmatmul.bf16.gmra.mxu3 %v5700_v40  ;;  %2086 = vmatmul.bf16.gmra.mxu0 %v5512_v49 }
 0x2c2   : > { %2468 = vmatpush.bf16.msra.mxu3 %v3380_v50  ;;  %2598 = vmatpush.bf16.msra.mxu0 %v3388_v12 }
 0x2c4   : > { %2338 = vmatpush.bf16.msra.mxu2 %v3371_v23  ;;  %2208 = vmatpush.bf16.msra.mxu1 %v3363_v17  ;;  %v5860_v17 = vsel %vm5649_vm4, %v1484_v56, 0 }
 0x2c6   : > { %2469 = vmatpush.bf16.msra.mxu3 %v3379_v3  ;;  %2599 = vmatpush.bf16.msra.mxu0 %v3387_v57  ;;  %v5864_v57 = vsel %vm5639_vm9, 0, %v1438_v62 }
 0x2c8   : > { %2339 = vmatpush.bf16.msra.mxu2 %v3370_v33  ;;  %2209 = vmatpush.bf16.msra.mxu1 %v3362_v9 }
 0x2ca   : > { %2470 = vmatpush.bf16.msra.mxu3 %v3378_v44  ;;  %2600 = vmatpush.bf16.msra.mxu0 %v3386_v15 }
 0x2cc   : > { %2340 = vmatpush.bf16.msra.mxu2 %v3369_v28  ;;  %2210 = vmatpush.bf16.msra.mxu1 %v3361_v63 }
 0x2ce   : > { %2471 = vmatpush.bf16.msra.mxu3 %v3377_v11  ;;  %2601 = vmatpush.bf16.msra.mxu0 %v3385_v36 }
 0x2cf   : > { %1716 = vmatmul.bf16.gmra.mxu1 %v5700_v40  ;;  %1830 = vmatmul.bf16.gmra.mxu2 %v5721_v47 }
 0x2d1   : > { %1960 = vmatmul.bf16.gmra.mxu3 %v5725_v0  ;;  %2091 = vmatmul.bf16.gmra.mxu0 %v5576_v26 }
 0x2df   : > { %1721 = vmatmul.bf16.gmra.mxu1 %v5725_v0  ;;  %1835 = vmatmul.bf16.gmra.mxu2 %v5747_v45 }
 0x2e1   : > { %1965 = vmatmul.bf16.gmra.mxu3 %v5751_v43  ;;  %2096 = vmatmul.bf16.gmra.mxu0 %v5515_v29 }
 0x2ef   : > { %1726 = vmatmul.bf16.gmra.mxu1 %v5751_v43  ;;  %1840 = vmatmul.bf16.gmra.mxu2 %v5773_v31 }
 0x2f1   : > { %1970 = vmatmul.bf16.gmra.mxu3 %v5777_v58  ;;  %2101 = vmatmul.bf16.gmra.mxu0 %v5579_v35 }
 0x2ff   : > { %1731 = vmatmul.bf16.gmra.mxu1 %v5777_v58  ;;  %1845 = vmatmul.bf16.gmra.mxu2 %v5799_v51 }
 0x301   : > { %1975 = vmatmul.bf16.gmra.mxu3 %v5803_v20  ;;  %2106 = vmatmul.bf16.gmra.mxu0 %v5518_v41 }
 0x30c   : > { %v5823_v8 = vpop.f32.mrf.mxu1 }
 0x30e   : > { %v1610_v52 = vpop.f32.mrf.mxu0 }
 0x30f   : > { %1736 = vmatmul.bf16.gmra.mxu1 %v5803_v20  ;;  %1850 = vmatmul.bf16.gmra.mxu2 %v5827_v7 }
 0x311   : > { %1980 = vmatmul.bf16.gmra.mxu3 %v5831_v4  ;;  %2111 = vmatmul.bf16.gmra.mxu0 %v5582_v10 }
 0x312   : > { %v5841_v1 = vpop.f32.mrf.mxu2 }
 0x314   : > { %v5843_v50 = vpop.f32.mrf.mxu3  ;;  %v5845_v22 = vpop.f32.mrf.mxu1 }
 0x316   : > { %v1612_v12 = vpop.f32.mrf.mxu0 }
 0x31a   : > { %v5852_v27 = vpop.f32.mrf.mxu2 }
 0x31c   : > { %v5854_v23 = vpop.f32.mrf.mxu3  ;;  %v5856_v3 = vpop.f32.mrf.mxu1 }
 0x31e   : > { %v1615_v30 = vpop.f32.mrf.mxu0 }
 0x31f   : > { %1741 = vmatmul.bf16.gmra.mxu1 %v5831_v4  ;;  %1855 = vmatmul.bf16.gmra.mxu2 %v5860_v17 }
 0x321   : > { %1985 = vmatmul.bf16.gmra.mxu3 %v5864_v57  ;;  %2116 = vmatmul.bf16.gmra.mxu0 %v5834_v21 }
 0x322   : > { %v5870_v25 = vpop.f32.mrf.mxu2 }
 0x324   : > { %v5872_v42 = vpop.f32.mrf.mxu3  ;;  %v5874_v24 = vpop.f32.mrf.mxu1 }
 0x326   : > { %v1617_v16 = vpop.f32.mrf.mxu0 }
 0x32a   : > { %v5876_v38 = vpop.f32.mrf.mxu2 }
 0x32c   : > { %v5878_v33 = vpop.f32.mrf.mxu3  ;;  %v1707_v44 = vpop.f32.mrf.mxu1 }
 0x32d   : > { %v1708_v34 = vadd.f32 %v1707_v44, %v1610_v52 }
 0x32e   : > { %v2082_v9 = vpop.f32.mrf.mxu0 }
 0x32f   : > { %2211 = vmatmul.bf16.vlgmr.msra.gmra.mxu1 %v5696_v53  ;;  %2341 = vmatmul.bf16.vlgmr.msra.gmra.mxu2 %v5700_v40 }
 0x331   : > { %2472 = vmatmul.bf16.vlgmr.msra.gmra.mxu3 %v5512_v49  ;;  %2602 = vmatmul.bf16.vlgmr.msra.gmra.mxu0 %v5721_v47 }
 0x332   : > { %v1821_v14 = vpop.f32.mrf.mxu2 }
 0x333   : > { %v1861_v39 = vadd.f32 %v1821_v14, %v1708_v34 }
 0x334   : > { %v1951_v13 = vpop.f32.mrf.mxu3  ;;  %v1709_v15 = vpop.f32.mrf.mxu1 }
 0x335   : > { %v1991_v19 = vadd.f32 %v1951_v13, %v1861_v39  ;;  %v1710_v61 = vadd.f32 %v1709_v15, %v1612_v12 }
 0x336   : > { %v2084_v28 = vpop.f32.mrf.mxu0 }
 0x337   : > { %v5884_v11 = vadd.f32 %v2082_v9, %v1991_v19 }
 0x33a   : > { %v1823_v46 = vpop.f32.mrf.mxu2 }
 0x33b   : > { %v1862_v63 = vadd.f32 %v1823_v46, %v1710_v61 }
 0x33c   : > { %v1953_v60 = vpop.f32.mrf.mxu3  ;;  %v1712_v6 = vpop.f32.mrf.mxu1 }
 0x33d   : > { %v1992_v53 = vadd.f32 %v1953_v60, %v1862_v63  ;;  %v1713_v2 = vadd.f32 %v1712_v6, %v1615_v30 }
 0x33e   : > { %v2087_v40 = vpop.f32.mrf.mxu0 }
 0x33f   : > { %2216 = vmatmul.bf16.gmra.mxu1 %v5721_v47  ;;  %2346 = vmatmul.bf16.gmra.mxu2 %v5725_v0  ;;  %v5888_v49 = vadd.f32 %v2084_v28, %v1992_v53 }
 0x341   : > { %2477 = vmatmul.bf16.gmra.mxu3 %v5576_v26  ;;  %2607 = vmatmul.bf16.gmra.mxu0 %v5747_v45 }
 0x342   : > { %v1826_v36 = vpop.f32.mrf.mxu2 }
 0x343   : > { %v1863_v5 = vadd.f32 %v1826_v36, %v1713_v2 }
 0x344   : > { %v1956_v18 = vpop.f32.mrf.mxu3  ;;  %v1714_v52 = vpop.f32.mrf.mxu1 }
 0x345   : > { %v1993_v48 = vadd.f32 %v1956_v18, %v1863_v5  ;;  %v1715_v12 = vadd.f32 %v1714_v52, %v1617_v16 }
 0x346   : > { %v2089_v32 = vpop.f32.mrf.mxu0 }
 0x347   : > { %v5892_v56 = vadd.f32 %v2087_v40, %v1993_v48 }
 0x34a   : > { %v1828_v62 = vpop.f32.mrf.mxu2 }
 0x34b   : > { %v1864_v30 = vadd.f32 %v1828_v62, %v1715_v12 }
 0x34c   : > { %v1958_v47 = vpop.f32.mrf.mxu3  ;;  %v1717_v44 = vpop.f32.mrf.mxu1 }
 0x34d   : > { %v1994_v0 = vadd.f32 %v1958_v47, %v1864_v30  ;;  %v1718_v34 = vadd.f32 %v1717_v44, %v5823_v8 }
 0x34e   : > { %v2092_v9 = vpop.f32.mrf.mxu0 }
 0x34f   : > { %2221 = vmatmul.bf16.gmra.mxu1 %v5747_v45  ;;  %2351 = vmatmul.bf16.gmra.mxu2 %v5751_v43  ;;  %v5897_v26 = vadd.f32 %v2089_v32, %v1994_v0 }
 0x351   : > { %2482 = vmatmul.bf16.gmra.mxu3 %v5515_v29  ;;  %2612 = vmatmul.bf16.gmra.mxu0 %v5773_v31 }
 0x352   : > { %v1831_v16 = vpop.f32.mrf.mxu2 }
 0x353   : > { %v1865_v14 = vadd.f32 %v1831_v16, %v1718_v34 }
 0x354   : > { %v1961_v39 = vpop.f32.mrf.mxu3  ;;  %v1719_v13 = vpop.f32.mrf.mxu1 }
 0x355   : > { %v1995_v15 = vadd.f32 %v1961_v39, %v1865_v14  ;;  %v1720_v19 = vadd.f32 %v1719_v13, %v5845_v22 }
 0x356   : > { %v2094_v61 = vpop.f32.mrf.mxu0 }
 0x357   : > { %v5902_v8 = vadd.f32 %v2092_v9, %v1995_v15 }
 0x35a   : > { %v1833_v28 = vpop.f32.mrf.mxu2 }
 0x35b   : > { %v1866_v45 = vadd.f32 %v1833_v28, %v1720_v19 }
 0x35c   : > { %v1963_v46 = vpop.f32.mrf.mxu3  ;;  %v1722_v43 = vpop.f32.mrf.mxu1 }
 0x35d   : > { %v1996_v63 = vadd.f32 %v1963_v46, %v1866_v45  ;;  %v1723_v60 = vadd.f32 %v1722_v43, %v5856_v3 }
 0x35e   : > { %v2097_v29 = vpop.f32.mrf.mxu0 }
 0x35f   : > { %2226 = vmatmul.bf16.gmra.mxu1 %v5773_v31  ;;  %2356 = vmatmul.bf16.gmra.mxu2 %v5777_v58  ;;  %v5907_v6 = vadd.f32 %v2094_v61, %v1996_v63 }
 0x361   : > { %2487 = vmatmul.bf16.gmra.mxu3 %v5579_v35  ;;  %2617 = vmatmul.bf16.gmra.mxu0 %v5799_v51 }
 0x362   : > { %v1836_v22 = vpop.f32.mrf.mxu2 }
 0x363   : > { %v1867_v53 = vadd.f32 %v1836_v22, %v1723_v60  ;;  %v3320_v22 = vld [vmem:[%s5509_s29 + $0x48] sm:$0xff] }
 0x364   : > { %v1966_v2 = vpop.f32.mrf.mxu3  ;;  %v1724_v40 = vpop.f32.mrf.mxu1 }
 0x365   : > { %v1997_v36 = vadd.f32 %v1966_v2, %v1867_v53  ;;  %v1725_v5 = vadd.f32 %v1724_v40, %v5874_v24 }
 0x366   : > { %v2099_v18 = vpop.f32.mrf.mxu0 }
 0x367   : > { %v5912_v3 = vadd.f32 %v2097_v29, %v1997_v36  ;;  %v1443_v36 = vshll.u32 %v3320_v22, 16 }
 0x36a   : > { %v1838_v52 = vpop.f32.mrf.mxu2 }
 0x36b   : > { %v1868_v31 = vadd.f32 %v1838_v52, %v1725_v5 }
 0x36c   : > { %v1968_v48 = vpop.f32.mrf.mxu3  ;;  %v1727_v58 = vpop.f32.mrf.mxu1 }
 0x36d   : > { %v1998_v12 = vadd.f32 %v1968_v48, %v1868_v31  ;;  %v1728_v24 = vadd.f32 %v1727_v58, %v5841_v1 }
 0x36e   : > { %v2102_v32 = vpop.f32.mrf.mxu0 }
 0x36f   : > { %2231 = vmatmul.bf16.gmra.mxu1 %v5799_v51  ;;  %2361 = vmatmul.bf16.gmra.mxu2 %v5803_v20  ;;  %v5916_v35 = vadd.f32 %v2099_v18, %v1998_v12 }
 0x371   : > { %2492 = vmatmul.bf16.gmra.mxu3 %v5518_v41  ;;  %2622 = vmatmul.bf16.gmra.mxu0 %v5827_v7 }
 0x372   : > { %v1841_v62 = vpop.f32.mrf.mxu2 }
 0x373   : > { %v1869_v30 = vadd.f32 %v1841_v62, %v1728_v24 }
 0x374   : > { %v1971_v47 = vpop.f32.mrf.mxu3  ;;  %v1729_v44 = vpop.f32.mrf.mxu1 }
 0x375   : > { %v1999_v0 = vadd.f32 %v1971_v47, %v1869_v30  ;;  %v1730_v51 = vadd.f32 %v1729_v44, %v5852_v27 }
 0x376   : > { %v2104_v34 = vpop.f32.mrf.mxu0 }
 0x377   : > { %v5921_v9 = vadd.f32 %v2102_v32, %v1999_v0  ;;  %v1487_v32 = vrot.slane %v1443_v36, 1 }
 0x37a   : > { %v1843_v16 = vpop.f32.mrf.mxu2 }
 0x37b   : > { %v1870_v20 = vadd.f32 %v1843_v16, %v1730_v51 }
 0x37c   : > { %v1973_v14 = vpop.f32.mrf.mxu3  ;;  %v1732_v39 = vpop.f32.mrf.mxu1 }
 0x37d   : > { %v2000_v13 = vadd.f32 %v1973_v14, %v1870_v20  ;;  %v1733_v15 = vadd.f32 %v1732_v39, %v5870_v25 }
 0x37e   : > { %v2107_v41 = vpop.f32.mrf.mxu0 }
 0x37f   : > { %2236 = vmatmul.bf16.gmra.mxu1 %v5827_v7  ;;  %2366 = vmatmul.bf16.gmra.mxu2 %v5831_v4  ;;  %v5926_v1 = vadd.f32 %v2104_v34, %v2000_v13  ;;  %v1485_v7 = vrot.slane %v1436_v59, 1 }
 0x381   : > { %2497 = vmatmul.bf16.gmra.mxu3 %v5582_v10  ;;  %2627 = vmatmul.bf16.gmra.mxu0 %v5860_v17  ;;  %v1486_v10 = vor.u32 %v1485_v7, %v1433_v37  ;;  %v1440_v37 = vshrl.u32 %v3320_v22, 16 }
 0x382   : > { %v1846_v27 = vpop.f32.mrf.mxu2 }
 0x383   : > { %v1871_v19 = vadd.f32 %v1846_v27, %v1733_v15  ;;  %v1510_v40 = vsel %vm5649_vm4, %v1486_v10, 0  ;;  %v1442_v48 = vrot.slane %v1440_v37, 7  ;;  %v1488_v62 = vor.u32 %v1487_v32, %v1440_v37 }
 0x384   : > { %v1976_v61 = vpop.f32.mrf.mxu3  ;;  %v1734_v28 = vpop.f32.mrf.mxu1 }
 0x385   : > { %v2001_v45 = vadd.f32 %v1976_v61, %v1871_v19  ;;  %v1735_v4 = vadd.f32 %v1734_v28, %v5876_v38  ;;  %v1511_v51 = vsel %vm5649_vm4, %v1488_v62, 0 }
 0x386   : > { %v2109_v46 = vpop.f32.mrf.mxu0 }
 0x387   : > { %v5933_v43 = vadd.f32 %v2107_v41, %v2001_v45 }
 0x38a   : > { %v1848_v63 = vpop.f32.mrf.mxu2 }
 0x38b   : > { %v1872_v60 = vadd.f32 %v1848_v63, %v1735_v4 }
 0x38c   : > { %v1978_v29 = vpop.f32.mrf.mxu3  ;;  %v1737_v25 = vpop.f32.mrf.mxu1 }
 0x38d   : > { %v2002_v53 = vadd.f32 %v1978_v29, %v1872_v60  ;;  %v1738_v38 = vadd.f32 %v1737_v25, %v5843_v50 }
 0x38e   : > { %v2112_v2 = vpop.f32.mrf.mxu0 }
 0x38f   : > { %2241 = vmatmul.bf16.gmra.mxu1 %v5860_v17  ;;  %2371 = vmatmul.bf16.gmra.mxu2 %v5864_v57  ;;  %v5943_v59 = vadd.f32 %v2109_v46, %v2002_v53  ;;  %v1445_v57 = vor.u32 %v1443_v36, %v1442_v48 }
 0x391   : > { %2502 = vmatmul.bf16.gmra.mxu3 %v5834_v21  ;;  %2632 = vmatmul.bf16.gmra.mxu0 %v1510_v40  ;;  %v1468_v50 = vsel %vm5639_vm9, 0, %v1445_v57 }
 0x392   : > { %v1851_v5 = vpop.f32.mrf.mxu2 }
 0x393   : > { %v1873_v18 = vadd.f32 %v1851_v5, %v1738_v38  ;;  %v5967_v38 = vld [vmem:[%s6027_s5] ss:$0 sm:$0xff] }
 0x394   : > { %v1981_v52 = vpop.f32.mrf.mxu3  ;;  %v1739_v31 = vpop.f32.mrf.mxu1 }
 0x395   : > { %v2003_v58 = vadd.f32 %v1981_v52, %v1873_v18  ;;  %v1740_v24 = vadd.f32 %v1739_v31, %v5854_v23 }
 0x396   : > { %v2114_v12 = vpop.f32.mrf.mxu0 }
 0x397   : > { %v5947_v17 = vadd.f32 %v2112_v2, %v2003_v58 }
 0x39a   : > { %v1853_v21 = vpop.f32.mrf.mxu2 }
 0x39b   : > { %v1874_v30 = vadd.f32 %v1853_v21, %v1740_v24 }
 0x39c   : > { %v1983_v47 = vpop.f32.mrf.mxu3  ;;  %v1742_v44 = vpop.f32.mrf.mxu1 }
 0x39d   : > { %v2004_v0 = vadd.f32 %v1983_v47, %v1874_v30  ;;  %v1743_v23 = vadd.f32 %v1742_v44, %v5872_v42 }
 0x39e   : > { %v2117_v34 = vpop.f32.mrf.mxu0 }
 0x39f   : > { %2246 = vmatmul.bf16.gmra.mxu1 %v1510_v40  ;;  %2376 = vmatmul.bf16.gmra.mxu2 %v1468_v50  ;;  %v5954_v16 = vadd.f32 %v2114_v12, %v2004_v0 }
 0x3a1   : > { %2507 = vmatmul.bf16.gmra.mxu3 %v3320_v22  ;;  %2637 = vmatmul.bf16.gmra.mxu0 %v1511_v51 }
 0x3a2   : > { %v1856_v20 = vpop.f32.mrf.mxu2 }
 0x3a3   : > { %v1875_v14 = vadd.f32 %v1856_v20, %v1743_v23 }
 0x3a4   : > { %v1986_v39 = vpop.f32.mrf.mxu3  ;;  %v1744_v13 = vpop.f32.mrf.mxu1 }
 0x3a5   : > { %v2005_v41 = vadd.f32 %v1986_v39, %v1875_v14  ;;  %v1745_v27 = vadd.f32 %v1744_v13, %v5878_v33 }
 0x3a6   : > { %v2119_v55 = vpop.f32.mrf.mxu0 }
 0x3a7   : > { %v5957_v15 = vadd.f32 %v2117_v34, %v2005_v41 }
 0x3aa   : > { %v1858_v54 = vpop.f32.mrf.mxu2 }
 0x3ab   : > { %v1876_v19 = vadd.f32 %v1858_v54, %v1745_v27 }
 0x3ac   : > { %v1988_v61 = vpop.f32.mrf.mxu3  ;;  %v2212_v28 = vpop.f32.mrf.mxu1 }
 0x3ad   : > { %v2006_v45 = vadd.f32 %v1988_v61, %v1876_v19  ;;  %v2252_v42 = vadd.f32 %v2212_v28, %v5884_v11 }
 0x3ae   : > { %v2603_v46 = vpop.f32.mrf.mxu0 }
 0x3af   : > { %v5960_v7 = vadd.f32 %v2119_v55, %v2006_v45 }
 0x3b2   : > { %v2342_v4 = vpop.f32.mrf.mxu2 }
 0x3b3   : > { %v2382_v60 = vadd.f32 %v2342_v4, %v2252_v42 }
 0x3b4   : > { %v2473_v10 = vpop.f32.mrf.mxu3  ;;  %v2214_v63 = vpop.f32.mrf.mxu1 }
 0x3b5   : > { %v2513_v25 = vadd.f32 %v2473_v10, %v2382_v60  ;;  %v2253_v22 = vadd.f32 %v2214_v63, %v5888_v49 }
 0x3b6   : > { %v2605_v29 = vpop.f32.mrf.mxu0 }
 0x3b7   : > { %v2643_v37 = vadd.f32 %v2603_v46, %v2513_v25 }
 0x3b9   : > { %v2663_v18 = vadd.f32 %v5967_v38, %v2643_v37 }
 0x3ba   : > { %v2344_v53 = vpop.f32.mrf.mxu2 }
 0x3bb   : > { %v2383_v33 = vadd.f32 %v2344_v53, %v2253_v22 }
 0x3bc   : > { %v2475_v2 = vpop.f32.mrf.mxu3  ;;  %v2217_v40 = vpop.f32.mrf.mxu1 }
 0x3bd   : > { %v2514_v36 = vadd.f32 %v2475_v2, %v2383_v33  ;;  %v2254_v48 = vadd.f32 %v2217_v40, %v5892_v56 }
 0x3be   : > { %v2608_v11 = vpop.f32.mrf.mxu0 }
 0x3bf   : > { %v2644_v5 = vadd.f32 %v2605_v29, %v2514_v36 }
 0x3c1   : > { %v2664_v52 = vadd.f32 %v5967_v38, %v2644_v5 }
 0x3c2   : > { %v2347_v31 = vpop.f32.mrf.mxu2 }
 0x3c3   : > { %v3476_v49 = vpack.c.bf16 %v2664_v52, %v2663_v18  ;;  %v2384_v32 = vadd.f32 %v2347_v31, %v2254_v48 }
 0x3c4   : > { %v2478_v58 = vpop.f32.mrf.mxu3  ;;  %v2219_v12 = vpop.f32.mrf.mxu1 }
 0x3c5   : > { %3477 = vst [vmem:[%s3848_s15] sm:$0xff] %v3476_v49   ;;  %v2515_v24 = vadd.f32 %v2478_v58, %v2384_v32  ;;  %v2255_v62 = vadd.f32 %v2219_v12, %v5897_v26 }
 0x3c6   : > { %v2610_v57 = vpop.f32.mrf.mxu0 }
 0x3c7   : > { %v2645_v50 = vadd.f32 %v2608_v11, %v2515_v24 }
 0x3c9   : > { %v2665_v23 = vadd.f32 %v5967_v38, %v2645_v50 }
 0x3ca   : > { %v2349_v21 = vpop.f32.mrf.mxu2 }
 0x3cb   : > { %v2385_v30 = vadd.f32 %v2349_v21, %v2255_v62 }
 0x3cc   : > { %v2480_v47 = vpop.f32.mrf.mxu3  ;;  %v2222_v44 = vpop.f32.mrf.mxu1 }
 0x3cd   : > { %v2516_v0 = vadd.f32 %v2480_v47, %v2385_v30  ;;  %v2256_v39 = vadd.f32 %v2222_v44, %v5902_v8 }
 0x3ce   : > { %v2613_v34 = vpop.f32.mrf.mxu0 }
 0x3cf   : > { %v2646_v51 = vadd.f32 %v2610_v57, %v2516_v0 }
 0x3d1   : > { %v2666_v56 = vadd.f32 %v5967_v38, %v2646_v51 }
 0x3d2   : > { %v2352_v20 = vpop.f32.mrf.mxu2 }
 0x3d3   : > { %v3481_v14 = vpack.c.bf16 %v2666_v56, %v2665_v23  ;;  %v2386_v26 = vadd.f32 %v2352_v20, %v2256_v39 }
 0x3d4   : > { %v2483_v13 = vpop.f32.mrf.mxu3  ;;  %v2224_v41 = vpop.f32.mrf.mxu1 }
 0x3d5   : > { %3528 = vst [vmem:[%s3848_s15 + $0x8] sm:$0xff] %v3481_v14   ;;  %v2517_v27 = vadd.f32 %v2483_v13, %v2386_v26  ;;  %v2257_v54 = vadd.f32 %v2224_v41, %v5907_v6 }
 0x3d6   : > { %v2615_v55 = vpop.f32.mrf.mxu0 }
 0x3d7   : > { %v2647_v46 = vadd.f32 %v2613_v34, %v2517_v27 }
 0x3d9   : > { %v2667_v63 = vadd.f32 %v5967_v38, %v2647_v46 }
 0x3da   : > { %v2354_v19 = vpop.f32.mrf.mxu2 }
 0x3db   : > { %v2387_v61 = vadd.f32 %v2354_v19, %v2257_v54 }
 0x3dc   : > { %v2485_v28 = vpop.f32.mrf.mxu3  ;;  %v2227_v45 = vpop.f32.mrf.mxu1 }
 0x3dd   : > { %v2518_v4 = vadd.f32 %v2485_v28, %v2387_v61  ;;  %v2258_v25 = vadd.f32 %v2227_v45, %v5912_v3 }
 0x3de   : > { %v2618_v42 = vpop.f32.mrf.mxu0 }
 0x3df   : > { %v2648_v10 = vadd.f32 %v2615_v55, %v2518_v4 }
 0x3e1   : > { %v2668_v8 = vadd.f32 %v5967_v38, %v2648_v10 }
 0x3e2   : > { %v2357_v60 = vpop.f32.mrf.mxu2 }
 0x3e3   : > { %v3486_v29 = vpack.c.bf16 %v2668_v8, %v2667_v63  ;;  %v2388_v6 = vadd.f32 %v2357_v60, %v2258_v25 }
 0x3e4   : > { %v2488_v22 = vpop.f32.mrf.mxu3  ;;  %v2229_v53 = vpop.f32.mrf.mxu1 }
 0x3e5   : > { %3529 = vst [vmem:[%s3848_s15 + $0x10] sm:$0xff] %v3486_v29   ;;  %v2519_v2 = vadd.f32 %v2488_v22, %v2388_v6  ;;  %v2259_v40 = vadd.f32 %v2229_v53, %v5916_v35 }
 0x3e6   : > { %v2620_v33 = vpop.f32.mrf.mxu0 }
 0x3e7   : > { %v2649_v18 = vadd.f32 %v2618_v42, %v2519_v2 }
 0x3e9   : > { %v2669_v48 = vadd.f32 %v5967_v38, %v2649_v18 }
 0x3ea   : > { %v2359_v37 = vpop.f32.mrf.mxu2 }
 0x3eb   : > { %v2389_v36 = vadd.f32 %v2359_v37, %v2259_v40 }
 0x3ec   : > { %v2490_v11 = vpop.f32.mrf.mxu3  ;;  %v2232_v5 = vpop.f32.mrf.mxu1 }
 0x3ed   : > { %v2520_v52 = vadd.f32 %v2490_v11, %v2389_v36  ;;  %v2260_v32 = vadd.f32 %v2232_v5, %v5921_v9 }
 0x3ee   : > { %v2623_v31 = vpop.f32.mrf.mxu0 }
 0x3ef   : > { %v2650_v49 = vadd.f32 %v2620_v33, %v2520_v52 }
 0x3f1   : > { %v2670_v3 = vadd.f32 %v5967_v38, %v2650_v49 }
 0x3f2   : > { %v2362_v58 = vpop.f32.mrf.mxu2 }
 0x3f3   : > { %v3491_v12 = vpack.c.bf16 %v2670_v3, %v2669_v48  ;;  %v2390_v35 = vadd.f32 %v2362_v58, %v2260_v32 }
 0x3f4   : > { %v2493_v57 = vpop.f32.mrf.mxu3  ;;  %v2234_v24 = vpop.f32.mrf.mxu1 }
 0x3f5   : > { %3530 = vst [vmem:[%s3848_s15 + $0x18] sm:$0xff] %v3491_v12   ;;  %v2521_v21 = vadd.f32 %v2493_v57, %v2390_v35  ;;  %v2261_v30 = vadd.f32 %v2234_v24, %v5926_v1 }
 0x3f6   : > { %v2625_v62 = vpop.f32.mrf.mxu0 }
 0x3f7   : > { %v2651_v34 = vadd.f32 %v2623_v31, %v2521_v21 }
 0x3f9   : > { %v2671_v20 = vadd.f32 %v5967_v38, %v2651_v34 }
 0x3fa   : > { %v2364_v47 = vpop.f32.mrf.mxu2 }
 0x3fb   : > { %v2391_v44 = vadd.f32 %v2364_v47, %v2261_v30 }
 0x3fc   : > { %v2495_v50 = vpop.f32.mrf.mxu3  ;;  %v2237_v0 = vpop.f32.mrf.mxu1 }
 0x3fd   : > { %v2522_v51 = vadd.f32 %v2495_v50, %v2391_v44  ;;  %v2262_v13 = vadd.f32 %v2237_v0, %v5933_v43 }
 0x3fe   : > { %v2628_v23 = vpop.f32.mrf.mxu0 }
 0x3ff   : > { %v2652_v56 = vadd.f32 %v2625_v62, %v2522_v51 }
 0x401   : > { %v2672_v9 = vadd.f32 %v5967_v38, %v2652_v56 }
 0x402   : > { %v2367_v14 = vpop.f32.mrf.mxu2 }
 0x403   : > { %v3496_v39 = vpack.c.bf16 %v2672_v9, %v2671_v20  ;;  %v2392_v1 = vadd.f32 %v2367_v14, %v2262_v13 }
 0x404   : > { %v2498_v41 = vpop.f32.mrf.mxu3  ;;  %v2239_v26 = vpop.f32.mrf.mxu1 }
 0x405   : > { %3531 = vst [vmem:[%s3848_s15 + $0x20] sm:$0xff] %v3496_v39   ;;  %v2523_v27 = vadd.f32 %v2498_v41, %v2392_v1  ;;  %v2263_v54 = vadd.f32 %v2239_v26, %v5943_v59 }
 0x406   : > { %v2630_v55 = vpop.f32.mrf.mxu0 }
 0x407   : > { %v2653_v46 = vadd.f32 %v2628_v23, %v2523_v27 }
 0x409   : > { %v2673_v63 = vadd.f32 %v5967_v38, %v2653_v46 }
 0x40a   : > { %v2369_v19 = vpop.f32.mrf.mxu2 }
 0x40b   : > { %v2393_v61 = vadd.f32 %v2369_v19, %v2263_v54 }
 0x40c   : > { %v2500_v28 = vpop.f32.mrf.mxu3  ;;  %v2242_v45 = vpop.f32.mrf.mxu1 }
 0x40d   : > { %v2524_v4 = vadd.f32 %v2500_v28, %v2393_v61  ;;  %v2264_v29 = vadd.f32 %v2242_v45, %v5947_v17 }
 0x40e   : > { %v2633_v10 = vpop.f32.mrf.mxu0 }
 0x40f   : > { %v2654_v42 = vadd.f32 %v2630_v55, %v2524_v4 }
 0x411   : > { %v2674_v43 = vadd.f32 %v5967_v38, %v2654_v42 }
 0x412   : > { %v2372_v8 = vpop.f32.mrf.mxu2 }
 0x413   : > { %v3501_v60 = vpack.c.bf16 %v2674_v43, %v2673_v63  ;;  %v2394_v59 = vadd.f32 %v2372_v8, %v2264_v29 }
 0x414   : > { %v2503_v25 = vpop.f32.mrf.mxu3  ;;  %v2244_v22 = vpop.f32.mrf.mxu1 }
 0x415   : > { %3532 = vst [vmem:[%s3848_s15 + $0x28] sm:$0xff] %v3501_v60   ;;  %v2525_v53 = vadd.f32 %v2503_v25, %v2394_v59  ;;  %v2265_v6 = vadd.f32 %v2244_v22, %v5954_v16 }
 0x416   : > { %v2635_v33 = vpop.f32.mrf.mxu0 }
 0x417   : > { %v2655_v11 = vadd.f32 %v2633_v10, %v2525_v53 }
 0x419   : > { %v2675_v52 = vadd.f32 %v5967_v38, %v2655_v11 }
 0x41a   : > { %v2374_v2 = vpop.f32.mrf.mxu2 }
 0x41b   : > { %v2395_v40 = vadd.f32 %v2374_v2, %v2265_v6 }
 0x41c   : > { %v2505_v37 = vpop.f32.mrf.mxu3  ;;  %v2247_v36 = vpop.f32.mrf.mxu1 }
 0x41d   : > { %v2526_v5 = vadd.f32 %v2505_v37, %v2395_v40  ;;  %v2266_v48 = vadd.f32 %v2247_v36, %v5957_v15 }
 0x41e   : > { %v2638_v58 = vpop.f32.mrf.mxu0 }
 0x41f   : > { %v2656_v18 = vadd.f32 %v2635_v33, %v2526_v5 }
 0x421   : > { %v2676_v17 = vadd.f32 %v5967_v38, %v2656_v18 }
 0x422   : > { %v2377_v31 = vpop.f32.mrf.mxu2 }
 0x423   : > { %v3506_v49 = vpack.c.bf16 %v2676_v17, %v2675_v52  ;;  %v2396_v16 = vadd.f32 %v2377_v31, %v2266_v48 }
 0x424   : > { %v2508_v3 = vpop.f32.mrf.mxu3  ;;  %v2249_v12 = vpop.f32.mrf.mxu1 }
 0x425   : > { %3533 = vst [vmem:[%s3848_s15 + $0x30] sm:$0xff] %v3506_v49   ;;  %v2527_v32 = vadd.f32 %v2508_v3, %v2396_v16  ;;  %v2267_v57 = vadd.f32 %v2249_v12, %v5960_v7 }
 0x426   : > { %v2640_v47 = vpop.f32.mrf.mxu0 }
 0x427   : > { %v2657_v21 = vadd.f32 %v2638_v58, %v2527_v32 }
 0x429   : > { %v2677_v50 = vadd.f32 %v5967_v38, %v2657_v21 }
 0x42a   : > { %v2379_v24 = vpop.f32.mrf.mxu2 }
 0x42b   : > { %v2397_v35 = vadd.f32 %v2379_v24, %v2267_v57 }
 0x42c   : > { %v2510_v62 = vpop.f32.mrf.mxu3 }
 0x42d   : > { %v2528_v30 = vadd.f32 %v2510_v62, %v2397_v35 }
 0x42f   : > { %v2658_v44 = vadd.f32 %v2640_v47, %v2528_v30 }
 0x431   : > { %v2678_v15 = vadd.f32 %v5967_v38, %v2658_v44 }
 0x433   : > { %v3511_v0 = vpack.c.bf16 %v2678_v15, %v2677_v50 }
 0x435   : > { %3534 = vst [vmem:[%s3848_s15 + $0x38] sm:$0xff] %v3511_v0  }
 0x436 PF: > { %s16_s25 = sadd.s32 1, %s3769_s25   ;;  %s6306_s21 = smov %s3761_s23 }
 0x437   : > { %p13_p8 = scmp.ge.s32.totalorder %s16_s25, 6   ;;  %s6307_s22 = smov %s3765_s24 }
 0x438   : > { %s6308_s23 = smov %s6311_s26  ;;  %s6309_s24 = smov %s6315_s27 }
 0x439   :  { %15 = sbr.rel (!%p13_p8) target bundleno = 3 (0x3), region = 89 }

// kernel: unet_mid_block2d.6
= control target key start
LH: loop header
LB: loop body
LE: loop exit
PB: predicated region body
PF: predicated region fallthrough
CT: control target
= control target key end

     0   :  { %s3983_s24 = smov 0   ;;  %s3985_s25 = smov 0   ;;  %s6211_s0 = inlined_call_operand.vmem [shape: bf16[2,16,16,128], index: 0, kind: input, shape index: {}]   ;;  %s6212_s1 = inlined_call_operand.vmem [shape: f32[128,128], index: 1, kind: input, shape index: {}]   ;;  %s6213_s2 = inlined_call_operand.vmem [shape: f32[1,128], index: 2, kind: input, shape index: {}]   ;;  %s6214_s3 = inlined_call_operand.vmem [shape: f32[1,128], index: 3, kind: input, shape index: {}]   ;;  %s6215_s4 = inlined_call_operand.vmem [shape: bf16[3,3,128,128], index: 4, kind: input, shape index: {}]   ;;  %s6216_s5 = inlined_call_operand.vmem [shape: f32[1,128], index: 5, kind: input, shape index: {}]   ;;  %s6217_s6 = inlined_call_operand.vmem [shape: f32[2,16,16,128], index: 6, kind: input, shape index: {}]   ;;  %s6218_s7 = inlined_call_operand.vmem [shape: f32[2,16,16,128], index: 7, kind: output, shape index: {}]  }
   0x1   :  { %s3987_s26 = smov 0   ;;  %s3989_s27 = smov 0  }
   0x2   :  { %s3991_s28 = smov 0  }
   0x3 LB: > { %s26_s29 = sadd.s32 1, %s3932_s26  ;;  %s29_s30 = sadd.s32 1, %s3936_s27  ;;  %s3940_s28 = sphi %s3991_s28, %s17_s28   ;;  %s3936_s27 = sphi %s3989_s27, %s6499_s27   ;;  %s3932_s26 = sphi %s3987_s26, %s6498_s26   ;;  %s3928_s25 = sphi %s3985_s25, %s6497_s25   ;;  %s3924_s24 = sphi %s3983_s24, %s6496_s24  }
   0x4   : > { %p27_p0 = scmp.ge.s32.totalorder %s26_s29, 2  ;;  %p2942_p1 = scmp.ge.s32.totalorder %s3940_s28, 1 }
   0x5   : > { %p269_p2 = scmp.lt.s32.totalorder %s3940_s28, 5 }
   0x6   : > { %s6501_s29 = smov (%p27_p0, %s26_s29), 0  ;;  %s6503_s30 = smov (!%p27_p0, %s29_s30), %s3936_s27 }
   0x7   : > { %p270_p3 = pnand %p2942_p1, %p269_p2  ;;  %p31_p4 = scmp.ge.s32.totalorder %s6503_s30, 2 }
   0x8   : > { %p316_p5 = scmp.lt.s32.totalorder (!%p270_p3), %s3928_s25, 1  ;;  %s2945_s8 = sshll.u32 (!%p270_p3), %s3924_s24, 3 }
   0x9   : > { %s6505_s30 = smov (%p31_p4, %s6503_s30), 0  ;;  %273 = sbr.rel (%p270_p3) target bundleno = 1080 (0x438), region = 48 }
   0xa   : > { %p324_p6 = scmp.lt.s32.totalorder (!%p270_p3), %s2945_s8, 15  ;;  %p2953_p7 = scmp.ne.s32.totalorder (!%p270_p3), %s3924_s24, 0 }
   0xe   : > { %s6507_s25 = smov (!%p316_p5, %s3928_s25), 1  ;;  %s6509_s8 = smov (!%p324_p6, %s2945_s8), 15 }
   0xf   : > { %s3447_s9 = sshll.u32 %s6507_s25, 7  ;;  %s2947_s10 = sshll.u32 %s6507_s25, 5 }
  0x10   : > { %s4019_s13 = scalar_lea.vmem %s6211_s0, %s3447_s9  ;;  %s2946_s14 = sshll.u32 %s6509_s8, 1 }
  0x11   : > { %s328_s15 = sadd.s32 %s2947_s10, %s2946_s14  ;;  %347 = sbr.rel (%p2953_p7) target bundleno = 625 (0x271), region = 52 }
  0x12   : > { %s2948_s16 = sshll.u32 %s328_s15, 3 }
  0x13   : > { %s4024_s19 = scalar_lea.vmem %s6217_s6, %s2948_s16  ;;  %s4029_s22 = scalar_lea.vmem %s6218_s7, %s2948_s16 }
  0x16   : > { %v427_v0 = vld [vmem:[%s6212_s1 + $0x78] sm:$0xff]  ;;  %v426_v1 = vld [vmem:[%s6212_s1 + $0x70] sm:$0xff]  ;;  %v425_v2 = vld [vmem:[%s6212_s1 + $0x68] sm:$0xff] }
  0x17   : > { %465 = vmatpush.msra.mxu0 %v427_v0  ;;  %587 = vmatpush.msra.mxu1 %v427_v0  ;;  %v424_v3 = vld [vmem:[%s6212_s1 + $0x60] sm:$0xff]  ;;  %v423_v4 = vld [vmem:[%s6212_s1 + $0x58] sm:$0xff]  ;;  %v422_v6 = vld [vmem:[%s6212_s1 + $0x50] sm:$0xff] }
  0x18   : > { %v3533_v5 = vld [vmem:[%s4019_s13] sm:$0xff]   ;;  %v3676_v7 = vld [vmem:[%s4019_s13 + $0x8] sm:$0xff]   ;;  %v3677_v13 = vld [vmem:[%s4019_s13 + $0x10] sm:$0xff]  }
  0x19   : > { %466 = vmatpush.msra.mxu0 %v426_v1  ;;  %588 = vmatpush.msra.mxu1 %v426_v1  ;;  %v421_v8 = vld [vmem:[%s6212_s1 + $0x48] sm:$0xff]  ;;  %v4055_v9 = vunpack.c.l.bf16 %v3533_v5  ;;  %v4057_v10 = vunpack.c.h.bf16 %v3533_v5  ;;  %v420_v11 = vld [vmem:[%s6212_s1 + $0x40] sm:$0xff]  ;;  %v4062_v12 = vunpack.c.l.bf16 %v3676_v7  ;;  %v419_v14 = vld [vmem:[%s6212_s1 + $0x38] sm:$0xff]  ;;  %v4068_v15 = vunpack.c.h.bf16 %v3676_v7 }
  0x1a   : > { %v418_v17 = vld [vmem:[%s6212_s1 + $0x30] sm:$0xff]  ;;  %v4075_v18 = vunpack.c.l.bf16 %v3677_v13  ;;  %v3678_v20 = vld [vmem:[%s4019_s13 + $0x18] sm:$0xff]   ;;  %v417_v21 = vld [vmem:[%s6212_s1 + $0x28] sm:$0xff]  ;;  %v4082_v22 = vunpack.c.h.bf16 %v3677_v13 }
  0x1b   : > { %467 = vmatpush.msra.mxu0 %v425_v2  ;;  %589 = vmatpush.msra.mxu1 %v425_v2  ;;  %v428_v16 = vadd.f32 %v4057_v10, %v4055_v9  ;;  %v416_v24 = vld [vmem:[%s6212_s1 + $0x20] sm:$0xff]  ;;  %v4088_v25 = vunpack.c.l.bf16 %v3678_v20  ;;  %v415_v28 = vld [vmem:[%s6212_s1 + $0x18] sm:$0xff]  ;;  %v4095_v29 = vunpack.c.h.bf16 %v3678_v20  ;;  %v414_v31 = vld [vmem:[%s6212_s1 + $0x10] sm:$0xff] }
  0x1c   : > { %v3679_v27 = vld [vmem:[%s4019_s13 + $0x20] sm:$0xff]   ;;  %v3680_v34 = vld [vmem:[%s4019_s13 + $0x28] sm:$0xff]   ;;  %v3681_v41 = vld [vmem:[%s4019_s13 + $0x30] sm:$0xff]  }
  0x1d   : > { %468 = vmatpush.msra.mxu0 %v424_v3  ;;  %590 = vmatpush.msra.mxu1 %v424_v3  ;;  %v429_v19 = vadd.f32 %v4062_v12, %v428_v16  ;;  %v4101_v32 = vunpack.c.l.bf16 %v3679_v27  ;;  %v413_v35 = vld [vmem:[%s6212_s1 + $0x8] sm:$0xff]  ;;  %v4108_v36 = vunpack.c.h.bf16 %v3679_v27  ;;  %v412_v38 = vld [vmem:[%s6212_s1] sm:$0xff]  ;;  %v4114_v39 = vunpack.c.l.bf16 %v3680_v34  ;;  %v3682_v46 = vld [vmem:[%s4019_s13 + $0x38] sm:$0xff]  }
  0x1e   : > { %v4118_v42 = vunpack.c.h.bf16 %v3680_v34  ;;  %v4121_v44 = vunpack.c.l.bf16 %v3681_v41  ;;  %v4125_v47 = vunpack.c.h.bf16 %v3681_v41  ;;  %v4128_v49 = vunpack.c.l.bf16 %v3682_v46  ;;  %v3683_v51 = vld [vmem:[%s4019_s13 + $0x40] sm:$0xff]   ;;  %v3684_v56 = vld [vmem:[%s4019_s13 + $0x48] sm:$0xff]   ;;  %v3685_v61 = vld [vmem:[%s4019_s13 + $0x50] sm:$0xff]  }
  0x1f   : > { %469 = vmatpush.msra.mxu0 %v423_v4  ;;  %591 = vmatpush.msra.mxu1 %v423_v4  ;;  %v430_v23 = vadd.f32 %v4068_v15, %v429_v19  ;;  %v4132_v52 = vunpack.c.h.bf16 %v3682_v46  ;;  %v4135_v54 = vunpack.c.l.bf16 %v3683_v51  ;;  %v4139_v57 = vunpack.c.h.bf16 %v3683_v51  ;;  %v3686_v2 = vld [vmem:[%s4019_s13 + $0x58] sm:$0xff]   ;;  %v3687_v7 = vld [vmem:[%s4019_s13 + $0x60] sm:$0xff]   ;;  %v3688_v16 = vld [vmem:[%s4019_s13 + $0x68] sm:$0xff]  }
  0x20   : > { %v4142_v59 = vunpack.c.l.bf16 %v3684_v56  ;;  %v4146_v62 = vunpack.c.h.bf16 %v3684_v56  ;;  %v4149_v0 = vunpack.c.l.bf16 %v3685_v61  ;;  %v4153_v3 = vunpack.c.h.bf16 %v3685_v61 }
  0x21   : > { %470 = vmatpush.msra.mxu0 %v422_v6  ;;  %592 = vmatpush.msra.mxu1 %v422_v6  ;;  %v431_v26 = vadd.f32 %v4075_v18, %v430_v23  ;;  %v4156_v5 = vunpack.c.l.bf16 %v3686_v2  ;;  %v4163_v13 = vunpack.c.l.bf16 %v3687_v7  ;;  %v4170_v20 = vunpack.c.l.bf16 %v3688_v16  ;;  %v3689_v23 = vld [vmem:[%s4019_s13 + $0x70] sm:$0xff]  }
  0x22   : > { %v4177_v27 = vunpack.c.l.bf16 %v3689_v23 }
  0x23   : > { %471 = vmatpush.msra.mxu0 %v421_v8  ;;  %593 = vmatpush.msra.mxu1 %v421_v8  ;;  %v432_v30 = vadd.f32 %v4082_v22, %v431_v26  ;;  %v4160_v8 = vunpack.c.h.bf16 %v3686_v2 }
  0x25   : > { %472 = vmatpush.msra.mxu0 %v420_v11  ;;  %594 = vmatpush.msra.mxu1 %v420_v11  ;;  %v433_v33 = vadd.f32 %v4088_v25, %v432_v30  ;;  %v3690_v30 = vld [vmem:[%s4019_s13 + $0x78] sm:$0xff]  }
  0x26   : > { %v4184_v34 = vunpack.c.l.bf16 %v3690_v30 }
  0x27   : > { %473 = vmatpush.msra.mxu0 %v419_v14  ;;  %595 = vmatpush.msra.mxu1 %v419_v14  ;;  %v434_v37 = vadd.f32 %v4095_v29, %v433_v33 }
  0x29   : > { %474 = vmatpush.msra.mxu0 %v418_v17  ;;  %596 = vmatpush.msra.mxu1 %v418_v17  ;;  %v435_v40 = vadd.f32 %v4101_v32, %v434_v37  ;;  %v4167_v17 = vunpack.c.h.bf16 %v3687_v7  ;;  %v4187_v37 = vunpack.c.h.bf16 %v3690_v30 }
  0x2b   : > { %475 = vmatpush.msra.mxu0 %v417_v21  ;;  %597 = vmatpush.msra.mxu1 %v417_v21  ;;  %v436_v43 = vadd.f32 %v4108_v36, %v435_v40 }
  0x2d   : > { %476 = vmatpush.msra.mxu0 %v416_v24  ;;  %598 = vmatpush.msra.mxu1 %v416_v24  ;;  %v437_v45 = vadd.f32 %v4114_v39, %v436_v43  ;;  %v4174_v24 = vunpack.c.h.bf16 %v3688_v16 }
  0x2f   : > { %477 = vmatpush.msra.mxu0 %v415_v28  ;;  %599 = vmatpush.msra.mxu1 %v415_v28  ;;  %v438_v48 = vadd.f32 %v4118_v42, %v437_v45 }
  0x31   : > { %478 = vmatpush.msra.mxu0 %v414_v31  ;;  %600 = vmatpush.msra.mxu1 %v414_v31  ;;  %v439_v50 = vadd.f32 %v4121_v44, %v438_v48  ;;  %v4181_v31 = vunpack.c.h.bf16 %v3689_v23 }
  0x33   : > { %479 = vmatpush.msra.mxu0 %v413_v35  ;;  %601 = vmatpush.msra.mxu1 %v413_v35  ;;  %v440_v53 = vadd.f32 %v4125_v47, %v439_v50 }
  0x35   : > { %480 = vmatpush.msra.mxu0 %v412_v38  ;;  %602 = vmatpush.msra.mxu1 %v412_v38  ;;  %v441_v55 = vadd.f32 %v4128_v49, %v440_v53 }
  0x37   : > { %v442_v58 = vadd.f32 %v4132_v52, %v441_v55 }
  0x39   : > { %v443_v60 = vadd.f32 %v4135_v54, %v442_v58 }
  0x3b   : > { %v444_v63 = vadd.f32 %v4139_v57, %v443_v60 }
  0x3d   : > { %v445_v1 = vadd.f32 %v4142_v59, %v444_v63 }
  0x3f   : > { %v446_v4 = vadd.f32 %v4146_v62, %v445_v1 }
  0x41   : > { %v447_v6 = vadd.f32 %v4149_v0, %v446_v4 }
  0x43   : > { %v448_v11 = vadd.f32 %v4153_v3, %v447_v6 }
  0x45   : > { %v449_v14 = vadd.f32 %v4156_v5, %v448_v11 }
  0x47   : > { %v450_v19 = vadd.f32 %v4160_v8, %v449_v14 }
  0x49   : > { %v451_v21 = vadd.f32 %v4163_v13, %v450_v19 }
  0x4b   : > { %v452_v26 = vadd.f32 %v4167_v17, %v451_v21 }
  0x4d   : > { %v453_v28 = vadd.f32 %v4170_v20, %v452_v26 }
  0x4f   : > { %v454_v33 = vadd.f32 %v4174_v24, %v453_v28 }
  0x51   : > { %v455_v35 = vadd.f32 %v4177_v27, %v454_v33 }
  0x53   : > { %v456_v38 = vadd.f32 %v4181_v31, %v455_v35 }
  0x55   : > { %v457_v40 = vadd.f32 %v4184_v34, %v456_v38 }
  0x57   : > { %v458_v41 = vadd.f32 %v4187_v37, %v457_v40 }
  0x59   : > { %v459_v43 = vrot.slane %v458_v41, 4 }
  0x5b   : > { %v460_v45 = vadd.f32 %v459_v43, %v458_v41 }
  0x5d   : > { %v461_v46 = vrot.slane %v460_v45, 2 }
  0x5f   : > { %v462_v48 = vadd.f32 %v461_v46, %v460_v45 }
  0x61   : > { %v463_v50 = vrot.slane %v462_v48, 1 }
  0x63   : > { %v464_v51 = vadd.f32 %v463_v50, %v462_v48 }
  0x65   : > { %481 = vmatmul.f32.vlgmr.msra.gmra.mxu0 %v464_v51 }
  0xe2   : > { %v4192_v53 = vpop.f32.mrf.mxu0 }
  0xe3   : > { %v4195_v55 = vperm.slane %v4192_v53, 0 }
  0xe5   : > { %v486_v56 = vsub.f32 %v4055_v9, %v4195_v55  ;;  %v487_v58 = vsub.f32 %v4057_v10, %v4195_v55  ;;  %v488_v60 = vsub.f32 %v4062_v12, %v4195_v55  ;;  %v489_v1 = vsub.f32 %v4068_v15, %v4195_v55 }
  0xe6   : > { %v490_v2 = vsub.f32 %v4075_v18, %v4195_v55  ;;  %v491_v7 = vsub.f32 %v4082_v22, %v4195_v55  ;;  %v492_v16 = vsub.f32 %v4088_v25, %v4195_v55  ;;  %v493_v23 = vsub.f32 %v4095_v29, %v4195_v55 }
  0xe7   : > { %v518_v61 = vmul.f32 %v486_v56, %v486_v56  ;;  %v519_v63 = vmul.f32 %v487_v58, %v487_v58  ;;  %v520_v4 = vmul.f32 %v488_v60, %v488_v60  ;;  %v521_v11 = vmul.f32 %v489_v1, %v489_v1 }
  0xe8   : > { %v522_v19 = vmul.f32 %v490_v2, %v490_v2  ;;  %v523_v26 = vmul.f32 %v491_v7, %v491_v7  ;;  %v494_v30 = vsub.f32 %v4101_v32, %v4195_v55  ;;  %v524_v33 = vmul.f32 %v492_v16, %v492_v16 }
  0xe9   : > { %v550_v6 = vadd.f32 %v519_v63, %v518_v61  ;;  %v495_v38 = vsub.f32 %v4108_v36, %v4195_v55  ;;  %v525_v40 = vmul.f32 %v493_v23, %v493_v23  ;;  %v496_v43 = vsub.f32 %v4114_v39, %v4195_v55 }
  0xea   : > { %v526_v45 = vmul.f32 %v494_v30, %v494_v30  ;;  %v497_v48 = vsub.f32 %v4118_v42, %v4195_v55  ;;  %v498_v56 = vsub.f32 %v4121_v44, %v4195_v55  ;;  %v499_v61 = vsub.f32 %v4125_v47, %v4195_v55 }
  0xeb   : > { %v551_v14 = vadd.f32 %v550_v6, %v520_v4  ;;  %v527_v50 = vmul.f32 %v495_v38, %v495_v38  ;;  %v528_v58 = vmul.f32 %v496_v43, %v496_v43  ;;  %v500_v2 = vsub.f32 %v4128_v49, %v4195_v55 }
  0xec   : > { %v529_v63 = vmul.f32 %v497_v48, %v497_v48  ;;  %v530_v4 = vmul.f32 %v498_v56, %v498_v56  ;;  %v501_v7 = vsub.f32 %v4132_v52, %v4195_v55  ;;  %v502_v16 = vsub.f32 %v4135_v54, %v4195_v55 }
  0xed   : > { %v552_v21 = vadd.f32 %v551_v14, %v521_v11  ;;  %v531_v11 = vmul.f32 %v499_v61, %v499_v61  ;;  %v503_v23 = vsub.f32 %v4139_v57, %v4195_v55  ;;  %v504_v30 = vsub.f32 %v4142_v59, %v4195_v55 }
  0xee   : > { %v505_v38 = vsub.f32 %v4146_v62, %v4195_v55  ;;  %v506_v43 = vsub.f32 %v4149_v0, %v4195_v55  ;;  %v507_v48 = vsub.f32 %v4153_v3, %v4195_v55  ;;  %v508_v56 = vsub.f32 %v4156_v5, %v4195_v55 }
  0xef   : > { %v553_v28 = vadd.f32 %v552_v21, %v522_v19  ;;  %v532_v19 = vmul.f32 %v500_v2, %v500_v2  ;;  %v509_v61 = vsub.f32 %v4160_v8, %v4195_v55  ;;  %v510_v2 = vsub.f32 %v4163_v13, %v4195_v55 }
  0xf1   : > { %v554_v35 = vadd.f32 %v553_v28, %v523_v26  ;;  %v533_v26 = vmul.f32 %v501_v7, %v501_v7  ;;  %v511_v7 = vsub.f32 %v4167_v17, %v4195_v55 }
  0xf3   : > { %v555_v41 = vadd.f32 %v554_v35, %v524_v33  ;;  %v534_v33 = vmul.f32 %v502_v16, %v502_v16  ;;  %v512_v16 = vsub.f32 %v4170_v20, %v4195_v55 }
  0xf5   : > { %v556_v46 = vadd.f32 %v555_v41, %v525_v40  ;;  %v535_v40 = vmul.f32 %v503_v23, %v503_v23  ;;  %v513_v23 = vsub.f32 %v4174_v24, %v4195_v55 }
  0xf7   : > { %v557_v51 = vadd.f32 %v556_v46, %v526_v45  ;;  %v536_v45 = vmul.f32 %v504_v30, %v504_v30  ;;  %v514_v30 = vsub.f32 %v4177_v27, %v4195_v55 }
  0xf9   : > { %v558_v60 = vadd.f32 %v557_v51, %v527_v50  ;;  %v537_v50 = vmul.f32 %v505_v38, %v505_v38  ;;  %v515_v38 = vsub.f32 %v4181_v31, %v4195_v55 }
  0xfb   : > { %v559_v1 = vadd.f32 %v558_v60, %v528_v58  ;;  %v538_v58 = vmul.f32 %v506_v43, %v506_v43  ;;  %v516_v43 = vsub.f32 %v4184_v34, %v4195_v55 }
  0xfd   : > { %v560_v6 = vadd.f32 %v559_v1, %v529_v63  ;;  %v539_v63 = vmul.f32 %v507_v48, %v507_v48  ;;  %v517_v48 = vsub.f32 %v4187_v37, %v4195_v55 }
  0xff   : > { %v561_v14 = vadd.f32 %v560_v6, %v530_v4  ;;  %v540_v4 = vmul.f32 %v508_v56, %v508_v56  ;;  %v548_v56 = vmul.f32 %v516_v43, %v516_v43 }
 0x101   : > { %v562_v21 = vadd.f32 %v561_v14, %v531_v11  ;;  %v541_v11 = vmul.f32 %v509_v61, %v509_v61 }
 0x103   : > { %v563_v28 = vadd.f32 %v562_v21, %v532_v19  ;;  %v542_v19 = vmul.f32 %v510_v2, %v510_v2 }
 0x105   : > { %v564_v35 = vadd.f32 %v563_v28, %v533_v26  ;;  %v543_v26 = vmul.f32 %v511_v7, %v511_v7 }
 0x107   : > { %v565_v41 = vadd.f32 %v564_v35, %v534_v33  ;;  %v544_v33 = vmul.f32 %v512_v16, %v512_v16 }
 0x109   : > { %v566_v46 = vadd.f32 %v565_v41, %v535_v40  ;;  %v545_v40 = vmul.f32 %v513_v23, %v513_v23 }
 0x10b   : > { %v567_v51 = vadd.f32 %v566_v46, %v536_v45  ;;  %v546_v45 = vmul.f32 %v514_v30, %v514_v30 }
 0x10d   : > { %v568_v60 = vadd.f32 %v567_v51, %v537_v50  ;;  %v547_v50 = vmul.f32 %v515_v38, %v515_v38 }
 0x10f   : > { %v569_v1 = vadd.f32 %v568_v60, %v538_v58  ;;  %v549_v60 = vmul.f32 %v517_v48, %v517_v48 }
 0x111   : > { %v570_v6 = vadd.f32 %v569_v1, %v539_v63 }
 0x113   : > { %v571_v14 = vadd.f32 %v570_v6, %v540_v4 }
 0x115   : > { %v572_v21 = vadd.f32 %v571_v14, %v541_v11 }
 0x117   : > { %v573_v28 = vadd.f32 %v572_v21, %v542_v19 }
 0x119   : > { %v574_v35 = vadd.f32 %v573_v28, %v543_v26 }
 0x11b   : > { %v575_v41 = vadd.f32 %v574_v35, %v544_v33  ;;  %v617_v33 = vld [vmem:[%s6213_s2] sm:$0x1] }
 0x11d   : > { %v576_v46 = vadd.f32 %v575_v41, %v545_v40  ;;  %v619_v40 = vld [vmem:[%s6214_s3] sm:$0x1] }
 0x11f   : > { %v577_v51 = vadd.f32 %v576_v46, %v546_v45 }
 0x121   : > { %v578_v58 = vadd.f32 %v577_v51, %v547_v50 }
 0x123   : > { %v579_v61 = vadd.f32 %v578_v58, %v548_v56 }
 0x125   : > { %v580_v63 = vadd.f32 %v579_v61, %v549_v60 }
 0x127   : > { %v581_v1 = vrot.slane %v580_v63, 4 }
 0x129   : > { %v582_v2 = vadd.f32 %v581_v1, %v580_v63 }
 0x12b   : > { %v583_v4 = vrot.slane %v582_v2, 2 }
 0x12d   : > { %v584_v6 = vadd.f32 %v583_v4, %v582_v2 }
 0x12f   : > { %v585_v7 = vrot.slane %v584_v6, 1 }
 0x131   : > { %v586_v11 = vadd.f32 %v585_v7, %v584_v6 }
 0x133   : > { %603 = vmatmul.f32.vlgmr.msra.gmra.mxu1 %v586_v11 }
 0x1b0   : > { %v604_v14 = vpop.f32.mrf.mxu1 }
 0x1b1   : > { %v605_v16 = vadd.f32 1e-05, %v604_v14 }
 0x1b3   : > { %3771 = vrsqrt.f32 %v605_v16  ;;  %vm613_vm1 = vweird.f32 %v605_v16 }
 0x1b9   : > { %v3772_v19 = vpop.eup %3771 }
 0x1ba   : > { %v608_v21 = vmul.f32 %v3772_v19, %v605_v16  ;;  %vm614_vm0 = vweird.f32 %v3772_v19 }
 0x1bb   : > { %vm615_vm2 = vmor %vm613_vm1, %vm614_vm0 }
 0x1bc   : > { %v609_v55 = vmul.f32 %v3772_v19, %v608_v21 }
 0x1be   : > { %v610_v23 = vmul.f32 0.5, %v609_v55 }
 0x1c0   : > { %v611_v26 = vsub.f32 1.5, %v610_v23 }
 0x1c2   : > { %v612_v28 = vmul.f32 %v3772_v19, %v611_v26 }
 0x1c4   : > { %v616_v30 = vsel %vm615_vm2, %v3772_v19, %v612_v28 }
 0x1c5   : > { %v618_v35 = vmul.f32 %v617_v33, %v616_v30 }
 0x1c7   : > { %v620_v38 = vmul.f32 %v618_v35, %v4192_v53  ;;  %v4268_v43 = vperm.slane %v618_v35, 0 }
 0x1c9   : > { %v621_v41 = vsub.f32 %v619_v40, %v620_v38  ;;  %v623_v46 = vmul.f32 %v4055_v9, %v4268_v43  ;;  %v624_v48 = vmul.f32 %v4057_v10, %v4268_v43  ;;  %v625_v50 = vmul.f32 %v4062_v12, %v4268_v43 }
 0x1ca   : > { %v626_v51 = vmul.f32 %v4068_v15, %v4268_v43  ;;  %v627_v58 = vmul.f32 %v4075_v18, %v4268_v43  ;;  %v628_v10 = vmul.f32 %v4082_v22, %v4268_v43  ;;  %v629_v60 = vmul.f32 %v4088_v25, %v4268_v43 }
 0x1cb   : > { %v4270_v45 = vperm.slane %v621_v41, 0  ;;  %v630_v15 = vmul.f32 %v4095_v29, %v4268_v43  ;;  %v631_v63 = vmul.f32 %v4101_v32, %v4268_v43  ;;  %v632_v22 = vmul.f32 %v4108_v36, %v4268_v43 }
 0x1cc   : > { %v633_v25 = vmul.f32 %v4114_v39, %v4268_v43  ;;  %v634_v29 = vmul.f32 %v4118_v42, %v4268_v43  ;;  %v635_v32 = vmul.f32 %v4121_v44, %v4268_v43  ;;  %v636_v36 = vmul.f32 %v4125_v47, %v4268_v43 }
 0x1cd   : > { %v4279_v53 = vadd.f32 %v4270_v45, %v623_v46  ;;  %v4284_v56 = vadd.f32 %v4270_v45, %v624_v48  ;;  %v4289_v9 = vadd.f32 %v4270_v45, %v625_v50  ;;  %v4294_v12 = vadd.f32 %v4270_v45, %v626_v51 }
 0x1ce   : > { %v4301_v61 = vadd.f32 %v4270_v45, %v627_v58  ;;  %v4309_v1 = vadd.f32 %v4270_v45, %v628_v10  ;;  %v4317_v4 = vadd.f32 %v4270_v45, %v629_v60  ;;  %v4325_v7 = vadd.f32 %v4270_v45, %v630_v15 }
 0x1cf   : > { %6262 = vst [vmem:[#allocation3_spill] sm:$0xff] %v4279_v53  ;;  %v2954_v18 = vmul.f32 -1.442695, %v4279_v53  ;;  %v2955_v2 = vmul.f32 -1.442695, %v4284_v56  ;;  %v637_v39 = vmul.f32 %v4128_v49, %v4268_v43  ;;  %v4331_v42 = vadd.f32 %v4270_v45, %v631_v63 }
 0x1d0   : > { %6263 = vst [vmem:[#allocation4_spill] sm:$0xff] %v4284_v56  ;;  %v2956_v6 = vmul.f32 -1.442695, %v4289_v9  ;;  %v2957_v11 = vmul.f32 -1.442695, %v4294_v12  ;;  %v638_v44 = vmul.f32 %v4132_v52, %v4268_v43  ;;  %v4337_v16 = vadd.f32 %v4270_v45, %v632_v22 }
 0x1d1   : > { %6264 = vst [vmem:[#allocation5_spill] sm:$0xff] %v4289_v9  ;;  %3773 = vpow2.f32 %v2954_v18  ;;  %v2958_v14 = vmul.f32 -1.442695, %v4301_v61  ;;  %v2959_v47 = vmul.f32 -1.442695, %v4309_v1  ;;  %v639_v19 = vmul.f32 %v4135_v54, %v4268_v43 }
 0x1d2   : > { %6265 = vst [vmem:[#allocation6_spill] sm:$0xff] %v4294_v12  ;;  %3775 = vpow2.f32 %v2955_v2  ;;  %v4343_v49 = vadd.f32 %v4270_v45, %v633_v25  ;;  %v2960_v21 = vmul.f32 -1.442695, %v4317_v4  ;;  %v640_v55 = vmul.f32 %v4139_v57, %v4268_v43 }
 0x1d3   : > { %6266 = vst [vmem:[#allocation7_spill] sm:$0xff] %v4301_v61  ;;  %3777 = vpow2.f32 %v2956_v6  ;;  %v4349_v52 = vadd.f32 %v4270_v45, %v634_v29  ;;  %v2961_v23 = vmul.f32 -1.442695, %v4325_v7  ;;  %v641_v26 = vmul.f32 %v4142_v59, %v4268_v43 }
 0x1d4   : > { %6267 = vst [vmem:[#allocation8_spill] sm:$0xff] %v4309_v1  ;;  %3779 = vpow2.f32 %v2957_v11  ;;  %v4355_v54 = vadd.f32 %v4270_v45, %v635_v32  ;;  %v2962_v28 = vmul.f32 -1.442695, %v4331_v42  ;;  %v642_v30 = vmul.f32 %v4146_v62, %v4268_v43 }
 0x1d5   : > { %6268 = vst [vmem:[#allocation9_spill] sm:$0xff] %v4317_v4  ;;  %3781 = vpow2.f32 %v2958_v14  ;;  %v4361_v57 = vadd.f32 %v4270_v45, %v636_v36  ;;  %v2963_v33 = vmul.f32 -1.442695, %v4337_v16  ;;  %v643_v59 = vmul.f32 %v4149_v0, %v4268_v43 }
 0x1d6   : > { %6269 = vst [vmem:[#allocation10_spill] sm:$0xff] %v4325_v7  ;;  %3783 = vpow2.f32 %v2959_v47  ;;  %v4369_v38 = vadd.f32 %v4270_v45, %v637_v39  ;;  %v2964_v40 = vmul.f32 -1.442695, %v4343_v49  ;;  %v644_v62 = vmul.f32 %v4153_v3, %v4268_v43 }
 0x1d7   : > { %6270 = vst [vmem:[#allocation11_spill] sm:$0xff] %v4331_v42  ;;  %v4364_v35 = vpop.eup %3773  ;;  %3785 = vpow2.f32 %v2960_v21  ;;  %v4377_v46 = vadd.f32 %v4270_v45, %v638_v44  ;;  %v2965_v48 = vmul.f32 -1.442695, %v4349_v52  ;;  %v645_v0 = vmul.f32 %v4156_v5, %v4268_v43 }
 0x1d8   : > { %6271 = vst [vmem:[#allocation12_spill] sm:$0xff] %v4337_v16  ;;  %v4372_v41 = vpop.eup %3775  ;;  %3787 = vpow2.f32 %v2961_v23  ;;  %v4385_v51 = vadd.f32 %v4270_v45, %v639_v19  ;;  %v2966_v58 = vmul.f32 -1.442695, %v4355_v54  ;;  %v646_v3 = vmul.f32 %v4160_v8, %v4268_v43 }
 0x1d9   : > { %6272 = vst [vmem:[#allocation13_spill] sm:$0xff] %v4343_v49  ;;  %v4380_v50 = vpop.eup %3777  ;;  %3789 = vpow2.f32 %v2962_v28  ;;  %v4393_v60 = vadd.f32 %v4270_v45, %v640_v55  ;;  %v2967_v15 = vmul.f32 -1.442695, %v4361_v57  ;;  %v647_v5 = vmul.f32 %v4163_v13, %v4268_v43 }
 0x1da   : > { %6273 = vst [vmem:[#allocation14_spill] sm:$0xff] %v4349_v52  ;;  %v4388_v10 = vpop.eup %3779  ;;  %3791 = vpow2.f32 %v2963_v33  ;;  %v4401_v63 = vadd.f32 %v4270_v45, %v641_v26  ;;  %v2968_v22 = vmul.f32 -1.442695, %v4369_v38  ;;  %v648_v8 = vmul.f32 %v4167_v17, %v4268_v43 }
 0x1db   : > { %6274 = vst [vmem:[#allocation15_spill] sm:$0xff] %v4355_v54  ;;  %v4396_v18 = vpop.eup %3781  ;;  %3793 = vpow2.f32 %v2964_v40  ;;  %v4409_v25 = vadd.f32 %v4270_v45, %v642_v30  ;;  %v2969_v29 = vmul.f32 -1.442695, %v4377_v46  ;;  %v649_v13 = vmul.f32 %v4170_v20, %v4268_v43 }
 0x1dc   : > { %6275 = vst [vmem:[#allocation16_spill] sm:$0xff] %v4361_v57  ;;  %v4404_v2 = vpop.eup %3783  ;;  %3795 = vpow2.f32 %v2965_v48  ;;  %v4417_v32 = vadd.f32 %v4270_v45, %v643_v59  ;;  %v2970_v36 = vmul.f32 -1.442695, %v4385_v51  ;;  %v650_v17 = vmul.f32 %v4174_v24, %v4268_v43 }
 0x1dd   : > { %6276 = vst [vmem:[#allocation17_spill] sm:$0xff] %v4369_v38  ;;  %v4412_v6 = vpop.eup %3785  ;;  %3797 = vpow2.f32 %v2966_v58  ;;  %v4425_v39 = vadd.f32 %v4270_v45, %v644_v62  ;;  %v2971_v14 = vmul.f32 -1.442695, %v4393_v60  ;;  %v651_v20 = vmul.f32 %v4177_v27, %v4268_v43 }
 0x1de   : > { %6277 = vst [vmem:[#allocation18_spill] sm:$0xff] %v4377_v46  ;;  %v4420_v11 = vpop.eup %3787  ;;  %3799 = vpow2.f32 %v2967_v15  ;;  %v4433_v47 = vadd.f32 %v4270_v45, %v645_v0  ;;  %v2972_v19 = vmul.f32 -1.442695, %v4401_v63  ;;  %v652_v24 = vmul.f32 %v4181_v31, %v4268_v43 }
 0x1df   : > { %6278 = vst [vmem:[#allocation19_spill] sm:$0xff] %v4385_v51  ;;  %v4428_v44 = vpop.eup %3789  ;;  %3801 = vpow2.f32 %v2968_v22  ;;  %v4441_v55 = vadd.f32 %v4270_v45, %v646_v3  ;;  %v2973_v23 = vmul.f32 -1.442695, %v4409_v25  ;;  %v653_v27 = vmul.f32 %v4184_v34, %v4268_v43 }
 0x1e0   : > { %6279 = vst [vmem:[#allocation20_spill] sm:$0xff] %v4393_v60  ;;  %v4436_v21 = vpop.eup %3791  ;;  %3803 = vpow2.f32 %v2969_v29  ;;  %v4449_v28 = vadd.f32 %v4270_v45, %v647_v5  ;;  %v2974_v30 = vmul.f32 -1.442695, %v4417_v32  ;;  %v654_v31 = vmul.f32 %v4187_v37, %v4268_v43 }
 0x1e1   : > { %6280 = vst [vmem:[#allocation21_spill] sm:$0xff] %v4401_v63  ;;  %v4444_v26 = vpop.eup %3793  ;;  %3805 = vpow2.f32 %v2970_v36  ;;  %v4457_v59 = vadd.f32 %v4270_v45, %v648_v8  ;;  %v2975_v40 = vmul.f32 -1.442695, %v4425_v39  ;;  %v4463_v34 = vadd.f32 %v4270_v45, %v649_v13 }
 0x1e2   : > { %6281 = vst [vmem:[#allocation22_spill] sm:$0xff] %v4409_v25  ;;  %v4452_v33 = vpop.eup %3795  ;;  %3807 = vpow2.f32 %v2971_v14  ;;  %v4466_v48 = vadd.f32 %v4270_v45, %v650_v17  ;;  %v2976_v0 = vmul.f32 -1.442695, %v4433_v47  ;;  %v4472_v37 = vadd.f32 %v4270_v45, %v651_v20 }
 0x1e3   : > { %6282 = vst [vmem:[#allocation23_spill] sm:$0xff] %v4417_v32  ;;  %v4460_v62 = vpop.eup %3797  ;;  %3809 = vpow2.f32 %v2972_v19  ;;  %v4475_v43 = vadd.f32 %v4270_v45, %v652_v24  ;;  %v2977_v3 = vmul.f32 -1.442695, %v4441_v55  ;;  %v4481_v5 = vadd.f32 %v4270_v45, %v653_v27 }
 0x1e4   : > { %6283 = vst [vmem:[#allocation24_spill] sm:$0xff] %v4425_v39  ;;  %v4469_v58 = vpop.eup %3799  ;;  %3811 = vpow2.f32 %v2973_v23  ;;  %v2978_v22 = vmul.f32 -1.442695, %v4449_v28  ;;  %v4485_v8 = vadd.f32 1.0, %v4364_v35  ;;  %v4490_v13 = vadd.f32 %v4270_v45, %v654_v31 }
 0x1e5   : > { %6284 = vst [vmem:[#allocation25_spill] sm:$0xff] %v4433_v47  ;;  %v4478_v15 = vpop.eup %3801  ;;  %3813 = vpow2.f32 %v2974_v30  ;;  %v2979_v36 = vmul.f32 -1.442695, %v4457_v59  ;;  %v4494_v17 = vadd.f32 1.0, %v4372_v41  ;;  %v2980_v20 = vmul.f32 -1.442695, %v4463_v34 }
 0x1e6   : > { %6285 = vst [vmem:[#allocation26_spill] sm:$0xff] %v4441_v55  ;;  %v4487_v29 = vpop.eup %3803  ;;  %3815 = vpow2.f32 %v2975_v40  ;;  %v2981_v35 = vmul.f32 -1.442695, %v4466_v48  ;;  %v2982_v24 = vmul.f32 -1.442695, %v4472_v37  ;;  %v4502_v45 = vadd.f32 1.0, %v4380_v50 }
 0x1e7   : > { %6286 = vst [vmem:[#allocation27_spill] sm:$0xff] %v4449_v28  ;;  %v4496_v14 = vpop.eup %3805  ;;  %3817 = vpow2.f32 %v2976_v0  ;;  %v2983_v27 = vmul.f32 -1.442695, %v4475_v43  ;;  %v2984_v41 = vmul.f32 -1.442695, %v4481_v5  ;;  %v829_v30 = vand.u32 2147483648, %v4485_v8 }
 0x1e8   : > { %6287 = vst [vmem:[#allocation28_spill] sm:$0xff] %v4457_v59  ;;  %v3808_v19 = vpop.eup %3807  ;;  %3819 = vpow2.f32 %v2977_v3  ;;  %v2985_v40 = vmul.f32 -1.442695, %v4490_v13  ;;  %v4509_v0 = vadd.f32 1.0, %v4388_v10  ;;  %v844_v3 = vand.u32 2147483648, %v4494_v17 }
 0x1e9   : > { %6288 = vst [vmem:[#allocation29_spill] sm:$0xff] %v4463_v34  ;;  %v3810_v23 = vpop.eup %3809  ;;  %3821 = vpow2.f32 %v2978_v22  ;;  %v4513_v50 = vadd.f32 1.0, %v4396_v18  ;;  %v4516_v22 = vadd.f32 1.0, %v4404_v2  ;;  %v4528_v18 = vadd.f32 1.0, %v4428_v44 }
 0x1ea   : > { %6289 = vst [vmem:[#allocation30_spill] sm:$0xff] %v4466_v48  ;;  %v3812_v31 = vpop.eup %3811  ;;  %3823 = vpow2.f32 %v2979_v36  ;;  %v4520_v36 = vadd.f32 1.0, %v4412_v6  ;;  %v4530_v2 = vor.u32 1.1754944e-38, %v829_v30  ;;  %v874_v10 = vand.u32 2147483648, %v4509_v0 }
 0x1eb   : > { %6290 = vst [vmem:[#allocation31_spill] sm:$0xff] %v4472_v37  ;;  %v3814_v37 = vpop.eup %3813  ;;  %3825 = vpow2.f32 %v2980_v20  ;;  %v4525_v20 = vadd.f32 1.0, %v4420_v11  ;;  %v4541_v11 = vadd.f32 1.0, %v4444_v26  ;;  %v4546_v59 = vadd.f32 1.0, %v4452_v33 }
 0x1ec   : > { %6291 = vst [vmem:[#allocation32_spill] sm:$0xff] %v4475_v43  ;;  %v3816_v43 = vpop.eup %3815  ;;  %3827 = vpow2.f32 %v2981_v35  ;;  %v4533_v35 = vor.u32 1.1754944e-38, %v844_v3  ;;  %v889_v6 = vand.u32 2147483648, %v4513_v50  ;;  %v4556_v26 = vadd.f32 1.0, %v4469_v58 }
 0x1ed   : > { %6292 = vst [vmem:[#allocation33_spill] sm:$0xff] %v4481_v5  ;;  %v3818_v48 = vpop.eup %3817  ;;  %3829 = vpow2.f32 %v2982_v24  ;;  %v4538_v24 = vadd.f32 1.0, %v4436_v21  ;;  %v4553_v21 = vadd.f32 1.0, %v4460_v62  ;;  %v904_v44 = vand.u32 2147483648, %v4516_v22 }
 0x1ee   : > { %6293 = vst [vmem:[#allocation34_spill] sm:$0xff] %v4490_v13  ;;  %v859_v13 = vand.u32 2147483648, %v4502_v45  ;;  %v3820_v5 = vpop.eup %3819  ;;  %3831 = vrcp.f32 %v4485_v8  ;;  %v4560_v33 = vadd.f32 1.0, %v4478_v15  ;;  %v4567_v62 = vadd.f32 1.0, %v4487_v29 }
 0x1ef   : > { %v3822_v34 = vpop.eup %3821  ;;  %3833 = vrcp.f32 %v4494_v17  ;;  %v4574_v15 = vadd.f32 1.0, %v4496_v14  ;;  %v4576_v25 = vadd.f32 1.0, %v3808_v19  ;;  %v4586_v29 = vor.u32 1.1754944e-38, %v904_v44 }
 0x1f0   : > { %v3824_v30 = vpop.eup %3823  ;;  %3835 = vrcp.f32 %v4502_v45  ;;  %v4549_v3 = vor.u32 1.1754944e-38, %v859_v13  ;;  %v4563_v13 = vor.u32 1.1754944e-38, %v874_v10  ;;  %v4579_v10 = vor.u32 1.1754944e-38, %v889_v6 }
 0x1f1   : > { %v3826_v28 = vpop.eup %3825  ;;  %3837 = vpow2.f32 %v2983_v27  ;;  %v919_v27 = vand.u32 2147483648, %v4520_v36  ;;  %v934_v58 = vand.u32 2147483648, %v4525_v20  ;;  %v4591_v14 = vadd.f32 1.0, %v3812_v31 }
 0x1f2   : > { %v3828_v55 = vpop.eup %3827  ;;  %3839 = vrcp.f32 %v4509_v0  ;;  %v4593_v19 = vadd.f32 1.0, %v3814_v37  ;;  %v4596_v51 = vadd.f32 1.0, %v3816_v43  ;;  %v4604_v38 = vadd.f32 1.0, %v3818_v48 }
 0x1f3   : > { %v3830_v39 = vpop.eup %3829  ;;  %3841 = vpow2.f32 %v2984_v41  ;;  %v4583_v41 = vadd.f32 1.0, %v3810_v23  ;;  %v4599_v23 = vor.u32 1.1754944e-38, %v919_v27  ;;  %v949_v37 = vand.u32 2147483648, %v4528_v18 }
 0x1f4   : > { %v4571_v32 = vpop.eup %3831  ;;  %3843 = vrcp.f32 %v4513_v50  ;;  %6294 = vst [vmem:[#allocation35_spill] sm:$0xff] %v4596_v51  ;;  %v4610_v43 = vadd.f32 1.0, %v3820_v5  ;;  %v4616_v6 = vor.u32 1.1754944e-38, %v934_v58  ;;  %v4620_v57 = vadd.f32 1.0, %v3822_v34 }
 0x1f5   : > { %v4581_v47 = vpop.eup %3833  ;;  %3845 = vrcp.f32 %v4516_v22  ;;  %6295 = vst [vmem:[#allocation36_spill] sm:$0xff] %v4604_v38  ;;  %v819_v31 = vmul.f32 %v4571_v32, %v4485_v8  ;;  %v964_v52 = vand.u32 2147483648, %v4538_v24  ;;  %v4627_v49 = vadd.f32 1.0, %v3824_v30 }
 0x1f6   : > { %v4589_v63 = vpop.eup %3835  ;;  %3847 = vpow2.f32 %v2985_v40  ;;  %6296 = vst [vmem:[#allocation37_spill] sm:$0xff] %v4610_v43  ;;  %v834_v27 = vmul.f32 %v4581_v47, %v4494_v17  ;;  %v4629_v16 = vadd.f32 1.0, %v3826_v28  ;;  %v4634_v34 = vadd.f32 1.0, %v3828_v55 }
 0x1f7   : > { %v3838_v60 = vpop.eup %3837  ;;  %3849 = vrcp.f32 %v4520_v36  ;;  %v849_v44 = vmul.f32 %v4589_v63, %v4502_v45  ;;  %6297 = vst [vmem:[#allocation38_spill] sm:$0xff] %v4620_v57  ;;  %v820_v4 = vsub.f32 1.0, %v819_v31  ;;  %v4636_v1 = vor.u32 1.1754944e-38, %v949_v37 }
 0x1f8   : > { %v4602_v46 = vpop.eup %3839  ;;  %3851 = vrcp.f32 %v4525_v20  ;;  %6298 = vst [vmem:[#allocation39_spill] sm:$0xff] %v4627_v49  ;;  %v4641_v61 = vadd.f32 1.0, %v3830_v39  ;;  %vm823_vm3 = vweird.f32 %v4485_v8  ;;  %v835_v28 = vsub.f32 1.0, %v834_v27 }
 0x1f9   : > { %v3842_v40 = vpop.eup %3841  ;;  %3853 = vrcp.f32 %v4528_v18  ;;  %6299 = vst [vmem:[#allocation40_spill] sm:$0xff] %v4629_v16  ;;  %v864_v58 = vmul.f32 %v4602_v46, %v4509_v0  ;;  %v850_v30 = vsub.f32 1.0, %v849_v44  ;;  %v979_v12 = vand.u32 2147483648, %v4541_v11 }
 0x1fa   : > { %v4618_v48 = vpop.eup %3843  ;;  %6300 = vst [vmem:[#allocation41_spill] sm:$0xff] %v4634_v34  ;;  %3855 = vrcp.f32 %v4538_v24  ;;  %vm838_vm4 = vweird.f32 %v4494_v17  ;;  %v4652_v37 = vor.u32 1.1754944e-38, %v964_v52  ;;  %v4655_v39 = vadd.f32 1.0, %v3838_v60 }
 0x1fb   : > { %v4625_v5 = vpop.eup %3845  ;;  %6301 = vst [vmem:[#allocation42_spill] sm:$0xff] %v4641_v61  ;;  %v879_v55 = vmul.f32 %v4618_v48, %v4513_v50  ;;  %3857 = vrcp.f32 %v4541_v11  ;;  %v4657_v27 = vadd.f32 1.0, %v3842_v40  ;;  %vm853_vm5 = vweird.f32 %v4502_v45 }
 0x1fc   : > { %v3848_v7 = vpop.eup %3847  ;;  %v894_v31 = vmul.f32 %v4625_v5, %v4516_v22  ;;  %6302 = vst [vmem:[#allocation43_spill] sm:$0xff] %v4655_v39  ;;  %v865_v44 = vsub.f32 1.0, %v864_v58  ;;  %v821_v61 = vmul.f32 %v4571_v32, %v820_v4  ;;  %v836_v60 = vmul.f32 %v4581_v47, %v835_v28 }
 0x1fd   : > { %v4639_v54 = vpop.eup %3849  ;;  %6303 = vst [vmem:[#allocation44_spill] sm:$0xff] %v4657_v27  ;;  %v4663_v53 = vadd.f32 1.0, %v3848_v7  ;;  %v851_v40 = vmul.f32 %v4589_v63, %v850_v30  ;;  %vm868_vm6 = vweird.f32 %v4509_v0  ;;  %v4674_v42 = vor.u32 1.1754944e-38, %v979_v12 }
 0x1fe   : > { %v4645_v9 = vpop.eup %3851  ;;  %v909_v52 = vmul.f32 %v4639_v54, %v4520_v36  ;;  %vm824_vm7 = vweird.f32 %v4571_v32  ;;  %v6305_v4 = vand.u32 2147483647, %v4485_v8  ;;  %v880_v28 = vsub.f32 1.0, %v879_v55 }
 0x1ff   : > { %v4661_v56 = vpop.eup %3853  ;;  %6304 = vst [vmem:[#allocation45_spill] sm:$0xff] %v4663_v53  ;;  %v924_v58 = vmul.f32 %v4645_v9, %v4525_v20  ;;  %v895_v34 = vsub.f32 1.0, %v894_v31  ;;  %v994_v30 = vand.u32 2147483648, %v4546_v59  ;;  %vm839_vm9 = vweird.f32 %v4581_v47  ;;  %vm4724_vm0 = vmor %vm823_vm3, %vm824_vm7 }
 0x200   : > { %v4676_v7 = vpop.eup %3855  ;;  %vm4681_vm8 = vcmp.eq.f32.partialorder %v6305_v4, 8.507059e+37  ;;  %v6308_v27 = vand.u32 2147483647, %v4494_v17  ;;  %v6311_v39 = vand.u32 2147483647, %v4502_v45  ;;  %v866_v4 = vmul.f32 %v4602_v46, %v865_v44  ;;  %vm4738_vm2 = vmor %vm838_vm4, %vm839_vm9 }
 0x201   : > { %vm883_vm12 = vweird.f32 %v4513_v50  ;;  %v939_v55 = vmul.f32 %v4661_v56, %v4528_v18  ;;  %3859 = vrcp.f32 %v4546_v59  ;;  %v4704_v31 = vpop.eup %3857  ;;  %vm854_vm13 = vweird.f32 %v4589_v63 }
 0x202   : > { %vm4689_vm10 = vcmp.eq.f32.partialorder %v6308_v27, 8.507059e+37  ;;  %vm4695_vm11 = vcmp.eq.f32.partialorder %v6311_v39, 8.507059e+37  ;;  %v822_v27 = vadd.f32 %v4571_v32, %v821_v61  ;;  %vm898_vm14 = vweird.f32 %v4516_v22  ;;  %vm4754_vm4 = vmor %vm853_vm5, %vm854_vm13 }
 0x203   : > { %v910_v39 = vsub.f32 1.0, %v909_v52  ;;  %3861 = vrcp.f32 %v4553_v21  ;;  %v837_v44 = vadd.f32 %v4581_v47, %v836_v60  ;;  %v852_v49 = vadd.f32 %v4589_v63, %v851_v40 }
 0x204   : > { %v6314_v57 = vand.u32 2147483647, %v4509_v0  ;;  %v925_v38 = vsub.f32 1.0, %v924_v58  ;;  %v954_v61 = vmul.f32 %v4676_v7, %v4538_v24  ;;  %v881_v60 = vmul.f32 %v4618_v48, %v880_v28 }
 0x205   : > { %v896_v40 = vmul.f32 %v4625_v5, %v895_v34  ;;  %vm913_vm1 = vweird.f32 %v4520_v36  ;;  %3863 = vrcp.f32 %v4556_v26  ;;  %v867_v58 = vadd.f32 %v4602_v46, %v866_v4 }
 0x206   : > { %vm4714_vm15 = vcmp.eq.f32.partialorder %v6314_v57, 8.507059e+37  ;;  %v4731_v57 = vor.u32 1.1754944e-38, %v994_v30  ;;  %vm869_vm3 = vweird.f32 %v4602_v46  ;;  %v940_v34 = vsub.f32 1.0, %v939_v55 }
 0x207   : > { %v969_v28 = vmul.f32 %v4704_v31, %v4541_v11  ;;  %v826_v30 = vsel %vm4724_vm0, %v4571_v32, %v822_v27  ;;  %vm884_vm9 = vweird.f32 %v4618_v48  ;;  %vm899_vm7 = vweird.f32 %v4625_v5  ;;  %v4761_v55 = vpop.eup %3859 }
 0x208   : > { %6319 = vst [vmem:[#allocation46_spill] sm:$0xff] %v4731_v57  ;;  %v911_v4 = vmul.f32 %v4639_v54, %v910_v39  ;;  %v841_v32 = vsel %vm4738_vm2, %v4581_v47, %v837_v44  ;;  %v856_v45 = vsel %vm4754_vm4, %v4589_v63, %v852_v49  ;;  %v6324_v27 = vand.u32 2147483647, %v4513_v50  ;;  %vm4789_vm2 = vmor %vm868_vm6, %vm869_vm3 }
 0x209   : > { %v6327_v51 = vand.u32 2147483647, %v4516_v22  ;;  %v926_v57 = vmul.f32 %v4645_v9, %v925_v38  ;;  %vm943_vm0 = vweird.f32 %v4528_v18  ;;  %v955_v47 = vsub.f32 1.0, %v954_v61  ;;  %v4783_v44 = vpop.eup %3861 }
 0x20a   : > { %vm4771_vm5 = vcmp.eq.f32.partialorder %v6324_v27, 8.507059e+37  ;;  %v897_v63 = vadd.f32 %v4625_v5, %v896_v40  ;;  %vm914_vm4 = vweird.f32 %v4639_v54  ;;  %3865 = vrcp.f32 %v4560_v33 }
 0x20b   : > { %vm4777_vm13 = vcmp.eq.f32.partialorder %v6327_v51, 8.507059e+37  ;;  %v882_v51 = vadd.f32 %v4618_v48, %v881_v60  ;;  %v4800_v38 = vsel %vm4681_vm8, %v4530_v2, %v826_v30  ;;  %v871_v0 = vsel %vm4789_vm2, %v4602_v46, %v867_v58  ;;  %v4819_v30 = vpop.eup %3863  ;;  %vm4835_vm2 = vmor %vm883_vm12, %vm884_vm9 }
 0x20c   : > { %v6332_v61 = vand.u32 2147483647, %v4520_v36  ;;  %v6335_v60 = vand.u32 2147483647, %v4525_v20  ;;  %v941_v53 = vmul.f32 %v4661_v56, %v940_v34  ;;  %v970_v2 = vsub.f32 1.0, %v969_v28 }
 0x20d   : > { %v4824_v46 = vsel %vm4689_vm10, %v4533_v35, %v841_v32  ;;  %v4829_v58 = vsel %vm4695_vm11, %v4549_v3, %v856_v45  ;;  %v912_v28 = vadd.f32 %v4639_v54, %v911_v4  ;;  %vm929_vm8 = vweird.f32 %v4645_v9  ;;  %vm4845_vm10 = vmor %vm898_vm14, %vm899_vm7 }
 0x20e   : > { %vm4807_vm6 = vcmp.eq.f32.partialorder %v6332_v61, 8.507059e+37  ;;  %vm4813_vm3 = vcmp.eq.f32.partialorder %v6335_v60, 8.507059e+37  ;;  %v927_v35 = vadd.f32 %v4645_v9, %v926_v57  ;;  %v6342_v50 = vand.u32 2147483647, %v4528_v18  ;;  %vm4878_vm14 = vmor %vm913_vm1, %vm914_vm4 }
 0x20f   : > { %v956_v12 = vmul.f32 %v4676_v7, %v955_v47  ;;  %vm973_vm12 = vweird.f32 %v4541_v11  ;;  %v984_v17 = vmul.f32 %v4761_v55, %v4546_v59  ;;  %v999_v22 = vmul.f32 %v4783_v44, %v4553_v21 }
 0x210   : > { %vm4852_vm11 = vcmp.eq.f32.partialorder %v6342_v50, 8.507059e+37  ;;  %v4865_v57 = vsel %vm4714_vm15, %v4563_v13, %v871_v0  ;;  %v886_v4 = vsel %vm4835_vm2, %v4618_v48, %v882_v51  ;;  %v901_v32 = vsel %vm4845_vm10, %v4625_v5, %v897_v63  ;;  %v4893_v36 = vpop.eup %3865 }
 0x211   : > { %3867 = vrcp.f32 %v4567_v62  ;;  %v942_v13 = vadd.f32 %v4661_v56, %v941_v53  ;;  %vm944_vm15 = vweird.f32 %v4661_v56  ;;  %v6347_v43 = vand.u32 2147483647, %v4538_v24 }
 0x212   : > { %v971_v5 = vmul.f32 %v4704_v31, %v970_v2  ;;  %v1014_v27 = vmul.f32 %v4819_v30, %v4556_v26  ;;  %v916_v47 = vsel %vm4878_vm14, %v4639_v54, %v912_v28  ;;  %vm6350_vm1 = vweird.f32 %v4525_v20 }
 0x213   : > { %vm4886_vm7 = vcmp.eq.f32.partialorder %v6347_v43, 8.507059e+37  ;;  %vm4902_vm9 = vmor %vm6350_vm1, %vm929_vm8  ;;  %vm959_vm4 = vweird.f32 %v4676_v7  ;;  %v1009_v51 = vand.u32 2147483648, %v4553_v21  ;;  %3869 = vrcp.f32 %v4574_v15 }
 0x214   : > { %v931_v63 = vsel %vm4902_vm9, %v4645_v9, %v927_v35  ;;  %v957_v54 = vadd.f32 %v4676_v7, %v956_v12  ;;  %v6353_v0 = vand.u32 2147483647, %v4541_v11  ;;  %v985_v61 = vsub.f32 1.0, %v984_v17  ;;  %vm4933_vm8 = vmor %vm943_vm0, %vm944_vm15 }
 0x215   : > { %v1000_v60 = vsub.f32 1.0, %v999_v22  ;;  %v4922_v53 = vsel %vm4771_vm5, %v4579_v10, %v886_v4  ;;  %v4927_v2 = vsel %vm4777_vm13, %v4586_v29, %v901_v32  ;;  %vm974_vm10 = vweird.f32 %v4704_v31 }
 0x216   : > { %vm4915_vm2 = vcmp.eq.f32.partialorder %v6353_v0, 8.507059e+37  ;;  %vm988_vm14 = vweird.f32 %v4546_v59  ;;  %v1007_v10 = vand.u32 2147483647, %v4553_v21  ;;  %v946_v52 = vsel %vm4933_vm8, %v4661_v56, %v942_v13 }
 0x217   : > { %v972_v29 = vadd.f32 %v4704_v31, %v971_v5  ;;  %v1015_v39 = vsub.f32 1.0, %v1014_v27  ;;  %v1029_v18 = vmul.f32 %v4893_v36, %v4560_v33  ;;  %v4946_v34 = vpop.eup %3867  ;;  %v4951_v28 = vsel %vm4807_vm6, %v4599_v23, %v916_v47 }
 0x218   : > { %v4956_v16 = vsel %vm4813_vm3, %v4616_v6, %v931_v63  ;;  %vm6358_vm5 = vweird.f32 %v4538_v24  ;;  %vm1003_vm0 = vweird.f32 %v4553_v21  ;;  %3871 = vrcp.f32 %v4576_v25  ;;  %vm4985_vm3 = vmor %vm973_vm12, %vm974_vm10 }
 0x219   : > { %vm4962_vm13 = vmor %vm6358_vm5, %vm959_vm4  ;;  %v986_v8 = vmul.f32 %v4761_v55, %v985_v61  ;;  %v1001_v6 = vmul.f32 %v4783_v44, %v1000_v60  ;;  %v1010_v40 = vor.u32 1.1754944e-38, %v1009_v51  ;;  %vm1018_vm6 = vweird.f32 %v4556_v26  ;;  %v4974_v24 = vpop.eup %3869 }
 0x21a   : > { %v961_v23 = vsel %vm4962_vm13, %v4676_v7, %v957_v54  ;;  %v4979_v35 = vsel %vm4852_vm11, %v4636_v1, %v946_v52  ;;  %v1022_v50 = vand.u32 2147483647, %v4556_v26  ;;  %v1024_v12 = vand.u32 2147483648, %v4556_v26 }
 0x21b   : > { %3873 = vrcp.f32 %v4583_v41  ;;  %v976_v3 = vsel %vm4985_vm3, %v4704_v31, %v972_v29  ;;  %v6363_v1 = vand.u32 2147483647, %v4546_v59  ;;  %vm5001_vm12 = vcmp.eq.f32.partialorder %v1007_v10, 8.507059e+37 }
 0x21c   : > { %v1016_v22 = vmul.f32 %v4819_v30, %v1015_v39  ;;  %v1030_v4 = vsub.f32 1.0, %v1029_v18  ;;  %v1044_v32 = vmul.f32 %v4946_v34, %v4567_v62  ;;  %v5011_v31 = vsel %vm4886_vm7, %v4652_v37, %v961_v23 }
 0x21d   : > { %vm4997_vm11 = vcmp.eq.f32.partialorder %v6363_v1, 8.507059e+37  ;;  %vm989_vm15 = vweird.f32 %v4761_v55  ;;  %vm1004_vm1 = vweird.f32 %v4783_v44  ;;  %v1037_v45 = vand.u32 2147483647, %v4560_v33 }
 0x21e   : > { %v987_v13 = vadd.f32 %v4761_v55, %v986_v8  ;;  %v1002_v43 = vadd.f32 %v4783_v44, %v1001_v6  ;;  %v1059_v5 = vmul.f32 %v4974_v24, %v4574_v15  ;;  %3875 = vrcp.f32 %v4591_v14  ;;  %v5021_v27 = vpop.eup %3871  ;;  %vm5035_vm9 = vmor %vm988_vm14, %vm989_vm15  ;;  %v6378_v6 = vld [vmem:[#allocation46_spill] sm:$0xff] }
 0x21f   : > { %v5026_v37 = vsel %vm4915_vm2, %v4674_v42, %v976_v3  ;;  %vm5028_vm7 = vcmp.eq.f32.partialorder %v1022_v50, 8.507059e+37  ;;  %v1025_v47 = vor.u32 1.1754944e-38, %v1024_v12  ;;  %v1039_v49 = vand.u32 2147483648, %v4560_v33  ;;  %vm5048_vm2 = vmor %vm1003_vm0, %vm1004_vm1 }
 0x220   : > { %v1017_v63 = vadd.f32 %v4819_v30, %v1016_v22  ;;  %vm1019_vm4 = vweird.f32 %v4819_v30  ;;  %v1031_v42 = vmul.f32 %v4893_v36, %v1030_v4  ;;  %v1045_v54 = vsub.f32 1.0, %v1044_v32  ;;  %v6381_v22 = vld [vmem:[#allocation35_spill] sm:$0xff] }
 0x221   : > { %v5042_v0 = vpop.eup %3873  ;;  %vm1033_vm8 = vweird.f32 %v4560_v33  ;;  %v1052_v59 = vand.u32 2147483647, %v4567_v62  ;;  %v1054_v61 = vand.u32 2147483648, %v4567_v62  ;;  %3877 = vrcp.f32 %v4593_v19  ;;  %vm5073_vm5 = vmor %vm1018_vm6, %vm1019_vm4 }
 0x222   : > { %v991_v60 = vsel %vm5035_vm9, %v4761_v55, %v987_v13  ;;  %v1006_v21 = vsel %vm5048_vm2, %v4783_v44, %v1002_v43  ;;  %vm5062_vm10 = vcmp.eq.f32.partialorder %v1037_v45, 8.507059e+37  ;;  %vm1048_vm14 = vweird.f32 %v4567_v62 }
 0x223   : > { %v1060_v10 = vsub.f32 1.0, %v1059_v5  ;;  %v1074_v52 = vmul.f32 %v5021_v27, %v4576_v25  ;;  %vm1034_vm13 = vweird.f32 %v4893_v36  ;;  %v1040_v44 = vor.u32 1.1754944e-38, %v1039_v49  ;;  %v6386_v49 = vld [vmem:[#allocation36_spill] sm:$0xff] }
 0x224   : > { %v1067_v29 = vand.u32 2147483647, %v4574_v15  ;;  %v1069_v39 = vand.u32 2147483648, %v4574_v15  ;;  %v5080_v18 = vpop.eup %3875  ;;  %v1021_v56 = vsel %vm5073_vm5, %v4819_v30, %v1017_v63  ;;  %v1032_v23 = vadd.f32 %v4893_v36, %v1031_v42 }
 0x225   : > { %v1046_v26 = vmul.f32 %v4946_v34, %v1045_v54  ;;  %v1089_v8 = vmul.f32 %v5042_v0, %v4583_v41  ;;  %v5092_v7 = vsel %vm4997_vm11, %v6378_v6, %v991_v60  ;;  %v5096_v50 = vsel %vm5001_vm12, %v1010_v40, %v1006_v21  ;;  %vm5116_vm11 = vmor %vm1033_vm8, %vm1034_vm13 }
 0x226   : > { %v1055_v12 = vor.u32 1.1754944e-38, %v1054_v61  ;;  %vm1063_vm0 = vweird.f32 %v4574_v15  ;;  %vm1049_vm6 = vweird.f32 %v4946_v34  ;;  %vm5100_vm3 = vcmp.eq.f32.partialorder %v1052_v59, 8.507059e+37 }
 0x227   : > { %v1061_v3 = vmul.f32 %v4974_v24, %v1060_v10  ;;  %v1075_v1 = vsub.f32 1.0, %v1074_v52  ;;  %3879 = vrcp.f32 %v6381_v22  ;;  %v5106_v17 = vpop.eup %3877  ;;  %v5110_v40 = vsel %vm5028_vm7, %v1025_v47, %v1021_v56  ;;  %vm5149_vm7 = vmor %vm1048_vm14, %vm1049_vm6  ;;  %v6391_v10 = vld [vmem:[#allocation37_spill] sm:$0xff]  ;;  %v6420_v52 = vld [vmem:[#allocation42_spill] sm:$0xff] }
 0x228   : > { %v1070_v4 = vor.u32 1.1754944e-38, %v1069_v39  ;;  %v1084_v32 = vand.u32 2147483648, %v4576_v25  ;;  %v1104_v45 = vmul.f32 %v5080_v18, %v4591_v14  ;;  %v1036_v13 = vsel %vm5116_vm11, %v4893_v36, %v1032_v23  ;;  %v6411_v56 = vld [vmem:[#allocation41_spill] sm:$0xff] }
 0x229   : > { %v1047_v43 = vadd.f32 %v4946_v34, %v1046_v26  ;;  %vm5127_vm12 = vcmp.eq.f32.partialorder %v1067_v29, 8.507059e+37  ;;  %v1082_v33 = vand.u32 2147483647, %v4576_v25  ;;  %v1090_v48 = vsub.f32 1.0, %v1089_v8 }
 0x22a   : > { %vm1064_vm15 = vweird.f32 %v4974_v24  ;;  %vm1078_vm1 = vweird.f32 %v4576_v25  ;;  %v1099_v47 = vand.u32 2147483648, %v4583_v41  ;;  %3881 = vrcp.f32 %v6386_v49 }
 0x22b   : > { %v1062_v51 = vadd.f32 %v4974_v24, %v1061_v3  ;;  %v1076_v36 = vmul.f32 %v5021_v27, %v1075_v1  ;;  %v1097_v63 = vand.u32 2147483647, %v4583_v41  ;;  %v1119_v42 = vmul.f32 %v5106_v17, %v4593_v19  ;;  %vm5170_vm8 = vmor %vm1063_vm0, %vm1064_vm15  ;;  %v6396_v3 = vld [vmem:[#allocation38_spill] sm:$0xff] }
 0x22c   : > { %v5143_v54 = vsel %vm5062_vm10, %v1040_v44, %v1036_v13  ;;  %v1085_v59 = vor.u32 1.1754944e-38, %v1084_v32  ;;  %vm1093_vm9 = vweird.f32 %v4583_v41  ;;  %v1105_v61 = vsub.f32 1.0, %v1104_v45 }
 0x22d   : > { %v5154_v60 = vpop.eup %3879  ;;  %v1051_v21 = vsel %vm5149_vm7, %v4946_v34, %v1047_v43  ;;  %vm1079_vm4 = vweird.f32 %v5021_v27  ;;  %vm5160_vm2 = vcmp.eq.f32.partialorder %v1082_v33, 8.507059e+37  ;;  %v1091_v62 = vmul.f32 %v5042_v0, %v1090_v48  ;;  %v6401_v33 = vld [vmem:[#allocation39_spill] sm:$0xff] }
 0x22e   : > { %3883 = vrcp.f32 %v6391_v10  ;;  %v1100_v55 = vor.u32 1.1754944e-38, %v1099_v47  ;;  %vm1108_vm10 = vweird.f32 %v4591_v14  ;;  %v1112_v34 = vand.u32 2147483647, %v4591_v14  ;;  %vm5209_vm13 = vmor %vm1078_vm1, %vm1079_vm4 }
 0x22f   : > { %v1114_v44 = vand.u32 2147483648, %v4591_v14  ;;  %v1066_v29 = vsel %vm5170_vm8, %v4974_v24, %v1062_v51  ;;  %v1077_v39 = vadd.f32 %v5021_v27, %v1076_v36  ;;  %vm5181_vm14 = vcmp.eq.f32.partialorder %v1097_v63, 8.507059e+37 }
 0x230   : > { %v1120_v15 = vsub.f32 1.0, %v1119_v42  ;;  %v1134_v23 = vmul.f32 %v5154_v60, %v6381_v22  ;;  %v5187_v26 = vpop.eup %3881  ;;  %v5191_v8 = vsel %vm5100_vm3, %v1055_v12, %v1051_v21  ;;  %v1106_v6 = vmul.f32 %v5080_v18, %v1105_v61  ;;  %v6406_v61 = vld [vmem:[#allocation40_spill] sm:$0xff] }
 0x231   : > { %v1129_v24 = vand.u32 2147483648, %v4593_v19  ;;  %3885 = vrcp.f32 %v6396_v3  ;;  %v1092_v1 = vadd.f32 %v5042_v0, %v1091_v62  ;;  %vm1094_vm5 = vweird.f32 %v5042_v0 }
 0x232   : > { %v1127_v11 = vand.u32 2147483647, %v4593_v19  ;;  %v1149_v32 = vmul.f32 %v5187_v26, %v6386_v49  ;;  %v5203_v30 = vsel %vm5127_vm12, %v1070_v4, %v1066_v29  ;;  %vm1109_vm0 = vweird.f32 %v5080_v18  ;;  %vm5228_vm11 = vmor %vm1093_vm9, %vm1094_vm5 }
 0x233   : > { %vm5214_vm6 = vcmp.eq.f32.partialorder %v1112_v34, 8.507059e+37  ;;  %v1115_v13 = vor.u32 1.1754944e-38, %v1114_v44  ;;  %vm1123_vm3 = vweird.f32 %v4593_v19  ;;  %v1081_v4 = vsel %vm5209_vm13, %v5021_v27, %v1077_v39  ;;  %vm5258_vm7 = vmor %vm1108_vm10, %vm1109_vm0 }
 0x234   : > { %v5219_v43 = vpop.eup %3883  ;;  %v1121_v25 = vmul.f32 %v5106_v17, %v1120_v15  ;;  %v1135_v5 = vsub.f32 1.0, %v1134_v23  ;;  %3887 = vrcp.f32 %v6401_v33  ;;  %v1107_v47 = vadd.f32 %v5080_v18, %v1106_v6 }
 0x235   : > { %v1130_v51 = vor.u32 1.1754944e-38, %v1129_v24  ;;  %v1144_v36 = vand.u32 2147483648, %v6381_v22  ;;  %v1164_v63 = vmul.f32 %v5219_v43, %v6391_v10  ;;  %v1096_v27 = vsel %vm5228_vm11, %v5042_v0, %v1092_v1 }
 0x236   : > { %vm5239_vm12 = vcmp.eq.f32.partialorder %v1127_v11, 8.507059e+37  ;;  %v1142_v41 = vand.u32 2147483647, %v6381_v22  ;;  %v1150_v20 = vsub.f32 1.0, %v1149_v32  ;;  %3889 = vrcp.f32 %v6406_v61 }
 0x237   : > { %v5245_v21 = vpop.eup %3885  ;;  %v5249_v62 = vsel %vm5160_vm2, %v1085_v59, %v1081_v4  ;;  %vm1124_vm15 = vweird.f32 %v5106_v17  ;;  %vm1138_vm1 = vweird.f32 %v6381_v22  ;;  %v1159_v0 = vand.u32 2147483648, %v6386_v49 }
 0x238   : > { %v1122_v34 = vadd.f32 %v5106_v17, %v1121_v25  ;;  %v1136_v9 = vmul.f32 %v5154_v60, %v1135_v5  ;;  %vm1153_vm9 = vweird.f32 %v6386_v49  ;;  %v1157_v59 = vand.u32 2147483647, %v6386_v49  ;;  %vm5289_vm8 = vmor %vm1123_vm3, %vm1124_vm15  ;;  %v6423_v49 = vld [vmem:[#allocation43_spill] sm:$0xff] }
 0x239   : > { %v1165_v44 = vsub.f32 1.0, %v1164_v63  ;;  %v5268_v29 = vsel %vm5181_vm14, %v1100_v55, %v1096_v27  ;;  %v1111_v14 = vsel %vm5258_vm7, %v5080_v18, %v1107_v47  ;;  %v1145_v39 = vor.u32 1.1754944e-38, %v1144_v36 }
 0x23a   : > { %v1179_v15 = vmul.f32 %v5245_v21, %v6396_v3  ;;  %v5275_v23 = vpop.eup %3887  ;;  %vm5277_vm4 = vcmp.eq.f32.partialorder %v1142_v41, 8.507059e+37  ;;  %v1151_v24 = vmul.f32 %v5187_v26, %v1150_v20  ;;  %vm1168_vm2 = vweird.f32 %v6391_v10 }
 0x23b   : > { %v1172_v55 = vand.u32 2147483647, %v6391_v10  ;;  %3891 = vrcp.f32 %v6411_v56  ;;  %vm1139_vm10 = vweird.f32 %v5154_v60  ;;  %v1160_v1 = vor.u32 1.1754944e-38, %v1159_v0 }
 0x23c   : > { %v1174_v11 = vand.u32 2147483648, %v6391_v10  ;;  %v1194_v32 = vmul.f32 %v5275_v23, %v6401_v33  ;;  %v5297_v12 = vpop.eup %3889  ;;  %v5301_v4 = vsel %vm5214_vm6, %v1115_v13, %v1111_v14  ;;  %v1126_v19 = vsel %vm5289_vm8, %v5106_v17, %v1122_v34  ;;  %vm5330_vm0 = vmor %vm1138_vm1, %vm1139_vm10 }
 0x23d   : > { %v1137_v25 = vadd.f32 %v5154_v60, %v1136_v9  ;;  %vm5307_vm14 = vcmp.eq.f32.partialorder %v1157_v59, 8.507059e+37  ;;  %v1166_v48 = vmul.f32 %v5219_v43, %v1165_v44  ;;  %vm1154_vm5 = vweird.f32 %v5187_v26 }
 0x23e   : > { %v1180_v47 = vsub.f32 1.0, %v1179_v15  ;;  %v1187_v36 = vand.u32 2147483647, %v6396_v3  ;;  %v1209_v45 = vmul.f32 %v5297_v12, %v6406_v61  ;;  %v1152_v13 = vadd.f32 %v5187_v26, %v1151_v24  ;;  %vm5349_vm11 = vmor %vm1153_vm9, %vm1154_vm5 }
 0x23f   : > { %vm5317_vm13 = vcmp.eq.f32.partialorder %v1172_v55, 8.507059e+37  ;;  %v1189_v63 = vand.u32 2147483648, %v6396_v3  ;;  %v1195_v27 = vsub.f32 1.0, %v1194_v32  ;;  %v5324_v41 = vsel %vm5239_vm12, %v1130_v51, %v1126_v19 }
 0x240   : > { %vm1169_vm6 = vweird.f32 %v5219_v43  ;;  %v1175_v0 = vor.u32 1.1754944e-38, %v1174_v11  ;;  %vm1183_vm3 = vweird.f32 %v6396_v3  ;;  %3893 = vrcp.f32 %v6420_v52 }
 0x241   : > { %v5337_v34 = vpop.eup %3891  ;;  %v1141_v51 = vsel %vm5330_vm0, %v5154_v60, %v1137_v25  ;;  %v1167_v42 = vadd.f32 %v5219_v43, %v1166_v48  ;;  %v1202_v22 = vand.u32 2147483647, %v6401_v33  ;;  %v1204_v9 = vand.u32 2147483648, %v6401_v33  ;;  %vm5370_vm15 = vmor %vm1168_vm2, %vm1169_vm6  ;;  %v6430_v48 = vld [vmem:[#allocation44_spill] sm:$0xff] }
 0x242   : > { %v1181_v44 = vmul.f32 %v5245_v21, %v1180_v47  ;;  %vm1198_vm12 = vweird.f32 %v6401_v33  ;;  %v1210_v14 = vsub.f32 1.0, %v1209_v45  ;;  %v1224_v60 = vmul.f32 %v5337_v34, %v6411_v56 }
 0x243   : > { %v1156_v15 = vsel %vm5349_vm11, %v5187_v26, %v1152_v13  ;;  %v1190_v24 = vor.u32 1.1754944e-38, %v1189_v63  ;;  %v1196_v55 = vmul.f32 %v5275_v23, %v1195_v27  ;;  %3895 = vrcp.f32 %v6423_v49 }
 0x244   : > { %v5364_v18 = vsel %vm5277_vm4, %v1145_v39, %v1141_v51  ;;  %vm5374_vm1 = vcmp.eq.f32.partialorder %v1187_v36, 8.507059e+37  ;;  %vm1213_vm7 = vweird.f32 %v6406_v61  ;;  %v1217_v26 = vand.u32 2147483647, %v6406_v61 }
 0x245   : > { %v1219_v6 = vand.u32 2147483648, %v6406_v61  ;;  %v1225_v39 = vsub.f32 1.0, %v1224_v60  ;;  %v1171_v19 = vsel %vm5370_vm15, %v5219_v43, %v1167_v42  ;;  %vm1184_vm9 = vweird.f32 %v5245_v21 }
 0x246   : > { %vm5385_vm4 = vcmp.eq.f32.partialorder %v1202_v22, 8.507059e+37  ;;  %v1205_v25 = vor.u32 1.1754944e-38, %v1204_v9  ;;  %3897 = vrcp.f32 %v6430_v48  ;;  %v5390_v47 = vpop.eup %3893  ;;  %v5394_v36 = vsel %vm5307_vm14, %v1160_v1, %v1156_v15  ;;  %vm5421_vm5 = vmor %vm1183_vm3, %vm1184_vm9  ;;  %v6450_v15 = vld [vmem:[#allocation3_spill] sm:$0xff] }
 0x247   : > { %v1182_v45 = vadd.f32 %v5245_v21, %v1181_v44  ;;  %v1211_v13 = vmul.f32 %v5297_v12, %v1210_v14  ;;  %vm1228_vm2 = vweird.f32 %v6411_v56  ;;  %v1232_v43 = vand.u32 2147483647, %v6411_v56  ;;  %v6435_v44 = vld [vmem:[#allocation45_spill] sm:$0xff] }
 0x248   : > { %v1197_v63 = vadd.f32 %v5275_v23, %v1196_v55  ;;  %vm1199_vm8 = vweird.f32 %v5275_v23  ;;  %v1234_v27 = vand.u32 2147483648, %v6411_v56  ;;  %v1239_v20 = vmul.f32 %v5390_v47, %v6420_v52 }
 0x249   : > { %v5407_v1 = vsel %vm5317_vm13, %v1175_v0, %v1171_v19  ;;  %vm1214_vm10 = vweird.f32 %v5297_v12  ;;  %vm5410_vm14 = vcmp.eq.f32.partialorder %v1217_v26, 8.507059e+37  ;;  %v1220_v51 = vor.u32 1.1754944e-38, %v1219_v6  ;;  %v5415_v22 = vpop.eup %3895  ;;  %vm5435_vm13 = vmor %vm1198_vm12, %vm1199_vm8 }
 0x24a   : > { %v1226_v42 = vmul.f32 %v5337_v34, %v1225_v39  ;;  %v1240_v17 = vsub.f32 1.0, %v1239_v20  ;;  %v1247_v0 = vand.u32 2147483647, %v6420_v52  ;;  %v1249_v59 = vand.u32 2147483648, %v6420_v52  ;;  %vm5465_vm11 = vmor %vm1213_vm7, %vm1214_vm10 }
 0x24b   : > { %3899 = vrcp.f32 %v6435_v44  ;;  %v1186_v14 = vsel %vm5421_vm5, %v5245_v21, %v1182_v45  ;;  %v1212_v60 = vadd.f32 %v5297_v12, %v1211_v13  ;;  %vm5440_vm0 = vcmp.eq.f32.partialorder %v1232_v43, 8.507059e+37  ;;  %v6464_v13 = vld [vmem:[#allocation11_spill] sm:$0xff] }
 0x24c   : > { %v1254_v55 = vmul.f32 %v5415_v22, %v6423_v49  ;;  %v5446_v11 = vpop.eup %3897  ;;  %v1201_v21 = vsel %vm5435_vm13, %v5275_v23, %v1197_v63  ;;  %v1235_v33 = vor.u32 1.1754944e-38, %v1234_v27  ;;  %v1241_v26 = vmul.f32 %v5390_v47, %v1240_v17 }
 0x24d   : > { %vm1243_vm6 = vweird.f32 %v6420_v52  ;;  %v1227_v6 = vadd.f32 %v5337_v34, %v1226_v42  ;;  %vm1229_vm3 = vweird.f32 %v5337_v34  ;;  %v1269_v19 = vmul.f32 %v5446_v11, %v6430_v48 }
 0x24e   : > { %v1255_v39 = vsub.f32 1.0, %v1254_v55  ;;  %v5459_v45 = vsel %vm5374_vm1, %v1190_v24, %v1186_v14  ;;  %vm5469_vm12 = vcmp.eq.f32.partialorder %v1247_v0, 8.507059e+37  ;;  %v1250_v43 = vor.u32 1.1754944e-38, %v1249_v59  ;;  %vm5487_vm1 = vmor %vm1228_vm2, %vm1229_vm3 }
 0x24f   : > { %v1264_v63 = vand.u32 2147483648, %v6423_v49  ;;  %v5476_v32 = vsel %vm5385_vm4, %v1205_v25, %v1201_v21  ;;  %v1216_v24 = vsel %vm5465_vm11, %v5297_v12, %v1212_v60  ;;  %vm1258_vm15 = vweird.f32 %v6423_v49 }
 0x250   : > { %v1279_v61 = vand.u32 2147483648, %v6430_v48  ;;  %v1242_v10 = vadd.f32 %v5390_v47, %v1241_v26  ;;  %vm1244_vm7 = vweird.f32 %v5390_v47  ;;  %v1262_v25 = vand.u32 2147483647, %v6423_v49 }
 0x251   : > { %v5483_v27 = vpop.eup %3899  ;;  %v1270_v42 = vsub.f32 1.0, %v1269_v19  ;;  %v1231_v12 = vsel %vm5487_vm1, %v5337_v34, %v1227_v6  ;;  %v1256_v9 = vmul.f32 %v5415_v22, %v1255_v39  ;;  %v1294_v17 = vand.u32 2147483648, %v6435_v44  ;;  %vm5509_vm4 = vmor %vm1243_vm6, %vm1244_vm7 }
 0x252   : > { %v1284_v56 = vmul.f32 %v5483_v27, %v6435_v44  ;;  %v5503_v0 = vsel %vm5410_vm14, %v1220_v51, %v1216_v24  ;;  %v1265_v59 = vor.u32 1.1754944e-38, %v1264_v63  ;;  %vm1273_vm9 = vweird.f32 %v6430_v48  ;;  %v6454_v63 = vld [vmem:[#allocation5_spill] sm:$0xff] }
 0x253   : > { %v1277_v14 = vand.u32 2147483647, %v6430_v48  ;;  %vm1259_vm2 = vweird.f32 %v5415_v22  ;;  %v1280_v3 = vor.u32 1.1754944e-38, %v1279_v61  ;;  %vm1288_vm8 = vweird.f32 %v6435_v44  ;;  %v6455_v61 = vld [vmem:[#allocation6_spill] sm:$0xff] }
 0x254   : > { %v1285_v60 = vsub.f32 1.0, %v1284_v56  ;;  %v1292_v5 = vand.u32 2147483647, %v6435_v44  ;;  %v5518_v51 = vsel %vm5440_vm0, %v1235_v33, %v1231_v12  ;;  %v1246_v52 = vsel %vm5509_vm4, %v5390_v47, %v1242_v10  ;;  %v6453_v47 = vld [vmem:[#allocation4_spill] sm:$0xff]  ;;  %v6456_v10 = vld [vmem:[#allocation7_spill] sm:$0xff]  ;;  %vm5561_vm0 = vmor %vm1258_vm15, %vm1259_vm2 }
 0x255   : > { %v1271_v55 = vmul.f32 %v5446_v11, %v1270_v42  ;;  %vm1274_vm10 = vweird.f32 %v5446_v11  ;;  %v1257_v21 = vadd.f32 %v5415_v22, %v1256_v9  ;;  %vm5526_vm14 = vcmp.eq.f32.partialorder %v1262_v25, 8.507059e+37  ;;  %v6459_v12 = vld [vmem:[#allocation8_spill] sm:$0xff]  ;;  %v6479_v44 = vld [vmem:[#allocation22_spill] sm:$0xff] }
 0x256   : > { %v1286_v6 = vmul.f32 %v5483_v27, %v1285_v60  ;;  %v1295_v39 = vor.u32 1.1754944e-38, %v1294_v17  ;;  %v1298_v33 = vmul.f32 %v4800_v38, %v6450_v15  ;;  %vm5533_vm5 = vcmp.eq.f32.partialorder %v1277_v14, 8.507059e+37  ;;  %v6466_v14 = vld [vmem:[#allocation13_spill] sm:$0xff]  ;;  %v6467_v60 = vld [vmem:[#allocation14_spill] sm:$0xff]  ;;  %v6469_v15 = vld [vmem:[#allocation16_spill] sm:$0xff] }
 0x257   : > { %v1299_v23 = vmul.f32 %v4824_v46, %v6453_v47  ;;  %v1300_v24 = vmul.f32 %v4829_v58, %v6454_v63  ;;  %v1301_v20 = vmul.f32 %v4865_v57, %v6455_v61  ;;  %v1302_v25 = vmul.f32 %v4922_v53, %v6456_v10  ;;  %v6460_v46 = vld [vmem:[#allocation9_spill] sm:$0xff]  ;;  %v6461_v58 = vld [vmem:[#allocation10_spill] sm:$0xff]  ;;  %vm5587_vm3 = vmor %vm1273_vm9, %vm1274_vm10 }
 0x258   : > { %v1251_v42 = vsel %vm5469_vm12, %v1250_v43, %v1246_v52  ;;  %vm5547_vm13 = vcmp.eq.f32.partialorder %v1292_v5, 8.507059e+37  ;;  %v1303_v9 = vmul.f32 %v4927_v2, %v6459_v12  ;;  %v1304_v56 = vmul.f32 %v4951_v28, %v6460_v46  ;;  %v6465_v43 = vld [vmem:[#allocation12_spill] sm:$0xff]  ;;  %v6468_v52 = vld [vmem:[#allocation15_spill] sm:$0xff]  ;;  %v6478_v61 = vld [vmem:[#allocation21_spill] sm:$0xff] }
 0x259   : > { %v1305_v17 = vmul.f32 %v4956_v16, %v6461_v58  ;;  %v1272_v53 = vadd.f32 %v5446_v11, %v1271_v55  ;;  %vm1289_vm6 = vweird.f32 %v5483_v27  ;;  %v1306_v2 = vmul.f32 %v4979_v35, %v6464_v13  ;;  %v6480_v12 = vld [vmem:[#allocation23_spill] sm:$0xff]  ;;  %v6489_v38 = vld [vmem:[#allocation32_spill] sm:$0xff] }
 0x25a   : > { %v1307_v28 = vmul.f32 %v5011_v31, %v6465_v43  ;;  %v1261_v16 = vsel %vm5561_vm0, %v5415_v22, %v1257_v21  ;;  %v1287_v49 = vadd.f32 %v5483_v27, %v1286_v6  ;;  %v1308_v34 = vmul.f32 %v5026_v37, %v6466_v14  ;;  %v6472_v37 = vld [vmem:[#allocation17_spill] sm:$0xff]  ;;  %vm5602_vm11 = vmor %vm1288_vm8, %vm1289_vm6  ;;  %v6488_v43 = vld [vmem:[#allocation31_spill] sm:$0xff] }
 0x25b   : > { %v1309_v5 = vmul.f32 %v5092_v7, %v6467_v60  ;;  %v1310_v55 = vmul.f32 %v5096_v50, %v6468_v52  ;;  %v1311_v35 = vmul.f32 %v5110_v40, %v6469_v15  ;;  %v3599_v47 = vpack.c.bf16 %v1299_v23, %v1298_v33  ;;  %v6473_v7 = vld [vmem:[#allocation18_spill] sm:$0xff]  ;;  %v6476_v33 = vld [vmem:[#allocation19_spill] sm:$0xff]  ;;  %v6477_v23 = vld [vmem:[#allocation20_spill] sm:$0xff] }
 0x25c   : > { %v3604_v31 = vpack.c.bf16 %v1301_v20, %v1300_v24  ;;  %v1312_v21 = vmul.f32 %v5143_v54, %v6472_v37  ;;  %v1313_v6 = vmul.f32 %v5191_v8, %v6473_v7  ;;  %v3609_v50 = vpack.c.bf16 %v1303_v9, %v1302_v25  ;;  %v6481_v9 = vld [vmem:[#allocation24_spill] sm:$0xff]  ;;  %v6491_v14 = vld [vmem:[#allocation34_spill] sm:$0xff] }
 0x25d   : > { %v3614_v63 = vpack.c.bf16 %v1305_v17, %v1304_v56  ;;  %v1276_v40 = vsel %vm5587_vm3, %v5446_v11, %v1272_v53  ;;  %v1314_v54 = vmul.f32 %v5203_v30, %v6476_v33  ;;  %v1315_v8 = vmul.f32 %v5249_v62, %v6477_v23  ;;  %3600 = vst [vmem:[#allocation2 + $0x8] sm:$0xff] %v3599_v47  }
 0x25e   : > { %v3619_v24 = vpack.c.bf16 %v1307_v28, %v1306_v2  ;;  %v1291_v11 = vsel %vm5602_vm11, %v5483_v27, %v1287_v49  ;;  %v1316_v20 = vmul.f32 %v5268_v29, %v6478_v61  ;;  %v1317_v10 = vmul.f32 %v5301_v4, %v6479_v44  ;;  %3691 = vst [vmem:[#allocation2 + $0x10] sm:$0xff] %v3604_v31   ;;  %v6482_v29 = vld [vmem:[#allocation25_spill] sm:$0xff]  ;;  %v6483_v4 = vld [vmem:[#allocation26_spill] sm:$0xff] }
 0x25f   : > { %v3624_v25 = vpack.c.bf16 %v1309_v5, %v1308_v34  ;;  %v1266_v30 = vsel %vm5526_vm14, %v1265_v59, %v1261_v16  ;;  %v1318_v62 = vmul.f32 %v5324_v41, %v6480_v12  ;;  %v1319_v46 = vmul.f32 %v5364_v18, %v6481_v9  ;;  %3692 = vst [vmem:[#allocation2 + $0x18] sm:$0xff] %v3609_v50   ;;  %v6484_v41 = vld [vmem:[#allocation27_spill] sm:$0xff]  ;;  %v6485_v18 = vld [vmem:[#allocation28_spill] sm:$0xff] }
 0x260   : > { %v3629_v56 = vpack.c.bf16 %v1311_v35, %v1310_v55  ;;  %v1281_v27 = vsel %vm5533_vm5, %v1280_v3, %v1276_v40  ;;  %v1320_v58 = vmul.f32 %v5394_v36, %v6482_v29  ;;  %v1321_v17 = vmul.f32 %v5407_v1, %v6483_v4  ;;  %3693 = vst [vmem:[#allocation2 + $0x20] sm:$0xff] %v3614_v63   ;;  %v6486_v3 = vld [vmem:[#allocation29_spill] sm:$0xff]  ;;  %v6487_v36 = vld [vmem:[#allocation30_spill] sm:$0xff] }
 0x261   : > { %v3634_v26 = vpack.c.bf16 %v1313_v6, %v1312_v21  ;;  %v1296_v59 = vsel %vm5547_vm13, %v1295_v39, %v1291_v11  ;;  %v1322_v57 = vmul.f32 %v5459_v45, %v6484_v41  ;;  %v1323_v53 = vmul.f32 %v5476_v32, %v6485_v18  ;;  %3694 = vst [vmem:[#allocation2 + $0x28] sm:$0xff] %v3619_v24   ;;  %v6490_v45 = vld [vmem:[#allocation33_spill] sm:$0xff] }
 0x262   : > { %v3639_v19 = vpack.c.bf16 %v1315_v8, %v1314_v54  ;;  %v1324_v13 = vmul.f32 %v5503_v0, %v6486_v3  ;;  %v1325_v2 = vmul.f32 %v5518_v51, %v6487_v36  ;;  %3695 = vst [vmem:[#allocation2 + $0x30] sm:$0xff] %v3624_v25   ;;  %v3644_v1 = vpack.c.bf16 %v1317_v10, %v1316_v20 }
 0x263   : > { %v1326_v28 = vmul.f32 %v1251_v42, %v6488_v43  ;;  %v1327_v39 = vmul.f32 %v1266_v30, %v6489_v38  ;;  %3696 = vst [vmem:[#allocation2 + $0x38] sm:$0xff] %v3629_v56   ;;  %v3649_v16 = vpack.c.bf16 %v1319_v46, %v1318_v62  ;;  %v1328_v49 = vmul.f32 %v1281_v27, %v6490_v45 }
 0x264   : > { %v1329_v32 = vmul.f32 %v1296_v59, %v6491_v14  ;;  %3697 = vst [vmem:[#allocation2 + $0x40] sm:$0xff] %v3634_v26   ;;  %v3654_v34 = vpack.c.bf16 %v1321_v17, %v1320_v58  ;;  %v3659_v60 = vpack.c.bf16 %v1323_v53, %v1322_v57  ;;  %v3664_v0 = vpack.c.bf16 %v1325_v2, %v1324_v13 }
 0x265   : > { %3698 = vst [vmem:[#allocation2 + $0x48] sm:$0xff] %v3639_v19   ;;  %v3669_v51 = vpack.c.bf16 %v1327_v39, %v1326_v28  ;;  %v3942_v42 = vmov 0  }
 0x266   : > { %3699 = vst [vmem:[#allocation2 + $0x50] sm:$0xff] %v3644_v1   ;;  %v3674_v5 = vpack.c.bf16 %v1329_v32, %v1328_v49 }
 0x267   : > { %3700 = vst [vmem:[#allocation2 + $0x58] sm:$0xff] %v3649_v16  }
 0x268   : > { %3701 = vst [vmem:[#allocation2 + $0x60] sm:$0xff] %v3654_v34  }
 0x269   : > { %3702 = vst [vmem:[#allocation2 + $0x68] sm:$0xff] %v3659_v60  }
 0x26a   : > { %3703 = vst [vmem:[#allocation2 + $0x70] sm:$0xff] %v3664_v0  }
 0x26b   : > { %3704 = vst [vmem:[#allocation2 + $0x78] sm:$0xff] %v3669_v51  }
 0x26c   : > { %3705 = vst [vmem:[#allocation2 + $0x80] sm:$0xff] %v3674_v5  }
 0x26d   : > { %1330 = vst [vmem:[#allocation2] sm:$0xf] %v3942_v42 }
 0x26e   : > { %1331 = vst [vmem:[#allocation2 + $0x4] sm:$0xf] %v3942_v42 }
 0x26f   : > { %1333 = vst [vmem:[#allocation2 + $0x88] sm:$0xf] %v3942_v42 }
 0x270   : > { %1334 = vst [vmem:[#allocation2 + $0x8c] sm:$0xf] %v3942_v42 }
 0x271 PF: > { %v3475_v52 = vld [vmem:[%s6215_s4 + $0x78] sm:$0xff]  ;;  %v3474_v55 = vld [vmem:[%s6215_s4 + $0x70] sm:$0xff]  ;;  %v3473_v15 = vld [vmem:[%s6215_s4 + $0x68] sm:$0xff]  ;;  %s3449_s12 = sshll.u32 %s3924_s24, 6  ;;  %vm1554_vm12 = vcmask 1040384   ;;  %vm1597_vm1 = vcmask 1047552  }
 0x272   : > { %3706 = vmatpush.bf16.msra.mxu1 %v3475_v52  ;;  %3707 = vmatpush.bf16.msra.mxu2 %v3475_v52  ;;  %v3472_v35 = vld [vmem:[%s6215_s4 + $0x60] sm:$0xff]  ;;  %v3471_v47 = vld [vmem:[%s6215_s4 + $0x58] sm:$0xff]  ;;  %v3470_v31 = vld [vmem:[%s6215_s4 + $0x50] sm:$0xff]  ;;  %s5674_s21 = scalar_lea.vmem [#allocation2], %s3449_s12  ;;  %vm1555_vm15 = vsmask.f32 256 }
 0x273   : > { %3708 = vmatpush.bf16.msra.mxu3 %v3475_v52  ;;  %1699 = vmatpush.bf16.msra.mxu0 %v3475_v52  ;;  %v3469_v22 = vld [vmem:[%s6215_s4 + $0x48] sm:$0xff]  ;;  %v3468_v37 = vld [vmem:[%s6215_s4 + $0x40] sm:$0xff]  ;;  %v3483_v21 = vld [vmem:[%s6215_s4 + $0xb8] sm:$0xff]  ;;  %vm1598_vm7 = vsmask.f32 7424 }
 0x274   : > { %v3467_v7 = vld [vmem:[%s6215_s4 + $0x38] sm:$0xff]  ;;  %v3482_v54 = vld [vmem:[%s6215_s4 + $0xb0] sm:$0xff]  ;;  %v3481_v11 = vld [vmem:[%s6215_s4 + $0xa8] sm:$0xff] }
 0x275   : > { %v3491_v48 = vld [vmem:[%s6215_s4 + $0xf8] sm:$0xff]  ;;  %v3466_v23 = vld [vmem:[%s6215_s4 + $0x30] sm:$0xff]  ;;  %v3465_v61 = vld [vmem:[%s6215_s4 + $0x28] sm:$0xff] }
 0x276   : > { %3709 = vmatpush.bf16.msra.mxu1 %v3474_v55  ;;  %3710 = vmatpush.bf16.msra.mxu2 %v3474_v55  ;;  %v3499_v33 = vld [vmem:[%s6215_s4 + $0x138] sm:$0xff]  ;;  %v3490_v8 = vld [vmem:[%s6215_s4 + $0xf0] sm:$0xff]  ;;  %v3489_v20 = vld [vmem:[%s6215_s4 + $0xe8] sm:$0xff] }
 0x277   : > { %3711 = vmatpush.bf16.msra.mxu3 %v3474_v55  ;;  %1700 = vmatpush.bf16.msra.mxu0 %v3474_v55  ;;  %v5677_v6 = vld [vmem:[%s5674_s21 + $0x10] sm:$0xff]  ;;  %v5680_v50 = vld [vmem:[%s5674_s21 + $0x20] sm:$0xff]  ;;  %v3497_v44 = vld [vmem:[%s6215_s4 + $0x128] sm:$0xff] }
 0x278   : > { %v5683_v63 = vld [vmem:[%s5674_s21 + $0x30] sm:$0xff]  ;;  %v5686_v40 = vld [vmem:[%s5674_s21] sm:$0xff]  ;;  %v3479_v62 = vld [vmem:[%s6215_s4 + $0x98] sm:$0xff] }
 0x279   : > { %v3498_v24 = vld [vmem:[%s6215_s4 + $0x130] sm:$0xff]  ;;  %v3480_v10 = vld [vmem:[%s6215_s4 + $0xa0] sm:$0xff]  ;;  %v3463_v9 = vld [vmem:[%s6215_s4 + $0x18] sm:$0xff]  ;;  %v1475_v59 = vshrl.u32 %v5686_v40, 16  ;;  %v1478_v41 = vshll.u32 %v5686_v40, 16 }
 0x27a   : > { %3712 = vmatpush.bf16.msra.mxu1 %v3473_v15  ;;  %3713 = vmatpush.bf16.msra.mxu2 %v3473_v15  ;;  %v3464_v25 = vld [vmem:[%s6215_s4 + $0x20] sm:$0xff]  ;;  %v5741_v46 = vld [vmem:[%s5674_s21 + $0x18] sm:$0xff]  ;;  %v5744_v56 = vld [vmem:[%s5674_s21 + $0x28] sm:$0xff] }
 0x27b   : > { %3714 = vmatpush.bf16.msra.mxu3 %v3473_v15  ;;  %1701 = vmatpush.bf16.msra.mxu0 %v3473_v15  ;;  %v3488_v30 = vld [vmem:[%s6215_s4 + $0xe0] sm:$0xff]  ;;  %v5747_v27 = vld [vmem:[%s5674_s21 + $0x38] sm:$0xff]  ;;  %v5750_v29 = vld [vmem:[%s5674_s21 + $0x8] sm:$0xff]  ;;  %v1477_v36 = vrot.slane %v1475_v59, 7  ;;  %v1567_v2 = vrot.slane %v1478_v41, 1 }
 0x27c   : > { %v3496_v12 = vld [vmem:[%s6215_s4 + $0x120] sm:$0xff]  ;;  %v3487_v58 = vld [vmem:[%s6215_s4 + $0xd8] sm:$0xff]  ;;  %v3478_v17 = vld [vmem:[%s6215_s4 + $0x90] sm:$0xff]  ;;  %v1482_v53 = vshrl.u32 %v5750_v29, 16  ;;  %v1485_v28 = vshll.u32 %v5750_v29, 16 }
 0x27d   : > { %v3495_v4 = vld [vmem:[%s6215_s4 + $0x118] sm:$0xff]  ;;  %v3462_v26 = vld [vmem:[%s6215_s4 + $0x10] sm:$0xff]  ;;  %v3477_v19 = vld [vmem:[%s6215_s4 + $0x88] sm:$0xff]  ;;  %v1480_v49 = vor.u32 %v1478_v41, %v1477_v36  ;;  %v1568_v32 = vor.u32 %v1567_v2, %v1475_v59 }
 0x27e   : > { %3715 = vmatpush.bf16.msra.mxu1 %v3472_v35  ;;  %3716 = vmatpush.bf16.msra.mxu2 %v3472_v35  ;;  %v3486_v57 = vld [vmem:[%s6215_s4 + $0xd0] sm:$0xff]  ;;  %v3461_v3 = vld [vmem:[%s6215_s4 + $0x8] sm:$0xff]  ;;  %v1484_v43 = vrot.slane %v1482_v53, 7  ;;  %v3476_v38 = vld [vmem:[%s6215_s4 + $0x80] sm:$0xff] }
 0x27f   : > { %3717 = vmatpush.bf16.msra.mxu3 %v3472_v35  ;;  %1702 = vmatpush.bf16.msra.mxu0 %v3472_v35  ;;  %v3494_v18 = vld [vmem:[%s6215_s4 + $0x110] sm:$0xff]  ;;  %v3485_v13 = vld [vmem:[%s6215_s4 + $0xc8] sm:$0xff]  ;;  %v3460_v39 = vld [vmem:[%s6215_s4] sm:$0xff] }
 0x280   : > { %v3493_v1 = vld [vmem:[%s6215_s4 + $0x108] sm:$0xff]  ;;  %v3515_v16 = vld [vmem:[%s6215_s4 + $0x1b8] sm:$0xff]  ;;  %vm5804_vm9 = vmand %vm1554_vm12, %vm1555_vm15  ;;  %v1487_v51 = vor.u32 %v1485_v28, %v1484_v43 }
 0x281   : > { %v3507_v45 = vld [vmem:[%s6215_s4 + $0x178] sm:$0xff]  ;;  %v3484_v34 = vld [vmem:[%s6215_s4 + $0xc0] sm:$0xff]  ;;  %vm5814_vm4 = vmand %vm1597_vm1, %vm1598_vm7  ;;  %v1557_v52 = vsel %vm5804_vm9, 0, %v1480_v49 }
 0x282   : > { %3718 = vmatpush.bf16.msra.mxu1 %v3471_v47  ;;  %3719 = vmatpush.bf16.msra.mxu2 %v3471_v47  ;;  %v3492_v60 = vld [vmem:[%s6215_s4 + $0x100] sm:$0xff]  ;;  %v3523_v5 = vld [vmem:[%s6215_s4 + $0x1f8] sm:$0xff]  ;;  %v1600_v55 = vsel %vm5814_vm4, %v1568_v32, 0  ;;  %v1558_v15 = vsel %vm5804_vm9, 0, %v1487_v51  ;;  %v3514_v35 = vld [vmem:[%s6215_s4 + $0x1b0] sm:$0xff]  ;;  %v1513_v32 = vshll.u32 %v5744_v56, 16 }
 0x283   : > { %3720 = vmatpush.bf16.msra.mxu3 %v3471_v47  ;;  %1703 = vmatpush.bf16.msra.mxu0 %v3471_v47  ;;  %v3531_v42 = vld [vmem:[%s6215_s4 + $0x238] sm:$0xff]  ;;  %v3506_v47 = vld [vmem:[%s6215_s4 + $0x170] sm:$0xff] }
 0x284   : > { %v3519_v59 = vld [vmem:[%s6215_s4 + $0x1d8] sm:$0xff]  ;;  %v3510_v43 = vld [vmem:[%s6215_s4 + $0x190] sm:$0xff] }
 0x285   : > { %v3503_v41 = vld [vmem:[%s6215_s4 + $0x158] sm:$0xff] }
 0x286   : > { %3721 = vmatpush.bf16.msra.mxu1 %v3470_v31  ;;  %3722 = vmatpush.bf16.msra.mxu2 %v3470_v31 }
 0x287   : > { %3723 = vmatpush.bf16.msra.mxu3 %v3470_v31  ;;  %1704 = vmatpush.bf16.msra.mxu0 %v3470_v31  ;;  %v3522_v31 = vld [vmem:[%s6215_s4 + $0x1f0] sm:$0xff] }
 0x28a   : > { %3724 = vmatpush.bf16.msra.mxu1 %v3469_v22  ;;  %3725 = vmatpush.bf16.msra.mxu2 %v3469_v22 }
 0x28b   : > { %3726 = vmatpush.bf16.msra.mxu3 %v3469_v22  ;;  %1705 = vmatpush.bf16.msra.mxu0 %v3469_v22  ;;  %v3530_v22 = vld [vmem:[%s6215_s4 + $0x230] sm:$0xff] }
 0x28e   : > { %3727 = vmatpush.bf16.msra.mxu1 %v3468_v37  ;;  %3728 = vmatpush.bf16.msra.mxu2 %v3468_v37 }
 0x28f   : > { %3729 = vmatpush.bf16.msra.mxu3 %v3468_v37  ;;  %1706 = vmatpush.bf16.msra.mxu0 %v3468_v37  ;;  %v1489_v37 = vshrl.u32 %v5677_v6, 16 }
 0x291   : > { %1717 = vmatmul.bf16.vlgmr.msra.gmra.mxu1 %v5677_v6  ;;  %1727 = vmatmul.bf16.vlgmr.msra.gmra.mxu2 %v5680_v50 }
 0x292   : > { %1910 = vmatpush.bf16.msrb.mxu2 %v3483_v21  ;;  %1796 = vmatpush.bf16.msrb.mxu1 %v3467_v7  ;;  %v3513_v21 = vld [vmem:[%s6215_s4 + $0x1a8] sm:$0xff] }
 0x293   : > { %1737 = vmatmul.bf16.vlgmr.msra.gmra.mxu3 %v5683_v63  ;;  %1707 = vmatmul.bf16.vlgmr.msra.gmra.mxu0 %v5686_v40  ;;  %v3505_v7 = vld [vmem:[%s6215_s4 + $0x168] sm:$0xff] }
 0x294   : > { %2040 = vmatpush.bf16.msrb.mxu3 %v3491_v48  ;;  %2171 = vmatpush.bf16.msrb.mxu0 %v3499_v33  ;;  %v3521_v40 = vld [vmem:[%s6215_s4 + $0x1e8] sm:$0xff]  ;;  %v1569_v33 = vrot.slane %v1485_v28, 1  ;;  %v3518_v28 = vld [vmem:[%s6215_s4 + $0x1d0] sm:$0xff] }
 0x295   : > { %v3529_v48 = vld [vmem:[%s6215_s4 + $0x228] sm:$0xff] }
 0x296   : > { %1911 = vmatpush.bf16.msrb.mxu2 %v3482_v54  ;;  %1797 = vmatpush.bf16.msrb.mxu1 %v3466_v23  ;;  %v1491_v54 = vrot.slane %v1489_v37, 7  ;;  %v1492_v23 = vshll.u32 %v5677_v6, 16 }
 0x298   : > { %2041 = vmatpush.bf16.msrb.mxu3 %v3490_v8  ;;  %2172 = vmatpush.bf16.msrb.mxu0 %v3498_v24  ;;  %v1570_v8 = vor.u32 %v1569_v33, %v1482_v53  ;;  %v1494_v24 = vor.u32 %v1492_v23, %v1491_v54  ;;  %v3516_v33 = vld [vmem:[%s6215_s4 + $0x1c0] sm:$0xff]  ;;  %v1524_v54 = vshrl.u32 %v5747_v27, 16 }
 0x29a   : > { %1912 = vmatpush.bf16.msrb.mxu2 %v3481_v11  ;;  %1798 = vmatpush.bf16.msrb.mxu1 %v3465_v61  ;;  %v5861_v11 = vsel %vm5814_vm4, %v1570_v8, 0  ;;  %v5865_v61 = vsel %vm5804_vm9, 0, %v1494_v24  ;;  %v1526_v24 = vrot.slane %v1524_v54, 7 }
 0x29c   : > { %2042 = vmatpush.bf16.msrb.mxu3 %v3489_v20  ;;  %2173 = vmatpush.bf16.msrb.mxu0 %v3497_v44  ;;  %v3512_v20 = vld [vmem:[%s6215_s4 + $0x1a0] sm:$0xff] }
 0x29d   : > { %v3520_v44 = vld [vmem:[%s6215_s4 + $0x1e0] sm:$0xff] }
 0x29e   : > { %1913 = vmatpush.bf16.msrb.mxu2 %v3480_v10  ;;  %1799 = vmatpush.bf16.msrb.mxu1 %v3464_v25  ;;  %v3504_v10 = vld [vmem:[%s6215_s4 + $0x160] sm:$0xff]  ;;  %v1496_v25 = vshrl.u32 %v5741_v46, 16 }
 0x2a0   : > { %2043 = vmatpush.bf16.msrb.mxu3 %v3488_v30  ;;  %2174 = vmatpush.bf16.msrb.mxu0 %v3496_v12  ;;  %v3528_v30 = vld [vmem:[%s6215_s4 + $0x220] sm:$0xff]  ;;  %v1571_v12 = vrot.slane %v1492_v23, 1 }
 0x2a1   : > { %1722 = vmatmul.bf16.gmra.mxu1 %v5741_v46  ;;  %1732 = vmatmul.bf16.gmra.mxu2 %v5744_v56  ;;  %v3500_v23 = vld [vmem:[%s6215_s4 + $0x140] sm:$0xff] }
 0x2a2   : > { %1914 = vmatpush.bf16.msrb.mxu2 %v3479_v62  ;;  %1800 = vmatpush.bf16.msrb.mxu1 %v3463_v9  ;;  %v1498_v62 = vrot.slane %v1496_v25, 7  ;;  %v1499_v9 = vshll.u32 %v5741_v46, 16 }
 0x2a3   : > { %1742 = vmatmul.bf16.gmra.mxu3 %v5747_v27  ;;  %1712 = vmatmul.bf16.gmra.mxu0 %v5750_v29 }
 0x2a4   : > { %2044 = vmatpush.bf16.msrb.mxu3 %v3487_v58  ;;  %2175 = vmatpush.bf16.msrb.mxu0 %v3495_v4  ;;  %v1501_v58 = vor.u32 %v1499_v9, %v1498_v62  ;;  %v1573_v53 = vrot.slane %v1499_v9, 1 }
 0x2a6   : > { %1915 = vmatpush.bf16.msrb.mxu2 %v3478_v17  ;;  %1801 = vmatpush.bf16.msrb.mxu1 %v3462_v26  ;;  %v5890_v17 = vsel %vm5804_vm9, 0, %v1501_v58  ;;  %v3511_v26 = vld [vmem:[%s6215_s4 + $0x198] sm:$0xff] }
 0x2a8   : > { %2045 = vmatpush.bf16.msrb.mxu3 %v3486_v57  ;;  %2176 = vmatpush.bf16.msrb.mxu0 %v3494_v18  ;;  %v1503_v57 = vshrl.u32 %v5680_v50, 16  ;;  %v3527_v18 = vld [vmem:[%s6215_s4 + $0x218] sm:$0xff] }
 0x2aa   : > { %1916 = vmatpush.bf16.msrb.mxu2 %v3477_v19  ;;  %1802 = vmatpush.bf16.msrb.mxu1 %v3461_v3  ;;  %v1505_v19 = vrot.slane %v1503_v57, 7  ;;  %v1506_v3 = vshll.u32 %v5680_v50, 16 }
 0x2ac   : > { %2046 = vmatpush.bf16.msrb.mxu3 %v3485_v13  ;;  %2177 = vmatpush.bf16.msrb.mxu0 %v3493_v1  ;;  %v1574_v13 = vor.u32 %v1573_v53, %v1496_v25  ;;  %v1508_v36 = vor.u32 %v1506_v3, %v1505_v19 }
 0x2ae   : > { %1917 = vmatpush.bf16.msrb.mxu2 %v3476_v38  ;;  %1803 = vmatpush.bf16.msrb.mxu1 %v3460_v39  ;;  %v5912_v2 = vsel %vm5814_vm4, %v1574_v13, 0  ;;  %v5916_v1 = vsel %vm5804_vm9, 0, %v1508_v36  ;;  %v3502_v38 = vld [vmem:[%s6215_s4 + $0x150] sm:$0xff]  ;;  %v1510_v39 = vshrl.u32 %v5744_v56, 16 }
 0x2b0   : > { %2047 = vmatpush.bf16.msrb.mxu3 %v3484_v34  ;;  %2178 = vmatpush.bf16.msrb.mxu0 %v3492_v60  ;;  %v1512_v49 = vrot.slane %v1510_v39, 7 }
 0x2b1   : > { %1804 = vmatmul.bf16.vlgmr.msrb.gmra.mxu1 %v1557_v52  ;;  %1918 = vmatmul.bf16.vlgmr.msrb.gmra.mxu2 %v1600_v55  ;;  %v3517_v52 = vld [vmem:[%s6215_s4 + $0x1c8] sm:$0xff]  ;;  %v1517_v55 = vshrl.u32 %v5683_v63, 16 }
 0x2b2   : > { %2431 = vmatpush.bf16.msra.mxu2 %v3515_v16  ;;  %2301 = vmatpush.bf16.msra.mxu1 %v3507_v45  ;;  %v3526_v16 = vld [vmem:[%s6215_s4 + $0x210] sm:$0xff]  ;;  %v1575_v45 = vrot.slane %v1506_v3, 1  ;;  %v1515_v60 = vor.u32 %v1513_v32, %v1512_v49 }
 0x2b3   : > { %2048 = vmatmul.bf16.vlgmr.msrb.gmra.mxu3 %v1558_v15  ;;  %2179 = vmatmul.bf16.vlgmr.msrb.gmra.mxu0 %v5750_v29  ;;  %v1572_v29 = vor.u32 %v1571_v12, %v1489_v37 }
 0x2b4   : > { %2562 = vmatpush.bf16.msra.mxu3 %v3523_v5  ;;  %2692 = vmatpush.bf16.msra.mxu0 %v3531_v42  ;;  %v1576_v34 = vor.u32 %v1575_v45, %v1503_v57  ;;  %v5942_v5 = vsel %vm5804_vm9, 0, %v1515_v60  ;;  %v3509_v42 = vld [vmem:[%s6215_s4 + $0x188] sm:$0xff] }
 0x2b5   : > { %v5886_v4 = vsel %vm5814_vm4, %v1572_v29, 0  ;;  %v5999_v29 = vld [vmem:[%s5674_s21 + $0x40] sm:$0xff] }
 0x2b6   : > { %2432 = vmatpush.bf16.msra.mxu2 %v3514_v35  ;;  %2302 = vmatpush.bf16.msra.mxu1 %v3506_v47  ;;  %v5938_v51 = vsel %vm5814_vm4, %v1576_v34, 0  ;;  %v1577_v35 = vrot.slane %v1513_v32, 1  ;;  %v1519_v47 = vrot.slane %v1517_v55, 7  ;;  %v1531_v58 = vshrl.u32 %v5999_v29, 16 }
 0x2b7   : > { %v1534_v19 = vshll.u32 %v5999_v29, 16 }
 0x2b8   : > { %2563 = vmatpush.bf16.msra.mxu3 %v3522_v31  ;;  %2693 = vmatpush.bf16.msra.mxu0 %v3530_v22  ;;  %v1520_v31 = vshll.u32 %v5683_v63, 16  ;;  %v3525_v22 = vld [vmem:[%s6215_s4 + $0x208] sm:$0xff]  ;;  %v1578_v37 = vor.u32 %v1577_v35, %v1510_v39  ;;  %v1533_v53 = vrot.slane %v1531_v58, 7 }
 0x2ba   : > { %2433 = vmatpush.bf16.msra.mxu2 %v3513_v21  ;;  %2303 = vmatpush.bf16.msra.mxu1 %v3505_v7  ;;  %v1522_v21 = vor.u32 %v1520_v31, %v1519_v47  ;;  %v5964_v7 = vsel %vm5814_vm4, %v1578_v37, 0  ;;  %v1579_v8 = vrot.slane %v1520_v31, 1  ;;  %v1536_v13 = vor.u32 %v1534_v19, %v1533_v53 }
 0x2bc   : > { %2564 = vmatpush.bf16.msra.mxu3 %v3521_v40  ;;  %2694 = vmatpush.bf16.msra.mxu0 %v3529_v48  ;;  %v5968_v40 = vsel %vm5804_vm9, 0, %v1522_v21  ;;  %v3508_v48 = vld [vmem:[%s6215_s4 + $0x180] sm:$0xff] }
 0x2be   : > { %2434 = vmatpush.bf16.msra.mxu2 %v3512_v20  ;;  %2304 = vmatpush.bf16.msra.mxu1 %v3504_v10  ;;  %v1527_v20 = vshll.u32 %v5747_v27, 16  ;;  %v1580_v10 = vor.u32 %v1579_v8, %v1517_v55 }
 0x2c0   : > { %2565 = vmatpush.bf16.msra.mxu3 %v3520_v44  ;;  %2695 = vmatpush.bf16.msra.mxu0 %v3528_v30  ;;  %v3524_v44 = vld [vmem:[%s6215_s4 + $0x200] sm:$0xff]  ;;  %v1529_v25 = vor.u32 %v1527_v20, %v1526_v24  ;;  %v5992_v12 = vsel %vm5814_vm4, %v1580_v10, 0  ;;  %v1581_v57 = vrot.slane %v1527_v20, 1 }
 0x2c1   : > { %1809 = vmatmul.bf16.gmra.mxu1 %v1558_v15  ;;  %1923 = vmatmul.bf16.gmra.mxu2 %v5861_v11  ;;  %v3501_v15 = vld [vmem:[%s6215_s4 + $0x148] sm:$0xff] }
 0x2c2   : > { %2435 = vmatpush.bf16.msra.mxu2 %v3511_v26  ;;  %2305 = vmatpush.bf16.msra.mxu1 %v3503_v41  ;;  %v5996_v9 = vsel %vm5804_vm9, 0, %v1529_v25  ;;  %v1582_v3 = vor.u32 %v1581_v57, %v1524_v54 }
 0x2c3   : > { %2053 = vmatmul.bf16.gmra.mxu3 %v5865_v61  ;;  %2184 = vmatmul.bf16.gmra.mxu0 %v5677_v6 }
 0x2c4   : > { %2566 = vmatpush.bf16.msra.mxu3 %v3519_v59  ;;  %2696 = vmatpush.bf16.msra.mxu0 %v3527_v18 }
 0x2c6   : > { %2436 = vmatpush.bf16.msra.mxu2 %v3510_v43  ;;  %2306 = vmatpush.bf16.msra.mxu1 %v3502_v38  ;;  %v6025_v38 = vsel %vm5814_vm4, %v1582_v3, 0 }
 0x2c8   : > { %2567 = vmatpush.bf16.msra.mxu3 %v3518_v28  ;;  %2697 = vmatpush.bf16.msra.mxu0 %v3526_v16  ;;  %v6029_v16 = vsel %vm5804_vm9, 0, %v1536_v13 }
 0x2ca   : > { %2437 = vmatpush.bf16.msra.mxu2 %v3509_v42  ;;  %2307 = vmatpush.bf16.msra.mxu1 %v3501_v15 }
 0x2cc   : > { %2568 = vmatpush.bf16.msra.mxu3 %v3517_v52  ;;  %2698 = vmatpush.bf16.msra.mxu0 %v3525_v22 }
 0x2ce   : > { %2438 = vmatpush.bf16.msra.mxu2 %v3508_v48  ;;  %2308 = vmatpush.bf16.msra.mxu1 %v3500_v23 }
 0x2d0   : > { %2569 = vmatpush.bf16.msra.mxu3 %v3516_v33  ;;  %2699 = vmatpush.bf16.msra.mxu0 %v3524_v44 }
 0x2d1   : > { %1814 = vmatmul.bf16.gmra.mxu1 %v5865_v61  ;;  %1928 = vmatmul.bf16.gmra.mxu2 %v5886_v4 }
 0x2d3   : > { %2058 = vmatmul.bf16.gmra.mxu3 %v5890_v17  ;;  %2189 = vmatmul.bf16.gmra.mxu0 %v5741_v46 }
 0x2e1   : > { %1819 = vmatmul.bf16.gmra.mxu1 %v5890_v17  ;;  %1933 = vmatmul.bf16.gmra.mxu2 %v5912_v2 }
 0x2e3   : > { %2063 = vmatmul.bf16.gmra.mxu3 %v5916_v1  ;;  %2194 = vmatmul.bf16.gmra.mxu0 %v5680_v50 }
 0x2f1   : > { %1824 = vmatmul.bf16.gmra.mxu1 %v5916_v1  ;;  %1938 = vmatmul.bf16.gmra.mxu2 %v5938_v51 }
 0x2f3   : > { %2068 = vmatmul.bf16.gmra.mxu3 %v5942_v5  ;;  %2199 = vmatmul.bf16.gmra.mxu0 %v5744_v56 }
 0x301   : > { %1829 = vmatmul.bf16.gmra.mxu1 %v5942_v5  ;;  %1943 = vmatmul.bf16.gmra.mxu2 %v5964_v7 }
 0x303   : > { %2073 = vmatmul.bf16.gmra.mxu3 %v5968_v40  ;;  %2204 = vmatmul.bf16.gmra.mxu0 %v5683_v63 }
 0x30e   : > { %v5988_v30 = vpop.f32.mrf.mxu1 }
 0x310   : > { %v1708_v62 = vpop.f32.mrf.mxu0 }
 0x311   : > { %1834 = vmatmul.bf16.gmra.mxu1 %v5968_v40  ;;  %1948 = vmatmul.bf16.gmra.mxu2 %v5992_v12 }
 0x313   : > { %2078 = vmatmul.bf16.gmra.mxu3 %v5996_v9  ;;  %2209 = vmatmul.bf16.gmra.mxu0 %v5747_v27 }
 0x314   : > { %v6006_v26 = vpop.f32.mrf.mxu2 }
 0x316   : > { %v6008_v59 = vpop.f32.mrf.mxu3  ;;  %v6010_v41 = vpop.f32.mrf.mxu1 }
 0x318   : > { %v1710_v18 = vpop.f32.mrf.mxu0 }
 0x31c   : > { %v6017_v36 = vpop.f32.mrf.mxu2 }
 0x31e   : > { %v6019_v43 = vpop.f32.mrf.mxu3  ;;  %v6021_v28 = vpop.f32.mrf.mxu1 }
 0x320   : > { %v1713_v39 = vpop.f32.mrf.mxu0 }
 0x321   : > { %1839 = vmatmul.bf16.gmra.mxu1 %v5996_v9  ;;  %1953 = vmatmul.bf16.gmra.mxu2 %v6025_v38 }
 0x323   : > { %2083 = vmatmul.bf16.gmra.mxu3 %v6029_v16  ;;  %2214 = vmatmul.bf16.gmra.mxu0 %v5999_v29 }
 0x324   : > { %v6035_v45 = vpop.f32.mrf.mxu2 }
 0x326   : > { %v6037_v49 = vpop.f32.mrf.mxu3  ;;  %v6039_v32 = vpop.f32.mrf.mxu1 }
 0x328   : > { %v1715_v34 = vpop.f32.mrf.mxu0 }
 0x32c   : > { %v6041_v60 = vpop.f32.mrf.mxu2 }
 0x32e   : > { %v6043_v42 = vpop.f32.mrf.mxu3  ;;  %v1805_v52 = vpop.f32.mrf.mxu1 }
 0x32f   : > { %v1806_v55 = vadd.f32 %v1805_v52, %v1708_v62 }
 0x330   : > { %v2180_v15 = vpop.f32.mrf.mxu0 }
 0x331   : > { %2309 = vmatmul.bf16.vlgmr.msra.gmra.mxu1 %v5861_v11  ;;  %2439 = vmatmul.bf16.vlgmr.msra.gmra.mxu2 %v5865_v61 }
 0x333   : > { %2570 = vmatmul.bf16.vlgmr.msra.gmra.mxu3 %v5677_v6  ;;  %2700 = vmatmul.bf16.vlgmr.msra.gmra.mxu0 %v5886_v4 }
 0x334   : > { %v1919_v35 = vpop.f32.mrf.mxu2 }
 0x335   : > { %v1959_v47 = vadd.f32 %v1919_v35, %v1806_v55 }
 0x336   : > { %v2049_v31 = vpop.f32.mrf.mxu3  ;;  %v1807_v22 = vpop.f32.mrf.mxu1 }
 0x337   : > { %v2089_v37 = vadd.f32 %v2049_v31, %v1959_v47  ;;  %v1808_v21 = vadd.f32 %v1807_v22, %v1710_v18 }
 0x338   : > { %v2182_v48 = vpop.f32.mrf.mxu0 }
 0x339   : > { %v6049_v33 = vadd.f32 %v2180_v15, %v2089_v37 }
 0x33c   : > { %v1921_v54 = vpop.f32.mrf.mxu2 }
 0x33d   : > { %v1960_v23 = vadd.f32 %v1921_v54, %v1808_v21 }
 0x33e   : > { %v2051_v8 = vpop.f32.mrf.mxu3  ;;  %v1810_v24 = vpop.f32.mrf.mxu1 }
 0x33f   : > { %v2090_v11 = vadd.f32 %v2051_v8, %v1960_v23  ;;  %v1811_v20 = vadd.f32 %v1810_v24, %v1713_v39 }
 0x340   : > { %v2185_v61 = vpop.f32.mrf.mxu0 }
 0x341   : > { %2314 = vmatmul.bf16.gmra.mxu1 %v5886_v4  ;;  %2444 = vmatmul.bf16.gmra.mxu2 %v5890_v17  ;;  %v6053_v6 = vadd.f32 %v2182_v48, %v2090_v11 }
 0x343   : > { %2575 = vmatmul.bf16.gmra.mxu3 %v5741_v46  ;;  %2705 = vmatmul.bf16.gmra.mxu0 %v5912_v2 }
 0x344   : > { %v1924_v44 = vpop.f32.mrf.mxu2 }
 0x345   : > { %v1961_v10 = vadd.f32 %v1924_v44, %v1811_v20 }
 0x346   : > { %v2054_v25 = vpop.f32.mrf.mxu3  ;;  %v1812_v62 = vpop.f32.mrf.mxu1 }
 0x347   : > { %v2091_v57 = vadd.f32 %v2054_v25, %v1961_v10  ;;  %v1813_v18 = vadd.f32 %v1812_v62, %v1715_v34 }
 0x348   : > { %v2187_v53 = vpop.f32.mrf.mxu0 }
 0x349   : > { %v6057_v3 = vadd.f32 %v2185_v61, %v2091_v57 }
 0x34c   : > { %v1926_v13 = vpop.f32.mrf.mxu2 }
 0x34d   : > { %v1962_v39 = vadd.f32 %v1926_v13, %v1813_v18 }
 0x34e   : > { %v2056_v4 = vpop.f32.mrf.mxu3  ;;  %v1815_v52 = vpop.f32.mrf.mxu1 }
 0x34f   : > { %v2092_v17 = vadd.f32 %v2056_v4, %v1962_v39  ;;  %v1816_v55 = vadd.f32 %v1815_v52, %v5988_v30 }
 0x350   : > { %v2190_v15 = vpop.f32.mrf.mxu0 }
 0x351   : > { %2319 = vmatmul.bf16.gmra.mxu1 %v5912_v2  ;;  %2449 = vmatmul.bf16.gmra.mxu2 %v5916_v1  ;;  %v6062_v46 = vadd.f32 %v2187_v53, %v2092_v17 }
 0x353   : > { %2580 = vmatmul.bf16.gmra.mxu3 %v5680_v50  ;;  %2710 = vmatmul.bf16.gmra.mxu0 %v5938_v51 }
 0x354   : > { %v1929_v34 = vpop.f32.mrf.mxu2 }
 0x355   : > { %v1963_v35 = vadd.f32 %v1929_v34, %v1816_v55 }
 0x356   : > { %v2059_v47 = vpop.f32.mrf.mxu3  ;;  %v1817_v31 = vpop.f32.mrf.mxu1 }
 0x357   : > { %v2093_v22 = vadd.f32 %v2059_v47, %v1963_v35  ;;  %v1818_v37 = vadd.f32 %v1817_v31, %v6010_v41 }
 0x358   : > { %v2192_v21 = vpop.f32.mrf.mxu0 }
 0x359   : > { %v6067_v30 = vadd.f32 %v2190_v15, %v2093_v22 }
 0x35c   : > { %v1931_v48 = vpop.f32.mrf.mxu2 }
 0x35d   : > { %v1964_v2 = vadd.f32 %v1931_v48, %v1818_v37 }
 0x35e   : > { %v2061_v54 = vpop.f32.mrf.mxu3  ;;  %v1820_v1 = vpop.f32.mrf.mxu1 }
 0x35f   : > { %v2094_v23 = vadd.f32 %v2061_v54, %v1964_v2  ;;  %v1821_v8 = vadd.f32 %v1820_v1, %v6021_v28 }
 0x360   : > { %v2195_v50 = vpop.f32.mrf.mxu0 }
 0x361   : > { %2324 = vmatmul.bf16.gmra.mxu1 %v5938_v51  ;;  %2454 = vmatmul.bf16.gmra.mxu2 %v5942_v5  ;;  %v6072_v24 = vadd.f32 %v2192_v21, %v2094_v23 }
 0x363   : > { %2585 = vmatmul.bf16.gmra.mxu3 %v5744_v56  ;;  %2715 = vmatmul.bf16.gmra.mxu0 %v5964_v7 }
 0x364   : > { %v1934_v41 = vpop.f32.mrf.mxu2 }
 0x365   : > { %v1965_v11 = vadd.f32 %v1934_v41, %v1821_v8  ;;  %v3459_v41 = vld [vmem:[%s5674_s21 + $0x48] sm:$0xff] }
 0x366   : > { %v2064_v20 = vpop.f32.mrf.mxu3  ;;  %v1822_v61 = vpop.f32.mrf.mxu1 }
 0x367   : > { %v2095_v44 = vadd.f32 %v2064_v20, %v1965_v11  ;;  %v1823_v10 = vadd.f32 %v1822_v61, %v6039_v32 }
 0x368   : > { %v2197_v25 = vpop.f32.mrf.mxu0 }
 0x369   : > { %v6077_v28 = vadd.f32 %v2195_v50, %v2095_v44  ;;  %v1541_v44 = vshll.u32 %v3459_v41, 16 }
 0x36c   : > { %v1936_v62 = vpop.f32.mrf.mxu2 }
 0x36d   : > { %v1966_v51 = vadd.f32 %v1936_v62, %v1823_v10 }
 0x36e   : > { %v2066_v57 = vpop.f32.mrf.mxu3  ;;  %v1825_v5 = vpop.f32.mrf.mxu1 }
 0x36f   : > { %v2096_v18 = vadd.f32 %v2066_v57, %v1966_v51  ;;  %v1826_v32 = vadd.f32 %v1825_v5, %v6006_v26 }
 0x370   : > { %v2200_v53 = vpop.f32.mrf.mxu0 }
 0x371   : > { %2329 = vmatmul.bf16.gmra.mxu1 %v5964_v7  ;;  %2459 = vmatmul.bf16.gmra.mxu2 %v5968_v40  ;;  %v6081_v56 = vadd.f32 %v2197_v25, %v2096_v18 }
 0x373   : > { %2590 = vmatmul.bf16.gmra.mxu3 %v5683_v63  ;;  %2720 = vmatmul.bf16.gmra.mxu0 %v5992_v12 }
 0x374   : > { %v1939_v13 = vpop.f32.mrf.mxu2 }
 0x375   : > { %v1967_v39 = vadd.f32 %v1939_v13, %v1826_v32 }
 0x376   : > { %v2069_v4 = vpop.f32.mrf.mxu3  ;;  %v1827_v52 = vpop.f32.mrf.mxu1 }
 0x377   : > { %v2097_v17 = vadd.f32 %v2069_v4, %v1967_v39  ;;  %v1828_v7 = vadd.f32 %v1827_v52, %v6017_v36 }
 0x378   : > { %v2202_v55 = vpop.f32.mrf.mxu0 }
 0x379   : > { %v6086_v15 = vadd.f32 %v2200_v53, %v2097_v17  ;;  %v1585_v53 = vrot.slane %v1541_v44, 1 }
 0x37c   : > { %v1941_v34 = vpop.f32.mrf.mxu2 }
 0x37d   : > { %v1968_v40 = vadd.f32 %v1941_v34, %v1828_v7 }
 0x37e   : > { %v2071_v35 = vpop.f32.mrf.mxu3  ;;  %v1830_v47 = vpop.f32.mrf.mxu1 }
 0x37f   : > { %v2098_v31 = vadd.f32 %v2071_v35, %v1968_v40  ;;  %v1831_v22 = vadd.f32 %v1830_v47, %v6035_v45 }
 0x380   : > { %v2205_v63 = vpop.f32.mrf.mxu0 }
 0x381   : > { %2334 = vmatmul.bf16.gmra.mxu1 %v5992_v12  ;;  %2464 = vmatmul.bf16.gmra.mxu2 %v5996_v9  ;;  %v6091_v26 = vadd.f32 %v2202_v55, %v2098_v31  ;;  %v1583_v12 = vrot.slane %v1534_v19, 1 }
 0x383   : > { %2595 = vmatmul.bf16.gmra.mxu3 %v5747_v27  ;;  %2725 = vmatmul.bf16.gmra.mxu0 %v6025_v38  ;;  %v1584_v27 = vor.u32 %v1583_v12, %v1531_v58  ;;  %v1538_v58 = vshrl.u32 %v3459_v41, 16 }
 0x384   : > { %v1944_v36 = vpop.f32.mrf.mxu2 }
 0x385   : > { %v1969_v37 = vadd.f32 %v1944_v36, %v1831_v22  ;;  %v1608_v61 = vsel %vm5814_vm4, %v1584_v27, 0  ;;  %v1540_v57 = vrot.slane %v1538_v58, 7  ;;  %v1586_v13 = vor.u32 %v1585_v53, %v1538_v58 }
 0x386   : > { %v2074_v21 = vpop.f32.mrf.mxu3  ;;  %v1832_v48 = vpop.f32.mrf.mxu1 }
 0x387   : > { %v2099_v2 = vadd.f32 %v2074_v21, %v1969_v37  ;;  %v1833_v9 = vadd.f32 %v1832_v48, %v6041_v60  ;;  %v1609_v7 = vsel %vm5814_vm4, %v1586_v13, 0 }
 0x388   : > { %v2207_v54 = vpop.f32.mrf.mxu0 }
 0x389   : > { %v6098_v1 = vadd.f32 %v2205_v63, %v2099_v2 }
 0x38c   : > { %v1946_v23 = vpop.f32.mrf.mxu2 }
 0x38d   : > { %v1970_v8 = vadd.f32 %v1946_v23, %v1833_v9 }
 0x38e   : > { %v2076_v50 = vpop.f32.mrf.mxu3  ;;  %v1835_v45 = vpop.f32.mrf.mxu1 }
 0x38f   : > { %v2100_v11 = vadd.f32 %v2076_v50, %v1970_v8  ;;  %v1836_v60 = vadd.f32 %v1835_v45, %v6008_v59 }
 0x390   : > { %v2210_v20 = vpop.f32.mrf.mxu0 }
 0x391   : > { %2339 = vmatmul.bf16.gmra.mxu1 %v6025_v38  ;;  %2469 = vmatmul.bf16.gmra.mxu2 %v6029_v16  ;;  %v6108_v19 = vadd.f32 %v2207_v54, %v2100_v11  ;;  %v1543_v16 = vor.u32 %v1541_v44, %v1540_v57  ;;  %v2777_v11 = vld [vmem:[%s4024_s19] sm:$0xff]  ;;  %v2778_v57 = vld [vmem:[%s4024_s19 + $0x8] sm:$0xff] }
 0x393   : > { %2600 = vmatmul.bf16.gmra.mxu3 %v5999_v29  ;;  %2730 = vmatmul.bf16.gmra.mxu0 %v1608_v61  ;;  %v1566_v59 = vsel %vm5804_vm9, 0, %v1543_v16 }
 0x394   : > { %v1949_v10 = vpop.f32.mrf.mxu2 }
 0x395   : > { %v1971_v25 = vadd.f32 %v1949_v10, %v1836_v60 }
 0x396   : > { %v2079_v62 = vpop.f32.mrf.mxu3  ;;  %v1837_v51 = vpop.f32.mrf.mxu1 }
 0x397   : > { %v2101_v5 = vadd.f32 %v2079_v62, %v1971_v25  ;;  %v1838_v32 = vadd.f32 %v1837_v51, %v6019_v43 }
 0x398   : > { %v2212_v18 = vpop.f32.mrf.mxu0 }
 0x399   : > { %v6112_v38 = vadd.f32 %v2210_v20, %v2101_v5 }
 0x39c   : > { %v1951_v29 = vpop.f32.mrf.mxu2 }
 0x39d   : > { %v1972_v39 = vadd.f32 %v1951_v29, %v1838_v32 }
 0x39e   : > { %v2081_v4 = vpop.f32.mrf.mxu3  ;;  %v1840_v52 = vpop.f32.mrf.mxu1 }
 0x39f   : > { %v2102_v17 = vadd.f32 %v2081_v4, %v1972_v39  ;;  %v1841_v43 = vadd.f32 %v1840_v52, %v6037_v49  ;;  %v2779_v52 = vld [vmem:[%s4024_s19 + $0x10] sm:$0xff] }
 0x3a0   : > { %v2215_v55 = vpop.f32.mrf.mxu0 }
 0x3a1   : > { %2344 = vmatmul.bf16.gmra.mxu1 %v1608_v61  ;;  %2474 = vmatmul.bf16.gmra.mxu2 %v1566_v59  ;;  %v6119_v34 = vadd.f32 %v2212_v18, %v2102_v17 }
 0x3a3   : > { %2605 = vmatmul.bf16.gmra.mxu3 %v3459_v41  ;;  %2735 = vmatmul.bf16.gmra.mxu0 %v1609_v7 }
 0x3a4   : > { %v1954_v40 = vpop.f32.mrf.mxu2 }
 0x3a5   : > { %v1973_v35 = vadd.f32 %v1954_v40, %v1841_v43 }
 0x3a6   : > { %v2084_v47 = vpop.f32.mrf.mxu3  ;;  %v1842_v31 = vpop.f32.mrf.mxu1 }
 0x3a7   : > { %v2103_v63 = vadd.f32 %v2084_v47, %v1973_v35  ;;  %v1843_v36 = vadd.f32 %v1842_v31, %v6043_v42  ;;  %v6131_v42 = vld [vmem:[%s6216_s5] ss:$0 sm:$0xff] }
 0x3a8   : > { %v2217_v14 = vpop.f32.mrf.mxu0 }
 0x3a9   : > { %v6122_v22 = vadd.f32 %v2215_v55, %v2103_v63  ;;  %v2780_v63 = vld [vmem:[%s4024_s19 + $0x18] sm:$0xff] }
 0x3ac   : > { %v1956_v0 = vpop.f32.mrf.mxu2 }
 0x3ad   : > { %v1974_v37 = vadd.f32 %v1956_v0, %v1843_v36 }
 0x3ae   : > { %v2086_v21 = vpop.f32.mrf.mxu3  ;;  %v2310_v48 = vpop.f32.mrf.mxu1 }
 0x3af   : > { %v2104_v2 = vadd.f32 %v2086_v21, %v1974_v37  ;;  %v2350_v49 = vadd.f32 %v2310_v48, %v6049_v33 }
 0x3b0   : > { %v2701_v54 = vpop.f32.mrf.mxu0 }
 0x3b1   : > { %v6125_v12 = vadd.f32 %v2217_v14, %v2104_v2 }
 0x3b4   : > { %v2440_v9 = vpop.f32.mrf.mxu2 }
 0x3b5   : > { %v2480_v27 = vadd.f32 %v2440_v9, %v2350_v49  ;;  %v2781_v9 = vld [vmem:[%s4024_s19 + $0x20] sm:$0xff] }
 0x3b6   : > { %v2571_v23 = vpop.f32.mrf.mxu3  ;;  %v2312_v8 = vpop.f32.mrf.mxu1 }
 0x3b7   : > { %v2611_v50 = vadd.f32 %v2571_v23, %v2480_v27  ;;  %v2351_v61 = vadd.f32 %v2312_v8, %v6053_v6 }
 0x3b8   : > { %v2703_v45 = vpop.f32.mrf.mxu0 }
 0x3b9   : > { %v2741_v41 = vadd.f32 %v2701_v54, %v2611_v50 }
 0x3bb   : > { %v2761_v20 = vadd.f32 %v6131_v42, %v2741_v41 }
 0x3bc   : > { %v2442_v33 = vpop.f32.mrf.mxu2 }
 0x3bd   : > { %v2793_v58 = vadd.f32 %v2777_v11, %v2761_v20  ;;  %v2481_v60 = vadd.f32 %v2442_v33, %v2351_v61  ;;  %v2782_v33 = vld [vmem:[%s4024_s19 + $0x28] sm:$0xff] }
 0x3be   : > { %v2573_v44 = vpop.f32.mrf.mxu3  ;;  %v2315_v10 = vpop.f32.mrf.mxu1 }
 0x3bf   : > { %2809 = vst [vmem:[%s4029_s22] sm:$0xff] %v2793_v58  ;;  %v2612_v25 = vadd.f32 %v2573_v44, %v2481_v60  ;;  %v2352_v18 = vadd.f32 %v2315_v10, %v6057_v3 }
 0x3c0   : > { %v2706_v62 = vpop.f32.mrf.mxu0 }
 0x3c1   : > { %v2742_v51 = vadd.f32 %v2703_v45, %v2612_v25 }
 0x3c3   : > { %v2762_v5 = vadd.f32 %v6131_v42, %v2742_v51 }
 0x3c4   : > { %v2445_v53 = vpop.f32.mrf.mxu2 }
 0x3c5   : > { %v2794_v16 = vadd.f32 %v2778_v57, %v2762_v5  ;;  %v2482_v6 = vadd.f32 %v2445_v53, %v2352_v18  ;;  %v2783_v18 = vld [vmem:[%s4024_s19 + $0x30] sm:$0xff] }
 0x3c6   : > { %v2576_v32 = vpop.f32.mrf.mxu3  ;;  %v2317_v13 = vpop.f32.mrf.mxu1 }
 0x3c7   : > { %2810 = vst [vmem:[%s4029_s22 + $0x8] sm:$0xff] %v2794_v16  ;;  %v2613_v29 = vadd.f32 %v2576_v32, %v2482_v6  ;;  %v2353_v17 = vadd.f32 %v2317_v13, %v6062_v46 }
 0x3c8   : > { %v2708_v39 = vpop.f32.mrf.mxu0 }
 0x3c9   : > { %v2743_v4 = vadd.f32 %v2706_v62, %v2613_v29 }
 0x3cb   : > { %v2763_v59 = vadd.f32 %v6131_v42, %v2743_v4 }
 0x3cc   : > { %v2447_v55 = vpop.f32.mrf.mxu2 }
 0x3cd   : > { %v2795_v7 = vadd.f32 %v2779_v52, %v2763_v59  ;;  %v2483_v3 = vadd.f32 %v2447_v55, %v2353_v17  ;;  %v2784_v59 = vld [vmem:[%s4024_s19 + $0x38] sm:$0xff] }
 0x3ce   : > { %v2578_v43 = vpop.f32.mrf.mxu3  ;;  %v2320_v40 = vpop.f32.mrf.mxu1 }
 0x3cf   : > { %2811 = vst [vmem:[%s4029_s22 + $0x10] sm:$0xff] %v2795_v7  ;;  %v2614_v35 = vadd.f32 %v2578_v43, %v2483_v3  ;;  %v2354_v36 = vadd.f32 %v2320_v40, %v6067_v30 }
 0x3d0   : > { %v2711_v47 = vpop.f32.mrf.mxu0 }
 0x3d1   : > { %v2744_v31 = vadd.f32 %v2708_v39, %v2614_v35 }
 0x3d3   : > { %v2764_v14 = vadd.f32 %v6131_v42, %v2744_v31 }
 0x3d4   : > { %v2450_v0 = vpop.f32.mrf.mxu2 }
 0x3d5   : > { %v2796_v37 = vadd.f32 %v2780_v63, %v2764_v14  ;;  %v2484_v46 = vadd.f32 %v2450_v0, %v2354_v36  ;;  %v2785_v63 = vld [vmem:[%s4024_s19 + $0x40] sm:$0xff] }
 0x3d6   : > { %v2581_v21 = vpop.f32.mrf.mxu3  ;;  %v2322_v48 = vpop.f32.mrf.mxu1 }
 0x3d7   : > { %2812 = vst [vmem:[%s4029_s22 + $0x18] sm:$0xff] %v2796_v37  ;;  %v2615_v2 = vadd.f32 %v2581_v21, %v2484_v46  ;;  %v2355_v23 = vadd.f32 %v2322_v48, %v6072_v24 }
 0x3d8   : > { %v2713_v54 = vpop.f32.mrf.mxu0 }
 0x3d9   : > { %v2745_v49 = vadd.f32 %v2711_v47, %v2615_v2 }
 0x3db   : > { %v2765_v27 = vadd.f32 %v6131_v42, %v2745_v49  ;;  %v2786_v49 = vld [vmem:[%s4024_s19 + $0x48] sm:$0xff] }
 0x3dc   : > { %v2452_v8 = vpop.f32.mrf.mxu2 }
 0x3dd   : > { %v2797_v50 = vadd.f32 %v2781_v9, %v2765_v27  ;;  %v2485_v30 = vadd.f32 %v2452_v8, %v2355_v23 }
 0x3de   : > { %v2583_v45 = vpop.f32.mrf.mxu3  ;;  %v2325_v41 = vpop.f32.mrf.mxu1 }
 0x3df   : > { %2813 = vst [vmem:[%s4029_s22 + $0x20] sm:$0xff] %v2797_v50  ;;  %v2616_v11 = vadd.f32 %v2583_v45, %v2485_v30  ;;  %v2356_v60 = vadd.f32 %v2325_v41, %v6077_v28 }
 0x3e0   : > { %v2716_v20 = vpop.f32.mrf.mxu0 }
 0x3e1   : > { %v2746_v61 = vadd.f32 %v2713_v54, %v2616_v11 }
 0x3e3   : > { %v2766_v58 = vadd.f32 %v6131_v42, %v2746_v61 }
 0x3e4   : > { %v2455_v44 = vpop.f32.mrf.mxu2 }
 0x3e5   : > { %v2798_v10 = vadd.f32 %v2782_v33, %v2766_v58  ;;  %v2486_v24 = vadd.f32 %v2455_v44, %v2356_v60 }
 0x3e6   : > { %v2586_v25 = vpop.f32.mrf.mxu3  ;;  %v2327_v62 = vpop.f32.mrf.mxu1 }
 0x3e7   : > { %2814 = vst [vmem:[%s4029_s22 + $0x28] sm:$0xff] %v2798_v10  ;;  %v2617_v51 = vadd.f32 %v2586_v25, %v2486_v24  ;;  %v2357_v16 = vadd.f32 %v2327_v62, %v6081_v56  ;;  %v2788_v62 = vld [vmem:[%s4024_s19 + $0x58] sm:$0xff] }
 0x3e8   : > { %v2718_v57 = vpop.f32.mrf.mxu0 }
 0x3e9   : > { %v2747_v5 = vadd.f32 %v2716_v20, %v2617_v51  ;;  %v2787_v20 = vld [vmem:[%s4024_s19 + $0x50] sm:$0xff] }
 0x3eb   : > { %v2767_v53 = vadd.f32 %v6131_v42, %v2747_v5 }
 0x3ec   : > { %v2457_v6 = vpop.f32.mrf.mxu2 }
 0x3ed   : > { %v2799_v32 = vadd.f32 %v2783_v18, %v2767_v53  ;;  %v2487_v28 = vadd.f32 %v2457_v6, %v2357_v16 }
 0x3ee   : > { %v2588_v13 = vpop.f32.mrf.mxu3  ;;  %v2330_v29 = vpop.f32.mrf.mxu1 }
 0x3ef   : > { %2815 = vst [vmem:[%s4029_s22 + $0x30] sm:$0xff] %v2799_v32  ;;  %v2618_v39 = vadd.f32 %v2588_v13, %v2487_v28  ;;  %v2358_v55 = vadd.f32 %v2330_v29, %v6086_v15  ;;  %v2789_v13 = vld [vmem:[%s4024_s19 + $0x60] sm:$0xff] }
 0x3f0   : > { %v2721_v4 = vpop.f32.mrf.mxu0 }
 0x3f1   : > { %v2748_v52 = vadd.f32 %v2718_v57, %v2618_v39 }
 0x3f3   : > { %v2768_v17 = vadd.f32 %v6131_v42, %v2748_v52 }
 0x3f4   : > { %v2460_v7 = vpop.f32.mrf.mxu2 }
 0x3f5   : > { %v2800_v3 = vadd.f32 %v2784_v59, %v2768_v17  ;;  %v2488_v56 = vadd.f32 %v2460_v7, %v2358_v55 }
 0x3f6   : > { %v2591_v43 = vpop.f32.mrf.mxu3  ;;  %v2332_v40 = vpop.f32.mrf.mxu1 }
 0x3f7   : > { %2816 = vst [vmem:[%s4029_s22 + $0x38] sm:$0xff] %v2800_v3  ;;  %v2619_v35 = vadd.f32 %v2591_v43, %v2488_v56  ;;  %v2359_v36 = vadd.f32 %v2332_v40, %v6091_v26  ;;  %v2790_v56 = vld [vmem:[%s4024_s19 + $0x68] sm:$0xff] }
 0x3f8   : > { %v2723_v47 = vpop.f32.mrf.mxu0 }
 0x3f9   : > { %v2749_v31 = vadd.f32 %v2721_v4, %v2619_v35 }
 0x3fb   : > { %v2769_v14 = vadd.f32 %v6131_v42, %v2749_v31 }
 0x3fc   : > { %v2462_v0 = vpop.f32.mrf.mxu2 }
 0x3fd   : > { %v2801_v37 = vadd.f32 %v2785_v63, %v2769_v14  ;;  %v2489_v15 = vadd.f32 %v2462_v0, %v2359_v36 }
 0x3fe   : > { %v2593_v46 = vpop.f32.mrf.mxu3  ;;  %v2335_v21 = vpop.f32.mrf.mxu1 }
 0x3ff   : > { %2817 = vst [vmem:[%s4029_s22 + $0x40] sm:$0xff] %v2801_v37  ;;  %v2620_v48 = vadd.f32 %v2593_v46, %v2489_v15  ;;  %v2360_v27 = vadd.f32 %v2335_v21, %v6098_v1  ;;  %v2791_v37 = vld [vmem:[%s4024_s19 + $0x70] sm:$0xff] }
 0x400   : > { %v2726_v2 = vpop.f32.mrf.mxu0 }
 0x401   : > { %v2750_v54 = vadd.f32 %v2723_v47, %v2620_v48 }
 0x403   : > { %v2770_v9 = vadd.f32 %v6131_v42, %v2750_v54 }
 0x404   : > { %v2465_v23 = vpop.f32.mrf.mxu2 }
 0x405   : > { %v2802_v8 = vadd.f32 %v2786_v49, %v2770_v9  ;;  %v2490_v26 = vadd.f32 %v2465_v23, %v2360_v27  ;;  %v2792_v27 = vld [vmem:[%s4024_s19 + $0x78] sm:$0xff] }
 0x406   : > { %v2596_v50 = vpop.f32.mrf.mxu3  ;;  %v2337_v30 = vpop.f32.mrf.mxu1 }
 0x407   : > { %2818 = vst [vmem:[%s4029_s22 + $0x48] sm:$0xff] %v2802_v8  ;;  %v2621_v45 = vadd.f32 %v2596_v50, %v2490_v26  ;;  %v2361_v33 = vadd.f32 %v2337_v30, %v6108_v19 }
 0x408   : > { %v2728_v41 = vpop.f32.mrf.mxu0 }
 0x409   : > { %v2751_v11 = vadd.f32 %v2726_v2, %v2621_v45 }
 0x40b   : > { %v2771_v61 = vadd.f32 %v6131_v42, %v2751_v11 }
 0x40c   : > { %v2467_v58 = vpop.f32.mrf.mxu2 }
 0x40d   : > { %v2803_v60 = vadd.f32 %v2787_v20, %v2771_v61  ;;  %v2491_v1 = vadd.f32 %v2467_v58, %v2361_v33 }
 0x40e   : > { %v2598_v44 = vpop.f32.mrf.mxu3  ;;  %v2340_v10 = vpop.f32.mrf.mxu1 }
 0x40f   : > { %2819 = vst [vmem:[%s4029_s22 + $0x50] sm:$0xff] %v2803_v60  ;;  %v2622_v24 = vadd.f32 %v2598_v44, %v2491_v1  ;;  %v2362_v5 = vadd.f32 %v2340_v10, %v6112_v38 }
 0x410   : > { %v2731_v51 = vpop.f32.mrf.mxu0 }
 0x411   : > { %v2752_v25 = vadd.f32 %v2728_v41, %v2622_v24 }
 0x413   : > { %v2772_v57 = vadd.f32 %v6131_v42, %v2752_v25 }
 0x414   : > { %v2470_v18 = vpop.f32.mrf.mxu2 }
 0x415   : > { %v2804_v53 = vadd.f32 %v2788_v62, %v2772_v57  ;;  %v2492_v19 = vadd.f32 %v2470_v18, %v2362_v5 }
 0x416   : > { %v2601_v16 = vpop.f32.mrf.mxu3  ;;  %v2342_v6 = vpop.f32.mrf.mxu1 }
 0x417   : > { %2820 = vst [vmem:[%s4029_s22 + $0x58] sm:$0xff] %v2804_v53  ;;  %v2623_v32 = vadd.f32 %v2601_v16, %v2492_v19  ;;  %v2363_v39 = vadd.f32 %v2342_v6, %v6119_v34 }
 0x418   : > { %v2733_v4 = vpop.f32.mrf.mxu0 }
 0x419   : > { %v2753_v28 = vadd.f32 %v2731_v51, %v2623_v32 }
 0x41b   : > { %v2773_v29 = vadd.f32 %v6131_v42, %v2753_v28 }
 0x41c   : > { %v2472_v52 = vpop.f32.mrf.mxu2 }
 0x41d   : > { %v2805_v59 = vadd.f32 %v2789_v13, %v2773_v29  ;;  %v2493_v38 = vadd.f32 %v2472_v52, %v2363_v39 }
 0x41e   : > { %v2603_v17 = vpop.f32.mrf.mxu3  ;;  %v2345_v55 = vpop.f32.mrf.mxu1 }
 0x41f   : > { %2821 = vst [vmem:[%s4029_s22 + $0x60] sm:$0xff] %v2805_v59  ;;  %v2624_v7 = vadd.f32 %v2603_v17, %v2493_v38  ;;  %v2364_v40 = vadd.f32 %v2345_v55, %v6122_v22 }
 0x420   : > { %v2736_v63 = vpop.f32.mrf.mxu0 }
 0x421   : > { %v2754_v3 = vadd.f32 %v2733_v4, %v2624_v7 }
 0x423   : > { %v2774_v43 = vadd.f32 %v6131_v42, %v2754_v3 }
 0x424   : > { %v2475_v35 = vpop.f32.mrf.mxu2 }
 0x425   : > { %v2806_v47 = vadd.f32 %v2790_v56, %v2774_v43  ;;  %v2494_v34 = vadd.f32 %v2475_v35, %v2364_v40 }
 0x426   : > { %v2606_v31 = vpop.f32.mrf.mxu3  ;;  %v2347_v36 = vpop.f32.mrf.mxu1 }
 0x427   : > { %2822 = vst [vmem:[%s4029_s22 + $0x68] sm:$0xff] %v2806_v47  ;;  %v2625_v14 = vadd.f32 %v2606_v31, %v2494_v34  ;;  %v2365_v46 = vadd.f32 %v2347_v36, %v6125_v12 }
 0x428   : > { %v2738_v49 = vpop.f32.mrf.mxu0 }
 0x429   : > { %v2755_v0 = vadd.f32 %v2736_v63, %v2625_v14 }
 0x42b   : > { %v2775_v15 = vadd.f32 %v6131_v42, %v2755_v0 }
 0x42c   : > { %v2477_v21 = vpop.f32.mrf.mxu2 }
 0x42d   : > { %v2807_v48 = vadd.f32 %v2791_v37, %v2775_v15  ;;  %v2495_v22 = vadd.f32 %v2477_v21, %v2365_v46 }
 0x42e   : > { %v2608_v2 = vpop.f32.mrf.mxu3 }
 0x42f   : > { %2823 = vst [vmem:[%s4029_s22 + $0x70] sm:$0xff] %v2807_v48  ;;  %v2626_v54 = vadd.f32 %v2608_v2, %v2495_v22 }
 0x431   : > { %v2756_v9 = vadd.f32 %v2738_v49, %v2626_v54 }
 0x433   : > { %v2776_v23 = vadd.f32 %v6131_v42, %v2756_v9 }
 0x435   : > { %v2808_v8 = vadd.f32 %v2792_v27, %v2776_v23 }
 0x437   : > { %2824 = vst [vmem:[%s4029_s22 + $0x78] sm:$0xff] %v2808_v8 }
 0x438 PF: > { %s17_s28 = sadd.s32 1, %s3940_s28   ;;  %s6496_s24 = smov %s3932_s26 }
 0x439   : > { %p14_p8 = scmp.ge.s32.totalorder %s17_s28, 6   ;;  %s6497_s25 = smov %s3936_s27 }
 0x43a   : > { %s6498_s26 = smov %s6501_s29  ;;  %s6499_s27 = smov %s6505_s30 }
 0x43b   :  { %16 = sbr.rel (!%p14_p8) target bundleno = 3 (0x3), region = 96 }

// kernel: unet_mid_block2d.9
= control target key start
LH: loop header
LB: loop body
LE: loop exit
PB: predicated region body
PF: predicated region fallthrough
CT: control target
= control target key end

     0   :  { %13 = vsyncpa [#allocation3], 0  ;;  %s4383_s0 = inlined_call_operand.vmem [shape: f32[2,256,128], index: 0, kind: input, shape index: {}]   ;;  %s4384_s1 = inlined_call_operand.vmem [shape: f32[128,128], index: 1, kind: input, shape index: {}]   ;;  %s4385_s2 = inlined_call_operand.vmem [shape: f32[1,128], index: 2, kind: input, shape index: {}]   ;;  %s4386_s3 = inlined_call_operand.vmem [shape: f32[1,128], index: 3, kind: input, shape index: {}]   ;;  %s4387_s4 = inlined_call_operand.vmem [shape: bf16[128,384], index: 4, kind: input, shape index: {}]   ;;  %s4388_s5 = inlined_call_operand.vmem [shape: f32[1,384], index: 5, kind: input, shape index: {}]   ;;  %s4389_s6 = inlined_call_operand.vmem [shape: bf16[128,128], index: 6, kind: input, shape index: {}]   ;;  %s4390_s7 = inlined_call_operand.vmem [shape: f32[1,128], index: 7, kind: input, shape index: {}]   ;;  %s4391_s8 = inlined_call_operand.hbm [shape: f32[2,256,128], index: 8, kind: output, shape index: {}]  }
   0x1   :  { %15 = vsyncpa [#allocation3 + $0x1], 0  ;;  %s2849_s27 = smov 0   ;;  %s2851_s28 = smov 0  }
   0x2   :  { %s2853_s29 = smov 0   ;;  %s2855_s30 = smov 0  }
   0x3 LB: > { %s2870_s9 = sadd.s32 4294967295, %s2800_s30   ;;  %s2296_s10 = sadd.s32 4294967294, %s2800_s30   ;;  %s2800_s30 = sphi %s2855_s30, %s4397_s30   ;;  %s2796_s29 = sphi %s2853_s29, %s4396_s29   ;;  %s2792_s28 = sphi %s2851_s28, %s4395_s28   ;;  %s2788_s27 = sphi %s2849_s27, %s4394_s27  }
   0x4   : > { %s2874_s11 = sadd.s32 1, %s2800_s30   ;;  %s201_s12 = sadd.s32 1, %s2796_s29 }
   0x5   : > { %s198_s13 = ssub.s32 %s2800_s30, %s2874_s11  ;;  %p211_p0 = scmp.ne.s32.totalorder %s2796_s29, %s2792_s28 }
   0x6   : > { %p199_p1 = scmp.eq.s32.totalorder %s198_s13, 0  ;;  %p212_p2 = scmp.eq.s32.totalorder %s2870_s9, 1 }
   0x7   : > { %p217_p3 = scmp.ne.s32.totalorder %s2792_s28, %s2788_s27  ;;  %p218_p4 = scmp.eq.s32.totalorder %s2296_s10, 1 }
   0x8   : > { %s2885_s14 = scalar_select %p199_p1, %s2796_s29, %s201_s12  }
   0x9   : > { %p2887_p5 = por %p212_p2, %p211_p0  ;;  %p2891_p6 = por %p218_p4, %p217_p3 }
   0xa   : > { %p2299_p7 = scmp.ge.s32.totalorder %s2800_s30, 1  ;;  %p265_p8 = scmp.lt.s32.totalorder %s2800_s30, 3 }
   0xc   : > { %p266_p9 = pnand %p2299_p7, %p265_p8 }
   0xd   : > { %p299_p10 = scmp.lt.s32.totalorder (!%p266_p9), %s2870_s9, 1  ;;  %s296_s10 = sand.u32 (!%p266_p9), 1, %s2792_s28  }
   0xe   : > { %269 = sbr.rel (%p266_p9) target bundleno = 2038 (0x7f6), region = 52  ;;  %s2300_s17 = sshll.u32 (!%p266_p9), %s296_s10, 8 }
   0xf   : > { %s4205_s19 = scalar_lea.vmem (!%p266_p9), [#allocation2], %s2300_s17  ;;  %s2469_s20 = sshll.u32 (!%p266_p9), %s2870_s9, 8 }
  0x10   : > { %s2231_s24 = sshll.u32 (!%p266_p9), %s4205_s19, 4  ;;  %s2232_s24 = int_to_ptr.vmem [resolvable:$true] %s2231_s24 }
  0x13   : > { %v351_v0 = vld [vmem:[%s4384_s1 + $0x78] sm:$0xff]  ;;  %v350_v1 = vld [vmem:[%s4384_s1 + $0x70] sm:$0xff]  ;;  %v349_v2 = vld [vmem:[%s4384_s1 + $0x68] sm:$0xff]  ;;  %s300_s23 = scalar_select %p299_p10, %s2870_s9, 1 }
  0x14   : > { %389 = vmatpush.msra.mxu0 %v351_v0  ;;  %511 = vmatpush.msra.mxu2 %v351_v0  ;;  %v348_v3 = vld [vmem:[%s4384_s1 + $0x60] sm:$0xff]  ;;  %v347_v4 = vld [vmem:[%s4384_s1 + $0x58] sm:$0xff]  ;;  %v346_v9 = vld [vmem:[%s4384_s1 + $0x50] sm:$0xff]  ;;  %s2219_s9 = scalar_lea.sflag [#allocation3], %s296_s10 }
  0x15   : > { %s2436_s26 = sshll.u32 %s300_s23, 8  ;;  %v345_v12 = vld [vmem:[%s4384_s1 + $0x48] sm:$0xff]  ;;  %v344_v15 = vld [vmem:[%s4384_s1 + $0x40] sm:$0xff]  ;;  %v343_v18 = vld [vmem:[%s4384_s1 + $0x38] sm:$0xff]  ;;  %s2230_s23 = scalar_lea.hbm %s4391_s8, %s2469_s20 }
  0x16   : > { %390 = vmatpush.msra.mxu0 %v350_v1  ;;  %512 = vmatpush.msra.mxu2 %v350_v1  ;;  %s2917_s18 = scalar_lea.vmem %s4383_s0, %s2436_s26  ;;  %v342_v21 = vld [vmem:[%s4384_s1 + $0x30] sm:$0xff]  ;;  %v341_v24 = vld [vmem:[%s4384_s1 + $0x28] sm:$0xff]  ;;  %v340_v27 = vld [vmem:[%s4384_s1 + $0x20] sm:$0xff]  ;;  %s2233_s25 = sshll.u32 %s2230_s23, 4  ;;  %s2234_s25 = int_to_ptr.hbm [resolvable:$true] %s2233_s25 }
  0x17   : > { %v2920_v5 = vld [vmem:[%s2917_s18] sm:$0xff]  ;;  %v2923_v6 = vld [vmem:[%s2917_s18 + $0x8] sm:$0xff]  ;;  %v2926_v7 = vld [vmem:[%s2917_s18 + $0x10] sm:$0xff]  ;;  %s2752_s26 = sshra.s32 %s2234_s25, 4  ;;  %s2758_s20 = scalar_lea.hbm %s4391_s8, 512  ;;  %s2753_s26 = int_to_ptr.hbm [resolvable:$true] %s2752_s26 }
  0x18   : > { %391 = vmatpush.msra.mxu0 %v349_v2  ;;  %513 = vmatpush.msra.mxu2 %v349_v2  ;;  %v352_v8 = vadd.f32 %v2923_v6, %v2920_v5  ;;  %v2934_v10 = vld [vmem:[%s2917_s18 + $0x18] sm:$0xff]  ;;  %v2941_v13 = vld [vmem:[%s2917_s18 + $0x20] sm:$0xff]  ;;  %v2948_v16 = vld [vmem:[%s2917_s18 + $0x28] sm:$0xff]  ;;  %s2754_s12 = scalar_lea.hbm %s2753_s26, 256  ;;  %p2759_p0 = scmp.lt.s32.totalorder %s2753_s26, %s4391_s8 }
  0x19   : > { %v2955_v19 = vld [vmem:[%s2917_s18 + $0x30] sm:$0xff]  ;;  %v2962_v22 = vld [vmem:[%s2917_s18 + $0x38] sm:$0xff]  ;;  %v2969_v25 = vld [vmem:[%s2917_s18 + $0x40] sm:$0xff]  ;;  %p2755_p11 = scmp.ne.s32.totalorder %s2753_s26, %s2754_s12  ;;  %p2760_p1 = scmp.lt.s32.totalorder %s2758_s20, %s2754_s12 }
  0x1a   : > { %392 = vmatpush.msra.mxu0 %v348_v3  ;;  %514 = vmatpush.msra.mxu2 %v348_v3  ;;  %v353_v11 = vadd.f32 %v352_v8, %v2926_v7  ;;  %v2976_v28 = vld [vmem:[%s2917_s18 + $0x48] sm:$0xff]  ;;  %v339_v30 = vld [vmem:[%s4384_s1 + $0x18] sm:$0xff]  ;;  %v2983_v31 = vld [vmem:[%s2917_s18 + $0x50] sm:$0xff] }
  0x1b   : > { %v338_v33 = vld [vmem:[%s4384_s1 + $0x10] sm:$0xff]  ;;  %v2990_v34 = vld [vmem:[%s2917_s18 + $0x58] sm:$0xff]  ;;  %v337_v36 = vld [vmem:[%s4384_s1 + $0x8] sm:$0xff]  ;;  %p2756_p12 = pnand %p2755_p11, %p2887_p5  ;;  %p2761_p2 = por %p2760_p1, %p2759_p0 }
  0x1c   : > { %393 = vmatpush.msra.mxu0 %v347_v4  ;;  %515 = vmatpush.msra.mxu2 %v347_v4  ;;  %v354_v14 = vadd.f32 %v353_v11, %v2934_v10  ;;  %v2997_v37 = vld [vmem:[%s2917_s18 + $0x60] sm:$0xff]  ;;  %v3004_v40 = vld [vmem:[%s2917_s18 + $0x68] sm:$0xff]  ;;  %v3008_v42 = vld [vmem:[%s2917_s18 + $0x70] sm:$0xff] }
  0x1d   : > { %v336_v39 = vld [vmem:[%s4384_s1] sm:$0xff]  ;;  %v3012_v44 = vld [vmem:[%s2917_s18 + $0x78] sm:$0xff]  ;;  %v3020_v48 = vld [vmem:[%s2917_s18 + $0x88] sm:$0xff]  ;;  %p2757_p13 = pneg %p2756_p12 }
  0x1e   : > { %394 = vmatpush.msra.mxu0 %v346_v9  ;;  %516 = vmatpush.msra.mxu2 %v346_v9  ;;  %v355_v17 = vadd.f32 %v354_v14, %v2941_v13  ;;  %v3016_v46 = vld [vmem:[%s2917_s18 + $0x80] sm:$0xff]  ;;  %v3024_v50 = vld [vmem:[%s2917_s18 + $0x90] sm:$0xff]  ;;  %v3028_v52 = vld [vmem:[%s2917_s18 + $0x98] sm:$0xff] }
  0x1f   : > { %v3032_v54 = vld [vmem:[%s2917_s18 + $0xa0] sm:$0xff]  ;;  %v3036_v56 = vld [vmem:[%s2917_s18 + $0xa8] sm:$0xff]  ;;  %v3040_v58 = vld [vmem:[%s2917_s18 + $0xb0] sm:$0xff]  ;;  %p2762_p3 = pnand %p2761_p2, %p2757_p13 }
  0x20   : > { %395 = vmatpush.msra.mxu0 %v345_v12  ;;  %517 = vmatpush.msra.mxu2 %v345_v12  ;;  %v356_v20 = vadd.f32 %v355_v17, %v2948_v16  ;;  %v3044_v60 = vld [vmem:[%s2917_s18 + $0xb8] sm:$0xff]  ;;  %v3048_v62 = vld [vmem:[%s2917_s18 + $0xc0] sm:$0xff]  ;;  %v3052_v0 = vld [vmem:[%s2917_s18 + $0xc8] sm:$0xff] }
  0x21   : > { %v3056_v2 = vld [vmem:[%s2917_s18 + $0xd0] sm:$0xff]  ;;  %v3060_v4 = vld [vmem:[%s2917_s18 + $0xd8] sm:$0xff]  ;;  %v3064_v9 = vld [vmem:[%s2917_s18 + $0xe0] sm:$0xff] }
  0x22   : > { %396 = vmatpush.msra.mxu0 %v344_v15  ;;  %518 = vmatpush.msra.mxu2 %v344_v15  ;;  %v357_v23 = vadd.f32 %v356_v20, %v2955_v19  ;;  %v3068_v12 = vld [vmem:[%s2917_s18 + $0xe8] sm:$0xff]  ;;  %v3072_v15 = vld [vmem:[%s2917_s18 + $0xf0] sm:$0xff] }
  0x24   : > { %397 = vmatpush.msra.mxu0 %v343_v18  ;;  %519 = vmatpush.msra.mxu2 %v343_v18  ;;  %v358_v26 = vadd.f32 %v357_v23, %v2962_v22  ;;  %v3076_v18 = vld [vmem:[%s2917_s18 + $0xf8] sm:$0xff] }
  0x26   : > { %398 = vmatpush.msra.mxu0 %v342_v21  ;;  %520 = vmatpush.msra.mxu2 %v342_v21  ;;  %v359_v29 = vadd.f32 %v358_v26, %v2969_v25 }
  0x28   : > { %399 = vmatpush.msra.mxu0 %v341_v24  ;;  %521 = vmatpush.msra.mxu2 %v341_v24  ;;  %v360_v32 = vadd.f32 %v359_v29, %v2976_v28 }
  0x2a   : > { %400 = vmatpush.msra.mxu0 %v340_v27  ;;  %522 = vmatpush.msra.mxu2 %v340_v27  ;;  %v361_v35 = vadd.f32 %v360_v32, %v2983_v31 }
  0x2c   : > { %401 = vmatpush.msra.mxu0 %v339_v30  ;;  %523 = vmatpush.msra.mxu2 %v339_v30  ;;  %v362_v38 = vadd.f32 %v361_v35, %v2990_v34 }
  0x2e   : > { %402 = vmatpush.msra.mxu0 %v338_v33  ;;  %524 = vmatpush.msra.mxu2 %v338_v33  ;;  %v363_v41 = vadd.f32 %v362_v38, %v2997_v37 }
  0x30   : > { %403 = vmatpush.msra.mxu0 %v337_v36  ;;  %525 = vmatpush.msra.mxu2 %v337_v36  ;;  %v364_v43 = vadd.f32 %v363_v41, %v3004_v40 }
  0x32   : > { %404 = vmatpush.msra.mxu0 %v336_v39  ;;  %526 = vmatpush.msra.mxu2 %v336_v39  ;;  %v365_v45 = vadd.f32 %v364_v43, %v3008_v42 }
  0x34   : > { %v366_v47 = vadd.f32 %v365_v45, %v3012_v44 }
  0x36   : > { %v367_v49 = vadd.f32 %v366_v47, %v3016_v46 }
  0x38   : > { %v368_v51 = vadd.f32 %v367_v49, %v3020_v48 }
  0x3a   : > { %v369_v53 = vadd.f32 %v368_v51, %v3024_v50 }
  0x3c   : > { %v370_v55 = vadd.f32 %v369_v53, %v3028_v52 }
  0x3e   : > { %v371_v57 = vadd.f32 %v370_v55, %v3032_v54 }
  0x40   : > { %v372_v59 = vadd.f32 %v371_v57, %v3036_v56 }
  0x42   : > { %v373_v61 = vadd.f32 %v372_v59, %v3040_v58 }
  0x44   : > { %v374_v63 = vadd.f32 %v373_v61, %v3044_v60 }
  0x46   : > { %v375_v1 = vadd.f32 %v374_v63, %v3048_v62 }
  0x48   : > { %v376_v3 = vadd.f32 %v375_v1, %v3052_v0 }
  0x4a   : > { %v377_v8 = vadd.f32 %v376_v3, %v3056_v2 }
  0x4c   : > { %v378_v11 = vadd.f32 %v377_v8, %v3060_v4 }
  0x4e   : > { %v379_v14 = vadd.f32 %v378_v11, %v3064_v9 }
  0x50   : > { %v380_v17 = vadd.f32 %v379_v14, %v3068_v12 }
  0x52   : > { %v381_v20 = vadd.f32 %v380_v17, %v3072_v15 }
  0x54   : > { %v382_v21 = vadd.f32 %v381_v20, %v3076_v18 }
  0x56   : > { %v383_v23 = vrot.slane %v382_v21, 4 }
  0x58   : > { %v384_v24 = vadd.f32 %v383_v23, %v382_v21 }
  0x5a   : > { %v385_v26 = vrot.slane %v384_v24, 2 }
  0x5c   : > { %v386_v27 = vadd.f32 %v385_v26, %v384_v24 }
  0x5e   : > { %v387_v29 = vrot.slane %v386_v27, 1 }
  0x60   : > { %v388_v30 = vadd.f32 %v387_v29, %v386_v27 }
  0x62   : > { %405 = vmatmul.f32.vlgmr.msra.gmra.mxu0 %v388_v30 }
  0xdf   : > { %v3080_v32 = vpop.f32.mrf.mxu0 }
  0xe0   : > { %v3083_v33 = vperm.slane %v3080_v32, 0 }
  0xe2   : > { %v410_v35 = vsub.f32 %v2920_v5, %v3083_v33  ;;  %v411_v36 = vsub.f32 %v2923_v6, %v3083_v33  ;;  %v412_v38 = vsub.f32 %v2926_v7, %v3083_v33  ;;  %v413_v43 = vsub.f32 %v2934_v10, %v3083_v33 }
  0xe3   : > { %v414_v45 = vsub.f32 %v2941_v13, %v3083_v33  ;;  %v415_v51 = vsub.f32 %v2948_v16, %v3083_v33  ;;  %v416_v57 = vsub.f32 %v2955_v19, %v3083_v33  ;;  %v417_v63 = vsub.f32 %v2962_v22, %v3083_v33 }
  0xe4   : > { %v442_v39 = vmul.f32 %v410_v35, %v410_v35  ;;  %v443_v41 = vmul.f32 %v411_v36, %v411_v36  ;;  %v444_v47 = vmul.f32 %v412_v38, %v412_v38  ;;  %v445_v53 = vmul.f32 %v413_v43, %v413_v43 }
  0xe5   : > { %v446_v59 = vmul.f32 %v414_v45, %v414_v45  ;;  %v447_v1 = vmul.f32 %v415_v51, %v415_v51  ;;  %v418_v8 = vsub.f32 %v2969_v25, %v3083_v33  ;;  %v448_v11 = vmul.f32 %v416_v57, %v416_v57 }
  0xe6   : > { %v474_v49 = vadd.f32 %v443_v41, %v442_v39  ;;  %v419_v17 = vsub.f32 %v2976_v28, %v3083_v33  ;;  %v449_v20 = vmul.f32 %v417_v63, %v417_v63  ;;  %v420_v23 = vsub.f32 %v2983_v31, %v3083_v33 }
  0xe7   : > { %v450_v24 = vmul.f32 %v418_v8, %v418_v8  ;;  %v421_v27 = vsub.f32 %v2990_v34, %v3083_v33  ;;  %v422_v35 = vsub.f32 %v2997_v37, %v3083_v33  ;;  %v423_v39 = vsub.f32 %v3004_v40, %v3083_v33 }
  0xe8   : > { %v475_v55 = vadd.f32 %v474_v49, %v444_v47  ;;  %v451_v29 = vmul.f32 %v419_v17, %v419_v17  ;;  %v452_v36 = vmul.f32 %v420_v23, %v420_v23  ;;  %v424_v45 = vsub.f32 %v3008_v42, %v3083_v33 }
  0xe9   : > { %v453_v41 = vmul.f32 %v421_v27, %v421_v27  ;;  %v454_v47 = vmul.f32 %v422_v35, %v422_v35  ;;  %v425_v51 = vsub.f32 %v3012_v44, %v3083_v33  ;;  %v426_v57 = vsub.f32 %v3016_v46, %v3083_v33 }
  0xea   : > { %v476_v61 = vadd.f32 %v475_v55, %v445_v53  ;;  %v455_v53 = vmul.f32 %v423_v39, %v423_v39  ;;  %v427_v63 = vsub.f32 %v3020_v48, %v3083_v33  ;;  %v428_v8 = vsub.f32 %v3024_v50, %v3083_v33 }
  0xeb   : > { %v429_v17 = vsub.f32 %v3028_v52, %v3083_v33  ;;  %v430_v23 = vsub.f32 %v3032_v54, %v3083_v33  ;;  %v431_v27 = vsub.f32 %v3036_v56, %v3083_v33  ;;  %v432_v35 = vsub.f32 %v3040_v58, %v3083_v33 }
  0xec   : > { %v477_v3 = vadd.f32 %v476_v61, %v446_v59  ;;  %v456_v59 = vmul.f32 %v424_v45, %v424_v45  ;;  %v433_v39 = vsub.f32 %v3044_v60, %v3083_v33  ;;  %v434_v45 = vsub.f32 %v3048_v62, %v3083_v33 }
  0xee   : > { %v478_v14 = vadd.f32 %v477_v3, %v447_v1  ;;  %v457_v1 = vmul.f32 %v425_v51, %v425_v51  ;;  %v435_v51 = vsub.f32 %v3052_v0, %v3083_v33 }
  0xf0   : > { %v479_v21 = vadd.f32 %v478_v14, %v448_v11  ;;  %v458_v11 = vmul.f32 %v426_v57, %v426_v57  ;;  %v436_v57 = vsub.f32 %v3056_v2, %v3083_v33 }
  0xf2   : > { %v480_v26 = vadd.f32 %v479_v21, %v449_v20  ;;  %v459_v20 = vmul.f32 %v427_v63, %v427_v63  ;;  %v437_v63 = vsub.f32 %v3060_v4, %v3083_v33 }
  0xf4   : > { %v481_v30 = vadd.f32 %v480_v26, %v450_v24  ;;  %v460_v24 = vmul.f32 %v428_v8, %v428_v8  ;;  %v438_v8 = vsub.f32 %v3064_v9, %v3083_v33 }
  0xf6   : > { %v482_v38 = vadd.f32 %v481_v30, %v451_v29  ;;  %v461_v29 = vmul.f32 %v429_v17, %v429_v17  ;;  %v439_v17 = vsub.f32 %v3068_v12, %v3083_v33 }
  0xf8   : > { %v483_v43 = vadd.f32 %v482_v38, %v452_v36  ;;  %v462_v36 = vmul.f32 %v430_v23, %v430_v23  ;;  %v440_v23 = vsub.f32 %v3072_v15, %v3083_v33 }
  0xfa   : > { %v484_v49 = vadd.f32 %v483_v43, %v453_v41  ;;  %v463_v41 = vmul.f32 %v431_v27, %v431_v27  ;;  %v441_v27 = vsub.f32 %v3076_v18, %v3083_v33  ;;  %v2459_v33 = vld [vmem:[%s4387_s4 + $0xb0] sm:$0xf0] }
  0xfc   : > { %v485_v55 = vadd.f32 %v484_v49, %v454_v47  ;;  %v464_v47 = vmul.f32 %v432_v35, %v432_v35  ;;  %v472_v35 = vmul.f32 %v440_v23, %v440_v23  ;;  %v2385_v23 = vld [vmem:[%s4387_s4 + $0x98] sm:$0xf] }
  0xfe   : > { %v486_v61 = vadd.f32 %v485_v55, %v455_v53  ;;  %v465_v53 = vmul.f32 %v433_v39, %v433_v39 }
 0x100   : > { %v487_v3 = vadd.f32 %v486_v61, %v456_v59  ;;  %v466_v59 = vmul.f32 %v434_v45, %v434_v45 }
 0x102   : > { %v488_v14 = vadd.f32 %v487_v3, %v457_v1  ;;  %v467_v1 = vmul.f32 %v435_v51, %v435_v51 }
 0x104   : > { %v489_v21 = vadd.f32 %v488_v14, %v458_v11  ;;  %v468_v11 = vmul.f32 %v436_v57, %v436_v57  ;;  %v2458_v57 = vld [vmem:[%s4387_s4 + $0xac] sm:$0xf] }
 0x106   : > { %v490_v26 = vadd.f32 %v489_v21, %v459_v20  ;;  %v469_v20 = vmul.f32 %v437_v63, %v437_v63  ;;  %v2397_v63 = vld [vmem:[%s4387_s4 + $0xb0] sm:$0xf] }
 0x108   : > { %v491_v30 = vadd.f32 %v490_v26, %v460_v24  ;;  %v470_v24 = vmul.f32 %v438_v8, %v438_v8 }
 0x10a   : > { %v492_v38 = vadd.f32 %v491_v30, %v461_v29  ;;  %v471_v29 = vmul.f32 %v439_v17, %v439_v17  ;;  %v2455_v17 = vld [vmem:[%s4387_s4 + $0x94] sm:$0xf] }
 0x10c   : > { %v493_v43 = vadd.f32 %v492_v38, %v462_v36  ;;  %v473_v38 = vmul.f32 %v441_v27, %v441_v27 }
 0x10e   : > { %v494_v49 = vadd.f32 %v493_v43, %v463_v41 }
 0x110   : > { %v495_v55 = vadd.f32 %v494_v49, %v464_v47 }
 0x112   : > { %v496_v61 = vadd.f32 %v495_v55, %v465_v53  ;;  %v2389_v55 = vld [vmem:[%s4387_s4 + $0xa8] sm:$0xf] }
 0x114   : > { %v497_v3 = vadd.f32 %v496_v61, %v466_v59  ;;  %v2390_v59 = vor.u32 %v2459_v33, %v2389_v55  ;;  %v2391_v61 = vld [vmem:[%s4387_s4 + $0xb4] sm:$0xf0]  ;;  %v2355_v55 = vld [vmem:[%s4387_s4 + $0x6c] sm:$0xf0]  ;;  %v2361_v33 = vld [vmem:[%s4387_s4 + $0x68] sm:$0xf] }
 0x116   : > { %v498_v14 = vadd.f32 %v497_v3, %v467_v1  ;;  %v2460_v1 = vld [vmem:[%s4387_s4 + $0xb8] sm:$0xf0]  ;;  %v2394_v3 = vor.u32 %v2458_v57, %v2391_v61  ;;  %798 = vmatpush.bf16.msrb.mxu2 %v2390_v59  ;;  %v2451_v57 = vld [vmem:[%s4387_s4 + $0x70] sm:$0xf0] }
 0x117   : > { %v2398_v8 = vor.u32 %v2460_v1, %v2397_v63  ;;  %v2362_v61 = vor.u32 %v2451_v57, %v2361_v33  ;;  %v2341_v63 = vld [vmem:[%s4387_s4 + $0x48] sm:$0xf]  ;;  %v2447_v1 = vld [vmem:[%s4387_s4 + $0x50] sm:$0xf0]  ;;  %v2305_v33 = vld [vmem:[%s4387_s4] sm:$0xf] }
 0x118   : > { %v499_v21 = vadd.f32 %v498_v14, %v468_v11  ;;  %887 = vmatpush.bf16.msra.mxu3 %v2394_v3  ;;  %v2377_v11 = vld [vmem:[%s4387_s4 + $0x90] sm:$0xf]  ;;  %v2456_v14 = vld [vmem:[%s4387_s4 + $0x98] sm:$0xf0]  ;;  %v2446_v3 = vld [vmem:[%s4387_s4 + $0x4c] sm:$0xf] }
 0x119   : > { %976 = vmatpush.bf16.msrb.mxu0 %v2398_v8  ;;  %v2342_v8 = vor.u32 %v2447_v1, %v2341_v63  ;;  %v2438_v57 = vld [vmem:[%s4387_s4 + $0x8] sm:$0xf0]  ;;  %v2307_v63 = vld [vmem:[%s4387_s4 + $0xc] sm:$0xf0]  ;;  %v2313_v1 = vld [vmem:[%s4387_s4 + $0x8] sm:$0xf] }
 0x11a   : > { %v500_v26 = vadd.f32 %v499_v21, %v469_v20  ;;  %v2378_v20 = vor.u32 %v2456_v14, %v2377_v11  ;;  %v2379_v21 = vld [vmem:[%s4387_s4 + $0x9c] sm:$0xf0]  ;;  %v2343_v11 = vld [vmem:[%s4387_s4 + $0x54] sm:$0xf0]  ;;  %v2349_v14 = vld [vmem:[%s4387_s4 + $0x50] sm:$0xf] }
 0x11c   : > { %v501_v30 = vadd.f32 %v500_v26, %v470_v24  ;;  %v2457_v24 = vld [vmem:[%s4387_s4 + $0xa0] sm:$0xf0]  ;;  %v2382_v26 = vor.u32 %v2455_v17, %v2379_v21  ;;  %799 = vmatpush.bf16.msrb.mxu2 %v2378_v20  ;;  %v2448_v17 = vld [vmem:[%s4387_s4 + $0x58] sm:$0xf0]  ;;  %v2346_v20 = vor.u32 %v2446_v3, %v2343_v11  ;;  %v2439_v3 = vld [vmem:[%s4387_s4 + $0x10] sm:$0xf0] }
 0x11d   : > { %v2386_v27 = vor.u32 %v2457_v24, %v2385_v23  ;;  %v2350_v21 = vor.u32 %v2448_v17, %v2349_v14  ;;  %v2329_v23 = vld [vmem:[%s4387_s4 + $0x30] sm:$0xf]  ;;  %v2444_v24 = vld [vmem:[%s4387_s4 + $0x38] sm:$0xf0]  ;;  %v2314_v11 = vor.u32 %v2439_v3, %v2313_v1 }
 0x11e   : > { %v502_v36 = vadd.f32 %v501_v30, %v471_v29  ;;  %888 = vmatpush.bf16.msra.mxu3 %v2382_v26  ;;  %v2365_v29 = vld [vmem:[%s4387_s4 + $0x78] sm:$0xf]  ;;  %v2453_v30 = vld [vmem:[%s4387_s4 + $0x80] sm:$0xf0]  ;;  %v2330_v26 = vor.u32 %v2444_v24, %v2329_v23 }
 0x11f   : > { %977 = vmatpush.bf16.msrb.mxu0 %v2386_v27  ;;  %v2443_v27 = vld [vmem:[%s4387_s4 + $0x34] sm:$0xf] }
 0x120   : > { %v503_v39 = vadd.f32 %v502_v36, %v472_v35  ;;  %v2452_v35 = vld [vmem:[%s4387_s4 + $0x7c] sm:$0xf]  ;;  %v2366_v36 = vor.u32 %v2453_v30, %v2365_v29  ;;  %v2331_v29 = vld [vmem:[%s4387_s4 + $0x3c] sm:$0xf0] }
 0x121   : > { %v2334_v30 = vor.u32 %v2443_v27, %v2331_v29  ;;  %v541_v29 = vld [vmem:[%s4385_s2] sm:$0x1] }
 0x122   : > { %v504_v41 = vadd.f32 %v503_v39, %v473_v38  ;;  %v2367_v38 = vld [vmem:[%s4387_s4 + $0x84] sm:$0xf0]  ;;  %v2373_v39 = vld [vmem:[%s4387_s4 + $0x80] sm:$0xf]  ;;  %800 = vmatpush.bf16.msrb.mxu2 %v2366_v36  ;;  %v2445_v36 = vld [vmem:[%s4387_s4 + $0x40] sm:$0xf0] }
 0x124   : > { %v505_v43 = vrot.slane %v504_v41, 4 }
 0x126   : > { %v506_v45 = vadd.f32 %v505_v43, %v504_v41  ;;  %v2454_v41 = vld [vmem:[%s4387_s4 + $0x88] sm:$0xf0]  ;;  %v2370_v43 = vor.u32 %v2452_v35, %v2367_v38  ;;  %v2337_v35 = vld [vmem:[%s4387_s4 + $0x38] sm:$0xf] }
 0x127   : > { %v2338_v38 = vor.u32 %v2445_v36, %v2337_v35  ;;  %v543_v36 = vld [vmem:[%s4386_s3] sm:$0x1] }
 0x128   : > { %v507_v47 = vrot.slane %v506_v45, 2  ;;  %889 = vmatpush.bf16.msra.mxu3 %v2370_v43  ;;  %v2440_v43 = vld [vmem:[%s4387_s4 + $0x1c] sm:$0xf] }
 0x12a   : > { %v508_v49 = vadd.f32 %v507_v47, %v506_v45  ;;  %v2374_v45 = vor.u32 %v2454_v41, %v2373_v39  ;;  %v2353_v47 = vld [vmem:[%s4387_s4 + $0x60] sm:$0xf]  ;;  %v2317_v39 = vld [vmem:[%s4387_s4 + $0x18] sm:$0xf]  ;;  %v2441_v41 = vld [vmem:[%s4387_s4 + $0x20] sm:$0xf0] }
 0x12c   : > { %v509_v51 = vrot.slane %v508_v49, 1  ;;  %978 = vmatpush.bf16.msrb.mxu0 %v2374_v45  ;;  %v2318_v45 = vor.u32 %v2441_v41, %v2317_v39 }
 0x12e   : > { %v510_v53 = vadd.f32 %v509_v51, %v508_v49  ;;  %v2450_v49 = vld [vmem:[%s4387_s4 + $0x68] sm:$0xf0]  ;;  %v2449_v51 = vld [vmem:[%s4387_s4 + $0x64] sm:$0xf] }
 0x12f   : > { %v2358_v59 = vor.u32 %v2449_v51, %v2355_v55  ;;  %v2442_v51 = vld [vmem:[%s4387_s4 + $0x28] sm:$0xf0] }
 0x130   : > { %527 = vmatmul.f32.vlgmr.msra.gmra.mxu2 %v510_v53  ;;  %v2354_v53 = vor.u32 %v2450_v49, %v2353_v47  ;;  %979 = vmatpush.bf16.msrb.mxu0 %v2362_v61  ;;  %v2319_v47 = vld [vmem:[%s4387_s4 + $0x24] sm:$0xf0]  ;;  %v2325_v49 = vld [vmem:[%s4387_s4 + $0x20] sm:$0xf]  ;;  %v2306_v61 = vor.u32 %v2438_v57, %v2305_v33 }
 0x131   : > { %890 = vmatpush.bf16.msra.mxu3 %v2358_v59  ;;  %v2326_v55 = vor.u32 %v2442_v51, %v2325_v49  ;;  %v2437_v59 = vld [vmem:[%s4387_s4 + $0x4] sm:$0xf] }
 0x132   : > { %801 = vmatpush.bf16.msrb.mxu2 %v2354_v53  ;;  %v2322_v53 = vor.u32 %v2440_v43, %v2319_v47 }
 0x134   : > { %980 = vmatpush.bf16.msrb.mxu0 %v2350_v21 }
 0x135   : > { %891 = vmatpush.bf16.msra.mxu3 %v2346_v20 }
 0x136   : > { %802 = vmatpush.bf16.msrb.mxu2 %v2342_v8  ;;  %v2310_v8 = vor.u32 %v2437_v59, %v2307_v63 }
 0x138   : > { %981 = vmatpush.bf16.msrb.mxu0 %v2338_v38 }
 0x139   : > { %892 = vmatpush.bf16.msra.mxu3 %v2334_v30 }
 0x13a   : > { %803 = vmatpush.bf16.msrb.mxu2 %v2330_v26 }
 0x13c   : > { %982 = vmatpush.bf16.msrb.mxu0 %v2326_v55 }
 0x13d   : > { %893 = vmatpush.bf16.msra.mxu3 %v2322_v53 }
 0x13e   : > { %804 = vmatpush.bf16.msrb.mxu2 %v2318_v45 }
 0x140   : > { %983 = vmatpush.bf16.msrb.mxu0 %v2314_v11 }
 0x141   : > { %894 = vmatpush.bf16.msra.mxu3 %v2310_v8 }
 0x142   : > { %805 = vmatpush.bf16.msrb.mxu2 %v2306_v61 }
 0x1b3   : > { %v528_v14 = vpop.f32.mrf.mxu2 }
 0x1b4   : > { %v529_v17 = vadd.f32 1e-05, %v528_v14 }
 0x1b6   : > { %2512 = vrsqrt.f32 %v529_v17  ;;  %vm537_vm1 = vweird.f32 %v529_v17 }
 0x1bc   : > { %v2513_v20 = vpop.eup %2512 }
 0x1bd   : > { %v532_v21 = vmul.f32 %v2513_v20, %v529_v17  ;;  %vm538_vm0 = vweird.f32 %v2513_v20 }
 0x1be   : > { %vm539_vm2 = vmor %vm537_vm1, %vm538_vm0 }
 0x1bf   : > { %v533_v23 = vmul.f32 %v2513_v20, %v532_v21 }
 0x1c1   : > { %v534_v24 = vmul.f32 0.5, %v533_v23 }
 0x1c3   : > { %v535_v26 = vsub.f32 1.5, %v534_v24 }
 0x1c5   : > { %v536_v27 = vmul.f32 %v2513_v20, %v535_v26 }
 0x1c7   : > { %v540_v30 = vsel %vm539_vm2, %v2513_v20, %v536_v27 }
 0x1c8   : > { %v542_v35 = vmul.f32 %v541_v29, %v540_v30 }
 0x1ca   : > { %v544_v38 = vmul.f32 %v542_v35, %v3080_v32  ;;  %v3300_v39 = vperm.slane %v542_v35, 0 }
 0x1cc   : > { %v545_v41 = vsub.f32 %v543_v36, %v544_v38  ;;  %v547_v45 = vmul.f32 %v3300_v39, %v2920_v5  ;;  %v548_v47 = vmul.f32 %v3300_v39, %v2923_v6  ;;  %v549_v49 = vmul.f32 %v3300_v39, %v2926_v7 }
 0x1cd   : > { %v555_v32 = vmul.f32 %v3300_v39, %v2969_v25  ;;  %v556_v55 = vmul.f32 %v3300_v39, %v2976_v28  ;;  %v550_v33 = vmul.f32 %v3300_v39, %v2934_v10  ;;  %v557_v5 = vmul.f32 %v3300_v39, %v2983_v31 }
 0x1ce   : > { %v3302_v43 = vperm.slane %v545_v41, 0  ;;  %v558_v6 = vmul.f32 %v3300_v39, %v2990_v34  ;;  %v559_v7 = vmul.f32 %v3300_v39, %v2997_v37  ;;  %v560_v28 = vmul.f32 %v3300_v39, %v3004_v40 }
 0x1cf   : > { %v561_v40 = vmul.f32 %v3300_v39, %v3008_v42  ;;  %v562_v8 = vmul.f32 %v3300_v39, %v3012_v44  ;;  %v563_v11 = vmul.f32 %v3300_v39, %v3016_v46  ;;  %v564_v17 = vmul.f32 %v3300_v39, %v3020_v48 }
 0x1d0   : > { %v582_v51 = vadd.f32 %v3302_v43, %v547_v45  ;;  %v583_v53 = vadd.f32 %v3302_v43, %v548_v47  ;;  %v590_v59 = vadd.f32 %v3302_v43, %v555_v32  ;;  %v591_v25 = vadd.f32 %v3302_v43, %v556_v55 }
 0x1d1   : > { %v584_v61 = vadd.f32 %v3302_v43, %v549_v49  ;;  %v585_v10 = vadd.f32 %v3302_v43, %v550_v33  ;;  %v592_v31 = vadd.f32 %v3302_v43, %v557_v5  ;;  %v593_v63 = vadd.f32 %v3302_v43, %v558_v6 }
 0x1d2   : > { %v614_v57 = vpack.c.bf16 %v583_v53, %v582_v51  ;;  %v3332_v34 = vpack.c.bf16 %v591_v25, %v590_v59  ;;  %v594_v37 = vadd.f32 %v3302_v43, %v559_v7  ;;  %v595_v1 = vadd.f32 %v3302_v43, %v560_v28 }
 0x1d3   : > { %v3336_v3 = vpack.c.bf16 %v593_v63, %v592_v31  ;;  %v565_v20 = vmul.f32 %v3300_v39, %v3024_v50  ;;  %v566_v21 = vmul.f32 %v3300_v39, %v3028_v52  ;;  %v596_v23 = vadd.f32 %v3302_v43, %v561_v40 }
 0x1d4   : > { %806 = vmatmul.bf16.vlgmr.msrb.gmra.mxu2 %v614_v57  ;;  %895 = vmatmul.bf16.vlgmr.msra.gmra.mxu3 %v614_v57  ;;  %v3344_v14 = vpack.c.bf16 %v595_v1, %v594_v37  ;;  %v597_v42 = vadd.f32 %v3302_v43, %v562_v8  ;;  %v598_v44 = vadd.f32 %v3302_v43, %v563_v11 }
 0x1d5   : > { %984 = vmatmul.bf16.vlgmr.msrb.gmra.mxu0 %v614_v57  ;;  %v567_v46 = vmul.f32 %v3300_v39, %v3032_v54  ;;  %v599_v24 = vadd.f32 %v3302_v43, %v564_v17  ;;  %v600_v26 = vadd.f32 %v3302_v43, %v565_v20  ;;  %v601_v48 = vadd.f32 %v3302_v43, %v566_v21 }
 0x1d6   : > { %v568_v50 = vmul.f32 %v3300_v39, %v3036_v56  ;;  %v621_v27 = vpack.c.bf16 %v597_v42, %v596_v23  ;;  %v569_v29 = vmul.f32 %v3300_v39, %v3040_v58  ;;  %v570_v30 = vmul.f32 %v3300_v39, %v3044_v60 }
 0x1d7   : > { %v602_v52 = vadd.f32 %v3302_v43, %v567_v46  ;;  %v622_v35 = vpack.c.bf16 %v599_v24, %v598_v44  ;;  %v3367_v54 = vpack.c.bf16 %v601_v48, %v600_v26  ;;  %v571_v38 = vmul.f32 %v3300_v39, %v3048_v62 }
 0x1d8   : > { %v603_v36 = vadd.f32 %v3302_v43, %v568_v50  ;;  %v604_v41 = vadd.f32 %v3302_v43, %v569_v29  ;;  %v605_v56 = vadd.f32 %v3302_v43, %v570_v30  ;;  %v572_v45 = vmul.f32 %v3300_v39, %v3052_v0 }
 0x1d9   : > { %v573_v58 = vmul.f32 %v3300_v39, %v3056_v2  ;;  %v606_v60 = vadd.f32 %v3302_v43, %v571_v38  ;;  %v574_v49 = vmul.f32 %v3300_v39, %v3060_v4  ;;  %v575_v62 = vmul.f32 %v3300_v39, %v3064_v9 }
 0x1da   : > { %v3378_v47 = vpack.c.bf16 %v603_v36, %v602_v52  ;;  %v3385_v51 = vpack.c.bf16 %v605_v56, %v604_v41  ;;  %v607_v53 = vadd.f32 %v3302_v43, %v572_v45  ;;  %v576_v0 = vmul.f32 %v3300_v39, %v3068_v12 }
 0x1db   : > { %v608_v32 = vadd.f32 %v3302_v43, %v573_v58  ;;  %v609_v2 = vadd.f32 %v3302_v43, %v574_v49  ;;  %v610_v55 = vadd.f32 %v3302_v43, %v575_v62  ;;  %v577_v33 = vmul.f32 %v3300_v39, %v3072_v15 }
 0x1dc   : > { %v578_v4 = vmul.f32 %v3300_v39, %v3076_v18  ;;  %v3397_v9 = vpack.c.bf16 %v607_v53, %v606_v60  ;;  %v611_v5 = vadd.f32 %v3302_v43, %v576_v0  ;;  %v615_v59 = vpack.c.bf16 %v585_v10, %v584_v61 }
 0x1dd   : > { %v3400_v6 = vpack.c.bf16 %v609_v2, %v608_v32  ;;  %v612_v7 = vadd.f32 %v3302_v43, %v577_v33  ;;  %v551_v15 = vmul.f32 %v3300_v39, %v2941_v13  ;;  %v552_v18 = vmul.f32 %v3300_v39, %v2948_v16 }
 0x1de   : > { %v613_v12 = vadd.f32 %v3302_v43, %v578_v4  ;;  %v3404_v57 = vpack.c.bf16 %v611_v5, %v610_v55  ;;  %v553_v61 = vmul.f32 %v3300_v39, %v2955_v19  ;;  %v554_v10 = vmul.f32 %v3300_v39, %v2962_v22  ;;  %v662_v19 = vld [vmem:[%s4388_s5] sm:$0x7] }
 0x1df   : > { %v586_v28 = vadd.f32 %v3302_v43, %v551_v15  ;;  %v587_v31 = vadd.f32 %v3302_v43, %v552_v18  ;;  %v3432_v22 = vperm.slane %v662_v19, 2  ;;  %v3440_v8 = vperm.slane %v662_v19, 0 }
 0x1e0   : > { %v3406_v25 = vpack.c.bf16 %v613_v12, %v612_v7  ;;  %v588_v37 = vadd.f32 %v3302_v43, %v553_v61  ;;  %v589_v13 = vadd.f32 %v3302_v43, %v554_v10  ;;  %v3442_v11 = vperm.slane %v662_v19, 1 }
 0x1e1   : > { %v616_v63 = vpack.c.bf16 %v587_v31, %v586_v28 }
 0x1e2   : > { %v617_v1 = vpack.c.bf16 %v589_v13, %v588_v37 }
 0x1e4   : > { %811 = vmatmul.bf16.gmra.mxu2 %v615_v59  ;;  %900 = vmatmul.bf16.gmra.mxu3 %v615_v59 }
 0x1e5   : > { %989 = vmatmul.bf16.gmra.mxu0 %v615_v59 }
 0x1f4   : > { %816 = vmatmul.bf16.gmra.mxu2 %v616_v63  ;;  %905 = vmatmul.bf16.gmra.mxu3 %v616_v63 }
 0x1f5   : > { %994 = vmatmul.bf16.gmra.mxu0 %v616_v63 }
 0x204   : > { %821 = vmatmul.bf16.gmra.mxu2 %v617_v1  ;;  %910 = vmatmul.bf16.gmra.mxu3 %v617_v1 }
 0x205   : > { %999 = vmatmul.bf16.gmra.mxu0 %v617_v1 }
 0x214   : > { %826 = vmatmul.bf16.gmra.mxu2 %v3332_v34  ;;  %915 = vmatmul.bf16.gmra.mxu3 %v3332_v34 }
 0x215   : > { %1004 = vmatmul.bf16.gmra.mxu0 %v3332_v34 }
 0x224   : > { %831 = vmatmul.bf16.gmra.mxu2 %v3336_v3  ;;  %920 = vmatmul.bf16.gmra.mxu3 %v3336_v3 }
 0x225   : > { %1009 = vmatmul.bf16.gmra.mxu0 %v3336_v3 }
 0x234   : > { %836 = vmatmul.bf16.gmra.mxu2 %v3344_v14  ;;  %925 = vmatmul.bf16.gmra.mxu3 %v3344_v14 }
 0x235   : > { %1014 = vmatmul.bf16.gmra.mxu0 %v3344_v14 }
 0x244   : > { %841 = vmatmul.bf16.gmra.mxu2 %v621_v27  ;;  %930 = vmatmul.bf16.gmra.mxu3 %v621_v27 }
 0x245   : > { %1019 = vmatmul.bf16.gmra.mxu0 %v621_v27 }
 0x252   : > { %v985_v16 = vpop.f32.mrf.mxu0 }
 0x253   : > { %v3435_v3 = vadd.f32 %v985_v16, %v3432_v22 }
 0x254   : > { %846 = vmatmul.bf16.gmra.mxu2 %v622_v35  ;;  %935 = vmatmul.bf16.gmra.mxu3 %v622_v35 }
 0x255   : > { %1024 = vmatmul.bf16.gmra.mxu0 %v622_v35 }
 0x257   : > { %v807_v39 = vpop.f32.mrf.mxu2  ;;  %v896_v43 = vpop.f32.mrf.mxu3 }
 0x258   : > { %v808_v21 = vadd.f32 %v807_v39, %v3440_v8  ;;  %v3448_v23 = vadd.f32 %v896_v43, %v3442_v11 }
 0x25a   : > { %v987_v34 = vpop.f32.mrf.mxu0 }
 0x25b   : > { %v3438_v40 = vadd.f32 %v987_v34, %v3432_v22 }
 0x25d   : > { %v1097_v14 = vpack.c.bf16 %v3438_v40, %v3435_v3 }
 0x25f   : > { %v809_v17 = vpop.f32.mrf.mxu2  ;;  %v898_v20 = vpop.f32.mrf.mxu3 }
 0x260   : > { %v810_v42 = vadd.f32 %v809_v17, %v3440_v8  ;;  %v3452_v44 = vadd.f32 %v898_v20, %v3442_v11 }
 0x262   : > { %v990_v46 = vpop.f32.mrf.mxu0  ;;  %v1081_v24 = vpack.c.bf16 %v3452_v44, %v3448_v23  ;;  %v3456_v26 = vpack.c.bf16 %v810_v42, %v808_v21 }
 0x263   : > { %v3462_v52 = vadd.f32 %v990_v46, %v3432_v22 }
 0x264   : > { %851 = vmatmul.bf16.gmra.mxu2 %v3367_v54  ;;  %940 = vmatmul.bf16.gmra.mxu3 %v3367_v54 }
 0x265   : > { %1029 = vmatmul.bf16.gmra.mxu0 %v3367_v54 }
 0x267   : > { %v812_v48 = vpop.f32.mrf.mxu2  ;;  %v901_v50 = vpop.f32.mrf.mxu3 }
 0x268   : > { %v813_v38 = vadd.f32 %v812_v48, %v3440_v8  ;;  %v3471_v41 = vadd.f32 %v901_v50, %v3442_v11 }
 0x26a   : > { %v992_v27 = vpop.f32.mrf.mxu0 }
 0x26b   : > { %v3465_v29 = vadd.f32 %v992_v27, %v3432_v22 }
 0x26d   : > { %v1098_v30 = vpack.c.bf16 %v3465_v29, %v3462_v52 }
 0x26f   : > { %v814_v35 = vpop.f32.mrf.mxu2  ;;  %v903_v36 = vpop.f32.mrf.mxu3 }
 0x270   : > { %v815_v54 = vadd.f32 %v814_v35, %v3440_v8  ;;  %v3475_v56 = vadd.f32 %v903_v36, %v3442_v11 }
 0x272   : > { %v995_v45 = vpop.f32.mrf.mxu0  ;;  %v1082_v58 = vpack.c.bf16 %v3475_v56, %v3471_v41  ;;  %v3479_v60 = vpack.c.bf16 %v815_v54, %v813_v38 }
 0x273   : > { %v3485_v32 = vadd.f32 %v995_v45, %v3432_v22 }
 0x274   : > { %856 = vmatmul.bf16.gmra.mxu2 %v3378_v47  ;;  %945 = vmatmul.bf16.gmra.mxu3 %v3378_v47 }
 0x275   : > { %1034 = vmatmul.bf16.gmra.mxu0 %v3378_v47 }
 0x277   : > { %v817_v49 = vpop.f32.mrf.mxu2  ;;  %v906_v62 = vpop.f32.mrf.mxu3 }
 0x278   : > { %v818_v4 = vadd.f32 %v817_v49, %v3440_v8  ;;  %v3494_v5 = vadd.f32 %v906_v62, %v3442_v11 }
 0x27a   : > { %v997_v53 = vpop.f32.mrf.mxu0 }
 0x27b   : > { %v3488_v0 = vadd.f32 %v997_v53, %v3432_v22 }
 0x27d   : > { %v1099_v2 = vpack.c.bf16 %v3488_v0, %v3485_v32 }
 0x27f   : > { %v819_v55 = vpop.f32.mrf.mxu2  ;;  %v908_v33 = vpop.f32.mrf.mxu3 }
 0x280   : > { %v820_v47 = vadd.f32 %v819_v55, %v3440_v8  ;;  %v3498_v7 = vadd.f32 %v908_v33, %v3442_v11 }
 0x282   : > { %v1000_v12 = vpop.f32.mrf.mxu0  ;;  %v1083_v59 = vpack.c.bf16 %v3498_v7, %v3494_v5  ;;  %v3502_v15 = vpack.c.bf16 %v820_v47, %v818_v4 }
 0x283   : > { %v3508_v63 = vadd.f32 %v1000_v12, %v3432_v22 }
 0x284   : > { %861 = vmatmul.bf16.gmra.mxu2 %v3385_v51  ;;  %950 = vmatmul.bf16.gmra.mxu3 %v3385_v51 }
 0x285   : > { %1039 = vmatmul.bf16.gmra.mxu0 %v3385_v51 }
 0x287   : > { %v822_v18 = vpop.f32.mrf.mxu2  ;;  %v911_v28 = vpop.f32.mrf.mxu3 }
 0x288   : > { %v823_v1 = vadd.f32 %v822_v18, %v3440_v8  ;;  %v3517_v16 = vadd.f32 %v911_v28, %v3442_v11 }
 0x28a   : > { %v1002_v31 = vpop.f32.mrf.mxu0 }
 0x28b   : > { %v3511_v61 = vadd.f32 %v1002_v31, %v3432_v22 }
 0x28d   : > { %v1100_v10 = vpack.c.bf16 %v3511_v61, %v3508_v63 }
 0x28f   : > { %v824_v37 = vpop.f32.mrf.mxu2  ;;  %v913_v13 = vpop.f32.mrf.mxu3 }
 0x290   : > { %v825_v51 = vadd.f32 %v824_v37, %v3440_v8  ;;  %v3521_v19 = vadd.f32 %v913_v13, %v3442_v11 }
 0x292   : > { %v1005_v39 = vpop.f32.mrf.mxu0  ;;  %v1084_v43 = vpack.c.bf16 %v3521_v19, %v3517_v16  ;;  %v3525_v34 = vpack.c.bf16 %v825_v51, %v823_v1 }
 0x293   : > { %v1006_v1 = vadd.f32 %v1005_v39, %v3432_v22 }
 0x294   : > { %866 = vmatmul.bf16.gmra.mxu2 %v3397_v9  ;;  %955 = vmatmul.bf16.gmra.mxu3 %v3397_v9 }
 0x295   : > { %1044 = vmatmul.bf16.gmra.mxu0 %v3397_v9 }
 0x297   : > { %v916_v17 = vpop.f32.mrf.mxu3  ;;  %v827_v5 = vpop.f32.mrf.mxu2 }
 0x298   : > { %v917_v61 = vadd.f32 %v916_v17, %v3442_v11 }
 0x29a   : > { %v1007_v20 = vpop.f32.mrf.mxu0 }
 0x29b   : > { %v1008_v31 = vadd.f32 %v1007_v20, %v3432_v22 }
 0x29f   : > { %v918_v21 = vpop.f32.mrf.mxu3  ;;  %v829_v19 = vpop.f32.mrf.mxu2 }
 0x2a2   : > { %v1010_v42 = vpop.f32.mrf.mxu0 }
 0x2a3   : > { %v1011_v28 = vadd.f32 %v1010_v42, %v3432_v22 }
 0x2a4   : > { %871 = vmatmul.bf16.gmra.mxu2 %v3400_v6  ;;  %960 = vmatmul.bf16.gmra.mxu3 %v3400_v6 }
 0x2a5   : > { %1049 = vmatmul.bf16.gmra.mxu0 %v3400_v6 }
 0x2a7   : > { %v921_v46 = vpop.f32.mrf.mxu3 }
 0x2a8   : > { %v922_v39 = vadd.f32 %v921_v46, %v3442_v11 }
 0x2aa   : > { %v1012_v48 = vpop.f32.mrf.mxu0 }
 0x2ab   : > { %v1013_v47 = vadd.f32 %v1012_v48, %v3432_v22 }
 0x2ad   : > { %v1102_v37 = vpack.c.bf16 %v1013_v47, %v1011_v28 }
 0x2af   : > { %v923_v50 = vpop.f32.mrf.mxu3 }
 0x2b0   : > { %v924_v42 = vadd.f32 %v923_v50, %v3442_v11 }
 0x2b2   : > { %v1015_v27 = vpop.f32.mrf.mxu0 }
 0x2b4   : > { %876 = vmatmul.bf16.gmra.mxu2 %v3404_v57  ;;  %965 = vmatmul.bf16.gmra.mxu3 %v3404_v57 }
 0x2b5   : > { %1054 = vmatmul.bf16.gmra.mxu0 %v3404_v57  ;;  %v1016_v57 = vadd.f32 %v1015_v27, %v3432_v22  ;;  %v1101_v27 = vpack.c.bf16 %v1008_v31, %v1006_v1 }
 0x2b7   : > { %v926_v9 = vpop.f32.mrf.mxu3 }
 0x2b8   : > { %v927_v48 = vadd.f32 %v926_v9, %v3442_v11  ;;  %v919_v9 = vadd.f32 %v918_v21, %v3442_v11 }
 0x2ba   : > { %v1017_v35 = vpop.f32.mrf.mxu0  ;;  %v1085_v46 = vpack.c.bf16 %v919_v9, %v917_v61 }
 0x2bb   : > { %v1018_v62 = vadd.f32 %v1017_v35, %v3432_v22 }
 0x2bf   : > { %v928_v36 = vpop.f32.mrf.mxu3 }
 0x2c0   : > { %v929_v13 = vadd.f32 %v928_v36, %v3442_v11 }
 0x2c2   : > { %v1020_v38 = vpop.f32.mrf.mxu0 }
 0x2c3   : > { %v1021_v45 = vadd.f32 %v1020_v38, %v3432_v22  ;;  %v1087_v38 = vpack.c.bf16 %v929_v13, %v927_v48 }
 0x2c4   : > { %881 = vmatmul.bf16.gmra.mxu2 %v3406_v25  ;;  %970 = vmatmul.bf16.gmra.mxu3 %v3406_v25 }
 0x2c5   : > { %1059 = vmatmul.bf16.gmra.mxu0 %v3406_v25  ;;  %v1103_v25 = vpack.c.bf16 %v1018_v62, %v1016_v57 }
 0x2c7   : > { %v931_v6 = vpop.f32.mrf.mxu3 }
 0x2c8   : > { %v932_v33 = vadd.f32 %v931_v6, %v3442_v11  ;;  %v1086_v6 = vpack.c.bf16 %v924_v42, %v922_v39 }
 0x2ca   : > { %v1022_v54 = vpop.f32.mrf.mxu0 }
 0x2cb   : > { %v1023_v49 = vadd.f32 %v1022_v54, %v3432_v22 }
 0x2cd   : > { %v1104_v53 = vpack.c.bf16 %v1023_v49, %v1021_v45 }
 0x2cf   : > { %1803 = vmatpush.bf16.msrb.mxu3 %v1104_v53  ;;  %v933_v55 = vpop.f32.mrf.mxu3 }
 0x2d0   : > { %v934_v4 = vadd.f32 %v933_v55, %v3442_v11 }
 0x2d2   : > { %v3546_v12 = vpop.f32.mrf.mxu0  ;;  %v1088_v18 = vpack.c.bf16 %v934_v4, %v932_v33  ;;  %v830_v4 = vadd.f32 %v829_v19, %v3440_v8 }
 0x2d3   : > { %1804 = vmatpush.bf16.msrb.mxu3 %v1103_v25 }
 0x2d4   : > { %1113 = vmatpush.bf16.xpose.msra.mxu1 %v1088_v18  ;;  %v828_v18 = vadd.f32 %v827_v5, %v3440_v8 }
 0x2d7   : > { %1805 = vmatpush.bf16.msrb.mxu3 %v1102_v37  ;;  %v3552_v51 = vpop.f32.mrf.mxu3 }
 0x2da   : > { %v3555_v35 = vpop.f32.mrf.mxu0 }
 0x2db   : > { %1806 = vmatpush.bf16.msrb.mxu3 %v1101_v27 }
 0x2dc   : > { %1114 = vmatpush.bf16.xpose.msra.mxu1 %v1087_v38  ;;  %v3630_v38 = vpack.c.bf16 %v830_v4, %v828_v18 }
 0x2df   : > { %1807 = vmatpush.bf16.msrb.mxu3 %v1100_v10  ;;  %v3561_v20 = vpop.f32.mrf.mxu3 }
 0x2e2   : > { %v3564_v36 = vpop.f32.mrf.mxu0 }
 0x2e3   : > { %1808 = vmatpush.bf16.msrb.mxu3 %v1099_v2 }
 0x2e4   : > { %1115 = vmatpush.bf16.xpose.msra.mxu1 %v1086_v6 }
 0x2e7   : > { %1809 = vmatpush.bf16.msrb.mxu3 %v1098_v30  ;;  %v3573_v63 = vpop.f32.mrf.mxu3 }
 0x2ea   : > { %v3576_v10 = vpop.f32.mrf.mxu0 }
 0x2eb   : > { %1810 = vmatpush.bf16.msrb.mxu3 %v1097_v14 }
 0x2ec   : > { %1116 = vmatpush.bf16.xpose.msra.mxu1 %v1085_v46 }
 0x2ef   : > { %v3581_v32 = vpop.f32.mrf.mxu3 }
 0x2f2   : > { %v3583_v0 = vpop.f32.mrf.mxu0 }
 0x2f4   : > { %1117 = vmatpush.bf16.xpose.msra.mxu1 %v1084_v43 }
 0x2f7   : > { %v3588_v52 = vpop.f32.mrf.mxu3 }
 0x2fa   : > { %v3590_v29 = vpop.f32.mrf.mxu0 }
 0x2fc   : > { %1118 = vmatpush.bf16.xpose.msra.mxu1 %v1083_v59 }
 0x2ff   : > { %v3595_v30 = vpop.f32.mrf.mxu3 }
 0x300   : > { %v949_v18 = vadd.f32 %v3595_v30, %v3442_v11 }
 0x302   : > { %v1040_v3 = vpop.f32.mrf.mxu0 }
 0x304   : > { %1119 = vmatpush.bf16.xpose.msra.mxu1 %v1082_v58  ;;  %v832_v58 = vpop.f32.mrf.mxu2 }
 0x307   : > { %v3600_v40 = vpop.f32.mrf.mxu3 }
 0x30a   : > { %v1042_v14 = vpop.f32.mrf.mxu0 }
 0x30b   : > { %v1043_v19 = vadd.f32 %v1042_v14, %v3432_v22  ;;  %v1036_v14 = vadd.f32 %v3583_v0, %v3432_v22  ;;  %v1028_v0 = vadd.f32 %v3555_v35, %v3432_v22 }
 0x30c   : > { %1120 = vmatpush.bf16.xpose.msra.mxu1 %v1081_v24  ;;  %v834_v44 = vpop.f32.mrf.mxu2 }
 0x30f   : > { %v3605_v2 = vpop.f32.mrf.mxu3 }
 0x310   : > { %v954_v35 = vadd.f32 %v3605_v2, %v3442_v11 }
 0x312   : > { %v1045_v16 = vpop.f32.mrf.mxu0 }
 0x313   : > { %1121 = vmatmul.bf16.vlgmr.msra.gmra.mxu1 %v3456_v26  ;;  %v1046_v46 = vadd.f32 %v1045_v16, %v3432_v22 }
 0x314   : > { %v3614_v54 = vpop.f32.mrf.mxu2 }
 0x317   : > { %v3608_v7 = vpop.f32.mrf.mxu3 }
 0x31a   : > { %v1047_v59 = vpop.f32.mrf.mxu0 }
 0x31b   : > { %v1048_v6 = vadd.f32 %v1047_v59, %v3432_v22  ;;  %v1038_v59 = vadd.f32 %v3590_v29, %v3432_v22  ;;  %v1031_v29 = vadd.f32 %v3564_v36, %v3432_v22 }
 0x31c   : > { %v3617_v62 = vpop.f32.mrf.mxu2 }
 0x31f   : > { %v3610_v43 = vpop.f32.mrf.mxu3 }
 0x322   : > { %v1050_v41 = vpop.f32.mrf.mxu0 }
 0x323   : > { %1126 = vmatmul.bf16.gmra.mxu1 %v3479_v60  ;;  %v1051_v39 = vadd.f32 %v1050_v41, %v3432_v22  ;;  %v1041_v41 = vadd.f32 %v1040_v3, %v3432_v22  ;;  %v1033_v3 = vadd.f32 %v3576_v10, %v3432_v22  ;;  %v1026_v10 = vadd.f32 %v3546_v12, %v3432_v22 }
 0x324   : > { %v3625_v37 = vpop.f32.mrf.mxu2 }
 0x325   : > { %v1105_v36 = vpack.c.bf16 %v1028_v0, %v1026_v10 }
 0x327   : > { %v961_v56 = vpop.f32.mrf.mxu3 }
 0x32a   : > { %v1052_v17 = vpop.f32.mrf.mxu0 }
 0x32b   : > { %v1053_v48 = vadd.f32 %v1052_v17, %v3432_v22  ;;  %v1109_v17 = vpack.c.bf16 %v1048_v6, %v1046_v46 }
 0x32d   : > { %v1110_v9 = vpack.c.bf16 %v1053_v48, %v1051_v39 }
 0x32f   : > { %v963_v23 = vpop.f32.mrf.mxu3 }
 0x330   : > { %v964_v16 = vadd.f32 %v963_v23, %v3442_v11  ;;  %v1106_v23 = vpack.c.bf16 %v1033_v3, %v1031_v29 }
 0x332   : > { %v1055_v24 = vpop.f32.mrf.mxu0 }
 0x333   : > { %1131 = vmatmul.bf16.gmra.mxu1 %v3502_v15  ;;  %v1056_v28 = vadd.f32 %v1055_v24, %v3432_v22  ;;  %v844_v24 = vpop.f32.mrf.mxu2 }
 0x337   : > { %v966_v21 = vpop.f32.mrf.mxu3 }
 0x338   : > { %v967_v5 = vadd.f32 %v966_v21, %v3442_v11  ;;  %v962_v21 = vadd.f32 %v961_v56, %v3442_v11  ;;  %v959_v56 = vadd.f32 %v3610_v43, %v3442_v11  ;;  %v838_v43 = vadd.f32 %v3614_v54, %v3440_v8 }
 0x339   : > { %v845_v54 = vadd.f32 %v844_v24, %v3440_v8 }
 0x33a   : > { %v1057_v50 = vpop.f32.mrf.mxu0 }
 0x33b   : > { %v1058_v47 = vadd.f32 %v1057_v50, %v3432_v22 }
 0x33d   : > { %v1111_v27 = vpack.c.bf16 %v1058_v47, %v1056_v28  ;;  %v840_v47 = vadd.f32 %v3617_v62, %v3440_v8  ;;  %v947_v28 = vadd.f32 %v3588_v52, %v3442_v11  ;;  %v939_v52 = vadd.f32 %v3561_v20, %v3442_v11 }
 0x33f   : > { %v968_v45 = vpop.f32.mrf.mxu3  ;;  %v3671_v12 = vpack.c.bf16 %v840_v47, %v838_v43  ;;  %v1091_v2 = vpack.c.bf16 %v949_v18, %v947_v28 }
 0x340   : > { %v969_v61 = vadd.f32 %v968_v45, %v3442_v11  ;;  %v1108_v45 = vpack.c.bf16 %v1043_v19, %v1041_v41 }
 0x342   : > { %v1060_v49 = vpop.f32.mrf.mxu0  ;;  %v1095_v50 = vpack.c.bf16 %v969_v61, %v967_v5 }
 0x343   : > { %1136 = vmatmul.bf16.gmra.mxu1 %v3525_v34  ;;  %v1061_v55 = vadd.f32 %v1060_v49, %v3432_v22  ;;  %v835_v49 = vadd.f32 %v834_v44, %v3440_v8  ;;  %v1094_v44 = vpack.c.bf16 %v964_v16, %v962_v21 }
 0x347   : > { %v971_v53 = vpop.f32.mrf.mxu3 }
 0x348   : > { %v972_v13 = vadd.f32 %v971_v53, %v3442_v11  ;;  %v833_v53 = vadd.f32 %v832_v58, %v3440_v8  ;;  %v847_v58 = vpop.f32.mrf.mxu2 }
 0x34a   : > { %v1062_v57 = vpop.f32.mrf.mxu0 }
 0x34b   : > { %v1063_v33 = vadd.f32 %v1062_v57, %v3432_v22  ;;  %v1107_v57 = vpack.c.bf16 %v1038_v59, %v1036_v14  ;;  %v952_v22 = vadd.f32 %v3600_v40, %v3442_v11  ;;  %v944_v40 = vadd.f32 %v3581_v32, %v3442_v11 }
 0x34d   : > { %v1112_v25 = vpack.c.bf16 %v1063_v33, %v1061_v55  ;;  %v3650_v55 = vpack.c.bf16 %v835_v49, %v833_v53  ;;  %v957_v33 = vadd.f32 %v3608_v7, %v3442_v11  ;;  %v1092_v7 = vpack.c.bf16 %v954_v35, %v952_v22 }
 0x34f   : > { %1892 = vmatpush.bf16.msra.mxu0 %v1112_v25  ;;  %v973_v31 = vpop.f32.mrf.mxu3  ;;  %v1093_v4 = vpack.c.bf16 %v959_v56, %v957_v33 }
 0x350   : > { %v974_v1 = vadd.f32 %v973_v31, %v3442_v11  ;;  %v849_v25 = vpop.f32.mrf.mxu2  ;;  %v843_v31 = vadd.f32 %v3625_v37, %v3440_v8 }
 0x351   : > { %v850_v37 = vadd.f32 %v849_v25, %v3440_v8 }
 0x352   : > { %v1096_v42 = vpack.c.bf16 %v974_v1, %v972_v13  ;;  %v942_v13 = vadd.f32 %v3573_v63, %v3442_v11  ;;  %v3685_v1 = vpack.c.bf16 %v845_v54, %v843_v31  ;;  %v848_v63 = vadd.f32 %v847_v58, %v3440_v8 }
 0x353   : > { %1893 = vmatpush.bf16.msra.mxu0 %v1111_v27  ;;  %1141 = vmatmul.bf16.gmra.mxu1 %v3630_v38  ;;  %v937_v27 = vadd.f32 %v3552_v51, %v3442_v11 }
 0x354   : > { %1202 = vmatpush.bf16.xpose.msra.mxu2 %v1096_v42  ;;  %v1090_v48 = vpack.c.bf16 %v944_v40, %v942_v13  ;;  %v1073_v39 = vpack.c.bf16 %v850_v37, %v848_v63 }
 0x355   : > { %v1089_v32 = vpack.c.bf16 %v939_v52, %v937_v27 }
 0x357   : > { %1894 = vmatpush.bf16.msra.mxu0 %v1110_v9 }
 0x358   : > { %v852_v62 = vpop.f32.mrf.mxu2 }
 0x359   : > { %v853_v61 = vadd.f32 %v852_v62, %v3440_v8 }
 0x35b   : > { %1895 = vmatpush.bf16.msra.mxu0 %v1109_v17 }
 0x35c   : > { %1203 = vmatpush.bf16.xpose.msra.mxu2 %v1095_v50 }
 0x35f   : > { %1896 = vmatpush.bf16.msra.mxu0 %v1108_v45 }
 0x360   : > { %v854_v30 = vpop.f32.mrf.mxu2 }
 0x361   : > { %v855_v9 = vadd.f32 %v854_v30, %v3440_v8 }
 0x363   : > { %1897 = vmatpush.bf16.msra.mxu0 %v1107_v57  ;;  %1146 = vmatmul.bf16.gmra.mxu1 %v3650_v55  ;;  %v1074_v46 = vpack.c.bf16 %v855_v9, %v853_v61 }
 0x364   : > { %1204 = vmatpush.bf16.xpose.msra.mxu2 %v1094_v44 }
 0x367   : > { %1898 = vmatpush.bf16.msra.mxu0 %v1106_v23 }
 0x368   : > { %v857_v42 = vpop.f32.mrf.mxu2 }
 0x369   : > { %v858_v5 = vadd.f32 %v857_v42, %v3440_v8 }
 0x36b   : > { %1899 = vmatpush.bf16.msra.mxu0 %v1105_v36 }
 0x36c   : > { %1205 = vmatpush.bf16.xpose.msra.mxu2 %v1093_v4 }
 0x370   : > { %v859_v6 = vpop.f32.mrf.mxu2 }
 0x371   : > { %v860_v51 = vadd.f32 %v859_v6, %v3440_v8 }
 0x373   : > { %1151 = vmatmul.bf16.gmra.mxu1 %v3671_v12  ;;  %v1075_v19 = vpack.c.bf16 %v860_v51, %v858_v5 }
 0x374   : > { %1206 = vmatpush.bf16.xpose.msra.mxu2 %v1092_v7 }
 0x378   : > { %v862_v20 = vpop.f32.mrf.mxu2 }
 0x379   : > { %v863_v41 = vadd.f32 %v862_v20, %v3440_v8 }
 0x37c   : > { %1207 = vmatpush.bf16.xpose.msra.mxu2 %v1091_v2 }
 0x380   : > { %v864_v11 = vpop.f32.mrf.mxu2 }
 0x381   : > { %v865_v17 = vadd.f32 %v864_v11, %v3440_v8 }
 0x383   : > { %1156 = vmatmul.bf16.gmra.mxu1 %v3685_v1  ;;  %v1076_v49 = vpack.c.bf16 %v865_v17, %v863_v41 }
 0x384   : > { %1208 = vmatpush.bf16.xpose.msra.mxu2 %v1090_v48 }
 0x38c   : > { %1209 = vmatpush.bf16.xpose.msra.mxu2 %v1089_v32 }
 0x390   : > { %v3702_v24 = vpop.f32.mrf.mxu1 }
 0x393   : > { %1161 = vmatmul.bf16.gmra.mxu1 %v1073_v39  ;;  %1210 = vmatmul.bf16.vlgmr.msra.gmra.mxu2 %v3456_v26  ;;  %v867_v26 = vpop.f32.mrf.mxu2 }
 0x394   : > { %v868_v16 = vadd.f32 %v867_v26, %v3440_v8 }
 0x39b   : > { %v869_v50 = vpop.f32.mrf.mxu2 }
 0x39c   : > { %v870_v45 = vadd.f32 %v869_v50, %v3440_v8 }
 0x3a3   : > { %1166 = vmatmul.bf16.gmra.mxu1 %v1074_v46  ;;  %1215 = vmatmul.bf16.gmra.mxu2 %v3479_v60  ;;  %v3706_v60 = vpop.f32.mrf.mxu1  ;;  %v872_v59 = vpop.f32.mrf.mxu2 }
 0x3ab   : > { %v3710_v53 = vpop.f32.mrf.mxu1  ;;  %v874_v14 = vpop.f32.mrf.mxu2 }
 0x3ac   : > { %v875_v57 = vadd.f32 %v874_v14, %v3440_v8 }
 0x3b3   : > { %1171 = vmatmul.bf16.gmra.mxu1 %v1075_v19  ;;  %1220 = vmatmul.bf16.gmra.mxu2 %v3502_v15  ;;  %v1077_v15 = vpack.c.bf16 %v870_v45, %v868_v16  ;;  %v3713_v21 = vpop.f32.mrf.mxu1  ;;  %v877_v3 = vpop.f32.mrf.mxu2 }
 0x3b4   : > { %v878_v23 = vadd.f32 %v877_v3, %v3440_v8 }
 0x3bb   : > { %v3718_v29 = vpop.f32.mrf.mxu1  ;;  %v879_v58 = vpop.f32.mrf.mxu2 }
 0x3bc   : > { %v880_v0 = vadd.f32 %v879_v58, %v3440_v8 }
 0x3be   : > { %v1079_v10 = vpack.c.bf16 %v880_v0, %v878_v23 }
 0x3c3   : > { %1176 = vmatmul.bf16.gmra.mxu1 %v1076_v49  ;;  %1225 = vmatmul.bf16.gmra.mxu2 %v3525_v34  ;;  %v873_v34 = vadd.f32 %v872_v59, %v3440_v8  ;;  %v3722_v56 = vpop.f32.mrf.mxu1 }
 0x3c5   : > { %v1078_v44 = vpack.c.bf16 %v875_v57, %v873_v34 }
 0x3cb   : > { %v3725_v33 = vpop.f32.mrf.mxu1 }
 0x3d3   : > { %1181 = vmatmul.bf16.gmra.mxu1 %v1077_v15  ;;  %1230 = vmatmul.bf16.gmra.mxu2 %v3630_v38  ;;  %v882_v38 = vpop.f32.mrf.mxu2  ;;  %v3729_v25 = vpop.f32.mrf.mxu1 }
 0x3db   : > { %v884_v36 = vpop.f32.mrf.mxu2  ;;  %v3755_v48 = vpop.f32.mrf.mxu1 }
 0x3dc   : > { %v885_v4 = vadd.f32 %v884_v36, %v3440_v8 }
 0x3e3   : > { %1186 = vmatmul.bf16.gmra.mxu1 %v1078_v44  ;;  %1235 = vmatmul.bf16.gmra.mxu2 %v3650_v55  ;;  %v883_v55 = vadd.f32 %v882_v38, %v3440_v8 }
 0x3e5   : > { %v1080_v47 = vpack.c.bf16 %v885_v4, %v883_v55 }
 0x3f3   : > { %1191 = vmatmul.bf16.gmra.mxu1 %v1079_v10  ;;  %1240 = vmatmul.bf16.gmra.mxu2 %v3671_v12 }
 0x403   : > { %1196 = vmatmul.bf16.gmra.mxu1 %v1080_v47  ;;  %1245 = vmatmul.bf16.gmra.mxu2 %v3685_v1 }
 0x413   : > { %1250 = vmatmul.bf16.gmra.mxu2 %v1073_v39  ;;  %v3764_v39 = vpop.f32.mrf.mxu1 }
 0x416   : > { %v1211_v35 = vpop.f32.mrf.mxu2 }
 0x417   : > { %v1291_v43 = vmax.f32 %v3702_v24, %v1211_v35 }
 0x419   : > { %1292 = vmax.xlane.f32.xlu0 %v1291_v43 }
 0x41b   : > { %v3773_v17 = vpop.f32.mrf.mxu1 }
 0x41e   : > { %v1213_v22 = vpop.f32.mrf.mxu2 }
 0x41f   : > { %v1294_v12 = vmax.f32 %v3706_v60, %v1213_v22 }
 0x421   : > { %1295 = vmax.xlane.f32.xlu0 %v1294_v12 }
 0x423   : > { %1255 = vmatmul.bf16.gmra.mxu2 %v1074_v46  ;;  %v3788_v57 = vpop.f32.mrf.mxu1 }
 0x426   : > { %v1216_v7 = vpop.f32.mrf.mxu2 }
 0x427   : > { %v1297_v18 = vmax.f32 %v3710_v53, %v1216_v7 }
 0x429   : > { %1298 = vmax.xlane.f32.xlu1 %v1297_v18 }
 0x42e   : > { %v3735_v8 = vpop.f32.mrf.mxu2 }
 0x42f   : > { %v1300_v62 = vmax.f32 %v3713_v21, %v3735_v8 }
 0x431   : > { %1301 = vmax.xlane.f32.xlu1 %v1300_v62 }
 0x433   : > { %1260 = vmatmul.bf16.gmra.mxu2 %v1075_v19 }
 0x436   : > { %v3739_v28 = vpop.f32.mrf.mxu2 }
 0x437   : > { %v1303_v2 = vmax.f32 %v3718_v29, %v3739_v28 }
 0x439   : > { %1304 = vmax.xlane.f32.xlu2 %v1303_v2 }
 0x43e   : > { %v3743_v54 = vpop.f32.mrf.mxu2 }
 0x43f   : > { %v1306_v40 = vmax.f32 %v3722_v56, %v3743_v54 }
 0x441   : > { %1307 = vmax.xlane.f32.xlu2 %v1306_v40 }
 0x443   : > { %1265 = vmatmul.bf16.gmra.mxu2 %v1076_v49 }
 0x446   : > { %v3747_v31 = vpop.f32.mrf.mxu2 }
 0x447   : > { %v1309_v13 = vmax.f32 %v3725_v33, %v3747_v31 }
 0x449   : > { %1310 = vmax.xlane.f32.xlu0 %v1309_v13 }
 0x44e   : > { %v3751_v1 = vpop.f32.mrf.mxu2 }
 0x44f   : > { %v1312_v30 = vmax.f32 %v3729_v25, %v3751_v1 }
 0x451   : > { %1313 = vmax.xlane.f32.xlu1 %v1312_v30 }
 0x453   : > { %1270 = vmatmul.bf16.gmra.mxu2 %v1077_v15 }
 0x456   : > { %v3757_v52 = vpop.f32.mrf.mxu2 }
 0x457   : > { %v1315_v27 = vmax.f32 %v3755_v48, %v3757_v52 }
 0x459   : > { %1316 = vmax.xlane.f32.xlu1 %v1315_v27 }
 0x45e   : > { %v3761_v32 = vpop.f32.mrf.mxu2 }
 0x45f   : > { %v1318_v3 = vmax.f32 %v3764_v39, %v3761_v32 }
 0x463   : > { %1275 = vmatmul.bf16.gmra.mxu2 %v1078_v44 }
 0x466   : > { %v3767_v11 = vpop.f32.mrf.mxu2 }
 0x467   : > { %v1321_v36 = vmax.f32 %v3773_v17, %v3767_v11 }
 0x46e   : > { %v3782_v15 = vpop.f32.mrf.mxu2 }
 0x473   : > { %1280 = vmatmul.bf16.gmra.mxu2 %v1079_v10 }
 0x476   : > { %v3800_v4 = vpop.f32.mrf.mxu2 }
 0x47e   : > { %v3814_v62 = vpop.f32.mrf.mxu2 }
 0x483   : > { %1285 = vmatmul.bf16.gmra.mxu2 %v1080_v47 }
 0x48c   : > { %v1293_v42 = vpop.xlane.xlu0 %1292 }
 0x48d   : > { %v1387_v37 = vsub.f32 %v3702_v24, %v1293_v42  ;;  %v1388_v63 = vsub.f32 %v1211_v35, %v1293_v42 }
 0x48f   : > { %v1451_v6 = vmul.f32 1.442695, %v1387_v37  ;;  %v1453_v9 = vmul.f32 1.442695, %v1388_v63 }
 0x491   : > { %2514 = vpow2.f32 %v1451_v6 }
 0x492   : > { %2516 = vpow2.f32 %v1453_v9  ;;  %v3830_v9 = vpop.f32.mrf.mxu2 }
 0x494   : > { %v1296_v61 = vpop.xlane.xlu0 %1295 }
 0x495   : > { %v1389_v20 = vsub.f32 %v3706_v60, %v1296_v61  ;;  %v1390_v46 = vsub.f32 %v1213_v22, %v1296_v61 }
 0x497   : > { %v3769_v51 = vpop.eup %2514  ;;  %v1455_v5 = vmul.f32 1.442695, %v1389_v20  ;;  %v1457_v19 = vmul.f32 1.442695, %v1390_v46 }
 0x498   : > { %v3771_v26 = vpop.eup %2516 }
 0x499   : > { %2518 = vpow2.f32 %v1455_v5  ;;  %v1579_v24 = vadd.f32 %v3771_v26, %v3769_v51 }
 0x49a   : > { %2520 = vpow2.f32 %v1457_v19 }
 0x49b   : > { %1580 = vadd.xlane.f32.xlu2 %v1579_v24 }
 0x49c   : > { %v1299_v50 = vpop.xlane.xlu1 %1298 }
 0x49d   : > { %v1391_v41 = vsub.f32 %v3710_v53, %v1299_v50  ;;  %v1392_v49 = vsub.f32 %v1216_v7, %v1299_v50 }
 0x49f   : > { %v3778_v60 = vpop.eup %2518  ;;  %v1459_v59 = vmul.f32 1.442695, %v1391_v41  ;;  %v1461_v45 = vmul.f32 1.442695, %v1392_v49 }
 0x4a0   : > { %v3780_v16 = vpop.eup %2520 }
 0x4a1   : > { %2522 = vpow2.f32 %v1459_v59  ;;  %v1582_v14 = vadd.f32 %v3780_v16, %v3778_v60 }
 0x4a2   : > { %2524 = vpow2.f32 %v1461_v45 }
 0x4a3   : > { %1583 = vadd.xlane.f32.xlu0 %v1582_v14  ;;  %1319 = vmax.xlane.f32.xlu2 %v1318_v3  ;;  %v3848_v3 = vpop.f32.mrf.mxu2 }
 0x4a4   : > { %v1302_v53 = vpop.xlane.xlu1 %1301 }
 0x4a5   : > { %v1393_v34 = vsub.f32 %v3713_v21, %v1302_v53  ;;  %v1394_v44 = vsub.f32 %v3735_v8, %v1302_v53  ;;  %v3802_v21 = vpop.f32.mrf.mxu1  ;;  %v1324_v8 = vmax.f32 %v3788_v57, %v3782_v15 }
 0x4a6   : > { %v1327_v63 = vmax.f32 %v3802_v21, %v3800_v4 }
 0x4a7   : > { %v3792_v58 = vpop.eup %2522  ;;  %v1463_v0 = vmul.f32 1.442695, %v1393_v34  ;;  %v1465_v23 = vmul.f32 1.442695, %v1394_v44 }
 0x4a8   : > { %v3794_v38 = vpop.eup %2524 }
 0x4a9   : > { %2526 = vpow2.f32 %v1463_v0  ;;  %v1585_v10 = vadd.f32 %v3794_v38, %v3792_v58 }
 0x4aa   : > { %2528 = vpow2.f32 %v1465_v23 }
 0x4ab   : > { %1586 = vadd.xlane.f32.xlu0 %v1585_v10  ;;  %1322 = vmax.xlane.f32.xlu2 %v1321_v36 }
 0x4ac   : > { %v1305_v55 = vpop.xlane.xlu2 %1304 }
 0x4ad   : > { %v1395_v47 = vsub.f32 %v3718_v29, %v1305_v55  ;;  %v1396_v35 = vsub.f32 %v3739_v28, %v1305_v55  ;;  %v3818_v40 = vpop.f32.mrf.mxu1 }
 0x4ae   : > { %v1330_v50 = vmax.f32 %v3818_v40, %v3814_v62 }
 0x4af   : > { %v3806_v43 = vpop.eup %2526  ;;  %v1467_v22 = vmul.f32 1.442695, %v1395_v47  ;;  %v1469_v12 = vmul.f32 1.442695, %v1396_v35 }
 0x4b0   : > { %v3808_v7 = vpop.eup %2528 }
 0x4b1   : > { %2530 = vpow2.f32 %v1467_v22  ;;  %v1588_v18 = vadd.f32 %v3808_v7, %v3806_v43  ;;  %v3866_v22 = vpop.f32.mrf.mxu2 }
 0x4b2   : > { %2532 = vpow2.f32 %v1469_v12 }
 0x4b3   : > { %1589 = vadd.xlane.f32.xlu1 %v1588_v18  ;;  %1325 = vmax.xlane.f32.xlu0 %v1324_v8 }
 0x4b4   : > { %v1308_v29 = vpop.xlane.xlu2 %1307 }
 0x4b5   : > { %v1397_v28 = vsub.f32 %v3722_v56, %v1308_v29  ;;  %v1398_v2 = vsub.f32 %v3743_v54, %v1308_v29  ;;  %v3836_v19 = vpop.f32.mrf.mxu1 }
 0x4b6   : > { %v1333_v34 = vmax.f32 %v3836_v19, %v3830_v9 }
 0x4b7   : > { %v3820_v13 = vpop.eup %2530  ;;  %v1471_v30 = vmul.f32 1.442695, %v1397_v28  ;;  %v1473_v27 = vmul.f32 1.442695, %v1398_v2 }
 0x4b8   : > { %v3822_v42 = vpop.eup %2532 }
 0x4b9   : > { %2534 = vpow2.f32 %v1471_v30  ;;  %v1591_v37 = vadd.f32 %v3822_v42, %v3820_v13  ;;  %v3878_v29 = vpop.f32.mrf.mxu2 }
 0x4ba   : > { %2536 = vpow2.f32 %v1473_v27 }
 0x4bb   : > { %1592 = vadd.xlane.f32.xlu1 %v1591_v37  ;;  %1328 = vmax.xlane.f32.xlu0 %v1327_v63 }
 0x4bc   : > { %v1311_v56 = vpop.xlane.xlu0 %1310 }
 0x4bd   : > { %v1399_v54 = vsub.f32 %v3725_v33, %v1311_v56  ;;  %v1400_v6 = vsub.f32 %v3747_v31, %v1311_v56  ;;  %v3854_v44 = vpop.f32.mrf.mxu1 }
 0x4be   : > { %v1336_v35 = vmax.f32 %v3854_v44, %v3848_v3 }
 0x4bf   : > { %v3832_v61 = vpop.eup %2534  ;;  %v1475_v20 = vmul.f32 1.442695, %v1399_v54  ;;  %v1477_v46 = vmul.f32 1.442695, %v1400_v6 }
 0x4c0   : > { %v3834_v5 = vpop.eup %2536 }
 0x4c1   : > { %2538 = vpow2.f32 %v1475_v20  ;;  %v1594_v24 = vadd.f32 %v3834_v5, %v3832_v61  ;;  %v3884_v30 = vpop.f32.mrf.mxu2 }
 0x4c2   : > { %2540 = vpow2.f32 %v1477_v46 }
 0x4c3   : > { %1595 = vadd.xlane.f32.xlu2 %v1594_v24  ;;  %1331 = vmax.xlane.f32.xlu1 %v1330_v50 }
 0x4c4   : > { %v1314_v33 = vpop.xlane.xlu1 %1313 }
 0x4c5   : > { %v1401_v31 = vsub.f32 %v3729_v25, %v1314_v33  ;;  %v1402_v41 = vsub.f32 %v3751_v1, %v1314_v33 }
 0x4c7   : > { %v3844_v49 = vpop.eup %2538  ;;  %v1479_v59 = vmul.f32 1.442695, %v1401_v31  ;;  %v1481_v45 = vmul.f32 1.442695, %v1402_v41 }
 0x4c8   : > { %v3846_v14 = vpop.eup %2540 }
 0x4c9   : > { %2542 = vpow2.f32 %v1479_v59  ;;  %v1597_v53 = vadd.f32 %v3846_v14, %v3844_v49  ;;  %v3892_v31 = vpop.f32.mrf.mxu2 }
 0x4ca   : > { %2544 = vpow2.f32 %v1481_v45 }
 0x4cb   : > { %1598 = vadd.xlane.f32.xlu2 %v1597_v53  ;;  %1334 = vmax.xlane.f32.xlu1 %v1333_v34 }
 0x4cc   : > { %v1317_v25 = vpop.xlane.xlu1 %1316 }
 0x4cd   : > { %v1403_v1 = vsub.f32 %v3755_v48, %v1317_v25  ;;  %v1404_v0 = vsub.f32 %v3757_v52, %v1317_v25  ;;  %v3868_v48 = vpop.f32.mrf.mxu1 }
 0x4ce   : > { %v1339_v8 = vmax.f32 %v3868_v48, %v3866_v22 }
 0x4cf   : > { %v3858_v23 = vpop.eup %2542  ;;  %v1483_v10 = vmul.f32 1.442695, %v1403_v1  ;;  %v1485_v36 = vmul.f32 1.442695, %v1404_v0 }
 0x4d0   : > { %v3860_v55 = vpop.eup %2544 }
 0x4d1   : > { %2546 = vpow2.f32 %v1483_v10  ;;  %v1600_v47 = vadd.f32 %v3860_v55, %v3858_v23 }
 0x4d2   : > { %2548 = vpow2.f32 %v1485_v36 }
 0x4d3   : > { %1601 = vadd.xlane.f32.xlu0 %v1600_v47  ;;  %1337 = vmax.xlane.f32.xlu2 %v1336_v35 }
 0x4d5   : > { %v3880_v28 = vpop.f32.mrf.mxu1 }
 0x4d6   : > { %v1342_v2 = vmax.f32 %v3880_v28, %v3878_v29 }
 0x4d7   : > { %v3870_v52 = vpop.eup %2546 }
 0x4d8   : > { %v3872_v12 = vpop.eup %2548 }
 0x4d9   : > { %v1603_v18 = vadd.f32 %v3872_v12, %v3870_v52 }
 0x4db   : > { %1604 = vadd.xlane.f32.xlu0 %v1603_v18  ;;  %1340 = vmax.xlane.f32.xlu2 %v1339_v8 }
 0x4dd   : > { %v3886_v27 = vpop.f32.mrf.mxu1 }
 0x4de   : > { %v1345_v37 = vmax.f32 %v3886_v27, %v3884_v30 }
 0x4e3   : > { %1343 = vmax.xlane.f32.xlu0 %v1342_v2 }
 0x4e5   : > { %v3898_v25 = vpop.f32.mrf.mxu1 }
 0x4eb   : > { %1346 = vmax.xlane.f32.xlu0 %v1345_v37 }
 0x4ed   : > { %v3914_v2 = vpop.f32.mrf.mxu1 }
 0x50e   : > { %v1581_v63 = vpop.xlane.xlu2 %1580 }
 0x50f   : > { %2550 = vrcp.f32 %v1581_v63 }
 0x515   : > { %v2551_v50 = vpop.eup %2550 }
 0x516   : > { %v1584_v56 = vpop.xlane.xlu0 %1583  ;;  %v1320_v54 = vpop.xlane.xlu2 %1319  ;;  %v1707_v41 = vmul.f32 %v2551_v50, %v3769_v51  ;;  %v1708_v59 = vmul.f32 %v2551_v50, %v3771_v26 }
 0x517   : > { %2552 = vrcp.f32 %v1584_v56  ;;  %v1405_v6 = vsub.f32 %v3764_v39, %v1320_v54  ;;  %v1406_v20 = vsub.f32 %v3761_v32, %v1320_v54 }
 0x519   : > { %v1487_v46 = vmul.f32 1.442695, %v1405_v6  ;;  %v1489_v24 = vmul.f32 1.442695, %v1406_v20 }
 0x51b   : > { %2554 = vpow2.f32 %v1487_v46 }
 0x51c   : > { %2556 = vpow2.f32 %v1489_v24 }
 0x51d   : > { %v2553_v33 = vpop.eup %2552 }
 0x51e   : > { %v1709_v45 = vmul.f32 %v2553_v33, %v3778_v60  ;;  %v1710_v53 = vmul.f32 %v2553_v33, %v3780_v16  ;;  %v1587_v34 = vpop.xlane.xlu0 %1586  ;;  %v1323_v39 = vpop.xlane.xlu2 %1322 }
 0x51f   : > { %v1407_v32 = vsub.f32 %v3773_v17, %v1323_v39  ;;  %v1408_v1 = vsub.f32 %v3767_v11, %v1323_v39  ;;  %v3908_v11 = vpop.f32.mrf.mxu2 }
 0x520   : > { %v1772_v0 = vpack.c.bf16 %v1710_v53, %v1708_v59  ;;  %v1771_v10 = vpack.c.bf16 %v1709_v45, %v1707_v41 }
 0x521   : > { %v3902_v36 = vpop.eup %2554  ;;  %v1491_v47 = vmul.f32 1.442695, %v1407_v32  ;;  %v1493_v51 = vmul.f32 1.442695, %v1408_v1 }
 0x522   : > { %v3904_v35 = vpop.eup %2556  ;;  %1811 = vmatmul.bf16.vlgmr.msrb.gmra.mxu3 %v1771_v10  ;;  %1900 = vmatmul.bf16.vlgmr.msra.gmra.mxu0 %v1772_v0 }
 0x523   : > { %2558 = vpow2.f32 %v1491_v47  ;;  %v1606_v26 = vadd.f32 %v3904_v35, %v3902_v36 }
 0x524   : > { %2560 = vpow2.f32 %v1493_v51 }
 0x525   : > { %2562 = vrcp.f32 %v1587_v34  ;;  %1607 = vadd.xlane.f32.xlu1 %v1606_v26 }
 0x526   : > { %v1590_v17 = vpop.xlane.xlu1 %1589  ;;  %v1326_v60 = vpop.xlane.xlu0 %1325 }
 0x527   : > { %2564 = vrcp.f32 %v1590_v17  ;;  %v1409_v16 = vsub.f32 %v3788_v57, %v1326_v60  ;;  %v1410_v18 = vsub.f32 %v3782_v15, %v1326_v60  ;;  %v3928_v39 = vpop.f32.mrf.mxu2 }
 0x529   : > { %v3912_v8 = vpop.eup %2558  ;;  %v1495_v37 = vmul.f32 1.442695, %v1409_v16  ;;  %v1497_v63 = vmul.f32 1.442695, %v1410_v18 }
 0x52a   : > { %v3916_v56 = vpop.eup %2560 }
 0x52b   : > { %v2563_v54 = vpop.eup %2562  ;;  %2566 = vpow2.f32 %v1495_v37  ;;  %v1609_v6 = vadd.f32 %v3916_v56, %v3912_v8  ;;  %v1351_v37 = vmax.f32 %v3914_v2, %v3908_v11 }
 0x52c   : > { %2568 = vpow2.f32 %v1497_v63  ;;  %v1711_v15 = vmul.f32 %v2563_v54, %v3792_v58  ;;  %v1712_v50 = vmul.f32 %v2563_v54, %v3794_v38  ;;  %v3932_v58 = vpop.f32.mrf.mxu1 }
 0x52d   : > { %v2565_v20 = vpop.eup %2564  ;;  %1610 = vadd.xlane.f32.xlu1 %v1609_v6 }
 0x52e   : > { %v1593_v46 = vpop.xlane.xlu1 %1592  ;;  %v1329_v57 = vpop.xlane.xlu0 %1328  ;;  %v1713_v24 = vmul.f32 %v2565_v20, %v3806_v43  ;;  %v1714_v33 = vmul.f32 %v2565_v20, %v3808_v7 }
 0x52f   : > { %v1411_v41 = vsub.f32 %v3802_v21, %v1329_v57  ;;  %v1412_v59 = vsub.f32 %v3800_v4, %v1329_v57  ;;  %v1348_v4 = vmax.f32 %v3898_v25, %v3892_v31  ;;  %v3944_v16 = vpop.f32.mrf.mxu2 }
 0x530   : > { %v1773_v45 = vpack.c.bf16 %v1713_v24, %v1711_v15  ;;  %v1774_v53 = vpack.c.bf16 %v1714_v33, %v1712_v50 }
 0x531   : > { %v3926_v34 = vpop.eup %2566  ;;  %v1499_v32 = vmul.f32 1.442695, %v1411_v41  ;;  %v1501_v1 = vmul.f32 1.442695, %v1412_v59 }
 0x532   : > { %v3930_v0 = vpop.eup %2568  ;;  %1816 = vmatmul.bf16.gmra.mxu3 %v1773_v45  ;;  %1905 = vmatmul.bf16.gmra.mxu0 %v1774_v53 }
 0x533   : > { %2570 = vpow2.f32 %v1499_v32  ;;  %v1612_v38 = vadd.f32 %v3930_v0, %v3926_v34 }
 0x534   : > { %2572 = vpow2.f32 %v1501_v1  ;;  %v3950_v63 = vpop.f32.mrf.mxu1 }
 0x535   : > { %2574 = vrcp.f32 %v1593_v46  ;;  %1613 = vadd.xlane.f32.xlu2 %v1612_v38  ;;  %1349 = vmax.xlane.f32.xlu1 %v1348_v4 }
 0x536   : > { %v1596_v21 = vpop.xlane.xlu2 %1595  ;;  %v1332_v43 = vpop.xlane.xlu1 %1331 }
 0x537   : > { %2576 = vrcp.f32 %v1596_v21  ;;  %v1413_v7 = vsub.f32 %v3818_v40, %v1332_v43  ;;  %v1414_v10 = vsub.f32 %v3814_v62, %v1332_v43 }
 0x539   : > { %v3940_v47 = vpop.eup %2570  ;;  %v1503_v51 = vmul.f32 1.442695, %v1413_v7  ;;  %v1505_v26 = vmul.f32 1.442695, %v1414_v10 }
 0x53a   : > { %v3942_v17 = vpop.eup %2572 }
 0x53b   : > { %v2575_v60 = vpop.eup %2574  ;;  %2578 = vpow2.f32 %v1503_v51  ;;  %v1615_v18 = vadd.f32 %v3942_v17, %v3940_v47  ;;  %v1357_v51 = vmax.f32 %v3950_v63, %v3944_v16 }
 0x53c   : > { %2580 = vpow2.f32 %v1505_v26  ;;  %v1715_v6 = vmul.f32 %v2575_v60, %v3820_v13  ;;  %v1716_v46 = vmul.f32 %v2575_v60, %v3822_v42  ;;  %v1354_v42 = vmax.f32 %v3932_v58, %v3928_v39  ;;  %v3970_v1 = vpop.f32.mrf.mxu1 }
 0x53d   : > { %v2577_v40 = vpop.eup %2576  ;;  %1616 = vadd.xlane.f32.xlu2 %v1615_v18  ;;  %1352 = vmax.xlane.f32.xlu1 %v1351_v37 }
 0x53e   : > { %v1599_v62 = vpop.xlane.xlu2 %1598  ;;  %v1335_v54 = vpop.xlane.xlu1 %1334  ;;  %v1717_v20 = vmul.f32 %v2577_v40, %v3832_v61  ;;  %v1718_v57 = vmul.f32 %v2577_v40, %v3834_v5 }
 0x53f   : > { %v1415_v15 = vsub.f32 %v3836_v19, %v1335_v54  ;;  %v1416_v24 = vsub.f32 %v3830_v9, %v1335_v54  ;;  %v3966_v61 = vpop.f32.mrf.mxu2 }
 0x540   : > { %v1775_v50 = vpack.c.bf16 %v1717_v20, %v1715_v6  ;;  %v1776_v33 = vpack.c.bf16 %v1718_v57, %v1716_v46 }
 0x541   : > { %v3958_v41 = vpop.eup %2578  ;;  %v1507_v59 = vmul.f32 1.442695, %v1415_v15  ;;  %v1509_v45 = vmul.f32 1.442695, %v1416_v24 }
 0x542   : > { %v3960_v53 = vpop.eup %2580  ;;  %1821 = vmatmul.bf16.gmra.mxu3 %v1775_v50  ;;  %1910 = vmatmul.bf16.gmra.mxu0 %v1776_v33 }
 0x543   : > { %2582 = vpow2.f32 %v1507_v59  ;;  %v1618_v13 = vadd.f32 %v3960_v53, %v3958_v41 }
 0x544   : > { %2584 = vpow2.f32 %v1509_v45 }
 0x545   : > { %2586 = vrcp.f32 %v1599_v62  ;;  %1619 = vadd.xlane.f32.xlu0 %v1618_v13  ;;  %1355 = vmax.xlane.f32.xlu2 %v1354_v42 }
 0x546   : > { %v1602_v9 = vpop.xlane.xlu0 %1601  ;;  %v1338_v5 = vpop.xlane.xlu2 %1337 }
 0x547   : > { %2588 = vrcp.f32 %v1602_v9  ;;  %v1417_v19 = vsub.f32 %v3854_v44, %v1338_v5  ;;  %v1418_v32 = vsub.f32 %v3848_v3, %v1338_v5  ;;  %v3988_v6 = vpop.f32.mrf.mxu2 }
 0x549   : > { %v3972_v38 = vpop.eup %2582  ;;  %v1511_v4 = vmul.f32 1.442695, %v1417_v19  ;;  %v1513_v21 = vmul.f32 1.442695, %v1418_v32 }
 0x54a   : > { %v3974_v43 = vpop.eup %2584 }
 0x54b   : > { %v2587_v7 = vpop.eup %2586  ;;  %2590 = vpow2.f32 %v1511_v4  ;;  %v1621_v10 = vadd.f32 %v3974_v43, %v3972_v38 }
 0x54c   : > { %2592 = vpow2.f32 %v1513_v21  ;;  %v1719_v60 = vmul.f32 %v2587_v7, %v3844_v49  ;;  %v1720_v37 = vmul.f32 %v2587_v7, %v3846_v14  ;;  %v3994_v49 = vpop.f32.mrf.mxu1  ;;  %v2467_v21 = vld [vmem:[%s4389_s6 + $0x30] sm:$0xff] }
 0x54d   : > { %v2589_v44 = vpop.eup %2588  ;;  %1622 = vadd.xlane.f32.xlu0 %v1621_v10  ;;  %1358 = vmax.xlane.f32.xlu2 %v1357_v51  ;;  %v1363_v5 = vmax.f32 %v3994_v49, %v3988_v6 }
 0x54e   : > { %v3980_v3 = vpop.xlane.xlu0 %1604  ;;  %v1341_v26 = vpop.xlane.xlu2 %1340  ;;  %v1721_v18 = vmul.f32 %v2589_v44, %v3858_v23  ;;  %v1722_v40 = vmul.f32 %v2589_v44, %v3860_v55  ;;  %v1360_v23 = vmax.f32 %v3970_v1, %v3966_v61 }
 0x54f   : > { %v1419_v62 = vsub.f32 %v3868_v48, %v1341_v26  ;;  %v1420_v54 = vsub.f32 %v3866_v22, %v1341_v26  ;;  %v4006_v42 = vpop.f32.mrf.mxu2 }
 0x550   : > { %v1777_v20 = vpack.c.bf16 %v1721_v18, %v1719_v60  ;;  %v1778_v46 = vpack.c.bf16 %v1722_v40, %v1720_v37 }
 0x551   : > { %v3990_v57 = vpop.eup %2590  ;;  %v1515_v15 = vmul.f32 1.442695, %v1419_v62  ;;  %v1517_v24 = vmul.f32 1.442695, %v1420_v54 }
 0x552   : > { %v3992_v50 = vpop.eup %2592  ;;  %1826 = vmatmul.bf16.gmra.mxu3 %v1777_v20  ;;  %1915 = vmatmul.bf16.gmra.mxu0 %v1778_v46 }
 0x553   : > { %2594 = vpow2.f32 %v1515_v15  ;;  %v1624_v14 = vadd.f32 %v3992_v50, %v3990_v57 }
 0x554   : > { %2596 = vpow2.f32 %v1517_v24  ;;  %v4012_v19 = vpop.f32.mrf.mxu1  ;;  %v2466_v24 = vld [vmem:[%s4389_s6 + $0x28] sm:$0xff] }
 0x555   : > { %1625 = vadd.xlane.f32.xlu1 %v1624_v14  ;;  %1361 = vmax.xlane.f32.xlu0 %v1360_v23 }
 0x556   : > { %v1344_v55 = vpop.xlane.xlu0 %1343 }
 0x557   : > { %v1421_v22 = vsub.f32 %v3880_v28, %v1344_v55  ;;  %v1422_v48 = vsub.f32 %v3878_v29, %v1344_v55  ;;  %v2468_v29 = vld [vmem:[%s4389_s6 + $0x38] sm:$0xff]  ;;  %v2465_v55 = vld [vmem:[%s4389_s6 + $0x20] sm:$0xff] }
 0x558   : > { %2065 = vmatpush.bf16.msrb.mxu1 %v2468_v29 }
 0x559   : > { %v4002_v33 = vpop.eup %2594  ;;  %v1519_v59 = vmul.f32 1.442695, %v1421_v22  ;;  %v1521_v45 = vmul.f32 1.442695, %v1422_v48  ;;  %v2464_v22 = vld [vmem:[%s4389_s6 + $0x18] sm:$0xff]  ;;  %v2463_v48 = vld [vmem:[%s4389_s6 + $0x10] sm:$0xff] }
 0x55a   : > { %v4004_v13 = vpop.eup %2596 }
 0x55b   : > { %2598 = vpow2.f32 %v1519_v59  ;;  %v1627_v9 = vadd.f32 %v4004_v13, %v4002_v33  ;;  %v2462_v59 = vld [vmem:[%s4389_s6 + $0x8] sm:$0xff] }
 0x55c   : > { %2600 = vpow2.f32 %v1521_v45  ;;  %2066 = vmatpush.bf16.msrb.mxu1 %v2467_v21  ;;  %v4032_v60 = vpop.f32.mrf.mxu1  ;;  %v2461_v45 = vld [vmem:[%s4389_s6] sm:$0xff] }
 0x55d   : > { %1628 = vadd.xlane.f32.xlu1 %v1627_v9  ;;  %1364 = vmax.xlane.f32.xlu0 %v1363_v5 }
 0x55e   : > { %v1347_v28 = vpop.xlane.xlu0 %1346 }
 0x55f   : > { %v1423_v32 = vsub.f32 %v3886_v27, %v1347_v28  ;;  %v1424_v4 = vsub.f32 %v3884_v30, %v1347_v28  ;;  %v1366_v27 = vmax.f32 %v4012_v19, %v4006_v42  ;;  %v4030_v30 = vpop.f32.mrf.mxu2 }
 0x560   : > { %v1369_v62 = vmax.f32 %v4032_v60, %v4030_v30  ;;  %2067 = vmatpush.bf16.msrb.mxu1 %v2466_v24 }
 0x561   : > { %v4022_v7 = vpop.eup %2598  ;;  %v1523_v10 = vmul.f32 1.442695, %v1423_v32  ;;  %v1525_v51 = vmul.f32 1.442695, %v1424_v4 }
 0x562   : > { %v4024_v44 = vpop.eup %2600 }
 0x563   : > { %2602 = vpow2.f32 %v1523_v10  ;;  %v1630_v26 = vadd.f32 %v4024_v44, %v4022_v7 }
 0x564   : > { %2604 = vpow2.f32 %v1525_v51  ;;  %v4044_v20 = vpop.f32.mrf.mxu1  ;;  %2068 = vmatpush.bf16.msrb.mxu1 %v2465_v55 }
 0x565   : > { %1631 = vadd.xlane.f32.xlu2 %v1630_v26  ;;  %1367 = vmax.xlane.f32.xlu1 %v1366_v27  ;;  %2606 = vrcp.f32 %v3980_v3 }
 0x567   : > { %v4042_v54 = vpop.f32.mrf.mxu2 }
 0x568   : > { %v1372_v46 = vmax.f32 %v4044_v20, %v4042_v54  ;;  %2069 = vmatpush.bf16.msrb.mxu1 %v2464_v22 }
 0x569   : > { %v4034_v18 = vpop.eup %2602 }
 0x56a   : > { %v4036_v37 = vpop.eup %2604 }
 0x56b   : > { %v1633_v40 = vadd.f32 %v4036_v37, %v4034_v18  ;;  %v2607_v5 = vpop.eup %2606 }
 0x56c   : > { %v4053_v14 = vpop.f32.mrf.mxu1  ;;  %2070 = vmatpush.bf16.msrb.mxu1 %v2463_v48  ;;  %v1723_v4 = vmul.f32 %v2607_v5, %v3870_v52  ;;  %v1724_v10 = vmul.f32 %v2607_v5, %v3872_v12 }
 0x56d   : > { %1634 = vadd.xlane.f32.xlu2 %v1633_v40  ;;  %1370 = vmax.xlane.f32.xlu1 %v1369_v62 }
 0x56f   : > { %v4048_v15 = vpop.f32.mrf.mxu2 }
 0x570   : > { %v1375_v23 = vmax.f32 %v4053_v14, %v4048_v15  ;;  %2071 = vmatpush.bf16.msrb.mxu1 %v2462_v59 }
 0x574   : > { %2072 = vmatpush.bf16.msrb.mxu1 %v2461_v45 }
 0x575   : > { %1373 = vmax.xlane.f32.xlu2 %v1372_v46 }
 0x57d   : > { %1376 = vmax.xlane.f32.xlu2 %v1375_v23 }
 0x598   : > { %v1608_v9 = vpop.xlane.xlu1 %1607 }
 0x599   : > { %2608 = vrcp.f32 %v1608_v9 }
 0x59f   : > { %v2609_v29 = vpop.eup %2608  ;;  %v1901_v28 = vpop.f32.mrf.mxu0 }
 0x5a0   : > { %v1611_v32 = vpop.xlane.xlu1 %1610  ;;  %v1725_v21 = vmul.f32 %v2609_v29, %v3902_v36  ;;  %v1726_v51 = vmul.f32 %v2609_v29, %v3904_v35 }
 0x5a1   : > { %2610 = vrcp.f32 %v1611_v32 }
 0x5a2   : > { %v1779_v26 = vpack.c.bf16 %v1725_v21, %v1723_v4  ;;  %v1780_v27 = vpack.c.bf16 %v1726_v51, %v1724_v10 }
 0x5a4   : > { %1831 = vmatmul.bf16.gmra.mxu3 %v1779_v26  ;;  %1920 = vmatmul.bf16.gmra.mxu0 %v1780_v27 }
 0x5a5   : > { %v1812_v40 = vpop.f32.mrf.mxu3 }
 0x5a6   : > { %v1902_v35 = vadd.f32 %v1901_v28, %v1812_v40 }
 0x5a7   : > { %v1903_v3 = vpop.f32.mrf.mxu0  ;;  %v2611_v55 = vpop.eup %2610 }
 0x5a8   : > { %v1614_v62 = vpop.xlane.xlu2 %1613  ;;  %v1350_v46 = vpop.xlane.xlu1 %1349  ;;  %v1727_v45 = vmul.f32 %v2611_v55, %v3912_v8 }
 0x5a9   : > { %2612 = vrcp.f32 %v1614_v62  ;;  %v1425_v24 = vsub.f32 %v3898_v25, %v1350_v46  ;;  %v1426_v52 = vsub.f32 %v3892_v31, %v1350_v46  ;;  %v1728_v25 = vmul.f32 %v2611_v55, %v3916_v56 }
 0x5ab   : > { %v1527_v23 = vmul.f32 1.442695, %v1425_v24  ;;  %v1529_v36 = vmul.f32 1.442695, %v1426_v52 }
 0x5ad   : > { %2614 = vpow2.f32 %v1527_v23  ;;  %v1814_v12 = vpop.f32.mrf.mxu3 }
 0x5ae   : > { %2616 = vpow2.f32 %v1529_v36  ;;  %v1904_v22 = vadd.f32 %v1903_v3, %v1814_v12  ;;  %v4097_v36 = vpop.f32.mrf.mxu2 }
 0x5af   : > { %v2613_v48 = vpop.eup %2612  ;;  %v1906_v59 = vpop.f32.mrf.mxu0 }
 0x5b0   : > { %v1981_v9 = vpack.c.bf16 %v1904_v22, %v1902_v35  ;;  %v1617_v5 = vpop.xlane.xlu2 %1616  ;;  %v1353_v29 = vpop.xlane.xlu1 %1352  ;;  %v1729_v32 = vmul.f32 %v2613_v48, %v3926_v34  ;;  %v1730_v31 = vmul.f32 %v2613_v48, %v3930_v0 }
 0x5b1   : > { %v1427_v4 = vsub.f32 %v3914_v2, %v1353_v29  ;;  %v1428_v21 = vsub.f32 %v3908_v11, %v1353_v29  ;;  %2618 = vrcp.f32 %v1617_v5  ;;  %v4101_v48 = vpop.f32.mrf.mxu1 }
 0x5b2   : > { %2073 = vmatmul.bf16.vlgmr.msrb.gmra.mxu1 %v1981_v9  ;;  %v1781_v28 = vpack.c.bf16 %v1729_v32, %v1727_v45  ;;  %v1782_v10 = vpack.c.bf16 %v1730_v31, %v1728_v25 }
 0x5b3   : > { %v4085_v51 = vpop.eup %2614  ;;  %v1531_v26 = vmul.f32 1.442695, %v1427_v4  ;;  %v1533_v8 = vmul.f32 1.442695, %v1428_v21 }
 0x5b4   : > { %v4087_v27 = vpop.eup %2616  ;;  %1836 = vmatmul.bf16.gmra.mxu3 %v1781_v28  ;;  %1925 = vmatmul.bf16.gmra.mxu0 %v1782_v10 }
 0x5b5   : > { %2620 = vpow2.f32 %v1531_v26  ;;  %v1817_v56 = vpop.f32.mrf.mxu3  ;;  %v1636_v34 = vadd.f32 %v4087_v27, %v4085_v51 }
 0x5b6   : > { %2622 = vpow2.f32 %v1533_v8  ;;  %v1907_v35 = vadd.f32 %v1906_v59, %v1817_v56 }
 0x5b7   : > { %1637 = vadd.xlane.f32.xlu0 %v1636_v34  ;;  %v1908_v11 = vpop.f32.mrf.mxu0  ;;  %v2619_v62 = vpop.eup %2618 }
 0x5b8   : > { %v1620_v2 = vpop.xlane.xlu0 %1619  ;;  %v1356_v0 = vpop.xlane.xlu2 %1355  ;;  %v1731_v45 = vmul.f32 %v2619_v62, %v3940_v47  ;;  %v1732_v25 = vmul.f32 %v2619_v62, %v3942_v17 }
 0x5b9   : > { %2624 = vrcp.f32 %v1620_v2  ;;  %v1429_v40 = vsub.f32 %v3932_v58, %v1356_v0  ;;  %v1430_v3 = vsub.f32 %v3928_v39, %v1356_v0 }
 0x5bb   : > { %v4093_v46 = vpop.eup %2620  ;;  %v1535_v24 = vmul.f32 1.442695, %v1429_v40  ;;  %v1537_v52 = vmul.f32 1.442695, %v1430_v3  ;;  %v4121_v40 = vpop.f32.mrf.mxu1 }
 0x5bc   : > { %v4095_v23 = vpop.eup %2622 }
 0x5bd   : > { %2626 = vpow2.f32 %v1535_v24  ;;  %v1819_v55 = vpop.f32.mrf.mxu3  ;;  %v1639_v12 = vadd.f32 %v4095_v23, %v4093_v46 }
 0x5be   : > { %2628 = vpow2.f32 %v1537_v52  ;;  %v1909_v22 = vadd.f32 %v1908_v11, %v1819_v55 }
 0x5bf   : > { %v2625_v58 = vpop.eup %2624  ;;  %1640 = vadd.xlane.f32.xlu0 %v1639_v12  ;;  %v1911_v39 = vpop.f32.mrf.mxu0 }
 0x5c0   : > { %v1982_v9 = vpack.c.bf16 %v1909_v22, %v1907_v35  ;;  %v1623_v5 = vpop.xlane.xlu0 %1622  ;;  %v1359_v29 = vpop.xlane.xlu2 %1358  ;;  %v1733_v32 = vmul.f32 %v2625_v58, %v3958_v41  ;;  %v1734_v31 = vmul.f32 %v2625_v58, %v3960_v53 }
 0x5c1   : > { %v1431_v59 = vsub.f32 %v3950_v63, %v1359_v29  ;;  %v1432_v4 = vsub.f32 %v3944_v16, %v1359_v29  ;;  %2630 = vrcp.f32 %v1623_v5  ;;  %v1378_v16 = vmax.f32 %v4101_v48, %v4097_v36  ;;  %v4117_v63 = vpop.f32.mrf.mxu2 }
 0x5c2   : > { %2078 = vmatmul.bf16.gmra.mxu1 %v1982_v9  ;;  %v1783_v21 = vpack.c.bf16 %v1733_v32, %v1731_v45  ;;  %v1784_v28 = vpack.c.bf16 %v1734_v31, %v1732_v25  ;;  %v1381_v35 = vmax.f32 %v4121_v40, %v4117_v63 }
 0x5c3   : > { %v4109_v10 = vpop.eup %2626  ;;  %v1539_v26 = vmul.f32 1.442695, %v1431_v59  ;;  %v1541_v47 = vmul.f32 1.442695, %v1432_v4 }
 0x5c4   : > { %v4111_v8 = vpop.eup %2628  ;;  %1841 = vmatmul.bf16.gmra.mxu3 %v1783_v21  ;;  %1930 = vmatmul.bf16.gmra.mxu0 %v1784_v28 }
 0x5c5   : > { %2632 = vpow2.f32 %v1539_v26  ;;  %v1822_v17 = vpop.f32.mrf.mxu3  ;;  %v1642_v41 = vadd.f32 %v4111_v8, %v4109_v10 }
 0x5c6   : > { %2634 = vpow2.f32 %v1541_v47 }
 0x5c7   : > { %1643 = vadd.xlane.f32.xlu1 %v1642_v41  ;;  %1379 = vmax.xlane.f32.xlu0 %v1378_v16  ;;  %v1913_v34 = vpop.f32.mrf.mxu0  ;;  %v2631_v0 = vpop.eup %2630 }
 0x5c8   : > { %v1626_v53 = vpop.xlane.xlu1 %1625  ;;  %v1362_v56 = vpop.xlane.xlu0 %1361  ;;  %v1735_v58 = vmul.f32 %v2631_v0, %v3972_v38  ;;  %v1736_v32 = vmul.f32 %v2631_v0, %v3974_v43 }
 0x5c9   : > { %2636 = vrcp.f32 %v1626_v53  ;;  %v1433_v11 = vsub.f32 %v3970_v1, %v1362_v56  ;;  %v1434_v2 = vsub.f32 %v3966_v61, %v1362_v56  ;;  %v1912_v1 = vadd.f32 %v1911_v39, %v1822_v17  ;;  %v4137_v59 = vpop.f32.mrf.mxu2 }
 0x5cb   : > { %v4123_v3 = vpop.eup %2632  ;;  %v1543_v62 = vmul.f32 1.442695, %v1433_v11  ;;  %v1545_v24 = vmul.f32 1.442695, %v1434_v2 }
 0x5cc   : > { %v4125_v52 = vpop.eup %2634 }
 0x5cd   : > { %2638 = vpow2.f32 %v1543_v62  ;;  %v1824_v55 = vpop.f32.mrf.mxu3  ;;  %v1645_v12 = vadd.f32 %v4125_v52, %v4123_v3 }
 0x5ce   : > { %2640 = vpow2.f32 %v1545_v24  ;;  %v1914_v61 = vadd.f32 %v1913_v34, %v1824_v55 }
 0x5cf   : > { %v2637_v22 = vpop.eup %2636  ;;  %1646 = vadd.xlane.f32.xlu1 %v1645_v12  ;;  %1382 = vmax.xlane.f32.xlu0 %v1381_v35  ;;  %v1916_v38 = vpop.f32.mrf.mxu0 }
 0x5d0   : > { %v1983_v45 = vpack.c.bf16 %v1914_v61, %v1912_v1  ;;  %v1629_v9 = vpop.xlane.xlu1 %1628  ;;  %v1365_v5 = vpop.xlane.xlu0 %1364  ;;  %v1737_v29 = vmul.f32 %v2637_v22, %v3990_v57  ;;  %v1738_v25 = vmul.f32 %v2637_v22, %v3992_v50 }
 0x5d1   : > { %v1435_v31 = vsub.f32 %v3994_v49, %v1365_v5  ;;  %v1436_v39 = vsub.f32 %v3988_v6, %v1365_v5  ;;  %v4143_v57 = vpop.f32.mrf.mxu1  ;;  %2642 = vrcp.f32 %v1629_v9 }
 0x5d2   : > { %2083 = vmatmul.bf16.gmra.mxu1 %v1983_v45  ;;  %v1785_v4 = vpack.c.bf16 %v1737_v29, %v1735_v58  ;;  %v1786_v21 = vpack.c.bf16 %v1738_v25, %v1736_v32  ;;  %v1384_v43 = vmax.f32 %v4143_v57, %v4137_v59 }
 0x5d3   : > { %v4139_v28 = vpop.eup %2638  ;;  %v1547_v26 = vmul.f32 1.442695, %v1435_v31  ;;  %v1549_v47 = vmul.f32 1.442695, %v1436_v39 }
 0x5d4   : > { %v4141_v17 = vpop.eup %2640  ;;  %1846 = vmatmul.bf16.gmra.mxu3 %v1785_v4  ;;  %1935 = vmatmul.bf16.gmra.mxu0 %v1786_v21 }
 0x5d5   : > { %2644 = vpow2.f32 %v1547_v26  ;;  %v1827_v6 = vpop.f32.mrf.mxu3  ;;  %v1648_v50 = vadd.f32 %v4141_v17, %v4139_v28 }
 0x5d6   : > { %2646 = vpow2.f32 %v1549_v47  ;;  %v1917_v12 = vadd.f32 %v1916_v38, %v1827_v6 }
 0x5d7   : > { %1649 = vadd.xlane.f32.xlu2 %v1648_v50  ;;  %1385 = vmax.xlane.f32.xlu1 %v1384_v43  ;;  %v2643_v56 = vpop.eup %2642  ;;  %v1918_v62 = vpop.f32.mrf.mxu0 }
 0x5d8   : > { %v1632_v49 = vpop.xlane.xlu2 %1631  ;;  %v1368_v41 = vpop.xlane.xlu1 %1367  ;;  %v1740_v45 = vmul.f32 %v2643_v56, %v4004_v13 }
 0x5d9   : > { %2648 = vrcp.f32 %v1632_v49  ;;  %v1437_v16 = vsub.f32 %v4012_v19, %v1368_v41  ;;  %v1438_v53 = vsub.f32 %v4006_v42, %v1368_v41  ;;  %v1739_v42 = vmul.f32 %v2643_v56, %v4002_v33 }
 0x5db   : > { %v4151_v34 = vpop.eup %2644  ;;  %v1551_v11 = vmul.f32 1.442695, %v1437_v16  ;;  %v1553_v2 = vmul.f32 1.442695, %v1438_v53 }
 0x5dc   : > { %v4153_v0 = vpop.eup %2646 }
 0x5dd   : > { %2650 = vpow2.f32 %v1551_v11  ;;  %v1829_v24 = vpop.f32.mrf.mxu3  ;;  %v1651_v55 = vadd.f32 %v4153_v0, %v4151_v34 }
 0x5de   : > { %2652 = vpow2.f32 %v1553_v2  ;;  %v1919_v35 = vadd.f32 %v1918_v62, %v1829_v24  ;;  %v4195_v24 = vld [vmem:[%s4390_s7] ss:$0 sm:$0xff] }
 0x5df   : > { %v2649_v1 = vpop.eup %2648  ;;  %1652 = vadd.xlane.f32.xlu2 %v1651_v55 }
 0x5e0   : > { %v1984_v19 = vpack.c.bf16 %v1919_v35, %v1917_v12  ;;  %v1635_v61 = vpop.xlane.xlu2 %1634  ;;  %v1371_v22 = vpop.xlane.xlu1 %1370  ;;  %v1741_v58 = vmul.f32 %v2649_v1, %v4022_v7  ;;  %v1742_v9 = vmul.f32 %v2649_v1, %v4024_v44 }
 0x5e1   : > { %v1439_v5 = vsub.f32 %v4032_v60, %v1371_v22  ;;  %v1440_v29 = vsub.f32 %v4030_v30, %v1371_v22 }
 0x5e2   : > { %2088 = vmatmul.bf16.gmra.mxu1 %v1984_v19  ;;  %v1787_v32 = vpack.c.bf16 %v1741_v58, %v1739_v42  ;;  %v1788_v25 = vpack.c.bf16 %v1742_v9, %v1740_v45 }
 0x5e3   : > { %v4163_v31 = vpop.eup %2650  ;;  %v1555_v39 = vmul.f32 1.442695, %v1439_v5  ;;  %v1557_v33 = vmul.f32 1.442695, %v1440_v29  ;;  %v2706_v5 = vld [vmem:[%s2917_s18] sm:$0xff] }
 0x5e4   : > { %v4165_v4 = vpop.eup %2652  ;;  %1851 = vmatmul.bf16.gmra.mxu3 %v1787_v32  ;;  %1940 = vmatmul.bf16.gmra.mxu0 %v1788_v25 }
 0x5e5   : > { %2654 = vpow2.f32 %v1555_v39  ;;  %v1654_v13 = vadd.f32 %v4165_v4, %v4163_v31 }
 0x5e6   : > { %2656 = vpow2.f32 %v1557_v33 }
 0x5e7   : > { %1655 = vadd.xlane.f32.xlu0 %v1654_v13 }
 0x5e8   : > { %v1374_v7 = vpop.xlane.xlu2 %1373 }
 0x5e9   : > { %v1441_v44 = vsub.f32 %v4044_v20, %v1374_v7  ;;  %v1442_v30 = vsub.f32 %v4042_v54, %v1374_v7 }
 0x5eb   : > { %v4171_v60 = vpop.eup %2654  ;;  %v1559_v21 = vmul.f32 1.442695, %v1441_v44  ;;  %v1561_v38 = vmul.f32 1.442695, %v1442_v30  ;;  %v2707_v30 = vld [vmem:[%s2917_s18 + $0x8] sm:$0xff] }
 0x5ec   : > { %v4173_v26 = vpop.eup %2656 }
 0x5ed   : > { %2658 = vpow2.f32 %v1559_v21  ;;  %v1657_v47 = vadd.f32 %v4173_v26, %v4171_v60 }
 0x5ee   : > { %2660 = vpow2.f32 %v1561_v38 }
 0x5ef   : > { %1658 = vadd.xlane.f32.xlu1 %v1657_v47 }
 0x5f0   : > { %v1377_v43 = vpop.xlane.xlu2 %1376 }
 0x5f1   : > { %v1443_v6 = vsub.f32 %v4053_v14, %v1377_v43  ;;  %v1444_v50 = vsub.f32 %v4048_v15, %v1377_v43 }
 0x5f3   : > { %v4179_v20 = vpop.eup %2658  ;;  %v1563_v54 = vmul.f32 1.442695, %v1443_v6  ;;  %v1565_v49 = vmul.f32 1.442695, %v1444_v50 }
 0x5f4   : > { %v4181_v41 = vpop.eup %2660 }
 0x5f5   : > { %2662 = vpow2.f32 %v1563_v54  ;;  %v1660_v16 = vadd.f32 %v4181_v41, %v4179_v20 }
 0x5f6   : > { %2664 = vpow2.f32 %v1565_v49 }
 0x5f7   : > { %1661 = vadd.xlane.f32.xlu2 %v1660_v16  ;;  %2666 = vrcp.f32 %v1635_v61 }
 0x5fb   : > { %v4185_v53 = vpop.eup %2662 }
 0x5fc   : > { %v4187_v56 = vpop.eup %2664 }
 0x5fd   : > { %v1663_v15 = vadd.f32 %v4187_v56, %v4185_v53  ;;  %v2667_v55 = vpop.eup %2666 }
 0x5fe   : > { %v1743_v58 = vmul.f32 %v2667_v55, %v4034_v18  ;;  %v1744_v45 = vmul.f32 %v2667_v55, %v4036_v37  ;;  %v2708_v55 = vld [vmem:[%s2917_s18 + $0x10] sm:$0xff] }
 0x5ff   : > { %1664 = vadd.xlane.f32.xlu0 %v1663_v15 }
 0x621   : > { %v1921_v14 = vpop.f32.mrf.mxu0 }
 0x627   : > { %v1832_v11 = vpop.f32.mrf.mxu3 }
 0x628   : > { %v1922_v1 = vadd.f32 %v1921_v14, %v1832_v11 }
 0x629   : > { %v1923_v2 = vpop.f32.mrf.mxu0 }
 0x62a   : > { %v1638_v62 = vpop.xlane.xlu0 %1637 }
 0x62b   : > { %2668 = vrcp.f32 %v1638_v62 }
 0x62f   : > { %v1834_v12 = vpop.f32.mrf.mxu3  ;;  %v2074_v35 = vpop.f32.mrf.mxu1 }
 0x630   : > { %v1924_v42 = vadd.f32 %v1923_v2, %v1834_v12  ;;  %v2075_v19 = vadd.f32 %v4195_v24, %v2074_v35 }
 0x631   : > { %v2669_v61 = vpop.eup %2668  ;;  %v1926_v22 = vpop.f32.mrf.mxu0 }
 0x632   : > { %v1985_v9 = vpack.c.bf16 %v1924_v42, %v1922_v1  ;;  %v2154_v29 = vadd.f32 %v2706_v5, %v2075_v19  ;;  %v1641_v32 = vpop.xlane.xlu0 %1640  ;;  %v1745_v25 = vmul.f32 %v2669_v61, %v4085_v51  ;;  %v1746_v39 = vmul.f32 %v2669_v61, %v4087_v27 }
 0x633   : > { %2670 = vrcp.f32 %v1641_v32  ;;  %v2709_v32 = vld [vmem:[%s2917_s18 + $0x18] sm:$0xff] }
 0x634   : > { %2186 = vst [vmem:[%s4205_s19] sm:$0xff] %v2154_v29  ;;  %2093 = vmatmul.bf16.gmra.mxu1 %v1985_v9  ;;  %v1789_v33 = vpack.c.bf16 %v1745_v25, %v1743_v58  ;;  %v1790_v13 = vpack.c.bf16 %v1746_v39, %v1744_v45 }
 0x636   : > { %1856 = vmatmul.bf16.gmra.mxu3 %v1789_v33  ;;  %1945 = vmatmul.bf16.gmra.mxu0 %v1790_v13 }
 0x637   : > { %v1837_v18 = vpop.f32.mrf.mxu3  ;;  %v2076_v37 = vpop.f32.mrf.mxu1 }
 0x638   : > { %v2077_v7 = vadd.f32 %v4195_v24, %v2076_v37  ;;  %v1927_v16 = vadd.f32 %v1926_v22, %v1837_v18 }
 0x639   : > { %v1928_v44 = vpop.f32.mrf.mxu0  ;;  %v2671_v50 = vpop.eup %2670 }
 0x63a   : > { %v2155_v51 = vadd.f32 %v2707_v30, %v2077_v7  ;;  %v1644_v21 = vpop.xlane.xlu1 %1643  ;;  %v1380_v27 = vpop.xlane.xlu0 %1379 }
 0x63b   : > { %2672 = vrcp.f32 %v1644_v21  ;;  %v1445_v38 = vsub.f32 %v4101_v48, %v1380_v27  ;;  %v1446_v47 = vsub.f32 %v4097_v36, %v1380_v27  ;;  %v1747_v48 = vmul.f32 %v2671_v50, %v4093_v46 }
 0x63c   : > { %2187 = vst [vmem:[%s4205_s19 + $0x8] sm:$0xff] %v2155_v51  ;;  %v1748_v36 = vmul.f32 %v2671_v50, %v4095_v23 }
 0x63d   : > { %v1567_v43 = vmul.f32 1.442695, %v1445_v38  ;;  %v1569_v6 = vmul.f32 1.442695, %v1446_v47 }
 0x63f   : > { %2674 = vpow2.f32 %v1567_v43  ;;  %v1839_v54 = vpop.f32.mrf.mxu3  ;;  %v2079_v49 = vpop.f32.mrf.mxu1 }
 0x640   : > { %2676 = vpow2.f32 %v1569_v6  ;;  %v1929_v15 = vadd.f32 %v1928_v44, %v1839_v54  ;;  %v2080_v14 = vadd.f32 %v4195_v24, %v2079_v49 }
 0x641   : > { %v2673_v11 = vpop.eup %2672  ;;  %v1931_v2 = vpop.f32.mrf.mxu0 }
 0x642   : > { %v1986_v62 = vpack.c.bf16 %v1929_v15, %v1927_v16  ;;  %v2156_v12 = vadd.f32 %v2708_v55, %v2080_v14  ;;  %v1647_v35 = vpop.xlane.xlu1 %1646  ;;  %v1383_v1 = vpop.xlane.xlu0 %1382  ;;  %v1749_v42 = vmul.f32 %v2673_v11, %v4109_v10  ;;  %v1750_v19 = vmul.f32 %v2673_v11, %v4111_v8  ;;  %v2710_v16 = vld [vmem:[%s2917_s18 + $0x20] sm:$0xff] }
 0x643   : > { %v1447_v61 = vsub.f32 %v4121_v40, %v1383_v1  ;;  %v1448_v22 = vsub.f32 %v4117_v63, %v1383_v1  ;;  %2678 = vrcp.f32 %v1647_v35 }
 0x644   : > { %2188 = vst [vmem:[%s4205_s19 + $0x10] sm:$0xff] %v2156_v12  ;;  %2098 = vmatmul.bf16.gmra.mxu1 %v1986_v62  ;;  %v1791_v58 = vpack.c.bf16 %v1749_v42, %v1747_v48  ;;  %v1792_v45 = vpack.c.bf16 %v1750_v19, %v1748_v36  ;;  %v2711_v12 = vld [vmem:[%s2917_s18 + $0x28] sm:$0xff] }
 0x645   : > { %v4222_v46 = vpop.eup %2674  ;;  %v1571_v23 = vmul.f32 1.442695, %v1447_v61  ;;  %v1573_v9 = vmul.f32 1.442695, %v1448_v22 }
 0x646   : > { %v4224_v5 = vpop.eup %2676  ;;  %1861 = vmatmul.bf16.gmra.mxu3 %v1791_v58  ;;  %1950 = vmatmul.bf16.gmra.mxu0 %v1792_v45 }
 0x647   : > { %2680 = vpow2.f32 %v1571_v23  ;;  %v1842_v10 = vpop.f32.mrf.mxu3  ;;  %v1666_v8 = vadd.f32 %v4224_v5, %v4222_v46  ;;  %v2081_v63 = vpop.f32.mrf.mxu1 }
 0x648   : > { %2682 = vpow2.f32 %v1573_v9  ;;  %v2082_v40 = vadd.f32 %v4195_v24, %v2081_v63  ;;  %v1932_v47 = vadd.f32 %v1931_v2, %v1842_v10 }
 0x649   : > { %1667 = vadd.xlane.f32.xlu1 %v1666_v8  ;;  %v1933_v29 = vpop.f32.mrf.mxu0  ;;  %v2679_v37 = vpop.eup %2678 }
 0x64a   : > { %v2157_v25 = vadd.f32 %v2709_v32, %v2082_v40  ;;  %v1650_v39 = vpop.xlane.xlu2 %1649  ;;  %v1386_v33 = vpop.xlane.xlu1 %1385  ;;  %v1751_v50 = vmul.f32 %v2679_v37, %v4123_v3  ;;  %v1752_v54 = vmul.f32 %v2679_v37, %v4125_v52  ;;  %v2712_v40 = vld [vmem:[%s2917_s18 + $0x30] sm:$0xff] }
 0x64b   : > { %2684 = vrcp.f32 %v1650_v39  ;;  %v1449_v13 = vsub.f32 %v4143_v57, %v1386_v33  ;;  %v1450_v18 = vsub.f32 %v4137_v59, %v1386_v33 }
 0x64c   : > { %2189 = vst [vmem:[%s4205_s19 + $0x18] sm:$0xff] %v2157_v25 }
 0x64d   : > { %v4233_v7 = vpop.eup %2680  ;;  %v1575_v44 = vmul.f32 1.442695, %v1449_v13  ;;  %v1577_v30 = vmul.f32 1.442695, %v1450_v18 }
 0x64e   : > { %v4235_v51 = vpop.eup %2682 }
 0x64f   : > { %2686 = vpow2.f32 %v1575_v44  ;;  %v1844_v21 = vpop.f32.mrf.mxu3  ;;  %v1669_v27 = vadd.f32 %v4235_v51, %v4233_v7  ;;  %v2084_v38 = vpop.f32.mrf.mxu1  ;;  %v2713_v44 = vld [vmem:[%s2917_s18 + $0x38] sm:$0xff] }
 0x650   : > { %2688 = vpow2.f32 %v1577_v30  ;;  %v1934_v57 = vadd.f32 %v1933_v29, %v1844_v21  ;;  %v2085_v59 = vadd.f32 %v4195_v24, %v2084_v38 }
 0x651   : > { %v2685_v43 = vpop.eup %2684  ;;  %1670 = vadd.xlane.f32.xlu2 %v1669_v27  ;;  %v1936_v6 = vpop.f32.mrf.mxu0 }
 0x652   : > { %v1987_v49 = vpack.c.bf16 %v1934_v57, %v1932_v47  ;;  %v2158_v15 = vadd.f32 %v2710_v16, %v2085_v59  ;;  %v1753_v14 = vmul.f32 %v2685_v43, %v4139_v28  ;;  %v1754_v11 = vmul.f32 %v2685_v43, %v4141_v17  ;;  %v1653_v62 = vpop.xlane.xlu2 %1652 }
 0x653   : > { %2690 = vrcp.f32 %v1653_v62 }
 0x654   : > { %2190 = vst [vmem:[%s4205_s19 + $0x20] sm:$0xff] %v2158_v15  ;;  %2103 = vmatmul.bf16.gmra.mxu1 %v1987_v49  ;;  %v1793_v2 = vpack.c.bf16 %v1753_v14, %v1751_v50  ;;  %v1794_v48 = vpack.c.bf16 %v1754_v11, %v1752_v54 }
 0x655   : > { %v4246_v36 = vpop.eup %2686 }
 0x656   : > { %v4248_v55 = vpop.eup %2688  ;;  %1866 = vmatmul.bf16.gmra.mxu3 %v1793_v2  ;;  %1955 = vmatmul.bf16.gmra.mxu0 %v1794_v48  ;;  %v2714_v2 = vld [vmem:[%s2917_s18 + $0x40] sm:$0xff] }
 0x657   : > { %v1847_v3 = vpop.f32.mrf.mxu3  ;;  %v1672_v52 = vadd.f32 %v4248_v55, %v4246_v36  ;;  %v2086_v28 = vpop.f32.mrf.mxu1 }
 0x658   : > { %v2087_v17 = vadd.f32 %v4195_v24, %v2086_v28  ;;  %v1937_v58 = vadd.f32 %v1936_v6, %v1847_v3  ;;  %v2715_v3 = vld [vmem:[%s2917_s18 + $0x48] sm:$0xff] }
 0x659   : > { %1673 = vadd.xlane.f32.xlu0 %v1672_v52  ;;  %v1938_v42 = vpop.f32.mrf.mxu0  ;;  %v2691_v19 = vpop.eup %2690 }
 0x65a   : > { %v2159_v35 = vadd.f32 %v2711_v12, %v2087_v17  ;;  %v1656_v1 = vpop.xlane.xlu0 %1655  ;;  %v1755_v10 = vmul.f32 %v2691_v19, %v4151_v34  ;;  %v1756_v8 = vmul.f32 %v2691_v19, %v4153_v0 }
 0x65b   : > { %2692 = vrcp.f32 %v1656_v1 }
 0x65c   : > { %2191 = vst [vmem:[%s4205_s19 + $0x28] sm:$0xff] %v2159_v35 }
 0x65f   : > { %v1849_v61 = vpop.f32.mrf.mxu3  ;;  %v2089_v22 = vpop.f32.mrf.mxu1 }
 0x660   : > { %v1939_v45 = vadd.f32 %v1938_v42, %v1849_v61  ;;  %v2090_v23 = vadd.f32 %v4195_v24, %v2089_v22 }
 0x661   : > { %v2693_v9 = vpop.eup %2692  ;;  %v1941_v13 = vpop.f32.mrf.mxu0 }
 0x662   : > { %v1988_v63 = vpack.c.bf16 %v1939_v45, %v1937_v58  ;;  %v2160_v29 = vadd.f32 %v2712_v40, %v2090_v23  ;;  %v1757_v32 = vmul.f32 %v2693_v9, %v4163_v31  ;;  %v1758_v25 = vmul.f32 %v2693_v9, %v4165_v4  ;;  %v1659_v18 = vpop.xlane.xlu1 %1658  ;;  %v2716_v9 = vld [vmem:[%s2917_s18 + $0x50] sm:$0xff] }
 0x663   : > { %2694 = vrcp.f32 %v1659_v18 }
 0x664   : > { %2192 = vst [vmem:[%s4205_s19 + $0x30] sm:$0xff] %v2160_v29  ;;  %2108 = vmatmul.bf16.gmra.mxu1 %v1988_v63  ;;  %v1795_v39 = vpack.c.bf16 %v1757_v32, %v1755_v10  ;;  %v1796_v33 = vpack.c.bf16 %v1758_v25, %v1756_v8 }
 0x666   : > { %1871 = vmatmul.bf16.gmra.mxu3 %v1795_v39  ;;  %1960 = vmatmul.bf16.gmra.mxu0 %v1796_v33  ;;  %v2717_v33 = vld [vmem:[%s2917_s18 + $0x58] sm:$0xff] }
 0x667   : > { %v1852_v34 = vpop.f32.mrf.mxu3  ;;  %v2091_v37 = vpop.f32.mrf.mxu1 }
 0x668   : > { %v2092_v0 = vadd.f32 %v4195_v24, %v2091_v37  ;;  %v1942_v38 = vadd.f32 %v1941_v13, %v1852_v34 }
 0x669   : > { %v2695_v31 = vpop.eup %2694  ;;  %v1943_v4 = vpop.f32.mrf.mxu0 }
 0x66a   : > { %v2161_v30 = vadd.f32 %v2713_v44, %v2092_v0  ;;  %v1662_v21 = vpop.xlane.xlu2 %1661  ;;  %v1759_v59 = vmul.f32 %v2695_v31, %v4171_v60  ;;  %v1760_v50 = vmul.f32 %v2695_v31, %v4173_v26 }
 0x66b   : > { %2696 = vrcp.f32 %v1662_v21 }
 0x66c   : > { %2193 = vst [vmem:[%s4205_s19 + $0x38] sm:$0xff] %v2161_v30 }
 0x66f   : > { %v1854_v27 = vpop.f32.mrf.mxu3 }
 0x670   : > { %v1944_v47 = vadd.f32 %v1943_v4, %v1854_v27 }
 0x671   : > { %v2697_v57 = vpop.eup %2696 }
 0x672   : > { %v1989_v43 = vpack.c.bf16 %v1944_v47, %v1942_v38  ;;  %v1761_v6 = vmul.f32 %v2697_v57, %v4179_v20  ;;  %v1762_v54 = vmul.f32 %v2697_v57, %v4181_v41  ;;  %v1665_v48 = vpop.xlane.xlu0 %1664  ;;  %v2718_v38 = vld [vmem:[%s2917_s18 + $0x60] sm:$0xff] }
 0x673   : > { %2698 = vrcp.f32 %v1665_v48  ;;  %v2720_v48 = vld [vmem:[%s2917_s18 + $0x70] sm:$0xff] }
 0x674   : > { %2113 = vmatmul.bf16.gmra.mxu1 %v1989_v43  ;;  %v1797_v49 = vpack.c.bf16 %v1761_v6, %v1759_v59  ;;  %v1798_v16 = vpack.c.bf16 %v1762_v54, %v1760_v50 }
 0x676   : > { %1876 = vmatmul.bf16.gmra.mxu3 %v1797_v49  ;;  %1965 = vmatmul.bf16.gmra.mxu0 %v1798_v16  ;;  %v2719_v49 = vld [vmem:[%s2917_s18 + $0x68] sm:$0xff] }
 0x679   : > { %v2699_v17 = vpop.eup %2698 }
 0x67a   : > { %v1763_v58 = vmul.f32 %v2699_v17, %v4185_v53  ;;  %v1764_v45 = vmul.f32 %v2699_v17, %v4187_v56 }
 0x6b1   : > { %v2094_v15 = vpop.f32.mrf.mxu1 }
 0x6b2   : > { %v2095_v14 = vadd.f32 %v4195_v24, %v2094_v15 }
 0x6b3   : > { %v1946_v11 = vpop.f32.mrf.mxu0 }
 0x6b4   : > { %v2162_v60 = vadd.f32 %v2714_v2, %v2095_v14 }
 0x6b6   : > { %2194 = vst [vmem:[%s4205_s19 + $0x40] sm:$0xff] %v2162_v60 }
 0x6b9   : > { %v1857_v20 = vpop.f32.mrf.mxu3  ;;  %v2096_v62 = vpop.f32.mrf.mxu1 }
 0x6ba   : > { %v2097_v26 = vadd.f32 %v4195_v24, %v2096_v62  ;;  %v1947_v1 = vadd.f32 %v1946_v11, %v1857_v20 }
 0x6bb   : > { %v1948_v41 = vpop.f32.mrf.mxu0 }
 0x6bc   : > { %v2163_v52 = vadd.f32 %v2715_v3, %v2097_v26  ;;  %v1668_v28 = vpop.xlane.xlu1 %1667  ;;  %v2721_v3 = vld [vmem:[%s2917_s18 + $0x78] sm:$0xff] }
 0x6bd   : > { %2700 = vrcp.f32 %v1668_v28 }
 0x6be   : > { %2195 = vst [vmem:[%s4205_s19 + $0x48] sm:$0xff] %v2163_v52 }
 0x6c1   : > { %v1859_v12 = vpop.f32.mrf.mxu3  ;;  %v2099_v35 = vpop.f32.mrf.mxu1 }
 0x6c2   : > { %v1949_v42 = vadd.f32 %v1948_v41, %v1859_v12  ;;  %v2100_v19 = vadd.f32 %v4195_v24, %v2099_v35 }
 0x6c3   : > { %v2701_v61 = vpop.eup %2700  ;;  %v1951_v22 = vpop.f32.mrf.mxu0 }
 0x6c4   : > { %v1990_v23 = vpack.c.bf16 %v1949_v42, %v1947_v1  ;;  %v2164_v10 = vadd.f32 %v2716_v9, %v2100_v19  ;;  %v1765_v8 = vmul.f32 %v2701_v61, %v4222_v46  ;;  %v1766_v63 = vmul.f32 %v2701_v61, %v4224_v5  ;;  %v1671_v32 = vpop.xlane.xlu2 %1670  ;;  %v2722_v61 = vld [vmem:[%s2917_s18 + $0x80] sm:$0xff] }
 0x6c5   : > { %2702 = vrcp.f32 %v1671_v32 }
 0x6c6   : > { %2196 = vst [vmem:[%s4205_s19 + $0x50] sm:$0xff] %v2164_v10  ;;  %2118 = vmatmul.bf16.gmra.mxu1 %v1990_v23  ;;  %v1799_v40 = vpack.c.bf16 %v1765_v8, %v1763_v58  ;;  %v1800_v29 = vpack.c.bf16 %v1766_v63, %v1764_v45  ;;  %v2723_v10 = vld [vmem:[%s2917_s18 + $0x88] sm:$0xff] }
 0x6c8   : > { %1881 = vmatmul.bf16.gmra.mxu3 %v1799_v40  ;;  %1970 = vmatmul.bf16.gmra.mxu0 %v1800_v29 }
 0x6c9   : > { %v1862_v25 = vpop.f32.mrf.mxu3  ;;  %v2101_v53 = vpop.f32.mrf.mxu1 }
 0x6ca   : > { %v2102_v56 = vadd.f32 %v4195_v24, %v2101_v53  ;;  %v1952_v37 = vadd.f32 %v1951_v22, %v1862_v25 }
 0x6cb   : > { %v1953_v39 = vpop.f32.mrf.mxu0  ;;  %v2703_v5 = vpop.eup %2702 }
 0x6cc   : > { %v2165_v13 = vadd.f32 %v2717_v33, %v2102_v56  ;;  %v1674_v46 = vpop.xlane.xlu0 %1673  ;;  %v1767_v31 = vmul.f32 %v2703_v5, %v4233_v7  ;;  %v1768_v4 = vmul.f32 %v2703_v5, %v4235_v51  ;;  %v2724_v33 = vld [vmem:[%s2917_s18 + $0x90] sm:$0xff] }
 0x6cd   : > { %2704 = vrcp.f32 %v1674_v46 }
 0x6ce   : > { %2197 = vst [vmem:[%s4205_s19 + $0x58] sm:$0xff] %v2165_v13 }
 0x6d1   : > { %v1864_v18 = vpop.f32.mrf.mxu3  ;;  %v2104_v34 = vpop.f32.mrf.mxu1 }
 0x6d2   : > { %v1954_v0 = vadd.f32 %v1953_v39, %v1864_v18  ;;  %v2105_v44 = vadd.f32 %v4195_v24, %v2104_v34  ;;  %v2725_v34 = vld [vmem:[%s2917_s18 + $0x98] sm:$0xff] }
 0x6d3   : > { %v2705_v30 = vpop.eup %2704  ;;  %v1956_v21 = vpop.f32.mrf.mxu0 }
 0x6d4   : > { %v1991_v27 = vpack.c.bf16 %v1954_v0, %v1952_v37  ;;  %v2166_v47 = vadd.f32 %v2718_v38, %v2105_v44  ;;  %v1769_v57 = vmul.f32 %v2705_v30, %v4246_v36  ;;  %v1770_v59 = vmul.f32 %v2705_v30, %v4248_v55  ;;  %v2726_v38 = vld [vmem:[%s2917_s18 + $0xa0] sm:$0xff] }
 0x6d6   : > { %2198 = vst [vmem:[%s4205_s19 + $0x60] sm:$0xff] %v2166_v47  ;;  %2123 = vmatmul.bf16.gmra.mxu1 %v1991_v27  ;;  %v1801_v43 = vpack.c.bf16 %v1769_v57, %v1767_v31  ;;  %v1802_v6 = vpack.c.bf16 %v1770_v59, %v1768_v4 }
 0x6d8   : > { %1886 = vmatmul.bf16.gmra.mxu3 %v1801_v43  ;;  %1975 = vmatmul.bf16.gmra.mxu0 %v1802_v6 }
 0x6d9   : > { %v1867_v50 = vpop.f32.mrf.mxu3  ;;  %v2106_v7 = vpop.f32.mrf.mxu1 }
 0x6da   : > { %v2107_v51 = vadd.f32 %v4195_v24, %v2106_v7  ;;  %v1957_v55 = vadd.f32 %v1956_v21, %v1867_v50  ;;  %v2727_v50 = vld [vmem:[%s2917_s18 + $0xa8] sm:$0xff] }
 0x6db   : > { %v1958_v54 = vpop.f32.mrf.mxu0 }
 0x6dc   : > { %v2167_v16 = vadd.f32 %v2719_v49, %v2107_v51 }
 0x6de   : > { %2199 = vst [vmem:[%s4205_s19 + $0x68] sm:$0xff] %v2167_v16 }
 0x6e1   : > { %v1869_v36 = vpop.f32.mrf.mxu3  ;;  %v2109_v15 = vpop.f32.mrf.mxu1 }
 0x6e2   : > { %v1959_v14 = vadd.f32 %v1958_v54, %v1869_v36  ;;  %v2110_v11 = vadd.f32 %v4195_v24, %v2109_v15 }
 0x6e3   : > { %v1961_v2 = vpop.f32.mrf.mxu0 }
 0x6e4   : > { %v1992_v60 = vpack.c.bf16 %v1959_v14, %v1957_v55  ;;  %v2168_v20 = vadd.f32 %v2720_v48, %v2110_v11  ;;  %v2728_v14 = vld [vmem:[%s2917_s18 + $0xb0] sm:$0xff]  ;;  %v2729_v48 = vld [vmem:[%s2917_s18 + $0xb8] sm:$0xff] }
 0x6e6   : > { %2200 = vst [vmem:[%s4205_s19 + $0x70] sm:$0xff] %v2168_v20  ;;  %2128 = vmatmul.bf16.gmra.mxu1 %v1992_v60 }
 0x6e9   : > { %v1872_v62 = vpop.f32.mrf.mxu3  ;;  %v2111_v26 = vpop.f32.mrf.mxu1 }
 0x6ea   : > { %v2112_v41 = vadd.f32 %v4195_v24, %v2111_v26  ;;  %v1962_v35 = vadd.f32 %v1961_v2, %v1872_v62 }
 0x6eb   : > { %v1963_v28 = vpop.f32.mrf.mxu0 }
 0x6ec   : > { %v2169_v52 = vadd.f32 %v2721_v3, %v2112_v41  ;;  %v2730_v41 = vld [vmem:[%s2917_s18 + $0xc0] sm:$0xff] }
 0x6ee   : > { %2201 = vst [vmem:[%s4205_s19 + $0x78] sm:$0xff] %v2169_v52 }
 0x6f1   : > { %v1874_v17 = vpop.f32.mrf.mxu3  ;;  %v2114_v12 = vpop.f32.mrf.mxu1 }
 0x6f2   : > { %v1964_v1 = vadd.f32 %v1963_v28, %v1874_v17  ;;  %v2115_v42 = vadd.f32 %v4195_v24, %v2114_v12  ;;  %v2731_v17 = vld [vmem:[%s2917_s18 + $0xc8] sm:$0xff] }
 0x6f3   : > { %v1966_v58 = vpop.f32.mrf.mxu0 }
 0x6f4   : > { %v1993_v19 = vpack.c.bf16 %v1964_v1, %v1962_v35  ;;  %v2170_v22 = vadd.f32 %v2722_v61, %v2115_v42  ;;  %v2732_v42 = vld [vmem:[%s2917_s18 + $0xd0] sm:$0xff] }
 0x6f6   : > { %2202 = vst [vmem:[%s4205_s19 + $0x80] sm:$0xff] %v2170_v22  ;;  %2133 = vmatmul.bf16.gmra.mxu1 %v1993_v19 }
 0x6f9   : > { %v1877_v45 = vpop.f32.mrf.mxu3  ;;  %v2116_v23 = vpop.f32.mrf.mxu1 }
 0x6fa   : > { %v2117_v9 = vadd.f32 %v4195_v24, %v2116_v23  ;;  %v1967_v29 = vadd.f32 %v1966_v58, %v1877_v45  ;;  %v2733_v58 = vld [vmem:[%s2917_s18 + $0xd8] sm:$0xff] }
 0x6fb   : > { %v1968_v63 = vpop.f32.mrf.mxu0 }
 0x6fc   : > { %v2171_v8 = vadd.f32 %v2723_v10, %v2117_v9  ;;  %v2734_v10 = vld [vmem:[%s2917_s18 + $0xe0] sm:$0xff] }
 0x6fe   : > { %2203 = vst [vmem:[%s4205_s19 + $0x88] sm:$0xff] %v2171_v8 }
 0x701   : > { %v1879_v40 = vpop.f32.mrf.mxu3 }
 0x702   : > { %v1969_v32 = vadd.f32 %v1968_v63, %v1879_v40 }
 0x704   : > { %v1994_v25 = vpack.c.bf16 %v1969_v32, %v1967_v29  ;;  %v2735_v29 = vld [vmem:[%s2917_s18 + $0xe8] sm:$0xff] }
 0x706   : > { %2138 = vmatmul.bf16.gmra.mxu1 %v1994_v25 }
 0x743   : > { %v2119_v53 = vpop.f32.mrf.mxu1 }
 0x744   : > { %v2120_v56 = vadd.f32 %v4195_v24, %v2119_v53 }
 0x745   : > { %v1971_v39 = vpop.f32.mrf.mxu0 }
 0x746   : > { %v2172_v13 = vadd.f32 %v2724_v33, %v2120_v56  ;;  %v2736_v56 = vld [vmem:[%s2917_s18 + $0xf0] sm:$0xff] }
 0x748   : > { %2204 = vst [vmem:[%s4205_s19 + $0x90] sm:$0xff] %v2172_v13 }
 0x74b   : > { %v1882_v46 = vpop.f32.mrf.mxu3  ;;  %v2121_v5 = vpop.f32.mrf.mxu1 }
 0x74c   : > { %v2122_v18 = vadd.f32 %v4195_v24, %v2121_v5  ;;  %v1972_v21 = vadd.f32 %v1971_v39, %v1882_v46  ;;  %v2737_v46 = vld [vmem:[%s2917_s18 + $0xf8] sm:$0xff] }
 0x74d   : > { %v1973_v0 = vpop.f32.mrf.mxu0 }
 0x74e   : > { %v2173_v37 = vadd.f32 %v2725_v34, %v2122_v18 }
 0x750   : > { %2205 = vst [vmem:[%s4205_s19 + $0x98] sm:$0xff] %v2173_v37 }
 0x753   : > { %v1884_v44 = vpop.f32.mrf.mxu3  ;;  %v2124_v30 = vpop.f32.mrf.mxu1 }
 0x754   : > { %v1974_v31 = vadd.f32 %v1973_v0, %v1884_v44  ;;  %v2125_v4 = vadd.f32 %v4195_v24, %v2124_v30 }
 0x755   : > { %v1976_v57 = vpop.f32.mrf.mxu0 }
 0x756   : > { %v1995_v27 = vpack.c.bf16 %v1974_v31, %v1972_v21  ;;  %v2174_v47 = vadd.f32 %v2726_v38, %v2125_v4 }
 0x758   : > { %2206 = vst [vmem:[%s4205_s19 + $0xa0] sm:$0xff] %v2174_v47  ;;  %2143 = vmatmul.bf16.gmra.mxu1 %v1995_v27 }
 0x75b   : > { %v1887_v59 = vpop.f32.mrf.mxu3  ;;  %v2126_v43 = vpop.f32.mrf.mxu1 }
 0x75c   : > { %v2127_v6 = vadd.f32 %v4195_v24, %v2126_v43  ;;  %v1977_v16 = vadd.f32 %v1976_v57, %v1887_v59 }
 0x75d   : > { %v1978_v51 = vpop.f32.mrf.mxu0 }
 0x75e   : > { %v2175_v7 = vadd.f32 %v2727_v50, %v2127_v6 }
 0x760   : > { %2207 = vst [vmem:[%s4205_s19 + $0xa8] sm:$0xff] %v2175_v7 }
 0x763   : > { %v1889_v54 = vpop.f32.mrf.mxu3  ;;  %v2129_v49 = vpop.f32.mrf.mxu1 }
 0x764   : > { %v1979_v36 = vadd.f32 %v1978_v51, %v1889_v54  ;;  %v2130_v15 = vadd.f32 %v4195_v24, %v2129_v49 }
 0x766   : > { %v1996_v55 = vpack.c.bf16 %v1979_v36, %v1977_v16  ;;  %v2176_v11 = vadd.f32 %v2728_v14, %v2130_v15 }
 0x768   : > { %2208 = vst [vmem:[%s4205_s19 + $0xb0] sm:$0xff] %v2176_v11  ;;  %2148 = vmatmul.bf16.gmra.mxu1 %v1996_v55 }
 0x76b   : > { %v2131_v2 = vpop.f32.mrf.mxu1 }
 0x76c   : > { %v2132_v60 = vadd.f32 %v4195_v24, %v2131_v2 }
 0x76e   : > { %v2177_v20 = vadd.f32 %v2729_v48, %v2132_v60 }
 0x770   : > { %2209 = vst [vmem:[%s4205_s19 + $0xb8] sm:$0xff] %v2177_v20 }
 0x773   : > { %v2134_v62 = vpop.f32.mrf.mxu1 }
 0x774   : > { %v2135_v26 = vadd.f32 %v4195_v24, %v2134_v62 }
 0x776   : > { %v2178_v3 = vadd.f32 %v2730_v41, %v2135_v26 }
 0x778   : > { %2210 = vst [vmem:[%s4205_s19 + $0xc0] sm:$0xff] %v2178_v3 }
 0x77b   : > { %v2136_v52 = vpop.f32.mrf.mxu1 }
 0x77c   : > { %v2137_v28 = vadd.f32 %v4195_v24, %v2136_v52 }
 0x77e   : > { %v2179_v12 = vadd.f32 %v2731_v17, %v2137_v28 }
 0x780   : > { %2211 = vst [vmem:[%s4205_s19 + $0xc8] sm:$0xff] %v2179_v12 }
 0x783   : > { %v2139_v35 = vpop.f32.mrf.mxu1 }
 0x784   : > { %v2140_v1 = vadd.f32 %v4195_v24, %v2139_v35 }
 0x786   : > { %v2180_v19 = vadd.f32 %v2732_v42, %v2140_v1 }
 0x788   : > { %2212 = vst [vmem:[%s4205_s19 + $0xd0] sm:$0xff] %v2180_v19 }
 0x78b   : > { %v2141_v61 = vpop.f32.mrf.mxu1 }
 0x78c   : > { %v2142_v22 = vadd.f32 %v4195_v24, %v2141_v61 }
 0x78e   : > { %v2181_v45 = vadd.f32 %v2733_v58, %v2142_v22 }
 0x790   : > { %2213 = vst [vmem:[%s4205_s19 + $0xd8] sm:$0xff] %v2181_v45 }
 0x7d5   : > { %v2144_v23 = vpop.f32.mrf.mxu1 }
 0x7d6   : > { %v2145_v9 = vadd.f32 %v4195_v24, %v2144_v23 }
 0x7d8   : > { %v2182_v8 = vadd.f32 %v2734_v10, %v2145_v9 }
 0x7da   : > { %2214 = vst [vmem:[%s4205_s19 + $0xe0] sm:$0xff] %v2182_v8 }
 0x7dd   : > { %v2146_v63 = vpop.f32.mrf.mxu1 }
 0x7de   : > { %v2147_v40 = vadd.f32 %v4195_v24, %v2146_v63 }
 0x7e0   : > { %v2183_v32 = vadd.f32 %v2735_v29, %v2147_v40 }
 0x7e2   : > { %2215 = vst [vmem:[%s4205_s19 + $0xe8] sm:$0xff] %v2183_v32 }
 0x7e5   : > { %v2149_v25 = vpop.f32.mrf.mxu1 }
 0x7e6   : > { %v2150_v53 = vadd.f32 %v4195_v24, %v2149_v25 }
 0x7e8   : > { %v2184_v39 = vadd.f32 %v2736_v56, %v2150_v53 }
 0x7ea   : > { %2216 = vst [vmem:[%s4205_s19 + $0xf0] sm:$0xff] %v2184_v39 }
 0x7ed   : > { %v2151_v33 = vpop.f32.mrf.mxu1 }
 0x7ee   : > { %v2152_v13 = vadd.f32 %v4195_v24, %v2151_v33 }
 0x7f0   : > { %v2185_v5 = vadd.f32 %v2737_v46, %v2152_v13 }
 0x7f2   : > { %2217 = vst [vmem:[%s4205_s19 + $0xf8] sm:$0xff] %v2185_v5 }
 0x7f3   : > { %2765 = shalt.err (!%p2762_p3)
}
 0x7f4   : > { %s2802_s18 = smov 128   ;;  %s2803_s10 = smov 8  }
 0x7f5   : > { %2470 = dma.vmem_to_hbm [thread:$0]  (%p2887_p5), %s2232_s24, 4096, %s2234_s25, %s2219_s9, %s2802_s18, %s2802_s18, %s2803_s10  }
 0x7f6 PF: > { %p2476_p4 = scmp.ge.s32.totalorder %s2800_s30, 2  ;;  %s2248_s19 = sand.u32 1, %s2788_s27  }
 0x7f7   : > { %s2249_s23 = scalar_lea.sflag [#allocation3], %s2248_s19 }
 0x7f8   : > { %p2473_p7 = pnand %p2476_p4, %p2891_p6 }
 0x7fa   : > { %p2474_p8 = pneg %p2473_p7 }
 0x7fc   : > { %2783 = dma.done.wait (%p2474_p8), %s2249_s23, 4096  }
 0x7fd   : > { %2785 = vsyncadd (%p2474_p8), %s2249_s23, 4294963200  ;;  %p18_p9 = scmp.ge.s32.totalorder %s2874_s11, 4   ;;  %s4394_s27 = smov %s2792_s28 }
 0x7fe   : > { %s4395_s28 = smov %s2796_s29  ;;  %s4396_s29 = smov %s2885_s14 }
 0x7ff   : > { %s4397_s30 = smov %s2874_s11  ;;  %20 = sbr.rel (!%p18_p9) target bundleno = 3 (0x3), region = 87 }
 0x804   :  { %2255 = vsyncpa [#allocation3], 1 }
 0x805   :  { %2257 = vsyncpa [#allocation3 + $0x1], 1 }

</bundles_post_ra>
